<compile_context>
chip_gen: v6e
topology: v6e:2x2x1
jax: 0.10.0
libtpu: 0.0.40
codegen_flags: <defaults>
</compile_context>

<pallas_src>
import functools

import jax
import jax.numpy as jnp
import numpy as np
from jax.experimental import pallas as pl
from jax.experimental.pallas import tpu as pltpu


# ----------------------------------------------------------------------------
# Pallas kernels
# ----------------------------------------------------------------------------
def _conv_bn_act_kernel(x_ref, w_ref, scale_ref, bias_ref, o_ref, *scratch,
                        KH, KW, stride, dilation, pad, H, W, tile_h, Wo,
                        relu, group):
    """Fused conv2d + folded BatchNorm + optional ReLU for one output row tile.

    x_ref:     (1, H, W, Cin)        unpadded bf16 input (whole feature map,
                                     VMEM-resident across the h grid axis)
    w_ref:     (KH*KW*Cin, TCO)      bf16 weights, taps stacked on K
    scale_ref: (1, TCO)              gamma / sqrt(running_var + eps)   (f32)
    bias_ref:  (1, TCO)              beta - running_mean * scale       (f32)
    o_ref:     (1, tile_h, Wo, TCO)  output row tile
    scratch:   optional (Hp, Wp, Cin) bf16 zero-padded copy of the input
               (only allocated when pad > 0), filled once per (c, n).
    """
    pad_ref = scratch[0] if scratch else None
    Cin = x_ref.shape[-1]
    h_idx = pl.program_id(2)

    if pad_ref is not None:
        # In-kernel zero padding (VMEM-only; no HBM pad round trip).
        @pl.when(h_idx == 0)
        def _():
            pad_ref[...] = jnp.zeros_like(pad_ref)
            pad_ref[pad:pad + H, pad:pad + W, :] = x_ref[0]

    rows = tile_h * Wo
    row_span = (tile_h - 1) * stride + 1
    r0 = pl.multiple_of(h_idx * (tile_h * stride), tile_h * stride)

    def read_band(kh):
        start = r0 + kh * dilation
        if pad_ref is not None:
            band = pad_ref[pl.ds(start, row_span), :, :]
        else:
            band = x_ref[pl.ds(0, 1), pl.ds(start, row_span), :, :][0]
        if stride > 1:
            # TODO(synk): push the stride into the DMA / index_map instead of
            # an in-kernel strided slice (cheaper on the XLU).
            band = band[::stride]
        return band

    taps = []
    for kh in range(KH):                    # static unroll (<= 3)
        band = read_band(kh)                # rows shared by all kw taps
        for kw in range(KW):
            w0 = kw * dilation
            if stride == 1:
                t = band[:, w0:w0 + Wo, :]
            else:
                t = band[:, w0:w0 + (Wo - 1) * stride + 1:stride, :]
            # TODO(synk): for production Wo not a multiple of 8 this reshape
            # relayouts; pad Wo to 8 in-kernel and mask the store.
            taps.append(t.reshape(rows, Cin))

    # Grouped-tap matmuls: contraction depth ~>=256 when Cin is small,
    # per-tap when Cin is already wide; f32 accumulation across groups.
    nt = KH * KW
    acc = None
    for g0 in range(0, nt, group):
        g1 = min(g0 + group, nt)
        lhs = taps[g0] if g1 - g0 == 1 else jnp.concatenate(taps[g0:g1], -1)
        part = jnp.dot(lhs, w_ref[g0 * Cin:g1 * Cin, :],
                       preferred_element_type=jnp.float32)
        acc = part if acc is None else acc + part

    y = acc * scale_ref[...] + bias_ref[...]
    if relu:
        y = jnp.maximum(y, 0.0)
    o_ref[...] = y.reshape(1, tile_h, Wo, -1).astype(o_ref.dtype)


def _tail_fused_kernel(b0_ref, b1_ref, b2_ref, xs_ref,
                       wl0_ref, wl1_ref, wl2_ref, ws_ref,
                       ls_ref, lb_ref, ss_ref, sb_ref,
                       o_ref, *, tile_h, Wo, res_scale):
    """Fused tail: ConvLinear(concat(b0,b1,b2))*res_scale + shortcut(x), ReLU.

    The channel concat is implicit: ConvLinear's weight is split per branch
    and three partial matmuls are summed in-register, so the 6*inter concat
    tensor and the pre-residual output never exist in HBM.
    """
    rows = tile_h * Wo

    def mm(a_ref, w_ref):
        a = a_ref[0].reshape(rows, a_ref.shape[-1])
        return jnp.dot(a, w_ref[...], preferred_element_type=jnp.float32)

    lin = mm(b0_ref, wl0_ref) + mm(b1_ref, wl1_ref) + mm(b2_ref, wl2_ref)
    lin = lin * ls_ref[...] + lb_ref[...]
    short = mm(xs_ref, ws_ref) * ss_ref[...] + sb_ref[...]
    y = jnp.maximum(lin * res_scale + short, 0.0)
    o_ref[...] = y.reshape(1, tile_h, Wo, -1).astype(o_ref.dtype)


# ----------------------------------------------------------------------------
# Helpers
# ----------------------------------------------------------------------------
def _pick_cout_tile(cout):
    """Lane-dense Cout tile, capped at 256 (256-wide MXU on v6e/v7x and >=2
    Cout-tile steps for megacore on v7x).  Tiny test configs fall back to the
    full (sub-128) width."""
    for t in (256, 128):
        if cout % t == 0:
            return t
    return cout


def _pick_h_tile(ho, target=16):
    """Largest divisor of Ho that is <= target output rows per grid step."""
    best = 1
    for t in range(1, min(ho, target) + 1):
        if ho % t == 0:
            best = t
    return best


@functools.lru_cache(maxsize=None)
def _vmem_limit_bytes():
    """Generation-aware scoped-VMEM limit: half of physical VMEM, <= 64 MiB
    (=> 32 MiB on v7x's 64 MiB, 64 MiB on v5e/v6e's 128 MiB)."""
    try:
        info = pltpu.get_tpu_info()
        cap = int(getattr(info, "vmem_capacity_bytes", 0) or 0)
        if cap > 0:
            return min(cap // 2, 64 * 1024 * 1024)
    except Exception:
        pass
    return 32 * 1024 * 1024


def _compiler_params(semantics):
    return pltpu.CompilerParams(dimension_semantics=semantics,
                                vmem_limit_bytes=_vmem_limit_bytes())


# ----------------------------------------------------------------------------
# BasicConv wrapper
# ----------------------------------------------------------------------------
def basic_conv_apply(x_nhwc, packed, *, kernel_size, stride=1, padding=0,
                     dilation=1, relu=True, out_dtype=jnp.bfloat16):
    KH, KW = kernel_size
    N, H, W, Cin = x_nhwc.shape
    Cout = packed["w"].shape[-1]
    assert packed["w"].shape[0] == KH * KW * Cin

    Hp, Wp = H + 2 * padding, W + 2 * padding
    Ho = (Hp - dilation * (KH - 1) - 1) // stride + 1
    Wo = (Wp - dilation * (KW - 1) - 1) // stride + 1

    tco = _pick_cout_tile(Cout)
    tile_h = _pick_h_tile(Ho)
    # Cout-tile axis outermost: the weight slab's block index is constant
    # across the inner (batch, row-tile) axes, so it is DMA'd only once per
    # Cout tile; the (smaller) activation streams instead.
    grid = (Cout // tco, N, Ho // tile_h)

    # Tap-group size so K per matmul is ~>=256 when Cin is narrow.
    group = 1 if Cin >= 256 else min(KH * KW, -(-256 // Cin))

    scratch = [pltpu.VMEM((Hp, Wp, Cin), jnp.bfloat16)] if padding > 0 else []

    kernel = functools.partial(
        _conv_bn_act_kernel, KH=KH, KW=KW, stride=stride, dilation=dilation,
        pad=padding, H=H, W=W, tile_h=tile_h, Wo=Wo, relu=relu, group=group)

    cost = pl.CostEstimate(
        flops=int(2 * N * Ho * Wo * KH * KW * Cin * Cout),
        transcendentals=0,
        bytes_accessed=int(N * H * W * Cin * 2 + KH * KW * Cin * Cout * 2
                           + 2 * Cout * 4
                           + N * Ho * Wo * Cout
                           * jnp.dtype(out_dtype).itemsize))

    return pl.pallas_call(
        kernel,
        out_shape=jax.ShapeDtypeStruct((N, Ho, Wo, Cout), out_dtype),
        grid_spec=pltpu.PrefetchScalarGridSpec(
            num_scalar_prefetch=0,
            grid=grid,
            in_specs=[
                pl.BlockSpec((1, H, W, Cin), lambda c, n, h: (n, 0, 0, 0)),
                pl.BlockSpec((KH * KW * Cin, tco), lambda c, n, h: (0, c)),
                pl.BlockSpec((1, tco), lambda c, n, h: (0, c)),
                pl.BlockSpec((1, tco), lambda c, n, h: (0, c)),
            ],
            out_specs=pl.BlockSpec((1, tile_h, Wo, tco),
                                   lambda c, n, h: (n, h, 0, c)),
            scratch_shapes=scratch,
        ),
        compiler_params=_compiler_params(("parallel", "parallel", "arbitrary")),
        cost_estimate=cost,
    )(x_nhwc.astype(jnp.bfloat16), packed["w"], packed["scale"],
      packed["bias"])


def _tail_fused_apply(b0, b1, b2, xs, cl_packed, sc_packed, *, res_scale):
    N, Ho, Wo, C0 = b0.shape
    C1, C2 = b1.shape[-1], b2.shape[-1]
    Cin = xs.shape[-1]
    Cout = cl_packed["w0"].shape[-1]

    tco = _pick_cout_tile(Cout)
    tile_h = _pick_h_tile(Ho)
    grid = (Cout // tco, N, Ho // tile_h)

    def fmap(c, n, h):        # per-batch feature-map row tiles
        return (n, h, 0, 0)

    def wmap(c, n, h):        # weight / scale slabs tiled on Cout only
        return (0, c)

    kernel = functools.partial(_tail_fused_kernel, tile_h=tile_h, Wo=Wo,
                               res_scale=res_scale)

    cost = pl.CostEstimate(
        flops=int(2 * N * Ho * Wo * (C0 + C1 + C2 + Cin) * Cout),
        transcendentals=0,
        bytes_accessed=int(N * Ho * Wo * (C0 + C1 + C2 + Cin) * 2
                           + (C0 + C1 + C2 + Cin) * Cout * 2
                           + 4 * Cout * 4
                           + N * Ho * Wo * Cout * 4))

    return pl.pallas_call(
        kernel,
        out_shape=jax.ShapeDtypeStruct((N, Ho, Wo, Cout), jnp.float32),
        grid_spec=pltpu.PrefetchScalarGridSpec(
            num_scalar_prefetch=0,
            grid=grid,
            in_specs=[
                pl.BlockSpec((1, tile_h, Wo, C0), fmap),
                pl.BlockSpec((1, tile_h, Wo, C1), fmap),
                pl.BlockSpec((1, tile_h, Wo, C2), fmap),
                pl.BlockSpec((1, tile_h, Wo, Cin), fmap),
                pl.BlockSpec((C0, tco), wmap),
                pl.BlockSpec((C1, tco), wmap),
                pl.BlockSpec((C2, tco), wmap),
                pl.BlockSpec((Cin, tco), wmap),
                pl.BlockSpec((1, tco), wmap),
                pl.BlockSpec((1, tco), wmap),
                pl.BlockSpec((1, tco), wmap),
                pl.BlockSpec((1, tco), wmap),
            ],
            out_specs=pl.BlockSpec((1, tile_h, Wo, tco),
                                   lambda c, n, h: (n, h, 0, c)),
        ),
        compiler_params=_compiler_params(("parallel", "parallel", "parallel")),
        cost_estimate=cost,
    )(b0, b1, b2, xs, cl_packed["w0"], cl_packed["w1"], cl_packed["w2"],
      sc_packed["w"], cl_packed["scale"], cl_packed["bias"],
      sc_packed["scale"], sc_packed["bias"])


# ----------------------------------------------------------------------------
# Deterministic parameter init (conv weight + folded eval-mode BatchNorm)
# ----------------------------------------------------------------------------
def init_basic_conv(key, cin, cout, kh, kw):
    k_w, k_g, k_b, k_m, k_v = jax.random.split(key, 5)
    fan_in = cin * kh * kw
    w = jax.random.normal(k_w, (kh, kw, cin, cout), jnp.float32) / np.sqrt(fan_in)
    gamma = jax.random.uniform(k_g, (cout,), jnp.float32, 0.5, 1.5)
    beta = jax.random.normal(k_b, (cout,), jnp.float32) * 0.1
    running_mean = jax.random.normal(k_m, (cout,), jnp.float32) * 0.1
    running_var = jax.random.uniform(k_v, (cout,), jnp.float32, 0.5, 1.5)
    eps = 1e-5
    scale = gamma / jnp.sqrt(running_var + eps)
    bias = beta - running_mean * scale
    return {"w": w,
            "scale": scale.reshape(1, cout),
            "bias": bias.reshape(1, cout)}


def init_basic_rfb(key, in_planes, out_planes):
    inter = in_planes // 8
    keys = jax.random.split(key, 11)
    return {
        "branch0": [init_basic_conv(keys[0], in_planes, 2 * inter, 1, 1),
                    init_basic_conv(keys[1], 2 * inter, 2 * inter, 3, 3)],
        "branch1": [init_basic_conv(keys[2], in_planes, inter, 1, 1),
                    init_basic_conv(keys[3], inter, 2 * inter, 3, 3),
                    init_basic_conv(keys[4], 2 * inter, 2 * inter, 3, 3)],
        "branch2": [init_basic_conv(keys[5], in_planes, inter, 1, 1),
                    init_basic_conv(keys[6], inter, inter // 2 * 3, 3, 3),
                    init_basic_conv(keys[7], inter // 2 * 3, 2 * inter, 3, 3),
                    init_basic_conv(keys[8], 2 * inter, 2 * inter, 3, 3)],
        "conv_linear": init_basic_conv(keys[9], 6 * inter, out_planes, 1, 1),
        "shortcut": init_basic_conv(keys[10], in_planes, out_planes, 1, 1),
    }


# ----------------------------------------------------------------------------
# One-time weight packing (reshape to (KH*KW*Cin, Cout), bf16 cast, per-branch
# splits for the fused tail) -- done OUTSIDE the jitted forward path.
# ----------------------------------------------------------------------------
def pack_basic_conv(p):
    kh, kw, cin, cout = p["w"].shape
    return {"w": p["w"].reshape(kh * kw * cin, cout).astype(jnp.bfloat16),
            "scale": p["scale"].astype(jnp.float32),
            "bias": p["bias"].astype(jnp.float32)}


def pack_basic_rfb(params):
    packed = {
        "branch0": [pack_basic_conv(p) for p in params["branch0"]],
        "branch1": [pack_basic_conv(p) for p in params["branch1"]],
        "branch2": [pack_basic_conv(p) for p in params["branch2"]],
        "shortcut": pack_basic_conv(params["shortcut"]),
    }
    cl = pack_basic_conv(params["conv_linear"])
    c0 = params["branch0"][-1]["w"].shape[-1]
    c1 = params["branch1"][-1]["w"].shape[-1]
    packed["conv_linear"] = {
        "w0": cl["w"][:c0],
        "w1": cl["w"][c0:c0 + c1],
        "w2": cl["w"][c0 + c1:],
        "scale": cl["scale"],
        "bias": cl["bias"],
    }
    return packed


# ----------------------------------------------------------------------------
# BasicRFB forward (NCHW in / NCHW out, matching the PyTorch module)
# ----------------------------------------------------------------------------
def basic_rfb_apply(packed, x_nchw, *, stride=1, scale=0.1, visual=1):
    x = jnp.transpose(x_nchw, (0, 2, 3, 1)).astype(jnp.bfloat16)  # NCHW->NHWC

    # branch0
    b0 = basic_conv_apply(x, packed["branch0"][0], kernel_size=(1, 1),
                          stride=stride, padding=0, relu=True)
    b0 = basic_conv_apply(b0, packed["branch0"][1], kernel_size=(3, 3),
                          stride=1, padding=visual, dilation=visual,
                          relu=False)
    # branch1
    b1 = basic_conv_apply(x, packed["branch1"][0], kernel_size=(1, 1),
                          stride=1, padding=0, relu=True)
    b1 = basic_conv_apply(b1, packed["branch1"][1], kernel_size=(3, 3),
                          stride=stride, padding=1, relu=True)
    b1 = basic_conv_apply(b1, packed["branch1"][2], kernel_size=(3, 3),
                          stride=1, padding=visual + 1, dilation=visual + 1,
                          relu=False)
    # branch2
    b2 = basic_conv_apply(x, packed["branch2"][0], kernel_size=(1, 1),
                          stride=1, padding=0, relu=True)
    b2 = basic_conv_apply(b2, packed["branch2"][1], kernel_size=(3, 3),
                          stride=1, padding=1, relu=True)
    b2 = basic_conv_apply(b2, packed["branch2"][2], kernel_size=(3, 3),
                          stride=stride, padding=1, relu=True)
    b2 = basic_conv_apply(b2, packed["branch2"][3], kernel_size=(3, 3),
                          stride=1, padding=2 * visual + 1,
                          dilation=2 * visual + 1, relu=False)
    # TODO(synk): fuse each branch's leading 1x1 conv into its following 3x3
    # kernel (1x1 row-band kept in VMEM scratch) to drop three more HBM trips.

    # Fused tail: concat + ConvLinear + shortcut + residual merge + ReLU.
    xs = x if stride == 1 else x[:, ::stride, ::stride, :]
    fused = _tail_fused_apply(b0, b1, b2, xs, packed["conv_linear"],
                              packed["shortcut"], res_scale=scale)
    return jnp.transpose(fused, (0, 3, 1, 2))  # NHWC -> NCHW


# ----------------------------------------------------------------------------
# Pure-JAX reference (f32, HIGHEST precision) for correctness check
# ----------------------------------------------------------------------------
def _conv_ref(x, p, *, kernel_size, stride=1, padding=0, dilation=1, relu=True):
    y = jax.lax.conv_general_dilated(
        x, p["w"], window_strides=(stride, stride),
        padding=((padding, padding), (padding, padding)),
        rhs_dilation=(dilation, dilation),
        dimension_numbers=("NHWC", "HWIO", "NHWC"),
        precision=jax.lax.Precision.HIGHEST)
    y = y * p["scale"].reshape(1, 1, 1, -1) + p["bias"].reshape(1, 1, 1, -1)
    if relu:
        y = jnp.maximum(y, 0.0)
    return y


def basic_rfb_ref(params, x_nchw, *, stride=1, scale=0.1, visual=1):
    x = jnp.transpose(x_nchw, (0, 2, 3, 1))
    b0 = _conv_ref(x, params["branch0"][0], kernel_size=(1, 1), stride=stride)
    b0 = _conv_ref(b0, params["branch0"][1], kernel_size=(3, 3), padding=visual,
                   dilation=visual, relu=False)
    b1 = _conv_ref(x, params["branch1"][0], kernel_size=(1, 1))
    b1 = _conv_ref(b1, params["branch1"][1], kernel_size=(3, 3), stride=stride,
                   padding=1)
    b1 = _conv_ref(b1, params["branch1"][2], kernel_size=(3, 3),
                   padding=visual + 1, dilation=visual + 1, relu=False)
    b2 = _conv_ref(x, params["branch2"][0], kernel_size=(1, 1))
    b2 = _conv_ref(b2, params["branch2"][1], kernel_size=(3, 3), padding=1)
    b2 = _conv_ref(b2, params["branch2"][2], kernel_size=(3, 3), stride=stride,
                   padding=1)
    b2 = _conv_ref(b2, params["branch2"][3], kernel_size=(3, 3),
                   padding=2 * visual + 1, dilation=2 * visual + 1, relu=False)
    cat = jnp.concatenate([b0, b1, b2], axis=-1)
    out = _conv_ref(cat, params["conv_linear"], kernel_size=(1, 1), relu=False)
    short = _conv_ref(x, params["shortcut"], kernel_size=(1, 1), stride=stride,
                      relu=False)
    y = jnp.maximum(out * scale + short, 0.0)
    return jnp.transpose(y, (0, 3, 1, 2))


# ----------------------------------------------------------------------------
if __name__ == "__main__":
    key = jax.random.PRNGKey(0)
    k_param, k_x = jax.random.split(key)

    # Small shapes consistent with BasicRFB: in_planes must be divisible by 8.
    N, C, H, W = 2, 32, 8, 8
    out_planes = 32

    params = init_basic_rfb(k_param, C, out_planes)
    packed = pack_basic_rfb(params)          # one-time weight packing
    x = jax.random.normal(k_x, (N, C, H, W), jnp.float32)

    fwd = jax.jit(functools.partial(basic_rfb_apply, stride=1, scale=0.1,
                                    visual=1))
    y = jax.block_until_ready(fwd(packed, x))

    y_ref = jax.block_until_ready(
        basic_rfb_ref(params, x, stride=1, scale=0.1, visual=1))
    np.testing.assert_allclose(np.asarray(y), np.asarray(y_ref),
                               rtol=2e-2, atol=2e-2)
    assert y.shape == (N, out_planes, H, W) and y.dtype == jnp.float32

    print("KERNEL_OK")
</pallas_src>

<mosaic_0001>
module attributes {stable_mosaic.version = 11 : i64} {
  func.func @_conv_bn_act_kernel(%arg0: i32, %arg1: i32, %arg2: i32, %arg3: memref<1x8x8x32xbf16, #tpu.memory_space<vmem>>, %arg4: memref<32x4xbf16, #tpu.memory_space<vmem>>, %arg5: memref<1x4xf32, #tpu.memory_space<vmem>>, %arg6: memref<1x4xf32, #tpu.memory_space<vmem>>, %arg7: memref<1x8x8x4xbf16, #tpu.memory_space<vmem>>) attributes {dimension_semantics = [#tpu.dimension_semantics<parallel>, #tpu.dimension_semantics<parallel>, #tpu.dimension_semantics<arbitrary>], iteration_bounds = array<i64: 1, 2, 1>, scalar_prefetch = 0 : i64, scratch_operands = 0 : i64, tpu.core_type = #tpu.core_type<tc>, window_params = [{transform_indices = @transform_0, window_bounds = array<i64: 1, 8, 8, 32>}, {transform_indices = @transform_1, window_bounds = array<i64: 32, 4>}, {transform_indices = @transform_2, window_bounds = array<i64: 1, 4>}, {transform_indices = @transform_3, window_bounds = array<i64: 1, 4>}, {transform_indices = @transform_4, window_bounds = array<i64: 1, 8, 8, 4>}]} {
    %c8_i32 = arith.constant 8 : i32
    %0 = arith.muli %arg2, %c8_i32 : i32
    %1 = tpu.assume_multiple %0, 8 : i32
    %c0_i32 = arith.constant 0 : i32
    %2 = arith.addi %1, %c0_i32 : i32
    %c0 = arith.constant 0 : index
    %3 = arith.index_cast %2 : i32 to index
    %c0_0 = arith.constant 0 : index
    %c0_1 = arith.constant 0 : index
    %4 = vector.load %arg3[%c0, %3, %c0_0, %c0_1] : memref<1x8x8x32xbf16, #tpu.memory_space<vmem>>, vector<1x8x8x32xbf16>
    %5 = vector.shape_cast %4 : vector<1x8x8x32xbf16> to vector<8x8x32xbf16>
    %6 = vector.shape_cast %5 : vector<8x8x32xbf16> to vector<64x32xbf16>
    %c0_2 = arith.constant 0 : index
    %c0_3 = arith.constant 0 : index
    %7 = vector.load %arg4[%c0_2, %c0_3] : memref<32x4xbf16, #tpu.memory_space<vmem>>, vector<32x4xbf16>
    %cst = arith.constant dense<0.000000e+00> : vector<64x4xf32>
    %8 = tpu.matmul %6, %7, %cst {dimension_numbers = #tpu.dot_dimension_numbers<[1], [0], [0], [1], [0, 0, 1, 1], [], []>} : vector<64x32xbf16>, vector<32x4xbf16>, vector<64x4xf32> -> vector<64x4xf32>
    %c0_4 = arith.constant 0 : index
    %c0_5 = arith.constant 0 : index
    %9 = vector.load %arg5[%c0_4, %c0_5] : memref<1x4xf32, #tpu.memory_space<vmem>>, vector<1x4xf32>
    %10 = vector.broadcast %9 : vector<1x4xf32> to vector<64x4xf32>
    %11 = arith.mulf %8, %10 : vector<64x4xf32>
    %c0_6 = arith.constant 0 : index
    %c0_7 = arith.constant 0 : index
    %12 = vector.load %arg6[%c0_6, %c0_7] : memref<1x4xf32, #tpu.memory_space<vmem>>, vector<1x4xf32>
    %13 = vector.broadcast %12 : vector<1x4xf32> to vector<64x4xf32>
    %14 = arith.addf %11, %13 : vector<64x4xf32>
    %cst_8 = arith.constant 0.000000e+00 : f32
    %15 = vector.broadcast %cst_8 : f32 to vector<64x4xf32>
    %16 = arith.maximumf %14, %15 : vector<64x4xf32>
    %17 = vector.shape_cast %16 : vector<64x4xf32> to vector<1x8x8x4xf32>
    %18 = arith.truncf %17 : vector<1x8x8x4xf32> to vector<1x8x8x4xbf16>
    %c0_9 = arith.constant 0 : index
    %c0_10 = arith.constant 0 : index
    %c0_11 = arith.constant 0 : index
    %c0_12 = arith.constant 0 : index
    %19 = vector.load %arg7[%c0_9, %c0_10, %c0_11, %c0_12] : memref<1x8x8x4xbf16, #tpu.memory_space<vmem>>, vector<1x8x8x4xbf16>
    tpu.vector_store %arg7[%c0_9, %c0_10, %c0_11, %c0_12], %18 {strides = array<i32>} : memref<1x8x8x4xbf16, #tpu.memory_space<vmem>>, vector<1x8x8x4xbf16>,
    return
  }
  func.func @transform_0(%arg0: i32, %arg1: i32, %arg2: i32) -> (i32, i32, i32, i32) {
    %c0_i32 = arith.constant 0 : i32
    %c0_i32_0 = arith.constant 0 : i32
    %c0_i32_1 = arith.constant 0 : i32
    %c0_i32_2 = arith.constant 0 : i32
    return %arg1, %c0_i32, %c0_i32_0, %c0_i32_1 : i32, i32, i32, i32
  }
  func.func @transform_1(%arg0: i32, %arg1: i32, %arg2: i32) -> (i32, i32) {
    %c0_i32 = arith.constant 0 : i32
    %c0_i32_0 = arith.constant 0 : i32
    return %c0_i32, %arg0 : i32, i32
  }
  func.func @transform_2(%arg0: i32, %arg1: i32, %arg2: i32) -> (i32, i32) {
    %c0_i32 = arith.constant 0 : i32
    %c0_i32_0 = arith.constant 0 : i32
    return %c0_i32, %arg0 : i32, i32
  }
  func.func @transform_3(%arg0: i32, %arg1: i32, %arg2: i32) -> (i32, i32) {
    %c0_i32 = arith.constant 0 : i32
    %c0_i32_0 = arith.constant 0 : i32
    return %c0_i32, %arg0 : i32, i32
  }
  func.func @transform_4(%arg0: i32, %arg1: i32, %arg2: i32) -> (i32, i32, i32, i32) {
    %c0_i32 = arith.constant 0 : i32
    %c0_i32_0 = arith.constant 0 : i32
    return %arg1, %arg2, %c0_i32, %arg0 : i32, i32, i32, i32
  }
}

module attributes {stable_mosaic.version = 11 : i64} {
  func.func @_conv_bn_act_kernel(%arg0: i32, %arg1: i32, %arg2: i32, %arg3: memref<1x8x8x4xbf16, #tpu.memory_space<vmem>>, %arg4: memref<36x6xbf16, #tpu.memory_space<vmem>>, %arg5: memref<1x6xf32, #tpu.memory_space<vmem>>, %arg6: memref<1x6xf32, #tpu.memory_space<vmem>>, %arg7: memref<1x8x8x6xbf16, #tpu.memory_space<vmem>>, %arg8: memref<10x10x4xbf16, #tpu.memory_space<vmem>>) attributes {dimension_semantics = [#tpu.dimension_semantics<parallel>, #tpu.dimension_semantics<parallel>, #tpu.dimension_semantics<arbitrary>], iteration_bounds = array<i64: 1, 2, 1>, scalar_prefetch = 0 : i64, scratch_operands = 1 : i64, tpu.core_type = #tpu.core_type<tc>, window_params = [{transform_indices = @transform_0, window_bounds = array<i64: 1, 8, 8, 4>}, {transform_indices = @transform_1, window_bounds = array<i64: 36, 6>}, {transform_indices = @transform_2, window_bounds = array<i64: 1, 6>}, {transform_indices = @transform_3, window_bounds = array<i64: 1, 6>}, {transform_indices = @transform_4, window_bounds = array<i64: 1, 8, 8, 6>}]} {
    %c0_i32 = arith.constant 0 : i32
    %0 = arith.cmpi eq, %arg2, %c0_i32 : i32
    %1 = arith.extui %0 : i1 to i32
    %c0_i32_0 = arith.constant 0 : i32
    %2 = arith.cmpi ne, %1, %c0_i32_0 : i32
    scf.if %2 {
      %cst_18 = arith.constant 0.000000e+00 : bf16
      %46 = vector.broadcast %cst_18 : bf16 to vector<10x10x4xbf16>
      %c0_19 = arith.constant 0 : index
      %c0_20 = arith.constant 0 : index
      %c0_21 = arith.constant 0 : index
      %47 = vector.load %arg8[%c0_19, %c0_20, %c0_21] : memref<10x10x4xbf16, #tpu.memory_space<vmem>>, vector<10x10x4xbf16>
      tpu.vector_store %arg8[%c0_19, %c0_20, %c0_21], %46 {strides = array<i32>} : memref<10x10x4xbf16, #tpu.memory_space<vmem>>, vector<10x10x4xbf16>,
      %c0_22 = arith.constant 0 : index
      %c0_23 = arith.constant 0 : index
      %c0_24 = arith.constant 0 : index
      %c0_25 = arith.constant 0 : index
      %48 = vector.load %arg3[%c0_22, %c0_23, %c0_24, %c0_25] : memref<1x8x8x4xbf16, #tpu.memory_space<vmem>>, vector<1x8x8x4xbf16>
      %49 = vector.shape_cast %48 : vector<1x8x8x4xbf16> to vector<8x8x4xbf16>
      %c1 = arith.constant 1 : index
      %c1_26 = arith.constant 1 : index
      %c0_27 = arith.constant 0 : index
      %50 = vector.load %arg8[%c1, %c1_26, %c0_27] : memref<10x10x4xbf16, #tpu.memory_space<vmem>>, vector<8x8x4xbf16>
      tpu.vector_store %arg8[%c1, %c1_26, %c0_27], %49 {strides = array<i32>} : memref<10x10x4xbf16, #tpu.memory_space<vmem>>, vector<8x8x4xbf16>,
    } else {
    }
    %c8_i32 = arith.constant 8 : i32
    %3 = arith.muli %arg2, %c8_i32 : i32
    %4 = tpu.assume_multiple %3, 8 : i32
    %c0_i32_1 = arith.constant 0 : i32
    %5 = arith.addi %4, %c0_i32_1 : i32
    %6 = arith.index_cast %5 : i32 to index
    %c0 = arith.constant 0 : index
    %c0_2 = arith.constant 0 : index
    %7 = vector.load %arg8[%6, %c0, %c0_2] : memref<10x10x4xbf16, #tpu.memory_space<vmem>>, vector<8x10x4xbf16>
    %8 = vector.extract_strided_slice %7 {offsets = [0, 0, 0], sizes = [8, 8, 4], strides = [1, 1, 1]} : vector<8x10x4xbf16> to vector<8x8x4xbf16>
    %9 = vector.shape_cast %8 : vector<8x8x4xbf16> to vector<64x4xbf16>
    %10 = vector.extract_strided_slice %7 {offsets = [0, 1, 0], sizes = [8, 8, 4], strides = [1, 1, 1]} : vector<8x10x4xbf16> to vector<8x8x4xbf16>
    %11 = vector.shape_cast %10 : vector<8x8x4xbf16> to vector<64x4xbf16>
    %12 = vector.extract_strided_slice %7 {offsets = [0, 2, 0], sizes = [8, 8, 4], strides = [1, 1, 1]} : vector<8x10x4xbf16> to vector<8x8x4xbf16>
    %13 = vector.shape_cast %12 : vector<8x8x4xbf16> to vector<64x4xbf16>
    %c1_i32 = arith.constant 1 : i32
    %14 = arith.addi %4, %c1_i32 : i32
    %15 = arith.index_cast %14 : i32 to index
    %c0_3 = arith.constant 0 : index
    %c0_4 = arith.constant 0 : index
    %16 = vector.load %arg8[%15, %c0_3, %c0_4] : memref<10x10x4xbf16, #tpu.memory_space<vmem>>, vector<8x10x4xbf16>
    %17 = vector.extract_strided_slice %16 {offsets = [0, 0, 0], sizes = [8, 8, 4], strides = [1, 1, 1]} : vector<8x10x4xbf16> to vector<8x8x4xbf16>
    %18 = vector.shape_cast %17 : vector<8x8x4xbf16> to vector<64x4xbf16>
    %19 = vector.extract_strided_slice %16 {offsets = [0, 1, 0], sizes = [8, 8, 4], strides = [1, 1, 1]} : vector<8x10x4xbf16> to vector<8x8x4xbf16>
    %20 = vector.shape_cast %19 : vector<8x8x4xbf16> to vector<64x4xbf16>
    %21 = vector.extract_strided_slice %16 {offsets = [0, 2, 0], sizes = [8, 8, 4], strides = [1, 1, 1]} : vector<8x10x4xbf16> to vector<8x8x4xbf16>
    %22 = vector.shape_cast %21 : vector<8x8x4xbf16> to vector<64x4xbf16>
    %c2_i32 = arith.constant 2 : i32
    %23 = arith.addi %4, %c2_i32 : i32
    %24 = arith.index_cast %23 : i32 to index
    %c0_5 = arith.constant 0 : index
    %c0_6 = arith.constant 0 : index
    %25 = vector.load %arg8[%24, %c0_5, %c0_6] : memref<10x10x4xbf16, #tpu.memory_space<vmem>>, vector<8x10x4xbf16>
    %26 = vector.extract_strided_slice %25 {offsets = [0, 0, 0], sizes = [8, 8, 4], strides = [1, 1, 1]} : vector<8x10x4xbf16> to vector<8x8x4xbf16>
    %27 = vector.shape_cast %26 : vector<8x8x4xbf16> to vector<64x4xbf16>
    %28 = vector.extract_strided_slice %25 {offsets = [0, 1, 0], sizes = [8, 8, 4], strides = [1, 1, 1]} : vector<8x10x4xbf16> to vector<8x8x4xbf16>
    %29 = vector.shape_cast %28 : vector<8x8x4xbf16> to vector<64x4xbf16>
    %30 = vector.extract_strided_slice %25 {offsets = [0, 2, 0], sizes = [8, 8, 4], strides = [1, 1, 1]} : vector<8x10x4xbf16> to vector<8x8x4xbf16>
    %31 = vector.shape_cast %30 : vector<8x8x4xbf16> to vector<64x4xbf16>
    %32 = tpu.concatenate %9, %11, %13, %18, %20, %22, %27, %29, %31 in 1 : vector<64x4xbf16>, vector<64x4xbf16>, vector<64x4xbf16>, vector<64x4xbf16>, vector<64x4xbf16>, vector<64x4xbf16>, vector<64x4xbf16>, vector<64x4xbf16>, vector<64x4xbf16> -> vector<64x36xbf16>
    %c0_7 = arith.constant 0 : index
    %c0_8 = arith.constant 0 : index
    %33 = vector.load %arg4[%c0_7, %c0_8] : memref<36x6xbf16, #tpu.memory_space<vmem>>, vector<36x6xbf16>
    %cst = arith.constant dense<0.000000e+00> : vector<64x6xf32>
    %34 = tpu.matmul %32, %33, %cst {dimension_numbers = #tpu.dot_dimension_numbers<[1], [0], [0], [1], [0, 0, 1, 1], [], []>} : vector<64x36xbf16>, vector<36x6xbf16>, vector<64x6xf32> -> vector<64x6xf32>
    %c0_9 = arith.constant 0 : index
    %c0_10 = arith.constant 0 : index
    %35 = vector.load %arg5[%c0_9, %c0_10] : memref<1x6xf32, #tpu.memory_space<vmem>>, vector<1x6xf32>
    %36 = vector.broadcast %35 : vector<1x6xf32> to vector<64x6xf32>
    %37 = arith.mulf %34, %36 : vector<64x6xf32>
    %c0_11 = arith.constant 0 : index
    %c0_12 = arith.constant 0 : index
    %38 = vector.load %arg6[%c0_11, %c0_12] : memref<1x6xf32, #tpu.memory_space<vmem>>, vector<1x6xf32>
    %39 = vector.broadcast %38 : vector<1x6xf32> to vector<64x6xf32>
    %40 = arith.addf %37, %39 : vector<64x6xf32>
    %cst_13 = arith.constant 0.000000e+00 : f32
    %41 = vector.broadcast %cst_13 : f32 to vector<64x6xf32>
    %42 = arith.maximumf %40, %41 : vector<64x6xf32>
    %43 = vector.shape_cast %42 : vector<64x6xf32> to vector<1x8x8x6xf32>
    %44 = arith.truncf %43 : vector<1x8x8x6xf32> to vector<1x8x8x6xbf16>
    %c0_14 = arith.constant 0 : index
    %c0_15 = arith.constant 0 : index
    %c0_16 = arith.constant 0 : index
    %c0_17 = arith.constant 0 : index
    %45 = vector.load %arg7[%c0_14, %c0_15, %c0_16, %c0_17] : memref<1x8x8x6xbf16, #tpu.memory_space<vmem>>, vector<1x8x8x6xbf16>
    tpu.vector_store %arg7[%c0_14, %c0_15, %c0_16, %c0_17], %44 {strides = array<i32>} : memref<1x8x8x6xbf16, #tpu.memory_space<vmem>>, vector<1x8x8x6xbf16>,
    return
  }
  func.func @transform_0(%arg0: i32, %arg1: i32, %arg2: i32) -> (i32, i32, i32, i32) {
    %c0_i32 = arith.constant 0 : i32
    %c0_i32_0 = arith.constant 0 : i32
    %c0_i32_1 = arith.constant 0 : i32
    %c0_i32_2 = arith.constant 0 : i32
    return %arg1, %c0_i32, %c0_i32_0, %c0_i32_1 : i32, i32, i32, i32
  }
  func.func @transform_1(%arg0: i32, %arg1: i32, %arg2: i32) -> (i32, i32) {
    %c0_i32 = arith.constant 0 : i32
    %c0_i32_0 = arith.constant 0 : i32
    return %c0_i32, %arg0 : i32, i32
  }
  func.func @transform_2(%arg0: i32, %arg1: i32, %arg2: i32) -> (i32, i32) {
    %c0_i32 = arith.constant 0 : i32
    %c0_i32_0 = arith.constant 0 : i32
    return %c0_i32, %arg0 : i32, i32
  }
  func.func @transform_3(%arg0: i32, %arg1: i32, %arg2: i32) -> (i32, i32) {
    %c0_i32 = arith.constant 0 : i32
    %c0_i32_0 = arith.constant 0 : i32
    return %c0_i32, %arg0 : i32, i32
  }
  func.func @transform_4(%arg0: i32, %arg1: i32, %arg2: i32) -> (i32, i32, i32, i32) {
    %c0_i32 = arith.constant 0 : i32
    %c0_i32_0 = arith.constant 0 : i32
    return %arg1, %arg2, %c0_i32, %arg0 : i32, i32, i32, i32
  }
}

module attributes {stable_mosaic.version = 11 : i64} {
  func.func @_conv_bn_act_kernel(%arg0: i32, %arg1: i32, %arg2: i32, %arg3: memref<1x8x8x6xbf16, #tpu.memory_space<vmem>>, %arg4: memref<54x8xbf16, #tpu.memory_space<vmem>>, %arg5: memref<1x8xf32, #tpu.memory_space<vmem>>, %arg6: memref<1x8xf32, #tpu.memory_space<vmem>>, %arg7: memref<1x8x8x8xbf16, #tpu.memory_space<vmem>>, %arg8: memref<10x10x6xbf16, #tpu.memory_space<vmem>>) attributes {dimension_semantics = [#tpu.dimension_semantics<parallel>, #tpu.dimension_semantics<parallel>, #tpu.dimension_semantics<arbitrary>], iteration_bounds = array<i64: 1, 2, 1>, scalar_prefetch = 0 : i64, scratch_operands = 1 : i64, tpu.core_type = #tpu.core_type<tc>, window_params = [{transform_indices = @transform_0, window_bounds = array<i64: 1, 8, 8, 6>}, {transform_indices = @transform_1, window_bounds = array<i64: 54, 8>}, {transform_indices = @transform_2, window_bounds = array<i64: 1, 8>}, {transform_indices = @transform_3, window_bounds = array<i64: 1, 8>}, {transform_indices = @transform_4, window_bounds = array<i64: 1, 8, 8, 8>}]} {
    %c0_i32 = arith.constant 0 : i32
    %0 = arith.cmpi eq, %arg2, %c0_i32 : i32
    %1 = arith.extui %0 : i1 to i32
    %c0_i32_0 = arith.constant 0 : i32
    %2 = arith.cmpi ne, %1, %c0_i32_0 : i32
    scf.if %2 {
      %cst_18 = arith.constant 0.000000e+00 : bf16
      %46 = vector.broadcast %cst_18 : bf16 to vector<10x10x6xbf16>
      %c0_19 = arith.constant 0 : index
      %c0_20 = arith.constant 0 : index
      %c0_21 = arith.constant 0 : index
      %47 = vector.load %arg8[%c0_19, %c0_20, %c0_21] : memref<10x10x6xbf16, #tpu.memory_space<vmem>>, vector<10x10x6xbf16>
      tpu.vector_store %arg8[%c0_19, %c0_20, %c0_21], %46 {strides = array<i32>} : memref<10x10x6xbf16, #tpu.memory_space<vmem>>, vector<10x10x6xbf16>,
      %c0_22 = arith.constant 0 : index
      %c0_23 = arith.constant 0 : index
      %c0_24 = arith.constant 0 : index
      %c0_25 = arith.constant 0 : index
      %48 = vector.load %arg3[%c0_22, %c0_23, %c0_24, %c0_25] : memref<1x8x8x6xbf16, #tpu.memory_space<vmem>>, vector<1x8x8x6xbf16>
      %49 = vector.shape_cast %48 : vector<1x8x8x6xbf16> to vector<8x8x6xbf16>
      %c1 = arith.constant 1 : index
      %c1_26 = arith.constant 1 : index
      %c0_27 = arith.constant 0 : index
      %50 = vector.load %arg8[%c1, %c1_26, %c0_27] : memref<10x10x6xbf16, #tpu.memory_space<vmem>>, vector<8x8x6xbf16>
      tpu.vector_store %arg8[%c1, %c1_26, %c0_27], %49 {strides = array<i32>} : memref<10x10x6xbf16, #tpu.memory_space<vmem>>, vector<8x8x6xbf16>,
    } else {
    }
    %c8_i32 = arith.constant 8 : i32
    %3 = arith.muli %arg2, %c8_i32 : i32
    %4 = tpu.assume_multiple %3, 8 : i32
    %c0_i32_1 = arith.constant 0 : i32
    %5 = arith.addi %4, %c0_i32_1 : i32
    %6 = arith.index_cast %5 : i32 to index
    %c0 = arith.constant 0 : index
    %c0_2 = arith.constant 0 : index
    %7 = vector.load %arg8[%6, %c0, %c0_2] : memref<10x10x6xbf16, #tpu.memory_space<vmem>>, vector<8x10x6xbf16>
    %8 = vector.extract_strided_slice %7 {offsets = [0, 0, 0], sizes = [8, 8, 6], strides = [1, 1, 1]} : vector<8x10x6xbf16> to vector<8x8x6xbf16>
    %9 = vector.shape_cast %8 : vector<8x8x6xbf16> to vector<64x6xbf16>
    %10 = vector.extract_strided_slice %7 {offsets = [0, 1, 0], sizes = [8, 8, 6], strides = [1, 1, 1]} : vector<8x10x6xbf16> to vector<8x8x6xbf16>
    %11 = vector.shape_cast %10 : vector<8x8x6xbf16> to vector<64x6xbf16>
    %12 = vector.extract_strided_slice %7 {offsets = [0, 2, 0], sizes = [8, 8, 6], strides = [1, 1, 1]} : vector<8x10x6xbf16> to vector<8x8x6xbf16>
    %13 = vector.shape_cast %12 : vector<8x8x6xbf16> to vector<64x6xbf16>
    %c1_i32 = arith.constant 1 : i32
    %14 = arith.addi %4, %c1_i32 : i32
    %15 = arith.index_cast %14 : i32 to index
    %c0_3 = arith.constant 0 : index
    %c0_4 = arith.constant 0 : index
    %16 = vector.load %arg8[%15, %c0_3, %c0_4] : memref<10x10x6xbf16, #tpu.memory_space<vmem>>, vector<8x10x6xbf16>
    %17 = vector.extract_strided_slice %16 {offsets = [0, 0, 0], sizes = [8, 8, 6], strides = [1, 1, 1]} : vector<8x10x6xbf16> to vector<8x8x6xbf16>
    %18 = vector.shape_cast %17 : vector<8x8x6xbf16> to vector<64x6xbf16>
    %19 = vector.extract_strided_slice %16 {offsets = [0, 1, 0], sizes = [8, 8, 6], strides = [1, 1, 1]} : vector<8x10x6xbf16> to vector<8x8x6xbf16>
    %20 = vector.shape_cast %19 : vector<8x8x6xbf16> to vector<64x6xbf16>
    %21 = vector.extract_strided_slice %16 {offsets = [0, 2, 0], sizes = [8, 8, 6], strides = [1, 1, 1]} : vector<8x10x6xbf16> to vector<8x8x6xbf16>
    %22 = vector.shape_cast %21 : vector<8x8x6xbf16> to vector<64x6xbf16>
    %c2_i32 = arith.constant 2 : i32
    %23 = arith.addi %4, %c2_i32 : i32
    %24 = arith.index_cast %23 : i32 to index
    %c0_5 = arith.constant 0 : index
    %c0_6 = arith.constant 0 : index
    %25 = vector.load %arg8[%24, %c0_5, %c0_6] : memref<10x10x6xbf16, #tpu.memory_space<vmem>>, vector<8x10x6xbf16>
    %26 = vector.extract_strided_slice %25 {offsets = [0, 0, 0], sizes = [8, 8, 6], strides = [1, 1, 1]} : vector<8x10x6xbf16> to vector<8x8x6xbf16>
    %27 = vector.shape_cast %26 : vector<8x8x6xbf16> to vector<64x6xbf16>
    %28 = vector.extract_strided_slice %25 {offsets = [0, 1, 0], sizes = [8, 8, 6], strides = [1, 1, 1]} : vector<8x10x6xbf16> to vector<8x8x6xbf16>
    %29 = vector.shape_cast %28 : vector<8x8x6xbf16> to vector<64x6xbf16>
    %30 = vector.extract_strided_slice %25 {offsets = [0, 2, 0], sizes = [8, 8, 6], strides = [1, 1, 1]} : vector<8x10x6xbf16> to vector<8x8x6xbf16>
    %31 = vector.shape_cast %30 : vector<8x8x6xbf16> to vector<64x6xbf16>
    %32 = tpu.concatenate %9, %11, %13, %18, %20, %22, %27, %29, %31 in 1 : vector<64x6xbf16>, vector<64x6xbf16>, vector<64x6xbf16>, vector<64x6xbf16>, vector<64x6xbf16>, vector<64x6xbf16>, vector<64x6xbf16>, vector<64x6xbf16>, vector<64x6xbf16> -> vector<64x54xbf16>
    %c0_7 = arith.constant 0 : index
    %c0_8 = arith.constant 0 : index
    %33 = vector.load %arg4[%c0_7, %c0_8] : memref<54x8xbf16, #tpu.memory_space<vmem>>, vector<54x8xbf16>
    %cst = arith.constant dense<0.000000e+00> : vector<64x8xf32>
    %34 = tpu.matmul %32, %33, %cst {dimension_numbers = #tpu.dot_dimension_numbers<[1], [0], [0], [1], [0, 0, 1, 1], [], []>} : vector<64x54xbf16>, vector<54x8xbf16>, vector<64x8xf32> -> vector<64x8xf32>
    %c0_9 = arith.constant 0 : index
    %c0_10 = arith.constant 0 : index
    %35 = vector.load %arg5[%c0_9, %c0_10] : memref<1x8xf32, #tpu.memory_space<vmem>>, vector<1x8xf32>
    %36 = vector.broadcast %35 : vector<1x8xf32> to vector<64x8xf32>
    %37 = arith.mulf %34, %36 : vector<64x8xf32>
    %c0_11 = arith.constant 0 : index
    %c0_12 = arith.constant 0 : index
    %38 = vector.load %arg6[%c0_11, %c0_12] : memref<1x8xf32, #tpu.memory_space<vmem>>, vector<1x8xf32>
    %39 = vector.broadcast %38 : vector<1x8xf32> to vector<64x8xf32>
    %40 = arith.addf %37, %39 : vector<64x8xf32>
    %cst_13 = arith.constant 0.000000e+00 : f32
    %41 = vector.broadcast %cst_13 : f32 to vector<64x8xf32>
    %42 = arith.maximumf %40, %41 : vector<64x8xf32>
    %43 = vector.shape_cast %42 : vector<64x8xf32> to vector<1x8x8x8xf32>
    %44 = arith.truncf %43 : vector<1x8x8x8xf32> to vector<1x8x8x8xbf16>
    %c0_14 = arith.constant 0 : index
    %c0_15 = arith.constant 0 : index
    %c0_16 = arith.constant 0 : index
    %c0_17 = arith.constant 0 : index
    %45 = vector.load %arg7[%c0_14, %c0_15, %c0_16, %c0_17] : memref<1x8x8x8xbf16, #tpu.memory_space<vmem>>, vector<1x8x8x8xbf16>
    tpu.vector_store %arg7[%c0_14, %c0_15, %c0_16, %c0_17], %44 {strides = array<i32>} : memref<1x8x8x8xbf16, #tpu.memory_space<vmem>>, vector<1x8x8x8xbf16>,
    return
  }
  func.func @transform_0(%arg0: i32, %arg1: i32, %arg2: i32) -> (i32, i32, i32, i32) {
    %c0_i32 = arith.constant 0 : i32
    %c0_i32_0 = arith.constant 0 : i32
    %c0_i32_1 = arith.constant 0 : i32
    %c0_i32_2 = arith.constant 0 : i32
    return %arg1, %c0_i32, %c0_i32_0, %c0_i32_1 : i32, i32, i32, i32
  }
  func.func @transform_1(%arg0: i32, %arg1: i32, %arg2: i32) -> (i32, i32) {
    %c0_i32 = arith.constant 0 : i32
    %c0_i32_0 = arith.constant 0 : i32
    return %c0_i32, %arg0 : i32, i32
  }
  func.func @transform_2(%arg0: i32, %arg1: i32, %arg2: i32) -> (i32, i32) {
    %c0_i32 = arith.constant 0 : i32
    %c0_i32_0 = arith.constant 0 : i32
    return %c0_i32, %arg0 : i32, i32
  }
  func.func @transform_3(%arg0: i32, %arg1: i32, %arg2: i32) -> (i32, i32) {
    %c0_i32 = arith.constant 0 : i32
    %c0_i32_0 = arith.constant 0 : i32
    return %c0_i32, %arg0 : i32, i32
  }
  func.func @transform_4(%arg0: i32, %arg1: i32, %arg2: i32) -> (i32, i32, i32, i32) {
    %c0_i32 = arith.constant 0 : i32
    %c0_i32_0 = arith.constant 0 : i32
    return %arg1, %arg2, %c0_i32, %arg0 : i32, i32, i32, i32
  }
}

module attributes {stable_mosaic.version = 11 : i64} {
  func.func @_conv_bn_act_kernel(%arg0: i32, %arg1: i32, %arg2: i32, %arg3: memref<1x8x8x8xbf16, #tpu.memory_space<vmem>>, %arg4: memref<72x8xbf16, #tpu.memory_space<vmem>>, %arg5: memref<1x8xf32, #tpu.memory_space<vmem>>, %arg6: memref<1x8xf32, #tpu.memory_space<vmem>>, %arg7: memref<1x8x8x8xbf16, #tpu.memory_space<vmem>>, %arg8: memref<14x14x8xbf16, #tpu.memory_space<vmem>>) attributes {dimension_semantics = [#tpu.dimension_semantics<parallel>, #tpu.dimension_semantics<parallel>, #tpu.dimension_semantics<arbitrary>], iteration_bounds = array<i64: 1, 2, 1>, scalar_prefetch = 0 : i64, scratch_operands = 1 : i64, tpu.core_type = #tpu.core_type<tc>, window_params = [{transform_indices = @transform_0, window_bounds = array<i64: 1, 8, 8, 8>}, {transform_indices = @transform_1, window_bounds = array<i64: 72, 8>}, {transform_indices = @transform_2, window_bounds = array<i64: 1, 8>}, {transform_indices = @transform_3, window_bounds = array<i64: 1, 8>}, {transform_indices = @transform_4, window_bounds = array<i64: 1, 8, 8, 8>}]} {
    %c0_i32 = arith.constant 0 : i32
    %0 = arith.cmpi eq, %arg2, %c0_i32 : i32
    %1 = arith.extui %0 : i1 to i32
    %c0_i32_0 = arith.constant 0 : i32
    %2 = arith.cmpi ne, %1, %c0_i32_0 : i32
    scf.if %2 {
      %cst_17 = arith.constant 0.000000e+00 : bf16
      %44 = vector.broadcast %cst_17 : bf16 to vector<14x14x8xbf16>
      %c0_18 = arith.constant 0 : index
      %c0_19 = arith.constant 0 : index
      %c0_20 = arith.constant 0 : index
      %45 = vector.load %arg8[%c0_18, %c0_19, %c0_20] : memref<14x14x8xbf16, #tpu.memory_space<vmem>>, vector<14x14x8xbf16>
      tpu.vector_store %arg8[%c0_18, %c0_19, %c0_20], %44 {strides = array<i32>} : memref<14x14x8xbf16, #tpu.memory_space<vmem>>, vector<14x14x8xbf16>,
      %c0_21 = arith.constant 0 : index
      %c0_22 = arith.constant 0 : index
      %c0_23 = arith.constant 0 : index
      %c0_24 = arith.constant 0 : index
      %46 = vector.load %arg3[%c0_21, %c0_22, %c0_23, %c0_24] : memref<1x8x8x8xbf16, #tpu.memory_space<vmem>>, vector<1x8x8x8xbf16>
      %47 = vector.shape_cast %46 : vector<1x8x8x8xbf16> to vector<8x8x8xbf16>
      %c3 = arith.constant 3 : index
      %c3_25 = arith.constant 3 : index
      %c0_26 = arith.constant 0 : index
      %48 = vector.load %arg8[%c3, %c3_25, %c0_26] : memref<14x14x8xbf16, #tpu.memory_space<vmem>>, vector<8x8x8xbf16>
      tpu.vector_store %arg8[%c3, %c3_25, %c0_26], %47 {strides = array<i32>} : memref<14x14x8xbf16, #tpu.memory_space<vmem>>, vector<8x8x8xbf16>,
    } else {
    }
    %c8_i32 = arith.constant 8 : i32
    %3 = arith.muli %arg2, %c8_i32 : i32
    %4 = tpu.assume_multiple %3, 8 : i32
    %c0_i32_1 = arith.constant 0 : i32
    %5 = arith.addi %4, %c0_i32_1 : i32
    %6 = arith.index_cast %5 : i32 to index
    %c0 = arith.constant 0 : index
    %c0_2 = arith.constant 0 : index
    %7 = vector.load %arg8[%6, %c0, %c0_2] : memref<14x14x8xbf16, #tpu.memory_space<vmem>>, vector<8x14x8xbf16>
    %8 = vector.extract_strided_slice %7 {offsets = [0, 0, 0], sizes = [8, 8, 8], strides = [1, 1, 1]} : vector<8x14x8xbf16> to vector<8x8x8xbf16>
    %9 = vector.shape_cast %8 : vector<8x8x8xbf16> to vector<64x8xbf16>
    %10 = vector.extract_strided_slice %7 {offsets = [0, 3, 0], sizes = [8, 8, 8], strides = [1, 1, 1]} : vector<8x14x8xbf16> to vector<8x8x8xbf16>
    %11 = vector.shape_cast %10 : vector<8x8x8xbf16> to vector<64x8xbf16>
    %12 = vector.extract_strided_slice %7 {offsets = [0, 6, 0], sizes = [8, 8, 8], strides = [1, 1, 1]} : vector<8x14x8xbf16> to vector<8x8x8xbf16>
    %13 = vector.shape_cast %12 : vector<8x8x8xbf16> to vector<64x8xbf16>
    %c3_i32 = arith.constant 3 : i32
    %14 = arith.addi %4, %c3_i32 : i32
    %15 = arith.index_cast %14 : i32 to index
    %c0_3 = arith.constant 0 : index
    %c0_4 = arith.constant 0 : index
    %16 = vector.load %arg8[%15, %c0_3, %c0_4] : memref<14x14x8xbf16, #tpu.memory_space<vmem>>, vector<8x14x8xbf16>
    %17 = vector.extract_strided_slice %16 {offsets = [0, 0, 0], sizes = [8, 8, 8], strides = [1, 1, 1]} : vector<8x14x8xbf16> to vector<8x8x8xbf16>
    %18 = vector.shape_cast %17 : vector<8x8x8xbf16> to vector<64x8xbf16>
    %19 = vector.extract_strided_slice %16 {offsets = [0, 3, 0], sizes = [8, 8, 8], strides = [1, 1, 1]} : vector<8x14x8xbf16> to vector<8x8x8xbf16>
    %20 = vector.shape_cast %19 : vector<8x8x8xbf16> to vector<64x8xbf16>
    %21 = vector.extract_strided_slice %16 {offsets = [0, 6, 0], sizes = [8, 8, 8], strides = [1, 1, 1]} : vector<8x14x8xbf16> to vector<8x8x8xbf16>
    %22 = vector.shape_cast %21 : vector<8x8x8xbf16> to vector<64x8xbf16>
    %c6_i32 = arith.constant 6 : i32
    %23 = arith.addi %4, %c6_i32 : i32
    %24 = arith.index_cast %23 : i32 to index
    %c0_5 = arith.constant 0 : index
    %c0_6 = arith.constant 0 : index
    %25 = vector.load %arg8[%24, %c0_5, %c0_6] : memref<14x14x8xbf16, #tpu.memory_space<vmem>>, vector<8x14x8xbf16>
    %26 = vector.extract_strided_slice %25 {offsets = [0, 0, 0], sizes = [8, 8, 8], strides = [1, 1, 1]} : vector<8x14x8xbf16> to vector<8x8x8xbf16>
    %27 = vector.shape_cast %26 : vector<8x8x8xbf16> to vector<64x8xbf16>
    %28 = vector.extract_strided_slice %25 {offsets = [0, 3, 0], sizes = [8, 8, 8], strides = [1, 1, 1]} : vector<8x14x8xbf16> to vector<8x8x8xbf16>
    %29 = vector.shape_cast %28 : vector<8x8x8xbf16> to vector<64x8xbf16>
    %30 = vector.extract_strided_slice %25 {offsets = [0, 6, 0], sizes = [8, 8, 8], strides = [1, 1, 1]} : vector<8x14x8xbf16> to vector<8x8x8xbf16>
    %31 = vector.shape_cast %30 : vector<8x8x8xbf16> to vector<64x8xbf16>
    %32 = tpu.concatenate %9, %11, %13, %18, %20, %22, %27, %29, %31 in 1 : vector<64x8xbf16>, vector<64x8xbf16>, vector<64x8xbf16>, vector<64x8xbf16>, vector<64x8xbf16>, vector<64x8xbf16>, vector<64x8xbf16>, vector<64x8xbf16>, vector<64x8xbf16> -> vector<64x72xbf16>
    %c0_7 = arith.constant 0 : index
    %c0_8 = arith.constant 0 : index
    %33 = vector.load %arg4[%c0_7, %c0_8] : memref<72x8xbf16, #tpu.memory_space<vmem>>, vector<72x8xbf16>
    %cst = arith.constant dense<0.000000e+00> : vector<64x8xf32>
    %34 = tpu.matmul %32, %33, %cst {dimension_numbers = #tpu.dot_dimension_numbers<[1], [0], [0], [1], [0, 0, 1, 1], [], []>} : vector<64x72xbf16>, vector<72x8xbf16>, vector<64x8xf32> -> vector<64x8xf32>
    %c0_9 = arith.constant 0 : index
    %c0_10 = arith.constant 0 : index
    %35 = vector.load %arg5[%c0_9, %c0_10] : memref<1x8xf32, #tpu.memory_space<vmem>>, vector<1x8xf32>
    %36 = vector.broadcast %35 : vector<1x8xf32> to vector<64x8xf32>
    %37 = arith.mulf %34, %36 : vector<64x8xf32>
    %c0_11 = arith.constant 0 : index
    %c0_12 = arith.constant 0 : index
    %38 = vector.load %arg6[%c0_11, %c0_12] : memref<1x8xf32, #tpu.memory_space<vmem>>, vector<1x8xf32>
    %39 = vector.broadcast %38 : vector<1x8xf32> to vector<64x8xf32>
    %40 = arith.addf %37, %39 : vector<64x8xf32>
    %41 = vector.shape_cast %40 : vector<64x8xf32> to vector<1x8x8x8xf32>
    %42 = arith.truncf %41 : vector<1x8x8x8xf32> to vector<1x8x8x8xbf16>
    %c0_13 = arith.constant 0 : index
    %c0_14 = arith.constant 0 : index
    %c0_15 = arith.constant 0 : index
    %c0_16 = arith.constant 0 : index
    %43 = vector.load %arg7[%c0_13, %c0_14, %c0_15, %c0_16] : memref<1x8x8x8xbf16, #tpu.memory_space<vmem>>, vector<1x8x8x8xbf16>
    tpu.vector_store %arg7[%c0_13, %c0_14, %c0_15, %c0_16], %42 {strides = array<i32>} : memref<1x8x8x8xbf16, #tpu.memory_space<vmem>>, vector<1x8x8x8xbf16>,
    return
  }
  func.func @transform_0(%arg0: i32, %arg1: i32, %arg2: i32) -> (i32, i32, i32, i32) {
    %c0_i32 = arith.constant 0 : i32
    %c0_i32_0 = arith.constant 0 : i32
    %c0_i32_1 = arith.constant 0 : i32
    %c0_i32_2 = arith.constant 0 : i32
    return %arg1, %c0_i32, %c0_i32_0, %c0_i32_1 : i32, i32, i32, i32
  }
  func.func @transform_1(%arg0: i32, %arg1: i32, %arg2: i32) -> (i32, i32) {
    %c0_i32 = arith.constant 0 : i32
    %c0_i32_0 = arith.constant 0 : i32
    return %c0_i32, %arg0 : i32, i32
  }
  func.func @transform_2(%arg0: i32, %arg1: i32, %arg2: i32) -> (i32, i32) {
    %c0_i32 = arith.constant 0 : i32
    %c0_i32_0 = arith.constant 0 : i32
    return %c0_i32, %arg0 : i32, i32
  }
  func.func @transform_3(%arg0: i32, %arg1: i32, %arg2: i32) -> (i32, i32) {
    %c0_i32 = arith.constant 0 : i32
    %c0_i32_0 = arith.constant 0 : i32
    return %c0_i32, %arg0 : i32, i32
  }
  func.func @transform_4(%arg0: i32, %arg1: i32, %arg2: i32) -> (i32, i32, i32, i32) {
    %c0_i32 = arith.constant 0 : i32
    %c0_i32_0 = arith.constant 0 : i32
    return %arg1, %arg2, %c0_i32, %arg0 : i32, i32, i32, i32
  }
}

module attributes {stable_mosaic.version = 11 : i64} {
  func.func @_conv_bn_act_kernel(%arg0: i32, %arg1: i32, %arg2: i32, %arg3: memref<1x8x8x4xbf16, #tpu.memory_space<vmem>>, %arg4: memref<36x8xbf16, #tpu.memory_space<vmem>>, %arg5: memref<1x8xf32, #tpu.memory_space<vmem>>, %arg6: memref<1x8xf32, #tpu.memory_space<vmem>>, %arg7: memref<1x8x8x8xbf16, #tpu.memory_space<vmem>>, %arg8: memref<10x10x4xbf16, #tpu.memory_space<vmem>>) attributes {dimension_semantics = [#tpu.dimension_semantics<parallel>, #tpu.dimension_semantics<parallel>, #tpu.dimension_semantics<arbitrary>], iteration_bounds = array<i64: 1, 2, 1>, scalar_prefetch = 0 : i64, scratch_operands = 1 : i64, tpu.core_type = #tpu.core_type<tc>, window_params = [{transform_indices = @transform_0, window_bounds = array<i64: 1, 8, 8, 4>}, {transform_indices = @transform_1, window_bounds = array<i64: 36, 8>}, {transform_indices = @transform_2, window_bounds = array<i64: 1, 8>}, {transform_indices = @transform_3, window_bounds = array<i64: 1, 8>}, {transform_indices = @transform_4, window_bounds = array<i64: 1, 8, 8, 8>}]} {
    %c0_i32 = arith.constant 0 : i32
    %0 = arith.cmpi eq, %arg2, %c0_i32 : i32
    %1 = arith.extui %0 : i1 to i32
    %c0_i32_0 = arith.constant 0 : i32
    %2 = arith.cmpi ne, %1, %c0_i32_0 : i32
    scf.if %2 {
      %cst_18 = arith.constant 0.000000e+00 : bf16
      %46 = vector.broadcast %cst_18 : bf16 to vector<10x10x4xbf16>
      %c0_19 = arith.constant 0 : index
      %c0_20 = arith.constant 0 : index
      %c0_21 = arith.constant 0 : index
      %47 = vector.load %arg8[%c0_19, %c0_20, %c0_21] : memref<10x10x4xbf16, #tpu.memory_space<vmem>>, vector<10x10x4xbf16>
      tpu.vector_store %arg8[%c0_19, %c0_20, %c0_21], %46 {strides = array<i32>} : memref<10x10x4xbf16, #tpu.memory_space<vmem>>, vector<10x10x4xbf16>,
      %c0_22 = arith.constant 0 : index
      %c0_23 = arith.constant 0 : index
      %c0_24 = arith.constant 0 : index
      %c0_25 = arith.constant 0 : index
      %48 = vector.load %arg3[%c0_22, %c0_23, %c0_24, %c0_25] : memref<1x8x8x4xbf16, #tpu.memory_space<vmem>>, vector<1x8x8x4xbf16>
      %49 = vector.shape_cast %48 : vector<1x8x8x4xbf16> to vector<8x8x4xbf16>
      %c1 = arith.constant 1 : index
      %c1_26 = arith.constant 1 : index
      %c0_27 = arith.constant 0 : index
      %50 = vector.load %arg8[%c1, %c1_26, %c0_27] : memref<10x10x4xbf16, #tpu.memory_space<vmem>>, vector<8x8x4xbf16>
      tpu.vector_store %arg8[%c1, %c1_26, %c0_27], %49 {strides = array<i32>} : memref<10x10x4xbf16, #tpu.memory_space<vmem>>, vector<8x8x4xbf16>,
    } else {
    }
    %c8_i32 = arith.constant 8 : i32
    %3 = arith.muli %arg2, %c8_i32 : i32
    %4 = tpu.assume_multiple %3, 8 : i32
    %c0_i32_1 = arith.constant 0 : i32
    %5 = arith.addi %4, %c0_i32_1 : i32
    %6 = arith.index_cast %5 : i32 to index
    %c0 = arith.constant 0 : index
    %c0_2 = arith.constant 0 : index
    %7 = vector.load %arg8[%6, %c0, %c0_2] : memref<10x10x4xbf16, #tpu.memory_space<vmem>>, vector<8x10x4xbf16>
    %8 = vector.extract_strided_slice %7 {offsets = [0, 0, 0], sizes = [8, 8, 4], strides = [1, 1, 1]} : vector<8x10x4xbf16> to vector<8x8x4xbf16>
    %9 = vector.shape_cast %8 : vector<8x8x4xbf16> to vector<64x4xbf16>
    %10 = vector.extract_strided_slice %7 {offsets = [0, 1, 0], sizes = [8, 8, 4], strides = [1, 1, 1]} : vector<8x10x4xbf16> to vector<8x8x4xbf16>
    %11 = vector.shape_cast %10 : vector<8x8x4xbf16> to vector<64x4xbf16>
    %12 = vector.extract_strided_slice %7 {offsets = [0, 2, 0], sizes = [8, 8, 4], strides = [1, 1, 1]} : vector<8x10x4xbf16> to vector<8x8x4xbf16>
    %13 = vector.shape_cast %12 : vector<8x8x4xbf16> to vector<64x4xbf16>
    %c1_i32 = arith.constant 1 : i32
    %14 = arith.addi %4, %c1_i32 : i32
    %15 = arith.index_cast %14 : i32 to index
    %c0_3 = arith.constant 0 : index
    %c0_4 = arith.constant 0 : index
    %16 = vector.load %arg8[%15, %c0_3, %c0_4] : memref<10x10x4xbf16, #tpu.memory_space<vmem>>, vector<8x10x4xbf16>
    %17 = vector.extract_strided_slice %16 {offsets = [0, 0, 0], sizes = [8, 8, 4], strides = [1, 1, 1]} : vector<8x10x4xbf16> to vector<8x8x4xbf16>
    %18 = vector.shape_cast %17 : vector<8x8x4xbf16> to vector<64x4xbf16>
    %19 = vector.extract_strided_slice %16 {offsets = [0, 1, 0], sizes = [8, 8, 4], strides = [1, 1, 1]} : vector<8x10x4xbf16> to vector<8x8x4xbf16>
    %20 = vector.shape_cast %19 : vector<8x8x4xbf16> to vector<64x4xbf16>
    %21 = vector.extract_strided_slice %16 {offsets = [0, 2, 0], sizes = [8, 8, 4], strides = [1, 1, 1]} : vector<8x10x4xbf16> to vector<8x8x4xbf16>
    %22 = vector.shape_cast %21 : vector<8x8x4xbf16> to vector<64x4xbf16>
    %c2_i32 = arith.constant 2 : i32
    %23 = arith.addi %4, %c2_i32 : i32
    %24 = arith.index_cast %23 : i32 to index
    %c0_5 = arith.constant 0 : index
    %c0_6 = arith.constant 0 : index
    %25 = vector.load %arg8[%24, %c0_5, %c0_6] : memref<10x10x4xbf16, #tpu.memory_space<vmem>>, vector<8x10x4xbf16>
    %26 = vector.extract_strided_slice %25 {offsets = [0, 0, 0], sizes = [8, 8, 4], strides = [1, 1, 1]} : vector<8x10x4xbf16> to vector<8x8x4xbf16>
    %27 = vector.shape_cast %26 : vector<8x8x4xbf16> to vector<64x4xbf16>
    %28 = vector.extract_strided_slice %25 {offsets = [0, 1, 0], sizes = [8, 8, 4], strides = [1, 1, 1]} : vector<8x10x4xbf16> to vector<8x8x4xbf16>
    %29 = vector.shape_cast %28 : vector<8x8x4xbf16> to vector<64x4xbf16>
    %30 = vector.extract_strided_slice %25 {offsets = [0, 2, 0], sizes = [8, 8, 4], strides = [1, 1, 1]} : vector<8x10x4xbf16> to vector<8x8x4xbf16>
    %31 = vector.shape_cast %30 : vector<8x8x4xbf16> to vector<64x4xbf16>
    %32 = tpu.concatenate %9, %11, %13, %18, %20, %22, %27, %29, %31 in 1 : vector<64x4xbf16>, vector<64x4xbf16>, vector<64x4xbf16>, vector<64x4xbf16>, vector<64x4xbf16>, vector<64x4xbf16>, vector<64x4xbf16>, vector<64x4xbf16>, vector<64x4xbf16> -> vector<64x36xbf16>
    %c0_7 = arith.constant 0 : index
    %c0_8 = arith.constant 0 : index
    %33 = vector.load %arg4[%c0_7, %c0_8] : memref<36x8xbf16, #tpu.memory_space<vmem>>, vector<36x8xbf16>
    %cst = arith.constant dense<0.000000e+00> : vector<64x8xf32>
    %34 = tpu.matmul %32, %33, %cst {dimension_numbers = #tpu.dot_dimension_numbers<[1], [0], [0], [1], [0, 0, 1, 1], [], []>} : vector<64x36xbf16>, vector<36x8xbf16>, vector<64x8xf32> -> vector<64x8xf32>
    %c0_9 = arith.constant 0 : index
    %c0_10 = arith.constant 0 : index
    %35 = vector.load %arg5[%c0_9, %c0_10] : memref<1x8xf32, #tpu.memory_space<vmem>>, vector<1x8xf32>
    %36 = vector.broadcast %35 : vector<1x8xf32> to vector<64x8xf32>
    %37 = arith.mulf %34, %36 : vector<64x8xf32>
    %c0_11 = arith.constant 0 : index
    %c0_12 = arith.constant 0 : index
    %38 = vector.load %arg6[%c0_11, %c0_12] : memref<1x8xf32, #tpu.memory_space<vmem>>, vector<1x8xf32>
    %39 = vector.broadcast %38 : vector<1x8xf32> to vector<64x8xf32>
    %40 = arith.addf %37, %39 : vector<64x8xf32>
    %cst_13 = arith.constant 0.000000e+00 : f32
    %41 = vector.broadcast %cst_13 : f32 to vector<64x8xf32>
    %42 = arith.maximumf %40, %41 : vector<64x8xf32>
    %43 = vector.shape_cast %42 : vector<64x8xf32> to vector<1x8x8x8xf32>
    %44 = arith.truncf %43 : vector<1x8x8x8xf32> to vector<1x8x8x8xbf16>
    %c0_14 = arith.constant 0 : index
    %c0_15 = arith.constant 0 : index
    %c0_16 = arith.constant 0 : index
    %c0_17 = arith.constant 0 : index
    %45 = vector.load %arg7[%c0_14, %c0_15, %c0_16, %c0_17] : memref<1x8x8x8xbf16, #tpu.memory_space<vmem>>, vector<1x8x8x8xbf16>
    tpu.vector_store %arg7[%c0_14, %c0_15, %c0_16, %c0_17], %44 {strides = array<i32>} : memref<1x8x8x8xbf16, #tpu.memory_space<vmem>>, vector<1x8x8x8xbf16>,
    return
  }
  func.func @transform_0(%arg0: i32, %arg1: i32, %arg2: i32) -> (i32, i32, i32, i32) {
    %c0_i32 = arith.constant 0 : i32
    %c0_i32_0 = arith.constant 0 : i32
    %c0_i32_1 = arith.constant 0 : i32
    %c0_i32_2 = arith.constant 0 : i32
    return %arg1, %c0_i32, %c0_i32_0, %c0_i32_1 : i32, i32, i32, i32
  }
  func.func @transform_1(%arg0: i32, %arg1: i32, %arg2: i32) -> (i32, i32) {
    %c0_i32 = arith.constant 0 : i32
    %c0_i32_0 = arith.constant 0 : i32
    return %c0_i32, %arg0 : i32, i32
  }
  func.func @transform_2(%arg0: i32, %arg1: i32, %arg2: i32) -> (i32, i32) {
    %c0_i32 = arith.constant 0 : i32
    %c0_i32_0 = arith.constant 0 : i32
    return %c0_i32, %arg0 : i32, i32
  }
  func.func @transform_3(%arg0: i32, %arg1: i32, %arg2: i32) -> (i32, i32) {
    %c0_i32 = arith.constant 0 : i32
    %c0_i32_0 = arith.constant 0 : i32
    return %c0_i32, %arg0 : i32, i32
  }
  func.func @transform_4(%arg0: i32, %arg1: i32, %arg2: i32) -> (i32, i32, i32, i32) {
    %c0_i32 = arith.constant 0 : i32
    %c0_i32_0 = arith.constant 0 : i32
    return %arg1, %arg2, %c0_i32, %arg0 : i32, i32, i32, i32
  }
}

module attributes {stable_mosaic.version = 11 : i64} {
  func.func @_conv_bn_act_kernel(%arg0: i32, %arg1: i32, %arg2: i32, %arg3: memref<1x8x8x8xbf16, #tpu.memory_space<vmem>>, %arg4: memref<72x8xbf16, #tpu.memory_space<vmem>>, %arg5: memref<1x8xf32, #tpu.memory_space<vmem>>, %arg6: memref<1x8xf32, #tpu.memory_space<vmem>>, %arg7: memref<1x8x8x8xbf16, #tpu.memory_space<vmem>>, %arg8: memref<12x12x8xbf16, #tpu.memory_space<vmem>>) attributes {dimension_semantics = [#tpu.dimension_semantics<parallel>, #tpu.dimension_semantics<parallel>, #tpu.dimension_semantics<arbitrary>], iteration_bounds = array<i64: 1, 2, 1>, scalar_prefetch = 0 : i64, scratch_operands = 1 : i64, tpu.core_type = #tpu.core_type<tc>, window_params = [{transform_indices = @transform_0, window_bounds = array<i64: 1, 8, 8, 8>}, {transform_indices = @transform_1, window_bounds = array<i64: 72, 8>}, {transform_indices = @transform_2, window_bounds = array<i64: 1, 8>}, {transform_indices = @transform_3, window_bounds = array<i64: 1, 8>}, {transform_indices = @transform_4, window_bounds = array<i64: 1, 8, 8, 8>}]} {
    %c0_i32 = arith.constant 0 : i32
    %0 = arith.cmpi eq, %arg2, %c0_i32 : i32
    %1 = arith.extui %0 : i1 to i32
    %c0_i32_0 = arith.constant 0 : i32
    %2 = arith.cmpi ne, %1, %c0_i32_0 : i32
    scf.if %2 {
      %cst_17 = arith.constant 0.000000e+00 : bf16
      %44 = vector.broadcast %cst_17 : bf16 to vector<12x12x8xbf16>
      %c0_18 = arith.constant 0 : index
      %c0_19 = arith.constant 0 : index
      %c0_20 = arith.constant 0 : index
      %45 = vector.load %arg8[%c0_18, %c0_19, %c0_20] : memref<12x12x8xbf16, #tpu.memory_space<vmem>>, vector<12x12x8xbf16>
      tpu.vector_store %arg8[%c0_18, %c0_19, %c0_20], %44 {strides = array<i32>} : memref<12x12x8xbf16, #tpu.memory_space<vmem>>, vector<12x12x8xbf16>,
      %c0_21 = arith.constant 0 : index
      %c0_22 = arith.constant 0 : index
      %c0_23 = arith.constant 0 : index
      %c0_24 = arith.constant 0 : index
      %46 = vector.load %arg3[%c0_21, %c0_22, %c0_23, %c0_24] : memref<1x8x8x8xbf16, #tpu.memory_space<vmem>>, vector<1x8x8x8xbf16>
      %47 = vector.shape_cast %46 : vector<1x8x8x8xbf16> to vector<8x8x8xbf16>
      %c2 = arith.constant 2 : index
      %c2_25 = arith.constant 2 : index
      %c0_26 = arith.constant 0 : index
      %48 = vector.load %arg8[%c2, %c2_25, %c0_26] : memref<12x12x8xbf16, #tpu.memory_space<vmem>>, vector<8x8x8xbf16>
      tpu.vector_store %arg8[%c2, %c2_25, %c0_26], %47 {strides = array<i32>} : memref<12x12x8xbf16, #tpu.memory_space<vmem>>, vector<8x8x8xbf16>,
    } else {
    }
    %c8_i32 = arith.constant 8 : i32
    %3 = arith.muli %arg2, %c8_i32 : i32
    %4 = tpu.assume_multiple %3, 8 : i32
    %c0_i32_1 = arith.constant 0 : i32
    %5 = arith.addi %4, %c0_i32_1 : i32
    %6 = arith.index_cast %5 : i32 to index
    %c0 = arith.constant 0 : index
    %c0_2 = arith.constant 0 : index
    %7 = vector.load %arg8[%6, %c0, %c0_2] : memref<12x12x8xbf16, #tpu.memory_space<vmem>>, vector<8x12x8xbf16>
    %8 = vector.extract_strided_slice %7 {offsets = [0, 0, 0], sizes = [8, 8, 8], strides = [1, 1, 1]} : vector<8x12x8xbf16> to vector<8x8x8xbf16>
    %9 = vector.shape_cast %8 : vector<8x8x8xbf16> to vector<64x8xbf16>
    %10 = vector.extract_strided_slice %7 {offsets = [0, 2, 0], sizes = [8, 8, 8], strides = [1, 1, 1]} : vector<8x12x8xbf16> to vector<8x8x8xbf16>
    %11 = vector.shape_cast %10 : vector<8x8x8xbf16> to vector<64x8xbf16>
    %12 = vector.extract_strided_slice %7 {offsets = [0, 4, 0], sizes = [8, 8, 8], strides = [1, 1, 1]} : vector<8x12x8xbf16> to vector<8x8x8xbf16>
    %13 = vector.shape_cast %12 : vector<8x8x8xbf16> to vector<64x8xbf16>
    %c2_i32 = arith.constant 2 : i32
    %14 = arith.addi %4, %c2_i32 : i32
    %15 = arith.index_cast %14 : i32 to index
    %c0_3 = arith.constant 0 : index
    %c0_4 = arith.constant 0 : index
    %16 = vector.load %arg8[%15, %c0_3, %c0_4] : memref<12x12x8xbf16, #tpu.memory_space<vmem>>, vector<8x12x8xbf16>
    %17 = vector.extract_strided_slice %16 {offsets = [0, 0, 0], sizes = [8, 8, 8], strides = [1, 1, 1]} : vector<8x12x8xbf16> to vector<8x8x8xbf16>
    %18 = vector.shape_cast %17 : vector<8x8x8xbf16> to vector<64x8xbf16>
    %19 = vector.extract_strided_slice %16 {offsets = [0, 2, 0], sizes = [8, 8, 8], strides = [1, 1, 1]} : vector<8x12x8xbf16> to vector<8x8x8xbf16>
    %20 = vector.shape_cast %19 : vector<8x8x8xbf16> to vector<64x8xbf16>
    %21 = vector.extract_strided_slice %16 {offsets = [0, 4, 0], sizes = [8, 8, 8], strides = [1, 1, 1]} : vector<8x12x8xbf16> to vector<8x8x8xbf16>
    %22 = vector.shape_cast %21 : vector<8x8x8xbf16> to vector<64x8xbf16>
    %c4_i32 = arith.constant 4 : i32
    %23 = arith.addi %4, %c4_i32 : i32
    %24 = arith.index_cast %23 : i32 to index
    %c0_5 = arith.constant 0 : index
    %c0_6 = arith.constant 0 : index
    %25 = vector.load %arg8[%24, %c0_5, %c0_6] : memref<12x12x8xbf16, #tpu.memory_space<vmem>>, vector<8x12x8xbf16>
    %26 = vector.extract_strided_slice %25 {offsets = [0, 0, 0], sizes = [8, 8, 8], strides = [1, 1, 1]} : vector<8x12x8xbf16> to vector<8x8x8xbf16>
    %27 = vector.shape_cast %26 : vector<8x8x8xbf16> to vector<64x8xbf16>
    %28 = vector.extract_strided_slice %25 {offsets = [0, 2, 0], sizes = [8, 8, 8], strides = [1, 1, 1]} : vector<8x12x8xbf16> to vector<8x8x8xbf16>
    %29 = vector.shape_cast %28 : vector<8x8x8xbf16> to vector<64x8xbf16>
    %30 = vector.extract_strided_slice %25 {offsets = [0, 4, 0], sizes = [8, 8, 8], strides = [1, 1, 1]} : vector<8x12x8xbf16> to vector<8x8x8xbf16>
    %31 = vector.shape_cast %30 : vector<8x8x8xbf16> to vector<64x8xbf16>
    %32 = tpu.concatenate %9, %11, %13, %18, %20, %22, %27, %29, %31 in 1 : vector<64x8xbf16>, vector<64x8xbf16>, vector<64x8xbf16>, vector<64x8xbf16>, vector<64x8xbf16>, vector<64x8xbf16>, vector<64x8xbf16>, vector<64x8xbf16>, vector<64x8xbf16> -> vector<64x72xbf16>
    %c0_7 = arith.constant 0 : index
    %c0_8 = arith.constant 0 : index
    %33 = vector.load %arg4[%c0_7, %c0_8] : memref<72x8xbf16, #tpu.memory_space<vmem>>, vector<72x8xbf16>
    %cst = arith.constant dense<0.000000e+00> : vector<64x8xf32>
    %34 = tpu.matmul %32, %33, %cst {dimension_numbers = #tpu.dot_dimension_numbers<[1], [0], [0], [1], [0, 0, 1, 1], [], []>} : vector<64x72xbf16>, vector<72x8xbf16>, vector<64x8xf32> -> vector<64x8xf32>
    %c0_9 = arith.constant 0 : index
    %c0_10 = arith.constant 0 : index
    %35 = vector.load %arg5[%c0_9, %c0_10] : memref<1x8xf32, #tpu.memory_space<vmem>>, vector<1x8xf32>
    %36 = vector.broadcast %35 : vector<1x8xf32> to vector<64x8xf32>
    %37 = arith.mulf %34, %36 : vector<64x8xf32>
    %c0_11 = arith.constant 0 : index
    %c0_12 = arith.constant 0 : index
    %38 = vector.load %arg6[%c0_11, %c0_12] : memref<1x8xf32, #tpu.memory_space<vmem>>, vector<1x8xf32>
    %39 = vector.broadcast %38 : vector<1x8xf32> to vector<64x8xf32>
    %40 = arith.addf %37, %39 : vector<64x8xf32>
    %41 = vector.shape_cast %40 : vector<64x8xf32> to vector<1x8x8x8xf32>
    %42 = arith.truncf %41 : vector<1x8x8x8xf32> to vector<1x8x8x8xbf16>
    %c0_13 = arith.constant 0 : index
    %c0_14 = arith.constant 0 : index
    %c0_15 = arith.constant 0 : index
    %c0_16 = arith.constant 0 : index
    %43 = vector.load %arg7[%c0_13, %c0_14, %c0_15, %c0_16] : memref<1x8x8x8xbf16, #tpu.memory_space<vmem>>, vector<1x8x8x8xbf16>
    tpu.vector_store %arg7[%c0_13, %c0_14, %c0_15, %c0_16], %42 {strides = array<i32>} : memref<1x8x8x8xbf16, #tpu.memory_space<vmem>>, vector<1x8x8x8xbf16>,
    return
  }
  func.func @transform_0(%arg0: i32, %arg1: i32, %arg2: i32) -> (i32, i32, i32, i32) {
    %c0_i32 = arith.constant 0 : i32
    %c0_i32_0 = arith.constant 0 : i32
    %c0_i32_1 = arith.constant 0 : i32
    %c0_i32_2 = arith.constant 0 : i32
    return %arg1, %c0_i32, %c0_i32_0, %c0_i32_1 : i32, i32, i32, i32
  }
  func.func @transform_1(%arg0: i32, %arg1: i32, %arg2: i32) -> (i32, i32) {
    %c0_i32 = arith.constant 0 : i32
    %c0_i32_0 = arith.constant 0 : i32
    return %c0_i32, %arg0 : i32, i32
  }
  func.func @transform_2(%arg0: i32, %arg1: i32, %arg2: i32) -> (i32, i32) {
    %c0_i32 = arith.constant 0 : i32
    %c0_i32_0 = arith.constant 0 : i32
    return %c0_i32, %arg0 : i32, i32
  }
  func.func @transform_3(%arg0: i32, %arg1: i32, %arg2: i32) -> (i32, i32) {
    %c0_i32 = arith.constant 0 : i32
    %c0_i32_0 = arith.constant 0 : i32
    return %c0_i32, %arg0 : i32, i32
  }
  func.func @transform_4(%arg0: i32, %arg1: i32, %arg2: i32) -> (i32, i32, i32, i32) {
    %c0_i32 = arith.constant 0 : i32
    %c0_i32_0 = arith.constant 0 : i32
    return %arg1, %arg2, %c0_i32, %arg0 : i32, i32, i32, i32
  }
}

module attributes {stable_mosaic.version = 11 : i64} {
  func.func @_conv_bn_act_kernel(%arg0: i32, %arg1: i32, %arg2: i32, %arg3: memref<1x8x8x32xbf16, #tpu.memory_space<vmem>>, %arg4: memref<32x8xbf16, #tpu.memory_space<vmem>>, %arg5: memref<1x8xf32, #tpu.memory_space<vmem>>, %arg6: memref<1x8xf32, #tpu.memory_space<vmem>>, %arg7: memref<1x8x8x8xbf16, #tpu.memory_space<vmem>>) attributes {dimension_semantics = [#tpu.dimension_semantics<parallel>, #tpu.dimension_semantics<parallel>, #tpu.dimension_semantics<arbitrary>], iteration_bounds = array<i64: 1, 2, 1>, scalar_prefetch = 0 : i64, scratch_operands = 0 : i64, tpu.core_type = #tpu.core_type<tc>, window_params = [{transform_indices = @transform_0, window_bounds = array<i64: 1, 8, 8, 32>}, {transform_indices = @transform_1, window_bounds = array<i64: 32, 8>}, {transform_indices = @transform_2, window_bounds = array<i64: 1, 8>}, {transform_indices = @transform_3, window_bounds = array<i64: 1, 8>}, {transform_indices = @transform_4, window_bounds = array<i64: 1, 8, 8, 8>}]} {
    %c8_i32 = arith.constant 8 : i32
    %0 = arith.muli %arg2, %c8_i32 : i32
    %1 = tpu.assume_multiple %0, 8 : i32
    %c0_i32 = arith.constant 0 : i32
    %2 = arith.addi %1, %c0_i32 : i32
    %c0 = arith.constant 0 : index
    %3 = arith.index_cast %2 : i32 to index
    %c0_0 = arith.constant 0 : index
    %c0_1 = arith.constant 0 : index
    %4 = vector.load %arg3[%c0, %3, %c0_0, %c0_1] : memref<1x8x8x32xbf16, #tpu.memory_space<vmem>>, vector<1x8x8x32xbf16>
    %5 = vector.shape_cast %4 : vector<1x8x8x32xbf16> to vector<8x8x32xbf16>
    %6 = vector.shape_cast %5 : vector<8x8x32xbf16> to vector<64x32xbf16>
    %c0_2 = arith.constant 0 : index
    %c0_3 = arith.constant 0 : index
    %7 = vector.load %arg4[%c0_2, %c0_3] : memref<32x8xbf16, #tpu.memory_space<vmem>>, vector<32x8xbf16>
    %cst = arith.constant dense<0.000000e+00> : vector<64x8xf32>
    %8 = tpu.matmul %6, %7, %cst {dimension_numbers = #tpu.dot_dimension_numbers<[1], [0], [0], [1], [0, 0, 1, 1], [], []>} : vector<64x32xbf16>, vector<32x8xbf16>, vector<64x8xf32> -> vector<64x8xf32>
    %c0_4 = arith.constant 0 : index
    %c0_5 = arith.constant 0 : index
    %9 = vector.load %arg5[%c0_4, %c0_5] : memref<1x8xf32, #tpu.memory_space<vmem>>, vector<1x8xf32>
    %10 = vector.broadcast %9 : vector<1x8xf32> to vector<64x8xf32>
    %11 = arith.mulf %8, %10 : vector<64x8xf32>
    %c0_6 = arith.constant 0 : index
    %c0_7 = arith.constant 0 : index
    %12 = vector.load %arg6[%c0_6, %c0_7] : memref<1x8xf32, #tpu.memory_space<vmem>>, vector<1x8xf32>
    %13 = vector.broadcast %12 : vector<1x8xf32> to vector<64x8xf32>
    %14 = arith.addf %11, %13 : vector<64x8xf32>
    %cst_8 = arith.constant 0.000000e+00 : f32
    %15 = vector.broadcast %cst_8 : f32 to vector<64x8xf32>
    %16 = arith.maximumf %14, %15 : vector<64x8xf32>
    %17 = vector.shape_cast %16 : vector<64x8xf32> to vector<1x8x8x8xf32>
    %18 = arith.truncf %17 : vector<1x8x8x8xf32> to vector<1x8x8x8xbf16>
    %c0_9 = arith.constant 0 : index
    %c0_10 = arith.constant 0 : index
    %c0_11 = arith.constant 0 : index
    %c0_12 = arith.constant 0 : index
    %19 = vector.load %arg7[%c0_9, %c0_10, %c0_11, %c0_12] : memref<1x8x8x8xbf16, #tpu.memory_space<vmem>>, vector<1x8x8x8xbf16>
    tpu.vector_store %arg7[%c0_9, %c0_10, %c0_11, %c0_12], %18 {strides = array<i32>} : memref<1x8x8x8xbf16, #tpu.memory_space<vmem>>, vector<1x8x8x8xbf16>,
    return
  }
  func.func @transform_0(%arg0: i32, %arg1: i32, %arg2: i32) -> (i32, i32, i32, i32) {
    %c0_i32 = arith.constant 0 : i32
    %c0_i32_0 = arith.constant 0 : i32
    %c0_i32_1 = arith.constant 0 : i32
    %c0_i32_2 = arith.constant 0 : i32
    return %arg1, %c0_i32, %c0_i32_0, %c0_i32_1 : i32, i32, i32, i32
  }
  func.func @transform_1(%arg0: i32, %arg1: i32, %arg2: i32) -> (i32, i32) {
    %c0_i32 = arith.constant 0 : i32
    %c0_i32_0 = arith.constant 0 : i32
    return %c0_i32, %arg0 : i32, i32
  }
  func.func @transform_2(%arg0: i32, %arg1: i32, %arg2: i32) -> (i32, i32) {
    %c0_i32 = arith.constant 0 : i32
    %c0_i32_0 = arith.constant 0 : i32
    return %c0_i32, %arg0 : i32, i32
  }
  func.func @transform_3(%arg0: i32, %arg1: i32, %arg2: i32) -> (i32, i32) {
    %c0_i32 = arith.constant 0 : i32
    %c0_i32_0 = arith.constant 0 : i32
    return %c0_i32, %arg0 : i32, i32
  }
  func.func @transform_4(%arg0: i32, %arg1: i32, %arg2: i32) -> (i32, i32, i32, i32) {
    %c0_i32 = arith.constant 0 : i32
    %c0_i32_0 = arith.constant 0 : i32
    return %arg1, %arg2, %c0_i32, %arg0 : i32, i32, i32, i32
  }
}

module attributes {stable_mosaic.version = 11 : i64} {
  func.func @_conv_bn_act_kernel(%arg0: i32, %arg1: i32, %arg2: i32, %arg3: memref<1x8x8x8xbf16, #tpu.memory_space<vmem>>, %arg4: memref<72x8xbf16, #tpu.memory_space<vmem>>, %arg5: memref<1x8xf32, #tpu.memory_space<vmem>>, %arg6: memref<1x8xf32, #tpu.memory_space<vmem>>, %arg7: memref<1x8x8x8xbf16, #tpu.memory_space<vmem>>, %arg8: memref<10x10x8xbf16, #tpu.memory_space<vmem>>) attributes {dimension_semantics = [#tpu.dimension_semantics<parallel>, #tpu.dimension_semantics<parallel>, #tpu.dimension_semantics<arbitrary>], iteration_bounds = array<i64: 1, 2, 1>, scalar_prefetch = 0 : i64, scratch_operands = 1 : i64, tpu.core_type = #tpu.core_type<tc>, window_params = [{transform_indices = @transform_0, window_bounds = array<i64: 1, 8, 8, 8>}, {transform_indices = @transform_1, window_bounds = array<i64: 72, 8>}, {transform_indices = @transform_2, window_bounds = array<i64: 1, 8>}, {transform_indices = @transform_3, window_bounds = array<i64: 1, 8>}, {transform_indices = @transform_4, window_bounds = array<i64: 1, 8, 8, 8>}]} {
    %c0_i32 = arith.constant 0 : i32
    %0 = arith.cmpi eq, %arg2, %c0_i32 : i32
    %1 = arith.extui %0 : i1 to i32
    %c0_i32_0 = arith.constant 0 : i32
    %2 = arith.cmpi ne, %1, %c0_i32_0 : i32
    scf.if %2 {
      %cst_17 = arith.constant 0.000000e+00 : bf16
      %44 = vector.broadcast %cst_17 : bf16 to vector<10x10x8xbf16>
      %c0_18 = arith.constant 0 : index
      %c0_19 = arith.constant 0 : index
      %c0_20 = arith.constant 0 : index
      %45 = vector.load %arg8[%c0_18, %c0_19, %c0_20] : memref<10x10x8xbf16, #tpu.memory_space<vmem>>, vector<10x10x8xbf16>
      tpu.vector_store %arg8[%c0_18, %c0_19, %c0_20], %44 {strides = array<i32>} : memref<10x10x8xbf16, #tpu.memory_space<vmem>>, vector<10x10x8xbf16>,
      %c0_21 = arith.constant 0 : index
      %c0_22 = arith.constant 0 : index
      %c0_23 = arith.constant 0 : index
      %c0_24 = arith.constant 0 : index
      %46 = vector.load %arg3[%c0_21, %c0_22, %c0_23, %c0_24] : memref<1x8x8x8xbf16, #tpu.memory_space<vmem>>, vector<1x8x8x8xbf16>
      %47 = vector.shape_cast %46 : vector<1x8x8x8xbf16> to vector<8x8x8xbf16>
      %c1 = arith.constant 1 : index
      %c1_25 = arith.constant 1 : index
      %c0_26 = arith.constant 0 : index
      %48 = vector.load %arg8[%c1, %c1_25, %c0_26] : memref<10x10x8xbf16, #tpu.memory_space<vmem>>, vector<8x8x8xbf16>
      tpu.vector_store %arg8[%c1, %c1_25, %c0_26], %47 {strides = array<i32>} : memref<10x10x8xbf16, #tpu.memory_space<vmem>>, vector<8x8x8xbf16>,
    } else {
    }
    %c8_i32 = arith.constant 8 : i32
    %3 = arith.muli %arg2, %c8_i32 : i32
    %4 = tpu.assume_multiple %3, 8 : i32
    %c0_i32_1 = arith.constant 0 : i32
    %5 = arith.addi %4, %c0_i32_1 : i32
    %6 = arith.index_cast %5 : i32 to index
    %c0 = arith.constant 0 : index
    %c0_2 = arith.constant 0 : index
    %7 = vector.load %arg8[%6, %c0, %c0_2] : memref<10x10x8xbf16, #tpu.memory_space<vmem>>, vector<8x10x8xbf16>
    %8 = vector.extract_strided_slice %7 {offsets = [0, 0, 0], sizes = [8, 8, 8], strides = [1, 1, 1]} : vector<8x10x8xbf16> to vector<8x8x8xbf16>
    %9 = vector.shape_cast %8 : vector<8x8x8xbf16> to vector<64x8xbf16>
    %10 = vector.extract_strided_slice %7 {offsets = [0, 1, 0], sizes = [8, 8, 8], strides = [1, 1, 1]} : vector<8x10x8xbf16> to vector<8x8x8xbf16>
    %11 = vector.shape_cast %10 : vector<8x8x8xbf16> to vector<64x8xbf16>
    %12 = vector.extract_strided_slice %7 {offsets = [0, 2, 0], sizes = [8, 8, 8], strides = [1, 1, 1]} : vector<8x10x8xbf16> to vector<8x8x8xbf16>
    %13 = vector.shape_cast %12 : vector<8x8x8xbf16> to vector<64x8xbf16>
    %c1_i32 = arith.constant 1 : i32
    %14 = arith.addi %4, %c1_i32 : i32
    %15 = arith.index_cast %14 : i32 to index
    %c0_3 = arith.constant 0 : index
    %c0_4 = arith.constant 0 : index
    %16 = vector.load %arg8[%15, %c0_3, %c0_4] : memref<10x10x8xbf16, #tpu.memory_space<vmem>>, vector<8x10x8xbf16>
    %17 = vector.extract_strided_slice %16 {offsets = [0, 0, 0], sizes = [8, 8, 8], strides = [1, 1, 1]} : vector<8x10x8xbf16> to vector<8x8x8xbf16>
    %18 = vector.shape_cast %17 : vector<8x8x8xbf16> to vector<64x8xbf16>
    %19 = vector.extract_strided_slice %16 {offsets = [0, 1, 0], sizes = [8, 8, 8], strides = [1, 1, 1]} : vector<8x10x8xbf16> to vector<8x8x8xbf16>
    %20 = vector.shape_cast %19 : vector<8x8x8xbf16> to vector<64x8xbf16>
    %21 = vector.extract_strided_slice %16 {offsets = [0, 2, 0], sizes = [8, 8, 8], strides = [1, 1, 1]} : vector<8x10x8xbf16> to vector<8x8x8xbf16>
    %22 = vector.shape_cast %21 : vector<8x8x8xbf16> to vector<64x8xbf16>
    %c2_i32 = arith.constant 2 : i32
    %23 = arith.addi %4, %c2_i32 : i32
    %24 = arith.index_cast %23 : i32 to index
    %c0_5 = arith.constant 0 : index
    %c0_6 = arith.constant 0 : index
    %25 = vector.load %arg8[%24, %c0_5, %c0_6] : memref<10x10x8xbf16, #tpu.memory_space<vmem>>, vector<8x10x8xbf16>
    %26 = vector.extract_strided_slice %25 {offsets = [0, 0, 0], sizes = [8, 8, 8], strides = [1, 1, 1]} : vector<8x10x8xbf16> to vector<8x8x8xbf16>
    %27 = vector.shape_cast %26 : vector<8x8x8xbf16> to vector<64x8xbf16>
    %28 = vector.extract_strided_slice %25 {offsets = [0, 1, 0], sizes = [8, 8, 8], strides = [1, 1, 1]} : vector<8x10x8xbf16> to vector<8x8x8xbf16>
    %29 = vector.shape_cast %28 : vector<8x8x8xbf16> to vector<64x8xbf16>
    %30 = vector.extract_strided_slice %25 {offsets = [0, 2, 0], sizes = [8, 8, 8], strides = [1, 1, 1]} : vector<8x10x8xbf16> to vector<8x8x8xbf16>
    %31 = vector.shape_cast %30 : vector<8x8x8xbf16> to vector<64x8xbf16>
    %32 = tpu.concatenate %9, %11, %13, %18, %20, %22, %27, %29, %31 in 1 : vector<64x8xbf16>, vector<64x8xbf16>, vector<64x8xbf16>, vector<64x8xbf16>, vector<64x8xbf16>, vector<64x8xbf16>, vector<64x8xbf16>, vector<64x8xbf16>, vector<64x8xbf16> -> vector<64x72xbf16>
    %c0_7 = arith.constant 0 : index
    %c0_8 = arith.constant 0 : index
    %33 = vector.load %arg4[%c0_7, %c0_8] : memref<72x8xbf16, #tpu.memory_space<vmem>>, vector<72x8xbf16>
    %cst = arith.constant dense<0.000000e+00> : vector<64x8xf32>
    %34 = tpu.matmul %32, %33, %cst {dimension_numbers = #tpu.dot_dimension_numbers<[1], [0], [0], [1], [0, 0, 1, 1], [], []>} : vector<64x72xbf16>, vector<72x8xbf16>, vector<64x8xf32> -> vector<64x8xf32>
    %c0_9 = arith.constant 0 : index
    %c0_10 = arith.constant 0 : index
    %35 = vector.load %arg5[%c0_9, %c0_10] : memref<1x8xf32, #tpu.memory_space<vmem>>, vector<1x8xf32>
    %36 = vector.broadcast %35 : vector<1x8xf32> to vector<64x8xf32>
    %37 = arith.mulf %34, %36 : vector<64x8xf32>
    %c0_11 = arith.constant 0 : index
    %c0_12 = arith.constant 0 : index
    %38 = vector.load %arg6[%c0_11, %c0_12] : memref<1x8xf32, #tpu.memory_space<vmem>>, vector<1x8xf32>
    %39 = vector.broadcast %38 : vector<1x8xf32> to vector<64x8xf32>
    %40 = arith.addf %37, %39 : vector<64x8xf32>
    %41 = vector.shape_cast %40 : vector<64x8xf32> to vector<1x8x8x8xf32>
    %42 = arith.truncf %41 : vector<1x8x8x8xf32> to vector<1x8x8x8xbf16>
    %c0_13 = arith.constant 0 : index
    %c0_14 = arith.constant 0 : index
    %c0_15 = arith.constant 0 : index
    %c0_16 = arith.constant 0 : index
    %43 = vector.load %arg7[%c0_13, %c0_14, %c0_15, %c0_16] : memref<1x8x8x8xbf16, #tpu.memory_space<vmem>>, vector<1x8x8x8xbf16>
    tpu.vector_store %arg7[%c0_13, %c0_14, %c0_15, %c0_16], %42 {strides = array<i32>} : memref<1x8x8x8xbf16, #tpu.memory_space<vmem>>, vector<1x8x8x8xbf16>,
    return
  }
  func.func @transform_0(%arg0: i32, %arg1: i32, %arg2: i32) -> (i32, i32, i32, i32) {
    %c0_i32 = arith.constant 0 : i32
    %c0_i32_0 = arith.constant 0 : i32
    %c0_i32_1 = arith.constant 0 : i32
    %c0_i32_2 = arith.constant 0 : i32
    return %arg1, %c0_i32, %c0_i32_0, %c0_i32_1 : i32, i32, i32, i32
  }
  func.func @transform_1(%arg0: i32, %arg1: i32, %arg2: i32) -> (i32, i32) {
    %c0_i32 = arith.constant 0 : i32
    %c0_i32_0 = arith.constant 0 : i32
    return %c0_i32, %arg0 : i32, i32
  }
  func.func @transform_2(%arg0: i32, %arg1: i32, %arg2: i32) -> (i32, i32) {
    %c0_i32 = arith.constant 0 : i32
    %c0_i32_0 = arith.constant 0 : i32
    return %c0_i32, %arg0 : i32, i32
  }
  func.func @transform_3(%arg0: i32, %arg1: i32, %arg2: i32) -> (i32, i32) {
    %c0_i32 = arith.constant 0 : i32
    %c0_i32_0 = arith.constant 0 : i32
    return %c0_i32, %arg0 : i32, i32
  }
  func.func @transform_4(%arg0: i32, %arg1: i32, %arg2: i32) -> (i32, i32, i32, i32) {
    %c0_i32 = arith.constant 0 : i32
    %c0_i32_0 = arith.constant 0 : i32
    return %arg1, %arg2, %c0_i32, %arg0 : i32, i32, i32, i32
  }
}

module attributes {stable_mosaic.version = 11 : i64} {
  func.func @_tail_fused_kernel(%arg0: i32, %arg1: i32, %arg2: i32, %arg3: memref<1x8x8x8xbf16, #tpu.memory_space<vmem>>, %arg4: memref<1x8x8x8xbf16, #tpu.memory_space<vmem>>, %arg5: memref<1x8x8x8xbf16, #tpu.memory_space<vmem>>, %arg6: memref<1x8x8x32xbf16, #tpu.memory_space<vmem>>, %arg7: memref<8x32xbf16, #tpu.memory_space<vmem>>, %arg8: memref<8x32xbf16, #tpu.memory_space<vmem>>, %arg9: memref<8x32xbf16, #tpu.memory_space<vmem>>, %arg10: memref<32x32xbf16, #tpu.memory_space<vmem>>, %arg11: memref<1x32xf32, #tpu.memory_space<vmem>>, %arg12: memref<1x32xf32, #tpu.memory_space<vmem>>, %arg13: memref<1x32xf32, #tpu.memory_space<vmem>>, %arg14: memref<1x32xf32, #tpu.memory_space<vmem>>, %arg15: memref<1x8x8x32xf32, #tpu.memory_space<vmem>>) attributes {dimension_semantics = [#tpu.dimension_semantics<parallel>, #tpu.dimension_semantics<parallel>, #tpu.dimension_semantics<parallel>], iteration_bounds = array<i64: 1, 2, 1>, scalar_prefetch = 0 : i64, scratch_operands = 0 : i64, tpu.core_type = #tpu.core_type<tc>, window_params = [{transform_indices = @transform_0, window_bounds = array<i64: 1, 8, 8, 8>}, {transform_indices = @transform_1, window_bounds = array<i64: 1, 8, 8, 8>}, {transform_indices = @transform_2, window_bounds = array<i64: 1, 8, 8, 8>}, {transform_indices = @transform_3, window_bounds = array<i64: 1, 8, 8, 32>}, {transform_indices = @transform_4, window_bounds = array<i64: 8, 32>}, {transform_indices = @transform_5, window_bounds = array<i64: 8, 32>}, {transform_indices = @transform_6, window_bounds = array<i64: 8, 32>}, {transform_indices = @transform_7, window_bounds = array<i64: 32, 32>}, {transform_indices = @transform_8, window_bounds = array<i64: 1, 32>}, {transform_indices = @transform_9, window_bounds = array<i64: 1, 32>}, {transform_indices = @transform_10, window_bounds = array<i64: 1, 32>}, {transform_indices = @transform_11, window_bounds = array<i64: 1, 32>}, {transform_indices = @transform_12, window_bounds = array<i64: 1, 8, 8, 32>}]} {
    %c0 = arith.constant 0 : index
    %c0_0 = arith.constant 0 : index
    %c0_1 = arith.constant 0 : index
    %c0_2 = arith.constant 0 : index
    %0 = vector.load %arg3[%c0, %c0_0, %c0_1, %c0_2] : memref<1x8x8x8xbf16, #tpu.memory_space<vmem>>, vector<1x8x8x8xbf16>
    %1 = vector.shape_cast %0 : vector<1x8x8x8xbf16> to vector<8x8x8xbf16>
    %2 = vector.shape_cast %1 : vector<8x8x8xbf16> to vector<64x8xbf16>
    %c0_3 = arith.constant 0 : index
    %c0_4 = arith.constant 0 : index
    %3 = vector.load %arg7[%c0_3, %c0_4] : memref<8x32xbf16, #tpu.memory_space<vmem>>, vector<8x32xbf16>
    %cst = arith.constant dense<0.000000e+00> : vector<64x32xf32>
    %4 = tpu.matmul %2, %3, %cst {dimension_numbers = #tpu.dot_dimension_numbers<[1], [0], [0], [1], [0, 0, 1, 1], [], []>} : vector<64x8xbf16>, vector<8x32xbf16>, vector<64x32xf32> -> vector<64x32xf32>
    %c0_5 = arith.constant 0 : index
    %c0_6 = arith.constant 0 : index
    %c0_7 = arith.constant 0 : index
    %c0_8 = arith.constant 0 : index
    %5 = vector.load %arg4[%c0_5, %c0_6, %c0_7, %c0_8] : memref<1x8x8x8xbf16, #tpu.memory_space<vmem>>, vector<1x8x8x8xbf16>
    %6 = vector.shape_cast %5 : vector<1x8x8x8xbf16> to vector<8x8x8xbf16>
    %7 = vector.shape_cast %6 : vector<8x8x8xbf16> to vector<64x8xbf16>
    %c0_9 = arith.constant 0 : index
    %c0_10 = arith.constant 0 : index
    %8 = vector.load %arg8[%c0_9, %c0_10] : memref<8x32xbf16, #tpu.memory_space<vmem>>, vector<8x32xbf16>
    %cst_11 = arith.constant dense<0.000000e+00> : vector<64x32xf32>
    %9 = tpu.matmul %7, %8, %cst_11 {dimension_numbers = #tpu.dot_dimension_numbers<[1], [0], [0], [1], [0, 0, 1, 1], [], []>} : vector<64x8xbf16>, vector<8x32xbf16>, vector<64x32xf32> -> vector<64x32xf32>
    %10 = arith.addf %4, %9 : vector<64x32xf32>
    %c0_12 = arith.constant 0 : index
    %c0_13 = arith.constant 0 : index
    %c0_14 = arith.constant 0 : index
    %c0_15 = arith.constant 0 : index
    %11 = vector.load %arg5[%c0_12, %c0_13, %c0_14, %c0_15] : memref<1x8x8x8xbf16, #tpu.memory_space<vmem>>, vector<1x8x8x8xbf16>
    %12 = vector.shape_cast %11 : vector<1x8x8x8xbf16> to vector<8x8x8xbf16>
    %13 = vector.shape_cast %12 : vector<8x8x8xbf16> to vector<64x8xbf16>
    %c0_16 = arith.constant 0 : index
    %c0_17 = arith.constant 0 : index
    %14 = vector.load %arg9[%c0_16, %c0_17] : memref<8x32xbf16, #tpu.memory_space<vmem>>, vector<8x32xbf16>
    %cst_18 = arith.constant dense<0.000000e+00> : vector<64x32xf32>
    %15 = tpu.matmul %13, %14, %cst_18 {dimension_numbers = #tpu.dot_dimension_numbers<[1], [0], [0], [1], [0, 0, 1, 1], [], []>} : vector<64x8xbf16>, vector<8x32xbf16>, vector<64x32xf32> -> vector<64x32xf32>
    %16 = arith.addf %10, %15 : vector<64x32xf32>
    %c0_19 = arith.constant 0 : index
    %c0_20 = arith.constant 0 : index
    %17 = vector.load %arg11[%c0_19, %c0_20] : memref<1x32xf32, #tpu.memory_space<vmem>>, vector<1x32xf32>
    %18 = vector.broadcast %17 : vector<1x32xf32> to vector<64x32xf32>
    %19 = arith.mulf %16, %18 : vector<64x32xf32>
    %c0_21 = arith.constant 0 : index
    %c0_22 = arith.constant 0 : index
    %20 = vector.load %arg12[%c0_21, %c0_22] : memref<1x32xf32, #tpu.memory_space<vmem>>, vector<1x32xf32>
    %21 = vector.broadcast %20 : vector<1x32xf32> to vector<64x32xf32>
    %22 = arith.addf %19, %21 : vector<64x32xf32>
    %c0_23 = arith.constant 0 : index
    %c0_24 = arith.constant 0 : index
    %c0_25 = arith.constant 0 : index
    %c0_26 = arith.constant 0 : index
    %23 = vector.load %arg6[%c0_23, %c0_24, %c0_25, %c0_26] : memref<1x8x8x32xbf16, #tpu.memory_space<vmem>>, vector<1x8x8x32xbf16>
    %24 = vector.shape_cast %23 : vector<1x8x8x32xbf16> to vector<8x8x32xbf16>
    %25 = vector.shape_cast %24 : vector<8x8x32xbf16> to vector<64x32xbf16>
    %c0_27 = arith.constant 0 : index
    %c0_28 = arith.constant 0 : index
    %26 = vector.load %arg10[%c0_27, %c0_28] : memref<32x32xbf16, #tpu.memory_space<vmem>>, vector<32x32xbf16>
    %cst_29 = arith.constant dense<0.000000e+00> : vector<64x32xf32>
    %27 = tpu.matmul %25, %26, %cst_29 {dimension_numbers = #tpu.dot_dimension_numbers<[1], [0], [0], [1], [0, 0, 1, 1], [], []>} : vector<64x32xbf16>, vector<32x32xbf16>, vector<64x32xf32> -> vector<64x32xf32>
    %c0_30 = arith.constant 0 : index
    %c0_31 = arith.constant 0 : index
    %28 = vector.load %arg13[%c0_30, %c0_31] : memref<1x32xf32, #tpu.memory_space<vmem>>, vector<1x32xf32>
    %29 = vector.broadcast %28 : vector<1x32xf32> to vector<64x32xf32>
    %30 = arith.mulf %27, %29 : vector<64x32xf32>
    %c0_32 = arith.constant 0 : index
    %c0_33 = arith.constant 0 : index
    %31 = vector.load %arg14[%c0_32, %c0_33] : memref<1x32xf32, #tpu.memory_space<vmem>>, vector<1x32xf32>
    %32 = vector.broadcast %31 : vector<1x32xf32> to vector<64x32xf32>
    %33 = arith.addf %30, %32 : vector<64x32xf32>
    %cst_34 = arith.constant 1.000000e-01 : f32
    %34 = vector.broadcast %cst_34 : f32 to vector<64x32xf32>
    %35 = arith.mulf %22, %34 : vector<64x32xf32>
    %36 = arith.addf %35, %33 : vector<64x32xf32>
    %cst_35 = arith.constant 0.000000e+00 : f32
    %37 = vector.broadcast %cst_35 : f32 to vector<64x32xf32>
    %38 = arith.maximumf %36, %37 : vector<64x32xf32>
    %39 = vector.shape_cast %38 : vector<64x32xf32> to vector<1x8x8x32xf32>
    %c0_36 = arith.constant 0 : index
    %c0_37 = arith.constant 0 : index
    %c0_38 = arith.constant 0 : index
    %c0_39 = arith.constant 0 : index
    %40 = vector.load %arg15[%c0_36, %c0_37, %c0_38, %c0_39] : memref<1x8x8x32xf32, #tpu.memory_space<vmem>>, vector<1x8x8x32xf32>
    tpu.vector_store %arg15[%c0_36, %c0_37, %c0_38, %c0_39], %39 {strides = array<i32>} : memref<1x8x8x32xf32, #tpu.memory_space<vmem>>, vector<1x8x8x32xf32>,
    return
  }
  func.func @transform_0(%arg0: i32, %arg1: i32, %arg2: i32) -> (i32, i32, i32, i32) {
    %c0_i32 = arith.constant 0 : i32
    %c0_i32_0 = arith.constant 0 : i32
    %c0_i32_1 = arith.constant 0 : i32
    return %arg1, %arg2, %c0_i32, %c0_i32_0 : i32, i32, i32, i32
  }
  func.func @transform_1(%arg0: i32, %arg1: i32, %arg2: i32) -> (i32, i32, i32, i32) {
    %c0_i32 = arith.constant 0 : i32
    %c0_i32_0 = arith.constant 0 : i32
    %c0_i32_1 = arith.constant 0 : i32
    return %arg1, %arg2, %c0_i32, %c0_i32_0 : i32, i32, i32, i32
  }
  func.func @transform_2(%arg0: i32, %arg1: i32, %arg2: i32) -> (i32, i32, i32, i32) {
    %c0_i32 = arith.constant 0 : i32
    %c0_i32_0 = arith.constant 0 : i32
    %c0_i32_1 = arith.constant 0 : i32
    return %arg1, %arg2, %c0_i32, %c0_i32_0 : i32, i32, i32, i32
  }
  func.func @transform_3(%arg0: i32, %arg1: i32, %arg2: i32) -> (i32, i32, i32, i32) {
    %c0_i32 = arith.constant 0 : i32
    %c0_i32_0 = arith.constant 0 : i32
    %c0_i32_1 = arith.constant 0 : i32
    return %arg1, %arg2, %c0_i32, %c0_i32_0 : i32, i32, i32, i32
  }
  func.func @transform_4(%arg0: i32, %arg1: i32, %arg2: i32) -> (i32, i32) {
    %c0_i32 = arith.constant 0 : i32
    %c0_i32_0 = arith.constant 0 : i32
    return %c0_i32, %arg0 : i32, i32
  }
  func.func @transform_5(%arg0: i32, %arg1: i32, %arg2: i32) -> (i32, i32) {
    %c0_i32 = arith.constant 0 : i32
    %c0_i32_0 = arith.constant 0 : i32
    return %c0_i32, %arg0 : i32, i32
  }
  func.func @transform_6(%arg0: i32, %arg1: i32, %arg2: i32) -> (i32, i32) {
    %c0_i32 = arith.constant 0 : i32
    %c0_i32_0 = arith.constant 0 : i32
    return %c0_i32, %arg0 : i32, i32
  }
  func.func @transform_7(%arg0: i32, %arg1: i32, %arg2: i32) -> (i32, i32) {
    %c0_i32 = arith.constant 0 : i32
    %c0_i32_0 = arith.constant 0 : i32
    return %c0_i32, %arg0 : i32, i32
  }
  func.func @transform_8(%arg0: i32, %arg1: i32, %arg2: i32) -> (i32, i32) {
    %c0_i32 = arith.constant 0 : i32
    %c0_i32_0 = arith.constant 0 : i32
    return %c0_i32, %arg0 : i32, i32
  }
  func.func @transform_9(%arg0: i32, %arg1: i32, %arg2: i32) -> (i32, i32) {
    %c0_i32 = arith.constant 0 : i32
    %c0_i32_0 = arith.constant 0 : i32
    return %c0_i32, %arg0 : i32, i32
  }
  func.func @transform_10(%arg0: i32, %arg1: i32, %arg2: i32) -> (i32, i32) {
    %c0_i32 = arith.constant 0 : i32
    %c0_i32_0 = arith.constant 0 : i32
    return %c0_i32, %arg0 : i32, i32
  }
  func.func @transform_11(%arg0: i32, %arg1: i32, %arg2: i32) -> (i32, i32) {
    %c0_i32 = arith.constant 0 : i32
    %c0_i32_0 = arith.constant 0 : i32
    return %c0_i32, %arg0 : i32, i32
  }
  func.func @transform_12(%arg0: i32, %arg1: i32, %arg2: i32) -> (i32, i32, i32, i32) {
    %c0_i32 = arith.constant 0 : i32
    %c0_i32_0 = arith.constant 0 : i32
    return %arg1, %arg2, %c0_i32, %arg0 : i32, i32, i32, i32
  }
}

</mosaic_0001>

<bundles_post_ra>
// kernel: basic_rfb_apply.15
= control target key start
LH: loop header
LB: loop body
LE: loop exit
PB: predicated region body
PF: predicated region fallthrough
CT: control target
= control target key end

     0   :  { %s726_s15 = smov 0   ;;  %s728_s16 = smov 0   ;;  %s796_s0 = inlined_call_operand.vmem [shape: bf16[2,8,8,32], index: 0, kind: input, shape index: {}]   ;;  %s797_s1 = inlined_call_operand.vmem [shape: bf16[32,4], index: 1, kind: input, shape index: {}]   ;;  %s798_s2 = inlined_call_operand.vmem [shape: f32[1,4], index: 2, kind: input, shape index: {}]   ;;  %s799_s3 = inlined_call_operand.vmem [shape: f32[1,4], index: 3, kind: input, shape index: {}]   ;;  %s800_s4 = inlined_call_operand.vmem [shape: bf16[2,8,8,4], index: 4, kind: output, shape index: {}]  }
   0x1   :  { %s730_s17 = smov 0  }
   0x2 LB: > { %s29_s18 = sadd.s32 1, %s695_s16  ;;  %p604_p0 = scmp.ge.s32.totalorder %s699_s17, 1  ;;  %s699_s17 = sphi %s730_s17, %s14_s17   ;;  %s695_s16 = sphi %s728_s16, %s802_s16   ;;  %s691_s15 = sphi %s726_s15, %s801_s15  }
   0x3   : > { %p31_p1 = scmp.ge.s32.totalorder %s29_s18, 2  ;;  %p210_p2 = scmp.lt.s32.totalorder %s699_s17, 3 }
   0x5   : > { %s804_s18 = smov (%p31_p1, %s29_s18), 0  ;;  %p211_p3 = pnand %p604_p0, %p210_p2 }
   0x6   : > { %p253_p4 = scmp.lt.s32.totalorder (!%p211_p3), %s691_s15, 1 }
   0x7   : > { %214 = sbr.rel (%p211_p3) target bundleno = 230 (0xe6), region = 36 }
   0xc   : > { %v671_v0 = vld [vmem:[%s797_s1 + $0x8] sm:$0xff]   ;;  %v672_v1 = vld [vmem:[%s797_s1] sm:$0xff]   ;;  %s806_s15 = smov (!%p253_p4, %s691_s15), 1  ;;  %vm329_vm0 = vcmask 261120   ;;  %vm453_vm1 = vcmask 27648  }
   0xd   : > { %631 = vmatprep.subr.bf16.mxu0 %v671_v0  ;;  %643 = vmatprep.subr.bf16.mxu1 %v671_v0  ;;  %s623_s23 = sshll.u32 %s806_s15, 5  ;;  %v619_v6 = vld [vmem:[%s798_s2] ss:$0 sm:$0xff] }
   0xe   : > { %632 = vmatpush3.bf16.msra.mxu0 %v671_v0  ;;  %645 = vmatpush3.bf16.msra.mxu1 %v671_v0  ;;  %s257_s26 = scalar_lea.vmem %s796_s0, %s623_s23  ;;  %v620_v8 = vld [vmem:[%s799_s3] ss:$0 sm:$0xff]  ;;  %s769_s7 = scalar_lea.vmem %s800_s4, %s623_s23 }
   0xf   : > { %633 = vmatprep.subr.bf16.mxu0 %v672_v1  ;;  %644 = vmatprep.subr.bf16.mxu1 %v672_v1  ;;  %v673_v2 = vld [vmem:[%s257_s26] sm:$0xff]   ;;  %v674_v3 = vld [vmem:[%s257_s26 + $0x10] sm:$0xff]   ;;  %v675_v4 = vld [vmem:[%s257_s26 + $0x8] sm:$0xff]  }
  0x10   : > { %635 = vmatprep.mubr.msk.bf16.mxu0 %vm329_vm0, %v673_v2  ;;  %639 = vmatprep.mubr.msk.bf16.mxu1 %vm329_vm0, %v674_v3  ;;  %v676_v5 = vld [vmem:[%s257_s26 + $0x18] sm:$0xff]  }
  0x12   : > { %634 = vmatpush3.bf16.msra.mxu0 %v672_v1  ;;  %646 = vmatpush3.bf16.msra.mxu1 %v672_v1 }
  0x15   : > { %636 = vmatmul.mubr.msk.bf16.vlgmr.msra.gmra.mxu0 %vm329_vm0, %v675_v4  ;;  %640 = vmatmul.mubr.msk.bf16.vlgmr.msra.gmra.mxu1 %vm329_vm0, %v676_v5 }
  0xd5   : > { %v637_v7 = vpop.f32.mrf.mxu0  ;;  %v641_v10 = vpop.f32.mrf.mxu1 }
  0xd6   : > { %v416_v9 = vmul.f32 %v637_v7, %v619_v6  ;;  %v420_v11 = vmul.f32 %v641_v10, %v619_v6 }
  0xd7   : > { %v376_v12 = vpop.f32.mrf.mxu0  ;;  %v392_v15 = vpop.f32.mrf.mxu1 }
  0xd8   : > { %v431_v13 = vadd.f32 %v620_v8, %v416_v9  ;;  %v414_v14 = vmul.f32 %v619_v6, %v376_v12  ;;  %v435_v16 = vadd.f32 %v620_v8, %v420_v11  ;;  %v418_v17 = vmul.f32 %v619_v6, %v392_v15 }
  0xd9   : > { %v638_v18 = vpop.f32.mrf.mxu0  ;;  %v642_v22 = vpop.f32.mrf.mxu1 }
  0xda   : > { %v439_v19 = vmax.f32 %v431_v13, 0.0  ;;  %v429_v20 = vadd.f32 %v620_v8, %v414_v14  ;;  %v417_v21 = vmul.f32 %v638_v18, %v619_v6  ;;  %v443_v23 = vmax.f32 %v435_v16, 0.0 }
  0xdb   : > { %v433_v24 = vadd.f32 %v620_v8, %v418_v17  ;;  %v421_v25 = vmul.f32 %v642_v22, %v619_v6  ;;  %v379_v26 = vpop.f32.mrf.mxu0  ;;  %v395_v31 = vpop.f32.mrf.mxu1 }
  0xdc   : > { %v447_v27 = vpack.c.bf16 %v439_v19, %v439_v19  ;;  %v437_v28 = vmax.f32 %v429_v20, 0.0  ;;  %v432_v29 = vadd.f32 %v620_v8, %v417_v21  ;;  %v415_v30 = vmul.f32 %v619_v6, %v379_v26 }
  0xdd   : > { %v451_v32 = vpack.c.bf16 %v443_v23, %v443_v23  ;;  %v441_v33 = vmax.f32 %v433_v24, 0.0  ;;  %v436_v34 = vadd.f32 %v620_v8, %v421_v25  ;;  %v419_v35 = vmul.f32 %v619_v6, %v395_v31 }
  0xde   : > { %456 = vst.msk [vmem:[%s769_s7 + $0x8] sm:$0xf] %vm453_vm1, %v447_v27  ;;  %v445_v36 = vpack.c.bf16 %v437_v28, %v437_v28  ;;  %v440_v37 = vmax.f32 %v432_v29, 0.0  ;;  %v430_v38 = vadd.f32 %v620_v8, %v415_v30 }
  0xdf   : > { %460 = vst.msk [vmem:[%s769_s7 + $0x18] sm:$0xf] %vm453_vm1, %v451_v32  ;;  %v449_v39 = vpack.c.bf16 %v441_v33, %v441_v33  ;;  %v444_v40 = vmax.f32 %v436_v34, 0.0  ;;  %v434_v41 = vadd.f32 %v620_v8, %v419_v35 }
  0xe0   : > { %454 = vst.msk [vmem:[%s769_s7] sm:$0xf] %vm453_vm1, %v445_v36  ;;  %v448_v42 = vpack.c.bf16 %v440_v37, %v440_v37  ;;  %v438_v43 = vmax.f32 %v430_v38, 0.0 }
  0xe1   : > { %458 = vst.msk [vmem:[%s769_s7 + $0x10] sm:$0xf] %vm453_vm1, %v449_v39  ;;  %v452_v44 = vpack.c.bf16 %v444_v40, %v444_v40  ;;  %v442_v45 = vmax.f32 %v434_v41, 0.0 }
  0xe2   : > { %457 = vst.msk [vmem:[%s769_s7 + $0xc] sm:$0xf] %vm453_vm1, %v448_v42  ;;  %v446_v46 = vpack.c.bf16 %v438_v43, %v438_v43 }
  0xe3   : > { %461 = vst.msk [vmem:[%s769_s7 + $0x1c] sm:$0xf] %vm453_vm1, %v452_v44  ;;  %v450_v47 = vpack.c.bf16 %v442_v45, %v442_v45 }
  0xe4   : > { %455 = vst.msk [vmem:[%s769_s7 + $0x4] sm:$0xf] %vm453_vm1, %v446_v46 }
  0xe5   : > { %459 = vst.msk [vmem:[%s769_s7 + $0x14] sm:$0xf] %vm453_vm1, %v450_v47 }
  0xe6 PF: > { %s14_s17 = sadd.s32 1, %s699_s17   ;;  %s801_s15 = smov %s695_s16 }
  0xe7   : > { %p11_p5 = scmp.ge.s32.totalorder %s14_s17, 4   ;;  %s802_s16 = smov %s804_s18 }
  0xe9   :  { %13 = sbr.rel (!%p11_p5) target bundleno = 2 (0x2), region = 76 }

// kernel: basic_rfb_apply.17
= control target key start
LH: loop header
LB: loop body
LE: loop exit
PB: predicated region body
PF: predicated region fallthrough
CT: control target
= control target key end

     0   :  { %s1807_s15 = smov 0   ;;  %s1809_s16 = smov 0   ;;  %s2425_s0 = inlined_call_operand.vmem [shape: bf16[2,8,8,6], index: 0, kind: input, shape index: {}]   ;;  %s2426_s1 = inlined_call_operand.vmem [shape: bf16[54,8], index: 1, kind: input, shape index: {}]   ;;  %s2427_s2 = inlined_call_operand.vmem [shape: f32[1,8], index: 2, kind: input, shape index: {}]   ;;  %s2428_s3 = inlined_call_operand.vmem [shape: f32[1,8], index: 3, kind: input, shape index: {}]   ;;  %s2429_s4 = inlined_call_operand.vmem [shape: bf16[2,8,8,8], index: 4, kind: output, shape index: {}]  }
   0x1   :  { %s1811_s17 = smov 0  }
   0x2 LB: > { %s29_s18 = sadd.s32 1, %s1767_s16  ;;  %p1556_p0 = scmp.ge.s32.totalorder %s1771_s17, 1  ;;  %s1771_s17 = sphi %s1811_s17, %s14_s17   ;;  %s1767_s16 = sphi %s1809_s16, %s2447_s16   ;;  %s1763_s15 = sphi %s1807_s15, %s2446_s15  }
   0x3   : > { %p31_p1 = scmp.ge.s32.totalorder %s29_s18, 2  ;;  %p210_p2 = scmp.lt.s32.totalorder %s1771_s17, 3 }
   0x5   : > { %s2449_s18 = smov (%p31_p1, %s29_s18), 0  ;;  %p211_p3 = pnand %p1556_p0, %p210_p2 }
   0x6   : > { %p253_p4 = scmp.lt.s32.totalorder (!%p211_p3), %s1763_s15, 1  ;;  %s1774_s23 = smov (!%p211_p3), 18  }
   0x7   : > { %214 = sbr.rel (%p211_p3) target bundleno = 452 (0x1c4), region = 36  ;;  %s1775_s24 = smov (!%p211_p3), 12  }
   0x8   : > { %s1776_s25 = smov (!%p211_p3), 30   ;;  %s1777_s26 = smov (!%p211_p3), 6  }
   0x9   : > { %s1778_s27 = smov (!%p211_p3), 24   ;;  %s1779_s30 = smov (!%p211_p3), 36  }
   0xa   : > { %s1780_s5 = smov (!%p211_p3), 42   ;;  %s1781_s6 = smov (!%p211_p3), 48  }
   0xc   : > { %vm286_vm0 = vcmask 44032   ;;  %v1773_v0 = vmov 0   ;;  %vm288_vm1 = vcmask 40960   ;;  %s2451_s15 = smov (!%p253_p4, %s1763_s15), 1  ;;  %vm398_vm2 = vsmask.f32 7938 }
   0xd   : > { %298 = vst.msk [vmem:[#allocation2 + $0x28] sm:$0xf] %vm286_vm0, %v1773_v0  ;;  %300 = vst.msk [vmem:[#allocation2 + $0x30] sm:$0xf] %vm286_vm0, %v1773_v0  ;;  %s1665_s19 = sshll.u32 %s2451_s15, 5  ;;  %vm602_vm4 = vcmask 1042432  }
   0xe   : > { %287 = vst.msk [vmem:[#allocation2] sm:$0xf] %vm286_vm0, %v1773_v0  ;;  %290 = vst.msk [vmem:[#allocation2 + $0x8] sm:$0xf] %vm286_vm0, %v1773_v0  ;;  %s1854_s22 = scalar_lea.vmem %s2425_s0, %s1665_s19  ;;  %vm404_vm3 = vsmask.f32 256 }
   0xf   : > { %292 = vst.msk [vmem:[#allocation2 + $0x10] sm:$0xf] %vm286_vm0, %v1773_v0  ;;  %294 = vst.msk [vmem:[#allocation2 + $0x18] sm:$0xf] %vm286_vm0, %v1773_v0  ;;  %v312_v1 = vld [vmem:[%s1854_s22 + $0x10] sm:$0xf] }
  0x10   : > { %296 = vst.msk [vmem:[#allocation2 + $0x20] sm:$0xf] %vm286_vm0, %v1773_v0  ;;  %302 = vst.msk [vmem:[#allocation2 + $0x38] sm:$0xf] %vm286_vm0, %v1773_v0  ;;  %v313_v2 = vld [vmem:[%s1854_s22 + $0x14] sm:$0xf] }
  0x11   : > { %304 = vst.msk [vmem:[#allocation2 + $0x40] sm:$0xf] %vm286_vm0, %v1773_v0  ;;  %306 = vst.msk [vmem:[#allocation2 + $0x48] sm:$0xf] %vm286_vm0, %v1773_v0  ;;  %v308_v3 = vld [vmem:[%s1854_s22] sm:$0xf] }
  0x12   : > { %297 = vst.msk [vmem:[#allocation2 + $0x24] sm:$0x1] %vm288_vm1, %v1773_v0  ;;  %299 = vst.msk [vmem:[#allocation2 + $0x2c] sm:$0x1] %vm288_vm1, %v1773_v0  ;;  %v349_v4 = vshrl.u32 %v312_v1, 16  ;;  %v352_v5 = vshll.u32 %v312_v1, 16 }
  0x13   : > { %289 = vst.msk [vmem:[#allocation2 + $0x4] sm:$0x1] %vm288_vm1, %v1773_v0  ;;  %291 = vst.msk [vmem:[#allocation2 + $0xc] sm:$0x1] %vm288_vm1, %v1773_v0  ;;  %v357_v6 = vshrl.u32 %v313_v2, 16  ;;  %v360_v7 = vshll.u32 %v313_v2, 16 }
  0x14   : > { %293 = vst.msk [vmem:[#allocation2 + $0x14] sm:$0x1] %vm288_vm1, %v1773_v0  ;;  %295 = vst.msk [vmem:[#allocation2 + $0x1c] sm:$0x1] %vm288_vm1, %v1773_v0  ;;  %v309_v8 = vld [vmem:[%s1854_s22 + $0x4] sm:$0xf] }
  0x15   : > { %301 = vst.msk [vmem:[#allocation2 + $0x34] sm:$0x1] %vm288_vm1, %v1773_v0  ;;  %303 = vst.msk [vmem:[#allocation2 + $0x3c] sm:$0x1] %vm288_vm1, %v1773_v0  ;;  %v317_v9 = vshrl.u32 %v308_v3, 16  ;;  %v320_v10 = vshll.u32 %v308_v3, 16 }
  0x16   : > { %305 = vst.msk [vmem:[#allocation2 + $0x44] sm:$0x1] %vm288_vm1, %v1773_v0  ;;  %307 = vst.msk [vmem:[#allocation2 + $0x4c] sm:$0x1] %vm288_vm1, %v1773_v0  ;;  %v351_v11 = vrot.slane %v349_v4, 7  ;;  %v1860_v12 = vrot.slane %v357_v6, 7 }
  0x17   : > { %v427_v13 = vld [vmem:[#allocation2 + $0x28] sm:$0xf]  ;;  %v325_v14 = vshrl.u32 %v309_v8, 16  ;;  %vm603_vm5 = vcmask 1046532   ;;  %vm1864_vm6 = vmand %vm286_vm0, %vm398_vm2  ;;  %v433_v16 = vld [vmem:[#allocation2 + $0x30] sm:$0xf] }
  0x18   : > { %v319_v17 = vrot.slane %v317_v9, 7  ;;  %v328_v18 = vshll.u32 %v309_v8, 16  ;;  %v314_v19 = vld [vmem:[%s1854_s22 + $0x18] sm:$0xf]  ;;  %v354_v20 = vor.u32 %v352_v5, %v351_v11  ;;  %v355_v21 = vrot.slane %v351_v11, 4  ;;  %vm1886_vm7 = vmand %vm288_vm1, %vm404_vm3  ;;  %v1748_v58 = vld [vmem:[%s2426_s1] sm:$0xff]  }
  0x19   : > { %v362_v22 = vor.u32 %v360_v7, %v1860_v12  ;;  %v363_v23 = vrot.slane %v1860_v12, 4  ;;  %v400_v24 = vld [vmem:[#allocation2 + $0x8] sm:$0xf]  ;;  %v315_v25 = vld [vmem:[%s1854_s22 + $0x1c] sm:$0xf]  ;;  %v1872_v28 = vrot.slane %v325_v14, 7  ;;  %vm1901_vm8 = vmor %vm602_vm4, %vm603_vm5 }
  0x1a   : > { %v322_v26 = vor.u32 %v320_v10, %v319_v17  ;;  %v323_v27 = vrot.slane %v319_v17, 4  ;;  %v409_v29 = vld [vmem:[#allocation2 + $0x10] sm:$0xf]  ;;  %v365_v30 = vshrl.u32 %v314_v19, 16  ;;  %v428_v31 = vsel %vm1864_vm6, %v354_v20, %v427_v13  ;;  %v310_v35 = vld [vmem:[%s1854_s22 + $0x8] sm:$0xf] }
  0x1b   : > { %v434_v32 = vsel %vm1864_vm6, %v362_v22, %v433_v16  ;;  %v368_v33 = vshll.u32 %v314_v19, 16  ;;  %v373_v34 = vshrl.u32 %v315_v25, 16  ;;  %v311_v36 = vld [vmem:[%s1854_s22 + $0xc] sm:$0xf]  ;;  %429 = vst [vmem:[#allocation2 + $0x28] sm:$0xf] %v428_v31  ;;  %v330_v37 = vor.u32 %v328_v18, %v1872_v28 }
  0x1c   : > { %435 = vst [vmem:[#allocation2 + $0x30] sm:$0xf] %v434_v32  ;;  %v331_v38 = vrot.slane %v1872_v28, 4  ;;  %v401_v39 = vsel %vm1864_vm6, %v322_v26, %v400_v24  ;;  %v367_v40 = vrot.slane %v365_v30, 7  ;;  %v439_v41 = vld [vmem:[#allocation2 + $0x38] sm:$0xf] }
  0x1d   : > { %402 = vst [vmem:[#allocation2 + $0x8] sm:$0xf] %v401_v39  ;;  %v1890_v43 = vrot.slane %v373_v34, 7  ;;  %v376_v44 = vshll.u32 %v315_v25, 16  ;;  %v445_v45 = vld [vmem:[#allocation2 + $0x40] sm:$0xf]  ;;  %v410_v48 = vsel %vm1864_vm6, %v330_v37, %v409_v29 }
  0x1e   : > { %v333_v46 = vshrl.u32 %v310_v35, 16  ;;  %v336_v47 = vshll.u32 %v310_v35, 16  ;;  %v370_v49 = vor.u32 %v368_v33, %v367_v40  ;;  %v341_v50 = vshrl.u32 %v311_v36, 16  ;;  %v415_v52 = vld [vmem:[#allocation2 + $0x18] sm:$0xf] }
  0x1f   : > { %v344_v51 = vshll.u32 %v311_v36, 16  ;;  %v430_v53 = vld [vmem:[#allocation2 + $0x2c] sm:$0x1]  ;;  %411 = vst [vmem:[#allocation2 + $0x10] sm:$0xf] %v410_v48  ;;  %v378_v55 = vor.u32 %v376_v44, %v1890_v43  ;;  %v371_v5 = vrot.slane %v367_v40, 4 }
  0x20   : > { %v406_v54 = vld [vmem:[#allocation2 + $0xc] sm:$0x1]  ;;  %v1895_v56 = vrot.slane %v333_v46, 7  ;;  %v431_v57 = vsel %vm1886_vm7, %v355_v21, %v430_v53  ;;  %v1907_v60 = vld [vmem:[#allocation2] sm:$0xf]  ;;  %v440_v62 = vsel %vm1864_vm6, %v370_v49, %v439_v41  ;;  %v343_v63 = vrot.slane %v341_v50, 7 }
  0x21   : > { %v407_v59 = vsel %vm1886_vm7, %v323_v27, %v406_v54  ;;  %v1909_v61 = vld [vmem:[#allocation2 + $0x4] sm:$0x1]  ;;  %432 = vst [vmem:[#allocation2 + $0x2c] sm:$0x1] %v431_v57  ;;  %v1561_v0 = vrot.slane %v1907_v60, 9  ;;  %v446_v3 = vsel %vm1864_vm6, %v378_v55, %v445_v45  ;;  %vm1169_vm12 = vcmask 48128  }
  0x22   : > { %408 = vst [vmem:[#allocation2 + $0xc] sm:$0x1] %v407_v59  ;;  %v607_v1 = vrot.slane %v1909_v61, 5  ;;  %v436_v2 = vld [vmem:[#allocation2 + $0x34] sm:$0x1]  ;;  %v338_v4 = vor.u32 %v336_v47, %v1895_v56  ;;  %v346_v9 = vor.u32 %v344_v51, %v343_v63  ;;  %v347_v11 = vrot.slane %v343_v63, 4 }
  0x23   : > { %441 = vst [vmem:[#allocation2 + $0x38] sm:$0xf] %v440_v62  ;;  %v437_v6 = vsel %vm1886_vm7, %v363_v23, %v436_v2  ;;  %v442_v7 = vld [vmem:[#allocation2 + $0x3c] sm:$0x1]  ;;  %v412_v8 = vld [vmem:[#allocation2 + $0x14] sm:$0x1] }
  0x24   : > { %447 = vst [vmem:[#allocation2 + $0x40] sm:$0xf] %v446_v3  ;;  %v421_v10 = vld [vmem:[#allocation2 + $0x20] sm:$0xf]  ;;  %v424_v12 = vld [vmem:[#allocation2 + $0x24] sm:$0x1]  ;;  %v1922_v13 = vsel %vm1901_vm8, %v1561_v0, %v607_v1  ;;  %v416_v17 = vsel %vm1864_vm6, %v338_v4, %v415_v52  ;;  %v443_v18 = vsel %vm1886_vm7, %v371_v5, %v442_v7  ;;  %v413_v20 = vsel %vm1886_vm7, %v331_v38, %v412_v8 }
  0x25   : > { %438 = vst [vmem:[#allocation2 + $0x34] sm:$0x1] %v437_v6  ;;  %v1924_v14 = vld [vmem:[#allocation2 + $0x28] sm:$0xf]  ;;  %v1926_v16 = vld [vmem:[#allocation2 + $0x30] sm:$0xf]  ;;  %v422_v29 = vsel %vm1864_vm6, %v346_v9, %v421_v10  ;;  %v425_v35 = vsel %vm1886_vm7, %v347_v11, %v424_v12 }
  0x26   : > { %v339_v19 = vrot.slane %v1895_v56, 4  ;;  %v728_v21 = vshrl.u32 %v1926_v16, 16  ;;  %v731_v22 = vshll.u32 %v1926_v16, 16  ;;  %v1631_v23 = vcombine.low %v1924_v14, %v1926_v16  ;;  %v1940_v25 = vld [vmem:[#allocation2 + $0x8] sm:$0xf] }
  0x27   : > { %v714_v24 = vshrl.u32 %v1924_v14, 16  ;;  %417 = vst [vmem:[#allocation2 + $0x18] sm:$0xf] %v416_v17  ;;  %444 = vst [vmem:[#allocation2 + $0x3c] sm:$0x1] %v443_v18  ;;  %v717_v26 = vshll.u32 %v1924_v14, 16 }
  0x28   : > { %414 = vst [vmem:[#allocation2 + $0x14] sm:$0x1] %v413_v20  ;;  %v658_v27 = vshrl.u32 %v1940_v25, 16  ;;  %v661_v28 = vshll.u32 %v1940_v25, 16  ;;  %v1947_v30 = vld [vmem:[#allocation2 + $0x28] sm:$0xf]  ;;  %1065 = vrot.lane.b32.xlu1 %v1631_v23, %s1774_s23 }
  0x29   : > { %v1949_v31 = vrot.slane %v728_v21, 4  ;;  %v1951_v32 = vrot.slane %v731_v22, 5  ;;  %v1954_v33 = vrot.slane %v714_v24, 4  ;;  %v1956_v34 = vld [vmem:[#allocation2 + $0x10] sm:$0xf]  ;;  %v1962_v37 = vrot.slane %v717_v26, 5 }
  0x2a   : > { %423 = vst [vmem:[#allocation2 + $0x20] sm:$0xf] %v422_v29  ;;  %v1960_v36 = vld [vmem:[#allocation2 + $0x8] sm:$0xf]  ;;  %v418_v15 = vld [vmem:[#allocation2 + $0x1c] sm:$0x1]  ;;  %v1629_v40 = vcombine.low %v1940_v25, %v1956_v34 }
  0x2b   : > { %v672_v38 = vshrl.u32 %v1956_v34, 16  ;;  %v675_v39 = vshll.u32 %v1956_v34, 16  ;;  %426 = vst [vmem:[#allocation2 + $0x24] sm:$0x1] %v425_v35  ;;  %v1968_v41 = vld [vmem:[#allocation2 + $0x2c] sm:$0x1]  ;;  %v419_v3 = vsel %vm1886_vm7, %v339_v19, %v418_v15  ;;  %v720_v4 = vor.u32 %v1962_v37, %v1954_v33 }
  0x2c   : > { %v1970_v44 = vrot.slane %v658_v27, 4  ;;  %v1972_v45 = vrot.slane %v661_v28, 5  ;;  %v1974_v46 = vld [vmem:[#allocation2 + $0x38] sm:$0xf]  ;;  %v1566_v47 = vrot.slane %v1947_v30, 9  ;;  %v627_v48 = vrot.slane %v1968_v41, 5  ;;  %1061 = vrot.lane.b32.xlu0 %v1629_v40, %s1774_s23 }
  0x2d   : > { %v1978_v49 = vrot.slane %v672_v38, 4  ;;  %v1980_v50 = vrot.slane %v675_v39, 5  ;;  %v1983_v51 = vld [vmem:[#allocation2 + $0x40] sm:$0xf]  ;;  %v742_v52 = vshrl.u32 %v1974_v46, 16  ;;  %v1562_v0 = vrot.slane %v1960_v36, 9 }
  0x2e   : > { %v1632_v56 = vcombine.low %v1974_v46, %v1983_v51  ;;  %v628_v57 = vsel %vm1901_vm8, %v1566_v47, %v627_v48  ;;  %v1993_v59 = vld [vmem:[#allocation2 + $0xc] sm:$0x1]  ;;  %v1995_v62 = vld [vmem:[#allocation2 + $0x30] sm:$0xf]  ;;  %v1997_v63 = vld [vmem:[#allocation2 + $0x18] sm:$0xf]  ;;  %v734_v9 = vor.u32 %v1951_v32, %v1949_v31  ;;  %v664_v10 = vor.u32 %v1972_v45, %v1970_v44 }
  0x2f   : > { %v611_v1 = vrot.slane %v1993_v59, 5  ;;  %v2001_v2 = vld [vmem:[#allocation2 + $0x34] sm:$0x1]  ;;  %v2010_v7 = vld [vmem:[#allocation2 + $0x38] sm:$0xf]  ;;  %v1567_v18 = vrot.slane %v1995_v62, 9  ;;  %v678_v20 = vor.u32 %v1980_v50, %v1978_v49 }
  0x30   : > { %1067 = vrot.lane.b32.xlu1 %v1632_v56, %s1774_s23  ;;  %v2012_v8 = vld [vmem:[#allocation2 + $0x3c] sm:$0x1]  ;;  %420 = vst [vmem:[#allocation2 + $0x1c] sm:$0x1] %v419_v3  ;;  %v631_v19 = vrot.slane %v2001_v2, 5  ;;  %v1568_v35 = vrot.slane %v2010_v7, 9 }
  0x31   : > { %v2018_v11 = vld [vmem:[#allocation2 + $0x20] sm:$0xf]  ;;  %v612_v17 = vsel %vm1901_vm8, %v1562_v0, %v611_v1  ;;  %v2040_v15 = vld [vmem:[#allocation2 + $0x10] sm:$0xf]  ;;  %v460_v38 = vld [vmem:[#allocation2 + $0x14] sm:$0x1] }
  0x32   : > { %v2020_v12 = vld [vmem:[#allocation2 + $0x20] sm:$0xf]  ;;  %v1630_v23 = vcombine.low %v1997_v63, %v2018_v11  ;;  %v2032_v24 = vld [vmem:[#allocation2 + $0x24] sm:$0x1]  ;;  %v1625_v28 = vcombine.low %v1922_v13, %v612_v17  ;;  %v632_v29 = vsel %vm1901_vm8, %v1567_v18, %v631_v19  ;;  %vm471_vm9 = vsmask.f32 3328 }
  0x33   : > { %v1565_v26 = vrot.slane %v2020_v12, 9  ;;  %v623_v27 = vrot.slane %v2032_v24, 5  ;;  %vm472_vm10 = vsmask.f32 7440  ;;  %v635_v39 = vrot.slane %v2012_v8, 5 }
  0x34   : > { %1063 = vrot.lane.b32.xlu0 %v1630_v23, %s1774_s23  ;;  %v2044_v40 = vld [vmem:[#allocation2 + $0x18] sm:$0xf]  ;;  %v1563_v47 = vrot.slane %v2040_v15, 9  ;;  %v615_v48 = vrot.slane %v460_v38, 5  ;;  %v1589_v13 = vrot.slane %v1924_v14, 9  ;;  %v1590_v17 = vrot.slane %v1926_v16, 9  ;;  %vm2091_vm11 = vmor %vm471_vm9, %vm472_vm10 }
  0x35   : > { %v624_v56 = vsel %vm1901_vm8, %v1565_v26, %v623_v27  ;;  %v1564_v0 = vrot.slane %v2044_v40, 9  ;;  %v2051_v1 = vld [vmem:[#allocation2 + $0x2c] sm:$0x1]  ;;  %v2053_v3 = vld [vmem:[#allocation2 + $0x34] sm:$0x1]  ;;  %v636_v23 = vsel %vm1901_vm8, %v1568_v35, %v635_v39  ;;  %v1585_v5 = vrot.slane %v1940_v25, 9 }
  0x36   : > { %v1627_v19 = vcombine.low %v624_v56, %v628_v57  ;;  %v616_v14 = vsel %vm1901_vm8, %v1563_v47, %v615_v48  ;;  %v803_v26 = vrot.slane %v2051_v1, 5  ;;  %v2063_v27 = vld [vmem:[#allocation2 + $0xc] sm:$0x1]  ;;  %v2065_v22 = vld [vmem:[#allocation2 + $0x14] sm:$0x1]  ;;  %v1628_v21 = vcombine.low %v632_v29, %v636_v23 }
  0x37   : > { %v462_v6 = vld [vmem:[#allocation2 + $0x1c] sm:$0x1]  ;;  %v807_v16 = vrot.slane %v2053_v3, 5  ;;  %v787_v57 = vrot.slane %v2063_v27, 5  ;;  %v1586_v47 = vrot.slane %v1956_v34, 9  ;;  %v791_v48 = vrot.slane %v2065_v22, 5 }
  0x38   : > { %1045 = vrot.lane.b32.xlu1 %v1627_v19, %s1775_s24  ;;  %1041 = vrot.lane.b32.xlu0 %v1625_v28, %s1775_s24  ;;  %v619_v35 = vrot.slane %v462_v6, 5  ;;  %v804_v39 = vsel %vm1901_vm8, %v1589_v13, %v803_v26  ;;  %v503_v25 = vshrl.u32 %v2040_v15, 16  ;;  %v506_v23 = vshll.u32 %v2040_v15, 16  ;;  %v448_v32 = vld [vmem:[#allocation2 + $0x44] sm:$0x1] }
  0x39   : > { %v808_v29 = vsel %vm1901_vm8, %v1590_v17, %v807_v16  ;;  %v788_v56 = vsel %vm1901_vm8, %v1585_v5, %v787_v57  ;;  %v792_v13 = vsel %vm1901_vm8, %v1586_v47, %v791_v48  ;;  %v512_v34 = vshll.u32 %v460_v38, 16 }
  0x3a   : > { %v620_v28 = vsel %vm1901_vm8, %v1564_v0, %v619_v35  ;;  %v1639_v19 = vcombine.low %v804_v39, %v808_v29  ;;  %v1637_v18 = vcombine.low %v788_v56, %v792_v13  ;;  %v505_v55 = vrot.slane %v503_v25, 4 }
  0x3b   : > { %v1626_v26 = vcombine.low %v616_v14, %v620_v28  ;;  %v508_v54 = vrot.slane %v506_v23, 5  ;;  %v514_v17 = vrot.slane %v512_v34, 5  ;;  %v517_v5 = vshrl.u32 %v2044_v40, 16 }
  0x3c   : > { %1047 = vrot.lane.b32.xlu1 %v1628_v21, %s1775_s24  ;;  %v520_v16 = vshll.u32 %v2044_v40, 16  ;;  %v526_v57 = vshll.u32 %v462_v6, 16  ;;  %v475_v0 = vshrl.u32 %v1907_v60, 16  ;;  %v478_v35 = vshll.u32 %v1907_v60, 16 }
  0x3d   : > { %1043 = vrot.lane.b32.xlu0 %v1626_v26, %s1775_s24  ;;  %v509_v53 = vor.u32 %v508_v54, %v505_v55  ;;  %v484_v39 = vshll.u32 %v1909_v61, 16  ;;  %v519_v21 = vrot.slane %v517_v5, 4  ;;  %v489_v48 = vshrl.u32 %v1960_v36, 16  ;;  %s2398_s24 = scalar_lea.vmem %s2429_s4, %s1665_s19 }
  0x3e   : > { %v522_v14 = vrot.slane %v520_v16, 5  ;;  %v528_v47 = vrot.slane %v526_v57, 5  ;;  %v477_v29 = vrot.slane %v475_v0, 4  ;;  %v480_v54 = vrot.slane %v478_v35, 5 }
  0x3f   : > { %v510_v6 = vrot.slane %v509_v53, 4  ;;  %v486_v55 = vrot.slane %v484_v39, 5  ;;  %v491_v61 = vrot.slane %v489_v48, 4  ;;  %v492_v25 = vshll.u32 %v1960_v36, 16 }
  0x40   : > { %1105 = vrot.lane.b32.xlu1 %v1639_v19, %s1776_s25  ;;  %v523_v56 = vor.u32 %v522_v14, %v519_v21  ;;  %v498_v23 = vshll.u32 %v1993_v59, 16  ;;  %v481_v13 = vor.u32 %v480_v54, %v477_v29  ;;  %v559_v53 = vshrl.u32 %v1995_v62, 16 }
  0x41   : > { %1101 = vrot.lane.b32.xlu0 %v1637_v18, %s1776_s25  ;;  %v515_v28 = vsel %vm2091_vm11, %v510_v6, %v514_v17  ;;  %v562_v34 = vshll.u32 %v1995_v62, 16  ;;  %v494_v5 = vrot.slane %v492_v25, 5  ;;  %v568_v19 = vshll.u32 %v2001_v2, 16 }
  0x42   : > { %v524_v26 = vrot.slane %v523_v56, 4  ;;  %v500_v16 = vrot.slane %v498_v23, 5  ;;  %v482_v57 = vrot.slane %v481_v13, 4  ;;  %v561_v0 = vrot.slane %v559_v53, 4 }
  0x43   : > { %v564_v35 = vrot.slane %v562_v34, 5  ;;  %v573_v59 = vshrl.u32 %v2010_v7, 16  ;;  %v495_v39 = vor.u32 %v494_v5, %v491_v61  ;;  %v570_v17 = vrot.slane %v568_v19, 5 }
  0x44   : > { %v529_v18 = vsel %vm2091_vm11, %v524_v26, %v528_v47  ;;  %v576_v21 = vshll.u32 %v2010_v7, 16  ;;  %v487_v48 = vsel %vm2091_vm11, %v482_v57, %v486_v55  ;;  %v582_v56 = vshll.u32 %v2012_v8, 16 }
  0x45   : > { %v1622_v14 = vcombine.low %v515_v28, %v529_v18  ;;  %v565_v6 = vor.u32 %v564_v35, %v561_v0  ;;  %v575_v29 = vrot.slane %v573_v59, 4  ;;  %v496_v54 = vrot.slane %v495_v39, 4 }
  0x46   : > { %v578_v2 = vrot.slane %v576_v21, 5  ;;  %v531_v25 = vshrl.u32 %v2020_v12, 16  ;;  %v534_v61 = vshll.u32 %v2020_v12, 16  ;;  %v540_v23 = vshll.u32 %v2032_v24, 16 }
  0x47   : > { %1023 = vrot.lane.b32.xlu1 %v1622_v14, %s1777_s26  ;;  %v566_v47 = vrot.slane %v565_v6, 4  ;;  %v545_v28 = vshrl.u32 %v1947_v30, 16  ;;  %v501_v55 = vsel %vm2091_vm11, %v496_v54, %v500_v16  ;;  %v584_v53 = vrot.slane %v582_v56, 5 }
  0x48   : > { %v579_v13 = vor.u32 %v578_v2, %v575_v29  ;;  %v533_v34 = vrot.slane %v531_v25, 4  ;;  %v1621_v26 = vcombine.low %v487_v48, %v501_v55  ;;  %v536_v5 = vrot.slane %v534_v61, 5 }
  0x49   : > { %v571_v8 = vsel %vm2091_vm11, %v566_v47, %v570_v17  ;;  %v542_v19 = vrot.slane %v540_v23, 5  ;;  %v547_v0 = vrot.slane %v545_v28, 4  ;;  %v548_v35 = vshll.u32 %v1947_v30, 16 }
  0x4a   : > { %v580_v57 = vrot.slane %v579_v13, 4  ;;  %v554_v24 = vshll.u32 %v1968_v41, 16  ;;  %1021 = vrot.lane.b32.xlu0 %v1621_v26, %s1777_s26  ;;  %v537_v59 = vor.u32 %v536_v5, %v533_v34  ;;  %v721_v16 = vrot.slane %v720_v4, 4  ;;  %v1576_v26 = vld [vmem:[#allocation2 + $0x24] sm:$0x1] }
  0x4b   : > { %v723_v18 = vshll.u32 %v2051_v1, 16  ;;  %v735_v39 = vrot.slane %v734_v9, 4  ;;  %v550_v21 = vrot.slane %v548_v35, 5  ;;  %v737_v41 = vshll.u32 %v2053_v3, 16 }
  0x4c   : > { %v585_v17 = vsel %vm2091_vm11, %v580_v57, %v584_v53  ;;  %v556_v14 = vrot.slane %v554_v24, 5  ;;  %v538_v6 = vrot.slane %v537_v59, 4  ;;  %v665_v33 = vrot.slane %v664_v10, 4  ;;  %v1582_v10 = vld [vmem:[#allocation2 + $0x3c] sm:$0x1] }
  0x4d   : > { %v1624_v48 = vcombine.low %v571_v8, %v585_v17  ;;  %v725_v29 = vrot.slane %v723_v18, 5  ;;  %v551_v37 = vor.u32 %v550_v21, %v547_v0  ;;  %v739_v4 = vrot.slane %v737_v41, 5 }
  0x4e   : > { %v667_v1 = vshll.u32 %v2063_v27, 16  ;;  %v679_v31 = vrot.slane %v678_v20, 4  ;;  %v543_v9 = vsel %vm2091_vm11, %v538_v6, %v542_v19  ;;  %v681_v44 = vshll.u32 %v2065_v22, 16 }
  0x4f   : > { %1027 = vrot.lane.b32.xlu1 %v1624_v48, %s1777_s26  ;;  %v726_v3 = vsel %vm2091_vm11, %v721_v16, %v725_v29  ;;  %v379_v45 = vrot.slane %v1890_v43, 4  ;;  %v552_v54 = vrot.slane %v551_v37, 4  ;;  %v740_v27 = vsel %vm2091_vm11, %v735_v39, %v739_v4  ;;  %v2179_v4 = vld [vmem:[#allocation2 + $0x30] sm:$0xf] }
  0x50   : > { %v669_v49 = vrot.slane %v667_v1, 5  ;;  %v744_v50 = vrot.slane %v742_v52, 4  ;;  %v1635_v20 = vcombine.low %v726_v3, %v740_v27  ;;  %v683_v2 = vrot.slane %v681_v44, 5  ;;  %v1574_v52 = vld [vmem:[#allocation2 + $0x1c] sm:$0x1] }
  0x51   : > { %v449_v56 = vsel %vm1886_vm7, %v379_v45, %v448_v32  ;;  %v2438_v25 = vshll.u32 %v1974_v46, 16  ;;  %v557_v43 = vsel %vm2091_vm11, %v552_v54, %v556_v14  ;;  %v751_v61 = vshll.u32 %v1582_v10, 16  ;;  %v2182_v3 = vld [vmem:[#allocation2 + $0x38] sm:$0xf] }
  0x52   : > { %v670_v22 = vsel %vm2091_vm11, %v665_v33, %v669_v49  ;;  %450 = vst [vmem:[#allocation2 + $0x44] sm:$0x1] %v449_v56  ;;  %v2439_v23 = vshrl.u32 %v1983_v51, 16  ;;  %v1623_v55 = vcombine.low %v543_v9, %v557_v43  ;;  %v684_v42 = vsel %vm2091_vm11, %v679_v31, %v683_v2 }
  0x53   : > { %v747_v47 = vrot.slane %v2438_v25, 5  ;;  %1085 = vrot.lane.b32.xlu1 %v1635_v20, %s1778_s27  ;;  %v2440_v53 = vshll.u32 %v1983_v51, 16  ;;  %v1633_v8 = vcombine.low %v670_v22, %v684_v42  ;;  %v753_v5 = vrot.slane %v751_v61, 5  ;;  %v2204_v61 = vld [vmem:[#allocation2 + $0x18] sm:$0xf] }
  0x54   : > { %v758_v28 = vrot.slane %v2439_v23, 4  ;;  %v2441_v19 = vshrl.u32 %v1997_v63, 16  ;;  %v2442_v0 = vshll.u32 %v1997_v63, 16  ;;  %1025 = vrot.lane.b32.xlu0 %v1623_v55, %s1777_s26  ;;  %v695_v16 = vshll.u32 %v1574_v52, 16  ;;  %v2206_v23 = vld [vmem:[#allocation2 + $0x40] sm:$0xf] }
  0x55   : > { %v748_v13 = vor.u32 %v747_v47, %v744_v50  ;;  %v761_v34 = vrot.slane %v2440_v53, 5  ;;  %v2443_v18 = vshrl.u32 %v2018_v11, 16  ;;  %v2444_v21 = vshll.u32 %v2018_v11, 16  ;;  %v2197_v47 = vld [vmem:[#allocation2 + $0x10] sm:$0xf] }
  0x56   : > { %v688_v57 = vrot.slane %v2441_v19, 4  ;;  %v691_v35 = vrot.slane %v2442_v0, 5  ;;  %v709_v41 = vshll.u32 %v1576_v26, 16  ;;  %v1591_v48 = vrot.slane %v1974_v46, 9  ;;  %v2214_v53 = vld [vmem:[#allocation2 + $0x20] sm:$0xf] }
  0x57   : > { %v749_v24 = vrot.slane %v748_v13, 4  ;;  %v762_v59 = vor.u32 %v761_v34, %v758_v28  ;;  %v702_v39 = vrot.slane %v2443_v18, 4  ;;  %v705_v14 = vrot.slane %v2444_v21, 5  ;;  %v2212_v13 = vld [vmem:[#allocation2 + $0x48] sm:$0xf] }
  0x58   : > { %v692_v17 = vor.u32 %v691_v35, %v688_v57  ;;  %v697_v33 = vrot.slane %v695_v16, 5  ;;  %v811_v37 = vrot.slane %v1582_v10, 5  ;;  %v711_v32 = vrot.slane %v709_v41, 5  ;;  %1081 = vrot.lane.b32.xlu0 %v1633_v8, %s1778_s27  ;;  %v2221_v19 = vld [vmem:[#allocation2 + $0x28] sm:$0xf] }
  0x59   : > { %v754_v6 = vsel %vm2091_vm11, %v749_v24, %v753_v5  ;;  %v763_v29 = vrot.slane %v762_v59, 4  ;;  %v706_v31 = vor.u32 %v705_v14, %v702_v39  ;;  %v1592_v9 = vrot.slane %v1983_v51, 9  ;;  %v1584_v44 = vld [vmem:[#allocation2 + $0x44] sm:$0x1]  ;;  %v2223_v57 = vld [vmem:[#allocation2 + $0x34] sm:$0x1] }
  0x5a   : > { %v693_v1 = vrot.slane %v692_v17, 4  ;;  %v2187_v46 = vsel %vm1901_vm8, %v1591_v48, %v811_v37  ;;  %v1587_v45 = vrot.slane %v1997_v63, 9  ;;  %v795_v54 = vrot.slane %v1574_v52, 5  ;;  %v2229_v16 = vld [vmem:[#allocation2 + $0x3c] sm:$0x1] }
  0x5b   : > { %v1588_v10 = vrot.slane %v2018_v11, 9  ;;  %v765_v27 = vshll.u32 %v1584_v44, 16  ;;  %v707_v50 = vrot.slane %v706_v31, 4  ;;  %v815_v51 = vrot.slane %v1584_v44, 5 }
  0x5c   : > { %v698_v49 = vsel %vm2091_vm11, %v693_v1, %v697_v33  ;;  %v796_v20 = vsel %vm1901_vm8, %v1587_v45, %v795_v54  ;;  %v799_v2 = vrot.slane %v1576_v26, 5  ;;  %v894_v56 = vshrl.u32 %v2179_v4, 16  ;;  %v2239_v14 = vld [vmem:[%s2426_s1 + $0x18] ss:$0 sps:$4 sm:$0x77]  }
  0x5d   : > { %v897_v25 = vshll.u32 %v2179_v4, 16  ;;  %v767_v63 = vrot.slane %v765_v27, 5  ;;  %v712_v11 = vsel %vm2091_vm11, %v707_v50, %v711_v32  ;;  %v816_v43 = vsel %vm1901_vm8, %v1592_v9, %v815_v51  ;;  %v2247_v33 = vld [vmem:[#allocation2 + $0x14] sm:$0x1]  ;;  %1699 = vmatprep.subr.msk.bf16.mxu0 %vm602_vm4, %v2239_v14  ;;  %1700 = vmatprep.subr.msk.bf16.mxu1 %vm602_vm4, %v2239_v14 }
  0x5e   : > { %v908_v22 = vshrl.u32 %v2182_v3, 16  ;;  %v1634_v28 = vcombine.low %v698_v49, %v712_v11  ;;  %v1640_v52 = vcombine.low %v2187_v46, %v816_v43  ;;  %v800_v55 = vsel %vm1901_vm8, %v1588_v10, %v799_v2  ;;  %v2260_v10 = vld [vmem:[#allocation2 + $0x1c] sm:$0x1] }
  0x5f   : > { %v911_v42 = vshll.u32 %v2182_v3, 16  ;;  %v768_v34 = vsel %vm2091_vm11, %v763_v29, %v767_v63  ;;  %v1638_v26 = vcombine.low %v796_v20, %v800_v55  ;;  %v1643_v8 = vcombine.low %v2179_v4, %v2182_v3  ;;  %v2264_v63 = vld [vmem:[#allocation2 + $0x44] sm:$0x1] }
  0x60   : > { %v838_v5 = vshrl.u32 %v2197_v47, 16  ;;  %v1636_v0 = vcombine.low %v754_v6, %v768_v34  ;;  %1083 = vrot.lane.b32.xlu0 %v1634_v28, %s1778_s27  ;;  %v841_v35 = vshll.u32 %v2197_v47, 16  ;;  %v852_v24 = vshrl.u32 %v2204_v61, 16 }
  0x61   : > { %v855_v59 = vshll.u32 %v2204_v61, 16  ;;  %v1641_v18 = vcombine.low %v2197_v47, %v2204_v61  ;;  %v922_v39 = vshrl.u32 %v2206_v23, 16  ;;  %v925_v17 = vshll.u32 %v2206_v23, 16 }
  0x62   : > { %v936_v21 = vshrl.u32 %v2212_v13, 16  ;;  %1087 = vrot.lane.b32.xlu1 %v1636_v0, %s1778_s27  ;;  %v939_v41 = vshll.u32 %v2212_v13, 16  ;;  %v1644_v48 = vcombine.low %v2206_v23, %v2212_v13  ;;  %v866_v6 = vshrl.u32 %v2214_v53, 16 }
  0x63   : > { %v869_v29 = vshll.u32 %v2214_v53, 16  ;;  %v880_v37 = vshrl.u32 %v2221_v19, 16  ;;  %v883_v1 = vshll.u32 %v2221_v19, 16  ;;  %v1642_v31 = vcombine.low %v2214_v53, %v2221_v19 }
  0x64   : > { %v896_v32 = vrot.slane %v894_v56, 4  ;;  %1103 = vrot.lane.b32.xlu0 %v1638_v26, %s1776_s25  ;;  %v899_v9 = vrot.slane %v897_v25, 5  ;;  %v903_v44 = vshll.u32 %v2223_v57, 16  ;;  %v910_v46 = vrot.slane %v908_v22, 4 }
  0x65   : > { %v913_v45 = vrot.slane %v911_v42, 5  ;;  %v917_v54 = vshll.u32 %v2229_v16, 16  ;;  %v840_v27 = vrot.slane %v838_v5, 4  ;;  %v843_v49 = vrot.slane %v841_v35, 5  ;;  %v2268_v5 = vld [vmem:[#allocation2 + $0x4c] sm:$0x1] }
  0x66   : > { %v847_v50 = vshll.u32 %v2247_v33, 16  ;;  %1107 = vrot.lane.b32.xlu1 %v1640_v52, %s1776_s25  ;;  %v900_v51 = vor.u32 %v899_v9, %v896_v32  ;;  %v905_v20 = vrot.slane %v903_v44, 5  ;;  %v854_v56 = vrot.slane %v852_v24, 4  ;;  %v2276_v9 = vld [vmem:[#allocation2 + $0x24] sm:$0x1] }
  0x67   : > { %v914_v2 = vor.u32 %v913_v45, %v910_v46  ;;  %v919_v25 = vrot.slane %v917_v54, 5  ;;  %v844_v11 = vor.u32 %v843_v49, %v840_v27  ;;  %v857_v22 = vrot.slane %v855_v59, 5 }
  0x68   : > { %v849_v43 = vrot.slane %v847_v50, 5  ;;  %1121 = vrot.lane.b32.xlu0 %v1641_v18, %s1779_s30  ;;  %v901_v28 = vrot.slane %v900_v51, 4  ;;  %v861_v42 = vshll.u32 %v2260_v10, 16  ;;  %v924_v34 = vrot.slane %v922_v39, 4 }
  0x69   : > { %v915_v55 = vrot.slane %v914_v2, 4  ;;  %v845_v26 = vrot.slane %v844_v11, 4  ;;  %v858_v52 = vor.u32 %v857_v22, %v854_v56  ;;  %v927_v0 = vrot.slane %v925_v17, 5 }
  0x6a   : > { %v931_v35 = vshll.u32 %v2264_v63, 16  ;;  %1125 = vrot.lane.b32.xlu1 %v1643_v8, %s1779_s30  ;;  %v906_v24 = vsel %vm2091_vm11, %v901_v28, %v905_v20  ;;  %v863_v18 = vrot.slane %v861_v42, 5  ;;  %v938_v32 = vrot.slane %v936_v21, 4  ;;  %v1600_v21 = vld [vmem:[#allocation2 + $0x2c] sm:$0x1] }
  0x6b   : > { %v920_v59 = vsel %vm2091_vm11, %v915_v55, %v919_v25  ;;  %v850_v44 = vsel %vm2091_vm11, %v845_v26, %v849_v43  ;;  %v859_v46 = vrot.slane %v858_v52, 4  ;;  %v928_v17 = vor.u32 %v927_v0, %v924_v34 }
  0x6c   : > { %v1647_v39 = vcombine.low %v906_v24, %v920_v59  ;;  %1123 = vrot.lane.b32.xlu0 %v1642_v31, %s1779_s30  ;;  %v933_v45 = vrot.slane %v931_v35, 5  ;;  %v941_v8 = vrot.slane %v939_v41, 5  ;;  %v945_v54 = vshll.u32 %v2268_v5, 16 }
  0x6d   : > { %v868_v27 = vrot.slane %v866_v6, 4  ;;  %v864_v49 = vsel %vm2091_vm11, %v859_v46, %v863_v18  ;;  %v929_v50 = vrot.slane %v928_v17, 4  ;;  %v871_v51 = vrot.slane %v869_v29, 5 }
  0x6e   : > { %v875_v20 = vshll.u32 %v2276_v9, 16  ;;  %1127 = vrot.lane.b32.xlu1 %v1644_v48, %s1779_s30  ;;  %v1645_v2 = vcombine.low %v850_v44, %v864_v49  ;;  %v942_v56 = vor.u32 %v941_v8, %v938_v32  ;;  %v947_v25 = vrot.slane %v945_v54, 5 }
  0x6f   : > { %v882_v11 = vrot.slane %v880_v37, 4  ;;  %v934_v41 = vsel %vm2091_vm11, %v929_v50, %v933_v45  ;;  %v872_v31 = vor.u32 %v871_v51, %v868_v27  ;;  %v885_v6 = vrot.slane %v883_v1, 5 }
  0x70   : > { %v877_v43 = vrot.slane %v875_v20, 5  ;;  %1141 = vrot.lane.b32.xlu0 %v1645_v2, %s1780_s5  ;;  %v943_v29 = vrot.slane %v942_v56, 4  ;;  %v889_v22 = vshll.u32 %v1600_v21, 16  ;;  %v1613_v28 = vrot.slane %v2179_v4, 9 }
  0x71   : > { %v983_v48 = vrot.slane %v2223_v57, 5  ;;  %v873_v55 = vrot.slane %v872_v31, 4  ;;  %v886_v42 = vor.u32 %v885_v6, %v882_v11  ;;  %v1614_v37 = vrot.slane %v2182_v3, 9 }
  0x72   : > { %v987_v34 = vrot.slane %v2229_v16, 5  ;;  %1145 = vrot.lane.b32.xlu1 %v1647_v39, %s1780_s5  ;;  %v948_v1 = vsel %vm2091_vm11, %v943_v29, %v947_v25  ;;  %v891_v26 = vrot.slane %v889_v22, 5  ;;  %v1609_v0 = vrot.slane %v2197_v47, 9 }
  0x73   : > { %v984_v52 = vsel %vm1901_vm8, %v1613_v28, %v983_v48  ;;  %v1648_v4 = vcombine.low %v934_v41, %v948_v1  ;;  %v878_v57 = vsel %vm2091_vm11, %v873_v55, %v877_v43  ;;  %v887_v35 = vrot.slane %v886_v42, 4 }
  0x74   : > { %v988_v3 = vsel %vm1901_vm8, %v1614_v37, %v987_v34  ;;  %v967_v24 = vrot.slane %v2247_v33, 5  ;;  %v1610_v59 = vrot.slane %v2204_v61, 9  ;;  %v971_v18 = vrot.slane %v2260_v10, 5 }
  0x75   : > { %v1651_v16 = vcombine.low %v984_v52, %v988_v3  ;;  %v892_v32 = vsel %vm2091_vm11, %v887_v35, %v891_v26  ;;  %v1615_v47 = vrot.slane %v2206_v23, 9  ;;  %v991_v39 = vrot.slane %v2264_v63, 5 }
  0x76   : > { %v1616_v44 = vrot.slane %v2212_v13, 9  ;;  %1147 = vrot.lane.b32.xlu1 %v1648_v4, %s1780_s5  ;;  %v1646_v46 = vcombine.low %v878_v57, %v892_v32  ;;  %v968_v17 = vsel %vm1901_vm8, %v1609_v0, %v967_v24  ;;  %v972_v61 = vsel %vm1901_vm8, %v1610_v59, %v971_v18 }
  0x77   : > { %v995_v33 = vrot.slane %v2268_v5, 5  ;;  %v992_v38 = vsel %vm1901_vm8, %v1615_v47, %v991_v39  ;;  %v1611_v23 = vrot.slane %v2214_v53, 9  ;;  %v975_v10 = vrot.slane %v2276_v9, 5  ;;  %v1746_v9 = vld [vmem:[%s2426_s1 + $0x10] sm:$0xff]  }
  0x78   : > { %1143 = vrot.lane.b32.xlu0 %v1646_v46, %s1780_s5  ;;  %v1649_v13 = vcombine.low %v968_v17, %v972_v61  ;;  %v1612_v45 = vrot.slane %v2221_v19, 9  ;;  %v979_v8 = vrot.slane %v1600_v21, 5  ;;  %v1284_v49 = vsel %vm602_vm4, %v2239_v14, 0  ;;  %v1747_v19 = vld [vmem:[%s2426_s1 + $0x8] sm:$0xff]  }
  0x79   : > { %v996_v63 = vsel %vm1901_vm8, %v1616_v44, %v995_v33  ;;  %v976_v54 = vsel %vm1901_vm8, %v1611_v23, %v975_v10  ;;  %1676 = vmatpush3.bf16.msra.mxu0 %v1284_v49  ;;  %1695 = vmatpush3.bf16.msra.mxu1 %v1284_v49  ;;  %v1619_v34 = vcombine.low %v2020_v12, %v1947_v30  ;;  %vm1182_vm13 = vcmask 97280  }
  0x7a   : > { %1165 = vrot.lane.b32.xlu1 %v1651_v16, %s1781_s6  ;;  %v1652_v5 = vcombine.low %v992_v38, %v996_v63  ;;  %v980_v53 = vsel %vm1901_vm8, %v1612_v45, %v979_v8  ;;  %1677 = vmatprep.subr.bf16.mxu0 %v1746_v9  ;;  %v1617_v52 = vcombine.low %v1907_v60, %v1960_v36  ;;  %vm1191_vm14 = vcmask 146432  }
  0x7b   : > { %v1650_v27 = vcombine.low %v976_v54, %v980_v53  ;;  %1692 = vmatprep.subr.bf16.mxu1 %v1746_v9  ;;  %v1620_v16 = vcombine.low %v1995_v62, %v2010_v7  ;;  %vm1200_vm15 = vcmask 195584   ;;  %vm1209_vm0 = vcmask 244736  }
  0x7c   : > { %1161 = vrot.lane.b32.xlu0 %v1649_v13, %s1781_s6  ;;  %v2445_v18 = vcombine.low %v2040_v15, %v2044_v40  ;;  %vm1218_vm1 = vcmask 293888   ;;  %vm1227_vm2 = vcmask 343040   ;;  %vm1236_vm3 = vcmask 392192  }
  0x7d   : > { %1678 = vmatpush3.bf16.msra.mxu0 %v1746_v9  ;;  %1696 = vmatpush3.bf16.msra.mxu1 %v1746_v9  ;;  %vm1273_vm4 = vcmask 441344   ;;  %vm1397_vm5 = vcmask 60416  }
  0x7e   : > { %1167 = vrot.lane.b32.xlu1 %v1652_v5, %s1781_s6  ;;  %1679 = vmatprep.subr.bf16.mxu0 %v1747_v19 }
  0x7f   : > { %1693 = vmatprep.subr.bf16.mxu1 %v1747_v19 }
  0x80   : > { %1163 = vrot.lane.b32.xlu0 %v1650_v27, %s1781_s6 }
  0x81   : > { %1680 = vmatpush3.bf16.msra.mxu0 %v1747_v19  ;;  %1697 = vmatpush3.bf16.msra.mxu1 %v1747_v19 }
  0x82   : > { %1681 = vmatprep.subr.bf16.mxu0 %v1748_v58  ;;  %1694 = vmatprep.subr.bf16.mxu1 %v1748_v58 }
  0x85   : > { %1682 = vmatpush3.bf16.msra.mxu0 %v1748_v58  ;;  %1698 = vmatpush3.bf16.msra.mxu1 %v1748_v58 }
  0x9a   : > { %v1066_v14 = vpop.permute.xlu1 %1065 }
  0x9e   : > { %v1062_v50 = vpop.permute.xlu0 %1061 }
  0xa2   : > { %v1068_v21 = vpop.permute.xlu1 %1067 }
  0xa6   : > { %v1064_v51 = vpop.permute.xlu0 %1063 }
  0xaa   : > { %v1046_v20 = vpop.permute.xlu1 %1045  ;;  %v1042_v2 = vpop.permute.xlu0 %1041 }
  0xae   : > { %v1048_v56 = vpop.permute.xlu1 %1047 }
  0xaf   : > { %v1044_v25 = vpop.permute.xlu0 %1043 }
  0xb2   : > { %v1106_v11 = vpop.permute.xlu1 %1105 }
  0xb3   : > { %v1102_v41 = vpop.permute.xlu0 %1101 }
  0xb9   : > { %v1024_v31 = vpop.permute.xlu1 %1023 }
  0xba   : > { %v1175_v32 = vsel %vm1169_vm12, %v2445_v18, %v1024_v31 }
  0xbb   : > { %v1186_v17 = vsel %vm1182_vm13, %v1175_v32, %v1044_v25 }
  0xbc   : > { %v1022_v43 = vpop.permute.xlu0 %1021  ;;  %v1195_v63 = vsel %vm1191_vm14, %v1186_v17, %v1064_v51 }
  0xbd   : > { %v1172_v3 = vsel %vm1169_vm12, %v1617_v52, %v1022_v43 }
  0xbe   : > { %v1184_v60 = vsel %vm1182_vm13, %v1172_v3, %v1042_v2  ;;  %v1662_v2 = vld [vmem:[%s2428_s3] ss:$0 sm:$0xff] }
  0xbf   : > { %v1193_v62 = vsel %vm1191_vm14, %v1184_v60, %v1062_v50 }
  0xc1   : > { %v1028_v6 = vpop.permute.xlu1 %1027 }
  0xc2   : > { %v1181_v36 = vsel %vm1169_vm12, %v1620_v16, %v1028_v6 }
  0xc3   : > { %v1190_v47 = vsel %vm1182_vm13, %v1181_v36, %v1048_v56 }
  0xc4   : > { %v1199_v15 = vsel %vm1191_vm14, %v1190_v47, %v1068_v21 }
  0xc5   : > { %v1086_v28 = vpop.permute.xlu1 %1085 }
  0xc6   : > { %v1026_v29 = vpop.permute.xlu0 %1025 }
  0xc7   : > { %v1178_v0 = vsel %vm1169_vm12, %v1619_v34, %v1026_v29 }
  0xc8   : > { %v1188_v35 = vsel %vm1182_vm13, %v1178_v0, %v1046_v20  ;;  %v1661_v20 = vld [vmem:[%s2427_s2] ss:$0 sm:$0xff] }
  0xc9   : > { %v1197_v30 = vsel %vm1191_vm14, %v1188_v35, %v1066_v14 }
  0xca   : > { %v1082_v22 = vpop.permute.xlu0 %1081  ;;  %v1206_v59 = vsel %vm1200_vm15, %v1197_v30, %v1086_v28 }
  0xcb   : > { %v1202_v39 = vsel %vm1200_vm15, %v1193_v62, %v1082_v22  ;;  %v1215_v44 = vsel %vm1209_vm0, %v1206_v59, %v1106_v11 }
  0xcc   : > { %v1211_v40 = vsel %vm1209_vm0, %v1202_v39, %v1102_v41 }
  0xd2   : > { %v1084_v48 = vpop.permute.xlu0 %1083 }
  0xd3   : > { %v1204_v5 = vsel %vm1200_vm15, %v1195_v63, %v1084_v48 }
  0xd4   : > { %v1088_v55 = vpop.permute.xlu1 %1087 }
  0xd5   : > { %v1208_v23 = vsel %vm1200_vm15, %v1199_v15, %v1088_v55 }
  0xd6   : > { %v1104_v42 = vpop.permute.xlu0 %1103 }
  0xd7   : > { %v1213_v27 = vsel %vm1209_vm0, %v1204_v5, %v1104_v42 }
  0xd8   : > { %v1108_v37 = vpop.permute.xlu1 %1107 }
  0xd9   : > { %v1217_v45 = vsel %vm1209_vm0, %v1208_v23, %v1108_v37 }
  0xda   : > { %v1122_v1 = vpop.permute.xlu0 %1121 }
  0xdb   : > { %v1220_v10 = vsel %vm1218_vm1, %v1211_v40, %v1122_v1 }
  0xdc   : > { %v1126_v26 = vpop.permute.xlu1 %1125 }
  0xdd   : > { %v1224_v61 = vsel %vm1218_vm1, %v1215_v44, %v1126_v26 }
  0xde   : > { %v1124_v4 = vpop.permute.xlu0 %1123 }
  0xdf   : > { %v1222_v58 = vsel %vm1218_vm1, %v1213_v27, %v1124_v4 }
  0xe0   : > { %v1128_v57 = vpop.permute.xlu1 %1127 }
  0xe1   : > { %v1226_v53 = vsel %vm1218_vm1, %v1217_v45, %v1128_v57 }
  0xe2   : > { %v1142_v24 = vpop.permute.xlu0 %1141 }
  0xe3   : > { %v1229_v8 = vsel %vm1227_vm2, %v1220_v10, %v1142_v24 }
  0xe4   : > { %v1146_v12 = vpop.permute.xlu1 %1145 }
  0xe5   : > { %v1233_v33 = vsel %vm1227_vm2, %v1224_v61, %v1146_v12 }
  0xe8   : > { %v1148_v7 = vpop.permute.xlu1 %1147 }
  0xe9   : > { %v1235_v49 = vsel %vm1227_vm2, %v1226_v53, %v1148_v7 }
  0xea   : > { %v1144_v46 = vpop.permute.xlu0 %1143 }
  0xeb   : > { %v1231_v50 = vsel %vm1227_vm2, %v1222_v58, %v1144_v46 }
  0xec   : > { %v1166_v38 = vpop.permute.xlu1 %1165 }
  0xed   : > { %v1242_v13 = vsel %vm1236_vm3, %v1233_v33, %v1166_v38 }
  0xee   : > { %v1162_v54 = vpop.permute.xlu0 %1161  ;;  %1687 = vmatprep.mubr.msk.bf16.mxu1 %vm1273_vm4, %v1242_v13 }
  0xef   : > { %v1238_v9 = vsel %vm1236_vm3, %v1229_v8, %v1162_v54 }
  0xf0   : > { %1683 = vmatprep.mubr.msk.bf16.mxu0 %vm1273_vm4, %v1238_v9  ;;  %v1168_v19 = vpop.permute.xlu1 %1167 }
  0xf1   : > { %v1244_v14 = vsel %vm1236_vm3, %v1235_v49, %v1168_v19 }
  0xf2   : > { %v1164_v21 = vpop.permute.xlu0 %1163  ;;  %1688 = vmatmul.mubr.msk.bf16.vlgmr.msra.gmra.mxu1 %vm1273_vm4, %v1244_v14 }
  0xf3   : > { %v1240_v51 = vsel %vm1236_vm3, %v1231_v50, %v1164_v21 }
  0xf4   : > { %1684 = vmatmul.mubr.msk.bf16.vlgmr.msra.gmra.mxu0 %vm1273_vm4, %v1240_v51 }
 0x1b2   : > { %v1689_v56 = vpop.f32.mrf.mxu1 }
 0x1b3   : > { %v1364_v25 = vmul.f32 %v1689_v56, %v1661_v20 }
 0x1b4   : > { %v1685_v11 = vpop.f32.mrf.mxu0  ;;  %v1336_v41 = vpop.f32.mrf.mxu1 }
 0x1b5   : > { %v1360_v31 = vmul.f32 %v1685_v11, %v1661_v20  ;;  %v1379_v43 = vadd.f32 %v1662_v2, %v1364_v25  ;;  %v1362_v6 = vmul.f32 %v1661_v20, %v1336_v41 }
 0x1b6   : > { %v1320_v29 = vpop.f32.mrf.mxu0  ;;  %v1690_v22 = vpop.f32.mrf.mxu1 }
 0x1b7   : > { %v1375_v28 = vadd.f32 %v1662_v2, %v1360_v31  ;;  %v1387_v48 = vmax.f32 %v1379_v43, 0.0  ;;  %v1358_v55 = vmul.f32 %v1661_v20, %v1320_v29  ;;  %v1377_v42 = vadd.f32 %v1662_v2, %v1362_v6 }
 0x1b8   : > { %v1686_v37 = vpop.f32.mrf.mxu0  ;;  %v1365_v34 = vmul.f32 %v1690_v22, %v1661_v20  ;;  %v1339_v1 = vpop.f32.mrf.mxu1 }
 0x1b9   : > { %v1383_v26 = vmax.f32 %v1375_v28, 0.0  ;;  %v1395_v52 = vpack.c.bf16 %v1387_v48, %v1387_v48  ;;  %v1373_v0 = vadd.f32 %v1662_v2, %v1358_v55  ;;  %v1385_v4 = vmax.f32 %v1377_v42, 0.0 }
 0x1ba   : > { %v1361_v57 = vmul.f32 %v1686_v37, %v1661_v20  ;;  %v1380_v35 = vadd.f32 %v1662_v2, %v1365_v34  ;;  %v1323_v3 = vpop.f32.mrf.mxu0  ;;  %v1363_v16 = vmul.f32 %v1661_v20, %v1339_v1 }
 0x1bb   : > { %v1391_v30 = vpack.c.bf16 %v1383_v26, %v1383_v26  ;;  %1404 = vst.msk [vmem:[%s2398_s24 + $0x18] sm:$0xf] %vm1397_vm5, %v1395_v52  ;;  %v1381_v12 = vmax.f32 %v1373_v0, 0.0  ;;  %v1393_v24 = vpack.c.bf16 %v1385_v4, %v1385_v4  ;;  %v1359_v60 = vmul.f32 %v1661_v20, %v1323_v3 }
 0x1bc   : > { %v1376_v36 = vadd.f32 %v1662_v2, %v1361_v57  ;;  %v1388_v59 = vmax.f32 %v1380_v35, 0.0  ;;  %v1378_v18 = vadd.f32 %v1662_v2, %v1363_v16 }
 0x1bd   : > { %1400 = vst.msk [vmem:[%s2398_s24 + $0x8] sm:$0xf] %vm1397_vm5, %v1391_v30  ;;  %v1389_v32 = vpack.c.bf16 %v1381_v12, %v1381_v12  ;;  %1402 = vst.msk [vmem:[%s2398_s24 + $0x10] sm:$0xf] %vm1397_vm5, %v1393_v24  ;;  %v1374_v62 = vadd.f32 %v1662_v2, %v1359_v60 }
 0x1be   : > { %v1384_v7 = vmax.f32 %v1376_v36, 0.0  ;;  %v1396_v47 = vpack.c.bf16 %v1388_v59, %v1388_v59  ;;  %v1386_v39 = vmax.f32 %v1378_v18, 0.0 }
 0x1bf   : > { %1398 = vst.msk [vmem:[%s2398_s24] sm:$0xf] %vm1397_vm5, %v1389_v32  ;;  %v1382_v44 = vmax.f32 %v1374_v62, 0.0 }
 0x1c0   : > { %v1392_v46 = vpack.c.bf16 %v1384_v7, %v1384_v7  ;;  %1405 = vst.msk [vmem:[%s2398_s24 + $0x1c] sm:$0xf] %vm1397_vm5, %v1396_v47  ;;  %v1394_v17 = vpack.c.bf16 %v1386_v39, %v1386_v39 }
 0x1c1   : > { %v1390_v61 = vpack.c.bf16 %v1382_v44, %v1382_v44 }
 0x1c2   : > { %1401 = vst.msk [vmem:[%s2398_s24 + $0xc] sm:$0xf] %vm1397_vm5, %v1392_v46  ;;  %1403 = vst.msk [vmem:[%s2398_s24 + $0x14] sm:$0xf] %vm1397_vm5, %v1394_v17 }
 0x1c3   : > { %1399 = vst.msk [vmem:[%s2398_s24 + $0x4] sm:$0xf] %vm1397_vm5, %v1390_v61 }
 0x1c4 PF: > { %s14_s17 = sadd.s32 1, %s1771_s17   ;;  %s2446_s15 = smov %s1767_s16 }
 0x1c5   : > { %p11_p5 = scmp.ge.s32.totalorder %s14_s17, 4   ;;  %s2447_s16 = smov %s2449_s18 }
 0x1c7   :  { %13 = sbr.rel (!%p11_p5) target bundleno = 2 (0x2), region = 83 }

// kernel: basic_rfb_apply.16
= control target key start
LH: loop header
LB: loop body
LE: loop exit
PB: predicated region body
PF: predicated region fallthrough
CT: control target
= control target key end

     0   :  { %s1792_s15 = smov 0   ;;  %s1794_s16 = smov 0   ;;  %s2394_s0 = inlined_call_operand.vmem [shape: bf16[2,8,8,4], index: 0, kind: input, shape index: {}]   ;;  %s2395_s1 = inlined_call_operand.vmem [shape: bf16[36,6], index: 1, kind: input, shape index: {}]   ;;  %s2396_s2 = inlined_call_operand.vmem [shape: f32[1,6], index: 2, kind: input, shape index: {}]   ;;  %s2397_s3 = inlined_call_operand.vmem [shape: f32[1,6], index: 3, kind: input, shape index: {}]   ;;  %s2398_s4 = inlined_call_operand.vmem [shape: bf16[2,8,8,6], index: 4, kind: output, shape index: {}]  }
   0x1   :  { %s1796_s17 = smov 0  }
   0x2 LB: > { %s29_s18 = sadd.s32 1, %s1752_s16  ;;  %p1548_p0 = scmp.ge.s32.totalorder %s1756_s17, 1  ;;  %s1756_s17 = sphi %s1796_s17, %s14_s17   ;;  %s1752_s16 = sphi %s1794_s16, %s2416_s16   ;;  %s1748_s15 = sphi %s1792_s15, %s2415_s15  }
   0x3   : > { %p31_p1 = scmp.ge.s32.totalorder %s29_s18, 2  ;;  %p210_p2 = scmp.lt.s32.totalorder %s1756_s17, 3 }
   0x5   : > { %s2418_s18 = smov (%p31_p1, %s29_s18), 0  ;;  %p211_p3 = pnand %p1548_p0, %p210_p2 }
   0x6   : > { %p253_p4 = scmp.lt.s32.totalorder (!%p211_p3), %s1748_s15, 1  ;;  %s1759_s23 = smov (!%p211_p3), 12  }
   0x7   : > { %214 = sbr.rel (%p211_p3) target bundleno = 452 (0x1c4), region = 36  ;;  %s1760_s24 = smov (!%p211_p3), 8  }
   0x8   : > { %s1761_s25 = smov (!%p211_p3), 20   ;;  %s1762_s26 = smov (!%p211_p3), 4  }
   0x9   : > { %s1763_s27 = smov (!%p211_p3), 16   ;;  %s1764_s28 = smov (!%p211_p3), 24  }
   0xa   : > { %s1765_s29 = smov (!%p211_p3), 28   ;;  %s1766_s6 = smov (!%p211_p3), 32  }
   0xc   : > { %vm286_vm0 = vcmask 27648   ;;  %v1758_v0 = vmov 0   ;;  %vm288_vm1 = vcmask 24576   ;;  %s2420_s15 = smov (!%p253_p4, %s1748_s15), 1  ;;  %vm398_vm2 = vsmask.f32 7938 }
   0xd   : > { %298 = vst.msk [vmem:[#allocation2 + $0x28] sm:$0xf] %vm286_vm0, %v1758_v0  ;;  %300 = vst.msk [vmem:[#allocation2 + $0x30] sm:$0xf] %vm286_vm0, %v1758_v0  ;;  %s1656_s19 = sshll.u32 %s2420_s15, 5  ;;  %vm602_vm4 = vcmask 1042432  }
   0xe   : > { %287 = vst.msk [vmem:[#allocation2] sm:$0xf] %vm286_vm0, %v1758_v0  ;;  %290 = vst.msk [vmem:[#allocation2 + $0x8] sm:$0xf] %vm286_vm0, %v1758_v0  ;;  %s1839_s22 = scalar_lea.vmem %s2394_s0, %s1656_s19  ;;  %vm404_vm3 = vsmask.f32 256 }
   0xf   : > { %292 = vst.msk [vmem:[#allocation2 + $0x10] sm:$0xf] %vm286_vm0, %v1758_v0  ;;  %294 = vst.msk [vmem:[#allocation2 + $0x18] sm:$0xf] %vm286_vm0, %v1758_v0  ;;  %v312_v1 = vld [vmem:[%s1839_s22 + $0x10] sm:$0xf] }
  0x10   : > { %296 = vst.msk [vmem:[#allocation2 + $0x20] sm:$0xf] %vm286_vm0, %v1758_v0  ;;  %302 = vst.msk [vmem:[#allocation2 + $0x38] sm:$0xf] %vm286_vm0, %v1758_v0  ;;  %v313_v2 = vld [vmem:[%s1839_s22 + $0x14] sm:$0xf] }
  0x11   : > { %304 = vst.msk [vmem:[#allocation2 + $0x40] sm:$0xf] %vm286_vm0, %v1758_v0  ;;  %306 = vst.msk [vmem:[#allocation2 + $0x48] sm:$0xf] %vm286_vm0, %v1758_v0  ;;  %v308_v3 = vld [vmem:[%s1839_s22] sm:$0xf] }
  0x12   : > { %297 = vst.msk [vmem:[#allocation2 + $0x24] sm:$0x1] %vm288_vm1, %v1758_v0  ;;  %299 = vst.msk [vmem:[#allocation2 + $0x2c] sm:$0x1] %vm288_vm1, %v1758_v0  ;;  %v349_v4 = vshrl.u32 %v312_v1, 16  ;;  %v352_v5 = vshll.u32 %v312_v1, 16 }
  0x13   : > { %289 = vst.msk [vmem:[#allocation2 + $0x4] sm:$0x1] %vm288_vm1, %v1758_v0  ;;  %291 = vst.msk [vmem:[#allocation2 + $0xc] sm:$0x1] %vm288_vm1, %v1758_v0  ;;  %v357_v6 = vshrl.u32 %v313_v2, 16  ;;  %v360_v7 = vshll.u32 %v313_v2, 16 }
  0x14   : > { %293 = vst.msk [vmem:[#allocation2 + $0x14] sm:$0x1] %vm288_vm1, %v1758_v0  ;;  %295 = vst.msk [vmem:[#allocation2 + $0x1c] sm:$0x1] %vm288_vm1, %v1758_v0  ;;  %v309_v8 = vld [vmem:[%s1839_s22 + $0x4] sm:$0xf] }
  0x15   : > { %301 = vst.msk [vmem:[#allocation2 + $0x34] sm:$0x1] %vm288_vm1, %v1758_v0  ;;  %303 = vst.msk [vmem:[#allocation2 + $0x3c] sm:$0x1] %vm288_vm1, %v1758_v0  ;;  %v317_v9 = vshrl.u32 %v308_v3, 16  ;;  %v320_v10 = vshll.u32 %v308_v3, 16 }
  0x16   : > { %305 = vst.msk [vmem:[#allocation2 + $0x44] sm:$0x1] %vm288_vm1, %v1758_v0  ;;  %307 = vst.msk [vmem:[#allocation2 + $0x4c] sm:$0x1] %vm288_vm1, %v1758_v0  ;;  %v351_v11 = vrot.slane %v349_v4, 7  ;;  %v1845_v12 = vrot.slane %v357_v6, 7 }
  0x17   : > { %v427_v13 = vld [vmem:[#allocation2 + $0x28] sm:$0xf]  ;;  %v325_v14 = vshrl.u32 %v309_v8, 16  ;;  %vm603_vm5 = vcmask 1046532   ;;  %vm1849_vm6 = vmand %vm286_vm0, %vm398_vm2  ;;  %v433_v16 = vld [vmem:[#allocation2 + $0x30] sm:$0xf] }
  0x18   : > { %v319_v17 = vrot.slane %v317_v9, 7  ;;  %v328_v18 = vshll.u32 %v309_v8, 16  ;;  %v314_v19 = vld [vmem:[%s1839_s22 + $0x18] sm:$0xf]  ;;  %v354_v20 = vor.u32 %v352_v5, %v351_v11  ;;  %v355_v21 = vrot.slane %v351_v11, 4  ;;  %vm1871_vm7 = vmand %vm288_vm1, %vm404_vm3 }
  0x19   : > { %v362_v22 = vor.u32 %v360_v7, %v1845_v12  ;;  %v363_v23 = vrot.slane %v1845_v12, 4  ;;  %v400_v24 = vld [vmem:[#allocation2 + $0x8] sm:$0xf]  ;;  %v315_v25 = vld [vmem:[%s1839_s22 + $0x1c] sm:$0xf]  ;;  %v1857_v28 = vrot.slane %v325_v14, 7  ;;  %vm1886_vm8 = vmor %vm602_vm4, %vm603_vm5 }
  0x1a   : > { %v322_v26 = vor.u32 %v320_v10, %v319_v17  ;;  %v323_v27 = vrot.slane %v319_v17, 4  ;;  %v409_v29 = vld [vmem:[#allocation2 + $0x10] sm:$0xf]  ;;  %v365_v30 = vshrl.u32 %v314_v19, 16  ;;  %v428_v31 = vsel %vm1849_vm6, %v354_v20, %v427_v13  ;;  %v310_v35 = vld [vmem:[%s1839_s22 + $0x8] sm:$0xf] }
  0x1b   : > { %v434_v32 = vsel %vm1849_vm6, %v362_v22, %v433_v16  ;;  %v368_v33 = vshll.u32 %v314_v19, 16  ;;  %v373_v34 = vshrl.u32 %v315_v25, 16  ;;  %v311_v36 = vld [vmem:[%s1839_s22 + $0xc] sm:$0xf]  ;;  %429 = vst [vmem:[#allocation2 + $0x28] sm:$0xf] %v428_v31  ;;  %v330_v37 = vor.u32 %v328_v18, %v1857_v28  ;;  %s2367_s22 = scalar_lea.vmem %s2398_s4, %s1656_s19 }
  0x1c   : > { %435 = vst [vmem:[#allocation2 + $0x30] sm:$0xf] %v434_v32  ;;  %v331_v38 = vrot.slane %v1857_v28, 4  ;;  %v401_v39 = vsel %vm1849_vm6, %v322_v26, %v400_v24  ;;  %v367_v40 = vrot.slane %v365_v30, 7  ;;  %v439_v41 = vld [vmem:[#allocation2 + $0x38] sm:$0xf] }
  0x1d   : > { %402 = vst [vmem:[#allocation2 + $0x8] sm:$0xf] %v401_v39  ;;  %v1875_v43 = vrot.slane %v373_v34, 7  ;;  %v376_v44 = vshll.u32 %v315_v25, 16  ;;  %v445_v45 = vld [vmem:[#allocation2 + $0x40] sm:$0xf]  ;;  %v410_v48 = vsel %vm1849_vm6, %v330_v37, %v409_v29 }
  0x1e   : > { %v333_v46 = vshrl.u32 %v310_v35, 16  ;;  %v336_v47 = vshll.u32 %v310_v35, 16  ;;  %v370_v49 = vor.u32 %v368_v33, %v367_v40  ;;  %v341_v50 = vshrl.u32 %v311_v36, 16  ;;  %v415_v52 = vld [vmem:[#allocation2 + $0x18] sm:$0xf] }
  0x1f   : > { %v344_v51 = vshll.u32 %v311_v36, 16  ;;  %v430_v53 = vld [vmem:[#allocation2 + $0x2c] sm:$0x1]  ;;  %411 = vst [vmem:[#allocation2 + $0x10] sm:$0xf] %v410_v48  ;;  %v378_v55 = vor.u32 %v376_v44, %v1875_v43  ;;  %v371_v5 = vrot.slane %v367_v40, 4 }
  0x20   : > { %v406_v54 = vld [vmem:[#allocation2 + $0xc] sm:$0x1]  ;;  %v1880_v56 = vrot.slane %v333_v46, 7  ;;  %v431_v57 = vsel %vm1871_vm7, %v355_v21, %v430_v53  ;;  %v1892_v60 = vld [vmem:[#allocation2] sm:$0xf]  ;;  %v440_v62 = vsel %vm1849_vm6, %v370_v49, %v439_v41  ;;  %v343_v63 = vrot.slane %v341_v50, 7 }
  0x21   : > { %v407_v59 = vsel %vm1871_vm7, %v323_v27, %v406_v54  ;;  %v1894_v61 = vld [vmem:[#allocation2 + $0x4] sm:$0x1]  ;;  %432 = vst [vmem:[#allocation2 + $0x2c] sm:$0x1] %v431_v57  ;;  %v1553_v0 = vrot.slane %v1892_v60, 9  ;;  %v446_v3 = vsel %vm1849_vm6, %v378_v55, %v445_v45  ;;  %vm1274_vm12 = vcmask 1041408  }
  0x22   : > { %408 = vst [vmem:[#allocation2 + $0xc] sm:$0x1] %v407_v59  ;;  %v607_v1 = vrot.slane %v1894_v61, 5  ;;  %v436_v2 = vld [vmem:[#allocation2 + $0x34] sm:$0x1]  ;;  %v338_v4 = vor.u32 %v336_v47, %v1880_v56  ;;  %v346_v9 = vor.u32 %v344_v51, %v343_v63  ;;  %v347_v11 = vrot.slane %v343_v63, 4 }
  0x23   : > { %441 = vst [vmem:[#allocation2 + $0x38] sm:$0xf] %v440_v62  ;;  %v437_v6 = vsel %vm1871_vm7, %v363_v23, %v436_v2  ;;  %v442_v7 = vld [vmem:[#allocation2 + $0x3c] sm:$0x1]  ;;  %v412_v8 = vld [vmem:[#allocation2 + $0x14] sm:$0x1] }
  0x24   : > { %447 = vst [vmem:[#allocation2 + $0x40] sm:$0xf] %v446_v3  ;;  %v421_v10 = vld [vmem:[#allocation2 + $0x20] sm:$0xf]  ;;  %v424_v12 = vld [vmem:[#allocation2 + $0x24] sm:$0x1]  ;;  %v1907_v13 = vsel %vm1886_vm8, %v1553_v0, %v607_v1  ;;  %v416_v17 = vsel %vm1849_vm6, %v338_v4, %v415_v52  ;;  %v443_v18 = vsel %vm1871_vm7, %v371_v5, %v442_v7  ;;  %v413_v20 = vsel %vm1871_vm7, %v331_v38, %v412_v8 }
  0x25   : > { %438 = vst [vmem:[#allocation2 + $0x34] sm:$0x1] %v437_v6  ;;  %v1909_v14 = vld [vmem:[#allocation2 + $0x28] sm:$0xf]  ;;  %v1911_v16 = vld [vmem:[#allocation2 + $0x30] sm:$0xf]  ;;  %v422_v29 = vsel %vm1849_vm6, %v346_v9, %v421_v10  ;;  %v425_v35 = vsel %vm1871_vm7, %v347_v11, %v424_v12 }
  0x26   : > { %v339_v19 = vrot.slane %v1880_v56, 4  ;;  %v728_v21 = vshrl.u32 %v1911_v16, 16  ;;  %v731_v22 = vshll.u32 %v1911_v16, 16  ;;  %v1623_v23 = vcombine.low %v1909_v14, %v1911_v16  ;;  %v1925_v25 = vld [vmem:[#allocation2 + $0x8] sm:$0xf] }
  0x27   : > { %v714_v24 = vshrl.u32 %v1909_v14, 16  ;;  %417 = vst [vmem:[#allocation2 + $0x18] sm:$0xf] %v416_v17  ;;  %444 = vst [vmem:[#allocation2 + $0x3c] sm:$0x1] %v443_v18  ;;  %v717_v26 = vshll.u32 %v1909_v14, 16 }
  0x28   : > { %414 = vst [vmem:[#allocation2 + $0x14] sm:$0x1] %v413_v20  ;;  %v658_v27 = vshrl.u32 %v1925_v25, 16  ;;  %v661_v28 = vshll.u32 %v1925_v25, 16  ;;  %v1932_v30 = vld [vmem:[#allocation2 + $0x28] sm:$0xf]  ;;  %1065 = vrot.lane.b32.xlu1 %v1623_v23, %s1759_s23 }
  0x29   : > { %v1934_v31 = vrot.slane %v728_v21, 4  ;;  %v1936_v32 = vrot.slane %v731_v22, 5  ;;  %v1939_v33 = vrot.slane %v714_v24, 4  ;;  %v1941_v34 = vld [vmem:[#allocation2 + $0x10] sm:$0xf]  ;;  %v1947_v37 = vrot.slane %v717_v26, 5 }
  0x2a   : > { %423 = vst [vmem:[#allocation2 + $0x20] sm:$0xf] %v422_v29  ;;  %v1945_v36 = vld [vmem:[#allocation2 + $0x8] sm:$0xf]  ;;  %v418_v15 = vld [vmem:[#allocation2 + $0x1c] sm:$0x1]  ;;  %v1621_v40 = vcombine.low %v1925_v25, %v1941_v34 }
  0x2b   : > { %v672_v38 = vshrl.u32 %v1941_v34, 16  ;;  %v675_v39 = vshll.u32 %v1941_v34, 16  ;;  %426 = vst [vmem:[#allocation2 + $0x24] sm:$0x1] %v425_v35  ;;  %v1953_v41 = vld [vmem:[#allocation2 + $0x2c] sm:$0x1]  ;;  %v419_v3 = vsel %vm1871_vm7, %v339_v19, %v418_v15  ;;  %v720_v4 = vor.u32 %v1947_v37, %v1939_v33 }
  0x2c   : > { %v1955_v44 = vrot.slane %v658_v27, 4  ;;  %v1957_v45 = vrot.slane %v661_v28, 5  ;;  %v1959_v46 = vld [vmem:[#allocation2 + $0x38] sm:$0xf]  ;;  %v1558_v47 = vrot.slane %v1932_v30, 9  ;;  %v627_v48 = vrot.slane %v1953_v41, 5  ;;  %1061 = vrot.lane.b32.xlu0 %v1621_v40, %s1759_s23 }
  0x2d   : > { %v1963_v49 = vrot.slane %v672_v38, 4  ;;  %v1965_v50 = vrot.slane %v675_v39, 5  ;;  %v1968_v51 = vld [vmem:[#allocation2 + $0x40] sm:$0xf]  ;;  %v742_v52 = vshrl.u32 %v1959_v46, 16  ;;  %v1554_v0 = vrot.slane %v1945_v36, 9 }
  0x2e   : > { %v1624_v56 = vcombine.low %v1959_v46, %v1968_v51  ;;  %v628_v57 = vsel %vm1886_vm8, %v1558_v47, %v627_v48  ;;  %v1978_v59 = vld [vmem:[#allocation2 + $0xc] sm:$0x1]  ;;  %v1980_v62 = vld [vmem:[#allocation2 + $0x30] sm:$0xf]  ;;  %v1982_v63 = vld [vmem:[#allocation2 + $0x18] sm:$0xf]  ;;  %v734_v9 = vor.u32 %v1936_v32, %v1934_v31  ;;  %v664_v10 = vor.u32 %v1957_v45, %v1955_v44 }
  0x2f   : > { %v611_v1 = vrot.slane %v1978_v59, 5  ;;  %v1986_v2 = vld [vmem:[#allocation2 + $0x34] sm:$0x1]  ;;  %v1995_v7 = vld [vmem:[#allocation2 + $0x38] sm:$0xf]  ;;  %v1559_v18 = vrot.slane %v1980_v62, 9  ;;  %v678_v20 = vor.u32 %v1965_v50, %v1963_v49 }
  0x30   : > { %1067 = vrot.lane.b32.xlu1 %v1624_v56, %s1759_s23  ;;  %v1997_v8 = vld [vmem:[#allocation2 + $0x3c] sm:$0x1]  ;;  %420 = vst [vmem:[#allocation2 + $0x1c] sm:$0x1] %v419_v3  ;;  %v631_v19 = vrot.slane %v1986_v2, 5  ;;  %v1560_v35 = vrot.slane %v1995_v7, 9 }
  0x31   : > { %v2003_v11 = vld [vmem:[#allocation2 + $0x20] sm:$0xf]  ;;  %v612_v17 = vsel %vm1886_vm8, %v1554_v0, %v611_v1  ;;  %v2025_v15 = vld [vmem:[#allocation2 + $0x10] sm:$0xf]  ;;  %v460_v38 = vld [vmem:[#allocation2 + $0x14] sm:$0x1] }
  0x32   : > { %v2005_v12 = vld [vmem:[#allocation2 + $0x20] sm:$0xf]  ;;  %v1622_v23 = vcombine.low %v1982_v63, %v2003_v11  ;;  %v2017_v24 = vld [vmem:[#allocation2 + $0x24] sm:$0x1]  ;;  %v1617_v28 = vcombine.low %v1907_v13, %v612_v17  ;;  %v632_v29 = vsel %vm1886_vm8, %v1559_v18, %v631_v19  ;;  %vm471_vm9 = vsmask.f32 3328 }
  0x33   : > { %v1557_v26 = vrot.slane %v2005_v12, 9  ;;  %v623_v27 = vrot.slane %v2017_v24, 5  ;;  %vm472_vm10 = vsmask.f32 7440  ;;  %v635_v39 = vrot.slane %v1997_v8, 5 }
  0x34   : > { %1063 = vrot.lane.b32.xlu0 %v1622_v23, %s1759_s23  ;;  %v2029_v40 = vld [vmem:[#allocation2 + $0x18] sm:$0xf]  ;;  %v1555_v47 = vrot.slane %v2025_v15, 9  ;;  %v615_v48 = vrot.slane %v460_v38, 5  ;;  %v1581_v13 = vrot.slane %v1909_v14, 9  ;;  %v1582_v17 = vrot.slane %v1911_v16, 9  ;;  %vm2076_vm11 = vmor %vm471_vm9, %vm472_vm10 }
  0x35   : > { %v624_v56 = vsel %vm1886_vm8, %v1557_v26, %v623_v27  ;;  %v1556_v0 = vrot.slane %v2029_v40, 9  ;;  %v2036_v1 = vld [vmem:[#allocation2 + $0x2c] sm:$0x1]  ;;  %v2038_v3 = vld [vmem:[#allocation2 + $0x34] sm:$0x1]  ;;  %v636_v23 = vsel %vm1886_vm8, %v1560_v35, %v635_v39  ;;  %v1577_v5 = vrot.slane %v1925_v25, 9 }
  0x36   : > { %v1619_v19 = vcombine.low %v624_v56, %v628_v57  ;;  %v616_v14 = vsel %vm1886_vm8, %v1555_v47, %v615_v48  ;;  %v803_v26 = vrot.slane %v2036_v1, 5  ;;  %v2048_v27 = vld [vmem:[#allocation2 + $0xc] sm:$0x1]  ;;  %v2050_v22 = vld [vmem:[#allocation2 + $0x14] sm:$0x1]  ;;  %v1620_v21 = vcombine.low %v632_v29, %v636_v23 }
  0x37   : > { %v462_v6 = vld [vmem:[#allocation2 + $0x1c] sm:$0x1]  ;;  %v807_v16 = vrot.slane %v2038_v3, 5  ;;  %v787_v57 = vrot.slane %v2048_v27, 5  ;;  %v1578_v47 = vrot.slane %v1941_v34, 9  ;;  %v791_v48 = vrot.slane %v2050_v22, 5 }
  0x38   : > { %1045 = vrot.lane.b32.xlu1 %v1619_v19, %s1760_s24  ;;  %1041 = vrot.lane.b32.xlu0 %v1617_v28, %s1760_s24  ;;  %v619_v35 = vrot.slane %v462_v6, 5  ;;  %v804_v39 = vsel %vm1886_vm8, %v1581_v13, %v803_v26  ;;  %v503_v25 = vshrl.u32 %v2025_v15, 16  ;;  %v506_v23 = vshll.u32 %v2025_v15, 16  ;;  %v448_v32 = vld [vmem:[#allocation2 + $0x44] sm:$0x1] }
  0x39   : > { %v808_v29 = vsel %vm1886_vm8, %v1582_v17, %v807_v16  ;;  %v788_v56 = vsel %vm1886_vm8, %v1577_v5, %v787_v57  ;;  %v792_v13 = vsel %vm1886_vm8, %v1578_v47, %v791_v48  ;;  %v512_v34 = vshll.u32 %v460_v38, 16 }
  0x3a   : > { %v620_v28 = vsel %vm1886_vm8, %v1556_v0, %v619_v35  ;;  %v1631_v19 = vcombine.low %v804_v39, %v808_v29  ;;  %v1629_v18 = vcombine.low %v788_v56, %v792_v13  ;;  %v505_v55 = vrot.slane %v503_v25, 4 }
  0x3b   : > { %v1618_v26 = vcombine.low %v616_v14, %v620_v28  ;;  %v508_v54 = vrot.slane %v506_v23, 5  ;;  %v514_v17 = vrot.slane %v512_v34, 5  ;;  %v517_v5 = vshrl.u32 %v2029_v40, 16 }
  0x3c   : > { %1047 = vrot.lane.b32.xlu1 %v1620_v21, %s1760_s24  ;;  %v520_v16 = vshll.u32 %v2029_v40, 16  ;;  %v526_v57 = vshll.u32 %v462_v6, 16  ;;  %v475_v0 = vshrl.u32 %v1892_v60, 16  ;;  %v478_v35 = vshll.u32 %v1892_v60, 16 }
  0x3d   : > { %1043 = vrot.lane.b32.xlu0 %v1618_v26, %s1760_s24  ;;  %v509_v53 = vor.u32 %v508_v54, %v505_v55  ;;  %v484_v39 = vshll.u32 %v1894_v61, 16  ;;  %v519_v21 = vrot.slane %v517_v5, 4  ;;  %v489_v48 = vshrl.u32 %v1945_v36, 16 }
  0x3e   : > { %v522_v14 = vrot.slane %v520_v16, 5  ;;  %v528_v47 = vrot.slane %v526_v57, 5  ;;  %v477_v29 = vrot.slane %v475_v0, 4  ;;  %v480_v54 = vrot.slane %v478_v35, 5 }
  0x3f   : > { %v510_v6 = vrot.slane %v509_v53, 4  ;;  %v486_v55 = vrot.slane %v484_v39, 5  ;;  %v491_v61 = vrot.slane %v489_v48, 4  ;;  %v492_v25 = vshll.u32 %v1945_v36, 16 }
  0x40   : > { %1105 = vrot.lane.b32.xlu1 %v1631_v19, %s1761_s25  ;;  %v523_v56 = vor.u32 %v522_v14, %v519_v21  ;;  %v498_v23 = vshll.u32 %v1978_v59, 16  ;;  %v481_v13 = vor.u32 %v480_v54, %v477_v29  ;;  %v559_v53 = vshrl.u32 %v1980_v62, 16 }
  0x41   : > { %1101 = vrot.lane.b32.xlu0 %v1629_v18, %s1761_s25  ;;  %v515_v28 = vsel %vm2076_vm11, %v510_v6, %v514_v17  ;;  %v562_v34 = vshll.u32 %v1980_v62, 16  ;;  %v494_v5 = vrot.slane %v492_v25, 5  ;;  %v568_v19 = vshll.u32 %v1986_v2, 16 }
  0x42   : > { %v524_v26 = vrot.slane %v523_v56, 4  ;;  %v500_v16 = vrot.slane %v498_v23, 5  ;;  %v482_v57 = vrot.slane %v481_v13, 4  ;;  %v561_v0 = vrot.slane %v559_v53, 4 }
  0x43   : > { %v564_v35 = vrot.slane %v562_v34, 5  ;;  %v573_v59 = vshrl.u32 %v1995_v7, 16  ;;  %v495_v39 = vor.u32 %v494_v5, %v491_v61  ;;  %v570_v17 = vrot.slane %v568_v19, 5 }
  0x44   : > { %v529_v18 = vsel %vm2076_vm11, %v524_v26, %v528_v47  ;;  %v576_v21 = vshll.u32 %v1995_v7, 16  ;;  %v487_v48 = vsel %vm2076_vm11, %v482_v57, %v486_v55  ;;  %v582_v56 = vshll.u32 %v1997_v8, 16 }
  0x45   : > { %v1614_v14 = vcombine.low %v515_v28, %v529_v18  ;;  %v565_v6 = vor.u32 %v564_v35, %v561_v0  ;;  %v575_v29 = vrot.slane %v573_v59, 4  ;;  %v496_v54 = vrot.slane %v495_v39, 4 }
  0x46   : > { %v578_v2 = vrot.slane %v576_v21, 5  ;;  %v531_v25 = vshrl.u32 %v2005_v12, 16  ;;  %v534_v61 = vshll.u32 %v2005_v12, 16  ;;  %v540_v23 = vshll.u32 %v2017_v24, 16 }
  0x47   : > { %1023 = vrot.lane.b32.xlu1 %v1614_v14, %s1762_s26  ;;  %v566_v47 = vrot.slane %v565_v6, 4  ;;  %v545_v28 = vshrl.u32 %v1932_v30, 16  ;;  %v501_v55 = vsel %vm2076_vm11, %v496_v54, %v500_v16  ;;  %v584_v53 = vrot.slane %v582_v56, 5 }
  0x48   : > { %v579_v13 = vor.u32 %v578_v2, %v575_v29  ;;  %v533_v34 = vrot.slane %v531_v25, 4  ;;  %v1613_v26 = vcombine.low %v487_v48, %v501_v55  ;;  %v536_v5 = vrot.slane %v534_v61, 5 }
  0x49   : > { %v571_v8 = vsel %vm2076_vm11, %v566_v47, %v570_v17  ;;  %v542_v19 = vrot.slane %v540_v23, 5  ;;  %v547_v0 = vrot.slane %v545_v28, 4  ;;  %v548_v35 = vshll.u32 %v1932_v30, 16 }
  0x4a   : > { %v580_v57 = vrot.slane %v579_v13, 4  ;;  %v554_v24 = vshll.u32 %v1953_v41, 16  ;;  %1021 = vrot.lane.b32.xlu0 %v1613_v26, %s1762_s26  ;;  %v537_v59 = vor.u32 %v536_v5, %v533_v34  ;;  %v721_v16 = vrot.slane %v720_v4, 4  ;;  %v1568_v26 = vld [vmem:[#allocation2 + $0x24] sm:$0x1] }
  0x4b   : > { %v723_v18 = vshll.u32 %v2036_v1, 16  ;;  %v735_v39 = vrot.slane %v734_v9, 4  ;;  %v550_v21 = vrot.slane %v548_v35, 5  ;;  %v737_v41 = vshll.u32 %v2038_v3, 16 }
  0x4c   : > { %v585_v17 = vsel %vm2076_vm11, %v580_v57, %v584_v53  ;;  %v556_v14 = vrot.slane %v554_v24, 5  ;;  %v538_v6 = vrot.slane %v537_v59, 4  ;;  %v665_v33 = vrot.slane %v664_v10, 4  ;;  %v1574_v10 = vld [vmem:[#allocation2 + $0x3c] sm:$0x1] }
  0x4d   : > { %v1616_v48 = vcombine.low %v571_v8, %v585_v17  ;;  %v725_v29 = vrot.slane %v723_v18, 5  ;;  %v551_v37 = vor.u32 %v550_v21, %v547_v0  ;;  %v739_v4 = vrot.slane %v737_v41, 5 }
  0x4e   : > { %v667_v1 = vshll.u32 %v2048_v27, 16  ;;  %v679_v31 = vrot.slane %v678_v20, 4  ;;  %v543_v9 = vsel %vm2076_vm11, %v538_v6, %v542_v19  ;;  %v681_v44 = vshll.u32 %v2050_v22, 16 }
  0x4f   : > { %1027 = vrot.lane.b32.xlu1 %v1616_v48, %s1762_s26  ;;  %v726_v3 = vsel %vm2076_vm11, %v721_v16, %v725_v29  ;;  %v379_v45 = vrot.slane %v1875_v43, 4  ;;  %v552_v54 = vrot.slane %v551_v37, 4  ;;  %v740_v27 = vsel %vm2076_vm11, %v735_v39, %v739_v4  ;;  %v2164_v4 = vld [vmem:[#allocation2 + $0x30] sm:$0xf] }
  0x50   : > { %v669_v49 = vrot.slane %v667_v1, 5  ;;  %v744_v50 = vrot.slane %v742_v52, 4  ;;  %v1627_v20 = vcombine.low %v726_v3, %v740_v27  ;;  %v683_v2 = vrot.slane %v681_v44, 5  ;;  %v1566_v52 = vld [vmem:[#allocation2 + $0x1c] sm:$0x1] }
  0x51   : > { %v449_v56 = vsel %vm1871_vm7, %v379_v45, %v448_v32  ;;  %v2407_v25 = vshll.u32 %v1959_v46, 16  ;;  %v557_v43 = vsel %vm2076_vm11, %v552_v54, %v556_v14  ;;  %v751_v61 = vshll.u32 %v1574_v10, 16  ;;  %v2167_v3 = vld [vmem:[#allocation2 + $0x38] sm:$0xf] }
  0x52   : > { %v670_v22 = vsel %vm2076_vm11, %v665_v33, %v669_v49  ;;  %450 = vst [vmem:[#allocation2 + $0x44] sm:$0x1] %v449_v56  ;;  %v2408_v23 = vshrl.u32 %v1968_v51, 16  ;;  %v1615_v55 = vcombine.low %v543_v9, %v557_v43  ;;  %v684_v42 = vsel %vm2076_vm11, %v679_v31, %v683_v2 }
  0x53   : > { %v747_v47 = vrot.slane %v2407_v25, 5  ;;  %1085 = vrot.lane.b32.xlu1 %v1627_v20, %s1763_s27  ;;  %v2409_v53 = vshll.u32 %v1968_v51, 16  ;;  %v1625_v8 = vcombine.low %v670_v22, %v684_v42  ;;  %v753_v5 = vrot.slane %v751_v61, 5  ;;  %v2187_v61 = vld [vmem:[#allocation2 + $0x18] sm:$0xf] }
  0x54   : > { %v758_v28 = vrot.slane %v2408_v23, 4  ;;  %v2410_v19 = vshrl.u32 %v1982_v63, 16  ;;  %v2411_v0 = vshll.u32 %v1982_v63, 16  ;;  %1025 = vrot.lane.b32.xlu0 %v1615_v55, %s1762_s26  ;;  %v695_v16 = vshll.u32 %v1566_v52, 16  ;;  %v2192_v42 = vld [vmem:[#allocation2 + $0x40] sm:$0xf] }
  0x55   : > { %v748_v13 = vor.u32 %v747_v47, %v744_v50  ;;  %v761_v34 = vrot.slane %v2409_v53, 5  ;;  %v2412_v18 = vshrl.u32 %v2003_v11, 16  ;;  %v2413_v21 = vshll.u32 %v2003_v11, 16  ;;  %v2180_v47 = vld [vmem:[#allocation2 + $0x10] sm:$0xf] }
  0x56   : > { %v688_v57 = vrot.slane %v2410_v19, 4  ;;  %v691_v35 = vrot.slane %v2411_v0, 5  ;;  %v709_v41 = vshll.u32 %v1568_v26, 16  ;;  %v1583_v48 = vrot.slane %v1959_v46, 9  ;;  %v2203_v19 = vld [vmem:[#allocation2 + $0x28] sm:$0xf] }
  0x57   : > { %v749_v24 = vrot.slane %v748_v13, 4  ;;  %v762_v59 = vor.u32 %v761_v34, %v758_v28  ;;  %v702_v39 = vrot.slane %v2412_v18, 4  ;;  %v705_v14 = vrot.slane %v2413_v21, 5  ;;  %v2194_v13 = vld [vmem:[#allocation2 + $0x48] sm:$0xf] }
  0x58   : > { %v692_v17 = vor.u32 %v691_v35, %v688_v57  ;;  %v697_v33 = vrot.slane %v695_v16, 5  ;;  %v811_v37 = vrot.slane %v1574_v10, 5  ;;  %v711_v32 = vrot.slane %v709_v41, 5  ;;  %1081 = vrot.lane.b32.xlu0 %v1625_v8, %s1763_s27  ;;  %v2216_v21 = vld [vmem:[#allocation2 + $0x3c] sm:$0x1] }
  0x59   : > { %v754_v6 = vsel %vm2076_vm11, %v749_v24, %v753_v5  ;;  %v763_v29 = vrot.slane %v762_v59, 4  ;;  %v706_v31 = vor.u32 %v705_v14, %v702_v39  ;;  %v1584_v9 = vrot.slane %v1968_v51, 9  ;;  %v1576_v44 = vld [vmem:[#allocation2 + $0x44] sm:$0x1]  ;;  %v2201_v5 = vld [vmem:[#allocation2 + $0x20] sm:$0xf] }
  0x5a   : > { %v693_v1 = vrot.slane %v692_v17, 4  ;;  %v812_v46 = vsel %vm1886_vm8, %v1583_v48, %v811_v37  ;;  %v1579_v45 = vrot.slane %v1982_v63, 9  ;;  %v795_v54 = vrot.slane %v1566_v52, 5  ;;  %v2209_v59 = vld [vmem:[#allocation2 + $0x34] sm:$0x1] }
  0x5b   : > { %v1580_v10 = vrot.slane %v2003_v11, 9  ;;  %v765_v27 = vshll.u32 %v1576_v44, 16  ;;  %v707_v50 = vrot.slane %v706_v31, 4  ;;  %v815_v20 = vrot.slane %v1576_v44, 5 }
  0x5c   : > { %v698_v49 = vsel %vm2076_vm11, %v693_v1, %v697_v33  ;;  %v796_v51 = vsel %vm1886_vm8, %v1579_v45, %v795_v54  ;;  %v799_v2 = vrot.slane %v1568_v26, 5  ;;  %v894_v56 = vshrl.u32 %v2164_v4, 16  ;;  %v2233_v54 = vld [vmem:[#allocation2 + $0x1c] sm:$0x1] }
  0x5d   : > { %v897_v25 = vshll.u32 %v2164_v4, 16  ;;  %v767_v63 = vrot.slane %v765_v27, 5  ;;  %v712_v11 = vsel %vm2076_vm11, %v707_v50, %v711_v32  ;;  %v816_v43 = vsel %vm1886_vm8, %v1584_v9, %v815_v20 }
  0x5e   : > { %v908_v22 = vshrl.u32 %v2167_v3, 16  ;;  %v1626_v23 = vcombine.low %v698_v49, %v712_v11  ;;  %v1632_v28 = vcombine.low %v812_v46, %v816_v43  ;;  %v800_v52 = vsel %vm1886_vm8, %v1580_v10, %v799_v2 }
  0x5f   : > { %v911_v55 = vshll.u32 %v2167_v3, 16  ;;  %v768_v53 = vsel %vm2076_vm11, %v763_v29, %v767_v63  ;;  %v1630_v34 = vcombine.low %v796_v51, %v800_v52  ;;  %v1635_v26 = vcombine.low %v2164_v4, %v2167_v3  ;;  %v2224_v29 = vld [vmem:[#allocation2 + $0x14] sm:$0x1] }
  0x60   : > { %v838_v8 = vshrl.u32 %v2180_v47, 16  ;;  %v1628_v57 = vcombine.low %v754_v6, %v768_v53  ;;  %1083 = vrot.lane.b32.xlu0 %v1626_v23, %s1763_s27  ;;  %v841_v0 = vshll.u32 %v2180_v47, 16  ;;  %v852_v35 = vshrl.u32 %v2187_v61, 16 }
  0x61   : > { %v855_v24 = vshll.u32 %v2187_v61, 16  ;;  %v1633_v16 = vcombine.low %v2180_v47, %v2187_v61  ;;  %v922_v18 = vshrl.u32 %v2192_v42, 16  ;;  %v925_v39 = vshll.u32 %v2192_v42, 16 }
  0x62   : > { %v936_v17 = vshrl.u32 %v2194_v13, 16  ;;  %1087 = vrot.lane.b32.xlu1 %v1628_v57, %s1763_s27  ;;  %v939_v14 = vshll.u32 %v2194_v13, 16  ;;  %v1636_v41 = vcombine.low %v2192_v42, %v2194_v13  ;;  %v866_v48 = vshrl.u32 %v2201_v5, 16 }
  0x63   : > { %v869_v6 = vshll.u32 %v2201_v5, 16  ;;  %v880_v33 = vshrl.u32 %v2203_v19, 16  ;;  %v883_v37 = vshll.u32 %v2203_v19, 16  ;;  %v1634_v1 = vcombine.low %v2201_v5, %v2203_v19 }
  0x64   : > { %v896_v31 = vrot.slane %v894_v56, 4  ;;  %1103 = vrot.lane.b32.xlu0 %v1630_v34, %s1761_s25  ;;  %v899_v32 = vrot.slane %v897_v25, 5  ;;  %v903_v9 = vshll.u32 %v2209_v59, 16  ;;  %v910_v44 = vrot.slane %v908_v22, 4  ;;  %v2237_v56 = vld [vmem:[#allocation2 + $0x44] sm:$0x1] }
  0x65   : > { %v913_v46 = vrot.slane %v911_v55, 5  ;;  %v917_v45 = vshll.u32 %v2216_v21, 16  ;;  %v840_v10 = vrot.slane %v838_v8, 4  ;;  %v843_v27 = vrot.slane %v841_v0, 5  ;;  %v2241_v34 = vld [vmem:[#allocation2 + $0x4c] sm:$0x1] }
  0x66   : > { %v847_v49 = vshll.u32 %v2224_v29, 16  ;;  %1107 = vrot.lane.b32.xlu1 %v1632_v28, %s1761_s25  ;;  %v900_v50 = vor.u32 %v899_v32, %v896_v31  ;;  %v905_v20 = vrot.slane %v903_v9, 5  ;;  %v854_v2 = vrot.slane %v852_v35, 4  ;;  %v2249_v31 = vld [vmem:[#allocation2 + $0x24] sm:$0x1] }
  0x67   : > { %v914_v51 = vor.u32 %v913_v46, %v910_v44  ;;  %v919_v25 = vrot.slane %v917_v45, 5  ;;  %v844_v63 = vor.u32 %v843_v27, %v840_v10  ;;  %v857_v43 = vrot.slane %v855_v24, 5 }
  0x68   : > { %v849_v11 = vrot.slane %v847_v49, 5  ;;  %1121 = vrot.lane.b32.xlu0 %v1633_v16, %s1764_s28  ;;  %v901_v22 = vrot.slane %v900_v50, 4  ;;  %v861_v52 = vshll.u32 %v2233_v54, 16  ;;  %v924_v55 = vrot.slane %v922_v18, 4 }
  0x69   : > { %v915_v23 = vrot.slane %v914_v51, 4  ;;  %v845_v53 = vrot.slane %v844_v63, 4  ;;  %v858_v28 = vor.u32 %v857_v43, %v854_v2  ;;  %v927_v8 = vrot.slane %v925_v39, 5 }
  0x6a   : > { %v931_v57 = vshll.u32 %v2237_v56, 16  ;;  %1125 = vrot.lane.b32.xlu1 %v1635_v26, %s1764_s28  ;;  %v906_v0 = vsel %vm2076_vm11, %v901_v22, %v905_v20  ;;  %v863_v24 = vrot.slane %v861_v52, 5  ;;  %v938_v16 = vrot.slane %v936_v17, 4  ;;  %v1592_v17 = vld [vmem:[#allocation2 + $0x2c] sm:$0x1] }
  0x6b   : > { %v920_v35 = vsel %vm2076_vm11, %v915_v23, %v919_v25  ;;  %v850_v32 = vsel %vm2076_vm11, %v845_v53, %v849_v11  ;;  %v859_v9 = vrot.slane %v858_v28, 4  ;;  %v928_v39 = vor.u32 %v927_v8, %v924_v55 }
  0x6c   : > { %v1639_v18 = vcombine.low %v906_v0, %v920_v35  ;;  %1123 = vrot.lane.b32.xlu0 %v1634_v1, %s1764_s28  ;;  %v933_v44 = vrot.slane %v931_v57, 5  ;;  %v941_v26 = vrot.slane %v939_v14, 5  ;;  %v945_v46 = vshll.u32 %v2241_v34, 16 }
  0x6d   : > { %v868_v45 = vrot.slane %v866_v48, 4  ;;  %v864_v10 = vsel %vm2076_vm11, %v859_v9, %v863_v24  ;;  %v929_v27 = vrot.slane %v928_v39, 4  ;;  %v871_v49 = vrot.slane %v869_v6, 5 }
  0x6e   : > { %v875_v50 = vshll.u32 %v2249_v31, 16  ;;  %1127 = vrot.lane.b32.xlu1 %v1636_v41, %s1764_s28  ;;  %v1637_v20 = vcombine.low %v850_v32, %v864_v10  ;;  %v942_v51 = vor.u32 %v941_v26, %v938_v16  ;;  %v947_v2 = vrot.slane %v945_v46, 5  ;;  %v1732_v46 = vld [vmem:[%s2395_s1 + $0x8] sm:$0xff]   ;;  %v1733_v10 = vld [vmem:[%s2395_s1] sm:$0xff]  }
  0x6f   : > { %v882_v25 = vrot.slane %v880_v33, 4  ;;  %v934_v14 = vsel %vm2076_vm11, %v929_v27, %v933_v44  ;;  %v872_v1 = vor.u32 %v871_v49, %v868_v45  ;;  %v885_v48 = vrot.slane %v883_v37, 5 }
  0x70   : > { %v877_v63 = vrot.slane %v875_v50, 5  ;;  %1141 = vrot.lane.b32.xlu0 %v1637_v20, %s1765_s29  ;;  %v943_v11 = vrot.slane %v942_v51, 4  ;;  %v889_v43 = vshll.u32 %v1592_v17, 16  ;;  %v1605_v6 = vrot.slane %v2164_v4, 9 }
  0x71   : > { %v983_v22 = vrot.slane %v2209_v59, 5  ;;  %v873_v41 = vrot.slane %v872_v1, 4  ;;  %v886_v23 = vor.u32 %v885_v48, %v882_v25  ;;  %v1606_v52 = vrot.slane %v2167_v3, 9 }
  0x72   : > { %v987_v33 = vrot.slane %v2216_v21, 5  ;;  %1145 = vrot.lane.b32.xlu1 %v1639_v18, %s1765_s29  ;;  %v948_v37 = vsel %vm2076_vm11, %v943_v11, %v947_v2  ;;  %v891_v55 = vrot.slane %v889_v43, 5  ;;  %v1601_v28 = vrot.slane %v2180_v47, 9 }
  0x73   : > { %v984_v53 = vsel %vm1886_vm8, %v1605_v6, %v983_v22  ;;  %v1640_v4 = vcombine.low %v934_v14, %v948_v37  ;;  %v878_v59 = vsel %vm2076_vm11, %v873_v41, %v877_v63  ;;  %v887_v8 = vrot.slane %v886_v23, 4 }
  0x74   : > { %v988_v3 = vsel %vm1886_vm8, %v1606_v52, %v987_v33  ;;  %v967_v57 = vrot.slane %v2224_v29, 5  ;;  %v1602_v0 = vrot.slane %v2187_v61, 9  ;;  %v971_v35 = vrot.slane %v2233_v54, 5 }
  0x75   : > { %v1643_v21 = vcombine.low %v984_v53, %v988_v3  ;;  %v892_v24 = vsel %vm2076_vm11, %v887_v8, %v891_v55  ;;  %v1607_v47 = vrot.slane %v2192_v42, 9  ;;  %v991_v16 = vrot.slane %v2237_v56, 5 }
  0x76   : > { %v1608_v18 = vrot.slane %v2194_v13, 9  ;;  %1147 = vrot.lane.b32.xlu1 %v1640_v4, %s1765_s29  ;;  %v1638_v32 = vcombine.low %v878_v59, %v892_v24  ;;  %v968_v9 = vsel %vm1886_vm8, %v1601_v28, %v967_v57  ;;  %v972_v61 = vsel %vm1886_vm8, %v1602_v0, %v971_v35 }
  0x77   : > { %v995_v29 = vrot.slane %v2241_v34, 5  ;;  %v992_v38 = vsel %vm1886_vm8, %v1607_v47, %v991_v16  ;;  %v1603_v42 = vrot.slane %v2201_v5, 9  ;;  %v975_v54 = vrot.slane %v2249_v31, 5  ;;  %v1731_v34 = vld [vmem:[%s2395_s1 + $0x10] ss:$0 sps:$4 sm:$0x33]  }
  0x78   : > { %1143 = vrot.lane.b32.xlu0 %v1638_v32, %s1765_s29  ;;  %v1641_v13 = vcombine.low %v968_v9, %v972_v61  ;;  %v1604_v39 = vrot.slane %v2203_v19, 9  ;;  %v979_v44 = vrot.slane %v1592_v17, 5  ;;  %1685 = vmatprep.subr.msk.bf16.mxu0 %vm1274_vm12, %v1731_v34  ;;  %v1276_v45 = vsel %vm1274_vm12, %v1731_v34, 0 }
  0x79   : > { %v996_v56 = vsel %vm1886_vm8, %v1608_v18, %v995_v29  ;;  %v976_v26 = vsel %vm1886_vm8, %v1603_v42, %v975_v54  ;;  %1686 = vmatprep.subr.msk.bf16.mxu1 %vm1274_vm12, %v1731_v34  ;;  %1666 = vmatpush3.bf16.msra.mxu0 %v1276_v45  ;;  %v1611_v33 = vcombine.low %v2005_v12, %v1932_v30  ;;  %vm1169_vm13 = vcmask 31744  }
  0x7a   : > { %1165 = vrot.lane.b32.xlu1 %v1643_v21, %s1766_s6  ;;  %v1644_v5 = vcombine.low %v992_v38, %v996_v56  ;;  %v980_v31 = vsel %vm1886_vm8, %v1604_v39, %v979_v44  ;;  %1682 = vmatpush3.bf16.msra.mxu1 %v1276_v45  ;;  %v1609_v53 = vcombine.low %v1892_v60, %v1945_v36  ;;  %vm1182_vm14 = vcmask 64512  }
  0x7b   : > { %v1642_v19 = vcombine.low %v976_v26, %v980_v31  ;;  %1667 = vmatprep.subr.bf16.mxu0 %v1732_v46  ;;  %1680 = vmatprep.subr.bf16.mxu1 %v1732_v46  ;;  %v1612_v21 = vcombine.low %v1980_v62, %v1995_v7  ;;  %vm1191_vm15 = vcmask 97280   ;;  %vm1200_vm0 = vcmask 130048  }
  0x7c   : > { %1161 = vrot.lane.b32.xlu0 %v1641_v13, %s1766_s6  ;;  %vm1209_vm1 = vcmask 162816   ;;  %v2414_v35 = vcombine.low %v2025_v15, %v2029_v40  ;;  %vm1218_vm2 = vcmask 195584   ;;  %vm1227_vm3 = vcmask 228352  }
  0x7d   : > { %1668 = vmatpush3.bf16.msra.mxu0 %v1732_v46  ;;  %vm1236_vm4 = vcmask 261120   ;;  %vm1265_vm5 = vcmask 293888   ;;  %vm1389_vm6 = vcmask 44032  }
  0x7e   : > { %1167 = vrot.lane.b32.xlu1 %v1644_v5, %s1766_s6  ;;  %1683 = vmatpush3.bf16.msra.mxu1 %v1732_v46 }
  0x7f   : > { %1669 = vmatprep.subr.bf16.mxu0 %v1733_v10  ;;  %1681 = vmatprep.subr.bf16.mxu1 %v1733_v10 }
  0x80   : > { %1163 = vrot.lane.b32.xlu0 %v1642_v19, %s1766_s6 }
  0x81   : > { %1670 = vmatpush3.bf16.msra.mxu0 %v1733_v10 }
  0x82   : > { %1684 = vmatpush3.bf16.msra.mxu1 %v1733_v10 }
  0x9a   : > { %v1066_v58 = vpop.permute.xlu1 %1065 }
  0x9e   : > { %v1062_v27 = vpop.permute.xlu0 %1061 }
  0xa2   : > { %v1068_v17 = vpop.permute.xlu1 %1067 }
  0xa6   : > { %v1064_v49 = vpop.permute.xlu0 %1063 }
  0xaa   : > { %v1046_v50 = vpop.permute.xlu1 %1045  ;;  %v1042_v20 = vpop.permute.xlu0 %1041 }
  0xae   : > { %v1048_v51 = vpop.permute.xlu1 %1047 }
  0xaf   : > { %v1044_v2 = vpop.permute.xlu0 %1043 }
  0xb2   : > { %v1106_v25 = vpop.permute.xlu1 %1105 }
  0xb3   : > { %v1102_v14 = vpop.permute.xlu0 %1101 }
  0xb9   : > { %v1024_v1 = vpop.permute.xlu1 %1023 }
  0xba   : > { %v1175_v24 = vsel %vm1169_vm13, %v2414_v35, %v1024_v1 }
  0xbb   : > { %v1186_v9 = vsel %vm1182_vm14, %v1175_v24, %v1044_v2 }
  0xbc   : > { %v1022_v63 = vpop.permute.xlu0 %1021  ;;  %v1195_v56 = vsel %vm1191_vm15, %v1186_v9, %v1064_v49 }
  0xbd   : > { %v1172_v3 = vsel %vm1169_vm13, %v1609_v53, %v1022_v63 }
  0xbe   : > { %v1184_v60 = vsel %vm1182_vm14, %v1172_v3, %v1042_v20  ;;  %v1653_v20 = vld [vmem:[%s2397_s3] ss:$0 sm:$0xff] }
  0xbf   : > { %v1193_v62 = vsel %vm1191_vm15, %v1184_v60, %v1062_v27 }
  0xc1   : > { %v1028_v48 = vpop.permute.xlu1 %1027 }
  0xc2   : > { %v1181_v36 = vsel %vm1169_vm13, %v1612_v21, %v1028_v48 }
  0xc3   : > { %v1190_v47 = vsel %vm1182_vm14, %v1181_v36, %v1048_v51 }
  0xc4   : > { %v1199_v15 = vsel %vm1191_vm15, %v1190_v47, %v1068_v17 }
  0xc5   : > { %v1086_v6 = vpop.permute.xlu1 %1085 }
  0xc6   : > { %v1026_v11 = vpop.permute.xlu0 %1025 }
  0xc7   : > { %v1178_v28 = vsel %vm1169_vm13, %v1611_v33, %v1026_v11 }
  0xc8   : > { %v1188_v8 = vsel %vm1182_vm14, %v1178_v28, %v1046_v50  ;;  %v1652_v50 = vld [vmem:[%s2396_s2] ss:$0 sm:$0xff] }
  0xc9   : > { %v1197_v30 = vsel %vm1191_vm15, %v1188_v8, %v1066_v58 }
  0xca   : > { %v1082_v43 = vpop.permute.xlu0 %1081  ;;  %v1206_v0 = vsel %vm1200_vm0, %v1197_v30, %v1086_v6 }
  0xcb   : > { %v1202_v16 = vsel %vm1200_vm0, %v1193_v62, %v1082_v43  ;;  %v1215_v18 = vsel %vm1209_vm1, %v1206_v0, %v1106_v25 }
  0xcc   : > { %v1211_v40 = vsel %vm1209_vm1, %v1202_v16, %v1102_v14 }
  0xd2   : > { %v1084_v22 = vpop.permute.xlu0 %1083 }
  0xd3   : > { %v1204_v34 = vsel %vm1200_vm0, %v1195_v56, %v1084_v22 }
  0xd4   : > { %v1088_v41 = vpop.permute.xlu1 %1087 }
  0xd5   : > { %v1208_v42 = vsel %vm1200_vm0, %v1199_v15, %v1088_v41 }
  0xd6   : > { %v1104_v23 = vpop.permute.xlu0 %1103 }
  0xd7   : > { %v1213_v46 = vsel %vm1209_vm1, %v1204_v34, %v1104_v23 }
  0xd8   : > { %v1108_v52 = vpop.permute.xlu1 %1107 }
  0xd9   : > { %v1217_v39 = vsel %vm1209_vm1, %v1208_v42, %v1108_v52 }
  0xda   : > { %v1122_v37 = vpop.permute.xlu0 %1121 }
  0xdb   : > { %v1220_v54 = vsel %vm1218_vm2, %v1211_v40, %v1122_v37 }
  0xdc   : > { %v1126_v55 = vpop.permute.xlu1 %1125 }
  0xdd   : > { %v1224_v61 = vsel %vm1218_vm2, %v1215_v18, %v1126_v55 }
  0xde   : > { %v1124_v4 = vpop.permute.xlu0 %1123 }
  0xdf   : > { %v1222_v10 = vsel %vm1218_vm2, %v1213_v46, %v1124_v4 }
  0xe0   : > { %v1128_v59 = vpop.permute.xlu1 %1127 }
  0xe1   : > { %v1226_v5 = vsel %vm1218_vm2, %v1217_v39, %v1128_v59 }
  0xe2   : > { %v1142_v57 = vpop.permute.xlu0 %1141 }
  0xe3   : > { %v1229_v44 = vsel %vm1227_vm3, %v1220_v54, %v1142_v57 }
  0xe4   : > { %v1146_v12 = vpop.permute.xlu1 %1145 }
  0xe5   : > { %v1233_v29 = vsel %vm1227_vm3, %v1224_v61, %v1146_v12 }
  0xe8   : > { %v1148_v7 = vpop.permute.xlu1 %1147 }
  0xe9   : > { %v1235_v19 = vsel %vm1227_vm3, %v1226_v5, %v1148_v7 }
  0xea   : > { %v1144_v32 = vpop.permute.xlu0 %1143 }
  0xeb   : > { %v1231_v27 = vsel %vm1227_vm3, %v1222_v10, %v1144_v32 }
  0xec   : > { %v1166_v38 = vpop.permute.xlu1 %1165 }
  0xed   : > { %v1242_v13 = vsel %vm1236_vm4, %v1233_v29, %v1166_v38 }
  0xee   : > { %v1162_v26 = vpop.permute.xlu0 %1161  ;;  %1675 = vmatprep.mubr.msk.bf16.mxu1 %vm1265_vm5, %v1242_v13 }
  0xef   : > { %v1238_v31 = vsel %vm1236_vm4, %v1229_v44, %v1162_v26 }
  0xf0   : > { %1671 = vmatprep.mubr.msk.bf16.mxu0 %vm1265_vm5, %v1238_v31  ;;  %v1168_v45 = vpop.permute.xlu1 %1167 }
  0xf1   : > { %v1244_v58 = vsel %vm1236_vm4, %v1235_v19, %v1168_v45 }
  0xf2   : > { %v1164_v17 = vpop.permute.xlu0 %1163  ;;  %1676 = vmatmul.mubr.msk.bf16.vlgmr.msra.gmra.mxu1 %vm1265_vm5, %v1244_v58 }
  0xf3   : > { %v1240_v49 = vsel %vm1236_vm4, %v1231_v27, %v1164_v17 }
  0xf4   : > { %1672 = vmatmul.mubr.msk.bf16.vlgmr.msra.gmra.mxu0 %vm1265_vm5, %v1240_v49 }
 0x1b2   : > { %v1677_v51 = vpop.f32.mrf.mxu1 }
 0x1b3   : > { %v1356_v2 = vmul.f32 %v1677_v51, %v1652_v50 }
 0x1b4   : > { %v1673_v25 = vpop.f32.mrf.mxu0  ;;  %v1328_v14 = vpop.f32.mrf.mxu1 }
 0x1b5   : > { %v1352_v1 = vmul.f32 %v1673_v25, %v1652_v50  ;;  %v1371_v63 = vadd.f32 %v1653_v20, %v1356_v2  ;;  %v1354_v48 = vmul.f32 %v1652_v50, %v1328_v14 }
 0x1b6   : > { %v1312_v11 = vpop.f32.mrf.mxu0  ;;  %v1678_v43 = vpop.f32.mrf.mxu1 }
 0x1b7   : > { %v1367_v6 = vadd.f32 %v1653_v20, %v1352_v1  ;;  %v1379_v22 = vmax.f32 %v1371_v63, 0.0  ;;  %v1350_v41 = vmul.f32 %v1652_v50, %v1312_v11  ;;  %v1369_v23 = vadd.f32 %v1653_v20, %v1354_v48 }
 0x1b8   : > { %v1674_v52 = vpop.f32.mrf.mxu0  ;;  %v1357_v33 = vmul.f32 %v1678_v43, %v1652_v50  ;;  %v1331_v37 = vpop.f32.mrf.mxu1 }
 0x1b9   : > { %v1375_v55 = vmax.f32 %v1367_v6, 0.0  ;;  %v1387_v53 = vpack.c.bf16 %v1379_v22, %v1379_v22  ;;  %v1365_v28 = vadd.f32 %v1653_v20, %v1350_v41  ;;  %v1377_v4 = vmax.f32 %v1369_v23, 0.0 }
 0x1ba   : > { %v1353_v59 = vmul.f32 %v1674_v52, %v1652_v50  ;;  %v1372_v8 = vadd.f32 %v1653_v20, %v1357_v33  ;;  %v1315_v3 = vpop.f32.mrf.mxu0  ;;  %v1355_v21 = vmul.f32 %v1652_v50, %v1331_v37 }
 0x1bb   : > { %v1383_v30 = vpack.c.bf16 %v1375_v55, %v1375_v55  ;;  %1396 = vst.msk [vmem:[%s2367_s22 + $0x18] sm:$0xf] %vm1389_vm6, %v1387_v53  ;;  %v1373_v12 = vmax.f32 %v1365_v28, 0.0  ;;  %v1385_v57 = vpack.c.bf16 %v1377_v4, %v1377_v4  ;;  %v1351_v60 = vmul.f32 %v1652_v50, %v1315_v3 }
 0x1bc   : > { %v1368_v36 = vadd.f32 %v1653_v20, %v1353_v59  ;;  %v1380_v0 = vmax.f32 %v1372_v8, 0.0  ;;  %v1370_v35 = vadd.f32 %v1653_v20, %v1355_v21 }
 0x1bd   : > { %1392 = vst.msk [vmem:[%s2367_s22 + $0x8] sm:$0xf] %vm1389_vm6, %v1383_v30  ;;  %v1381_v24 = vpack.c.bf16 %v1373_v12, %v1373_v12  ;;  %1394 = vst.msk [vmem:[%s2367_s22 + $0x10] sm:$0xf] %vm1389_vm6, %v1385_v57  ;;  %v1366_v62 = vadd.f32 %v1653_v20, %v1351_v60 }
 0x1be   : > { %v1376_v7 = vmax.f32 %v1368_v36, 0.0  ;;  %v1388_v47 = vpack.c.bf16 %v1380_v0, %v1380_v0  ;;  %v1378_v16 = vmax.f32 %v1370_v35, 0.0 }
 0x1bf   : > { %1390 = vst.msk [vmem:[%s2367_s22] sm:$0xf] %vm1389_vm6, %v1381_v24  ;;  %v1374_v18 = vmax.f32 %v1366_v62, 0.0 }
 0x1c0   : > { %v1384_v32 = vpack.c.bf16 %v1376_v7, %v1376_v7  ;;  %1397 = vst.msk [vmem:[%s2367_s22 + $0x1c] sm:$0xf] %vm1389_vm6, %v1388_v47  ;;  %v1386_v9 = vpack.c.bf16 %v1378_v16, %v1378_v16 }
 0x1c1   : > { %v1382_v61 = vpack.c.bf16 %v1374_v18, %v1374_v18 }
 0x1c2   : > { %1393 = vst.msk [vmem:[%s2367_s22 + $0xc] sm:$0xf] %vm1389_vm6, %v1384_v32  ;;  %1395 = vst.msk [vmem:[%s2367_s22 + $0x14] sm:$0xf] %vm1389_vm6, %v1386_v9 }
 0x1c3   : > { %1391 = vst.msk [vmem:[%s2367_s22 + $0x4] sm:$0xf] %vm1389_vm6, %v1382_v61 }
 0x1c4 PF: > { %s14_s17 = sadd.s32 1, %s1756_s17   ;;  %s2415_s15 = smov %s1752_s16 }
 0x1c5   : > { %p11_p5 = scmp.ge.s32.totalorder %s14_s17, 4   ;;  %s2416_s16 = smov %s2418_s18 }
 0x1c7   :  { %13 = sbr.rel (!%p11_p5) target bundleno = 2 (0x2), region = 83 }

// kernel: basic_rfb_apply.18
= control target key start
LH: loop header
LB: loop body
LE: loop exit
PB: predicated region body
PF: predicated region fallthrough
CT: control target
= control target key end

     0   :  { %s1930_s15 = smov 0   ;;  %s1932_s16 = smov 0   ;;  %s2562_s0 = inlined_call_operand.vmem [shape: bf16[2,8,8,8], index: 0, kind: input, shape index: {}]   ;;  %s2563_s1 = inlined_call_operand.vmem [shape: bf16[72,8], index: 1, kind: input, shape index: {}]   ;;  %s2564_s2 = inlined_call_operand.vmem [shape: f32[1,8], index: 2, kind: input, shape index: {}]   ;;  %s2565_s3 = inlined_call_operand.vmem [shape: f32[1,8], index: 3, kind: input, shape index: {}]   ;;  %s2566_s4 = inlined_call_operand.vmem [shape: bf16[2,8,8,8], index: 4, kind: output, shape index: {}]  }
   0x1   :  { %s1934_s17 = smov 0  }
   0x2 LB: > { %s29_s18 = sadd.s32 1, %s1890_s16  ;;  %p1668_p0 = scmp.ge.s32.totalorder %s1894_s17, 1  ;;  %s1894_s17 = sphi %s1934_s17, %s14_s17   ;;  %s1890_s16 = sphi %s1932_s16, %s2581_s16   ;;  %s1886_s15 = sphi %s1930_s15, %s2580_s15  }
   0x3   : > { %p31_p1 = scmp.ge.s32.totalorder %s29_s18, 2  ;;  %p210_p2 = scmp.lt.s32.totalorder %s1894_s17, 3 }
   0x5   : > { %s2583_s18 = smov (%p31_p1, %s29_s18), 0  ;;  %p211_p3 = pnand %p1668_p0, %p210_p2 }
   0x6   : > { %p253_p4 = scmp.lt.s32.totalorder (!%p211_p3), %s1886_s15, 1  ;;  %s1897_s23 = smov (!%p211_p3), 16  }
   0x7   : > { %214 = sbr.rel (%p211_p3) target bundleno = 476 (0x1dc), region = 36  ;;  %s1898_s24 = smov (!%p211_p3), 8  }
   0x8   : > { %s1899_s25 = smov (!%p211_p3), 24   ;;  %s1900_s26 = smov (!%p211_p3), 40  }
   0x9   : > { %s1901_s27 = smov (!%p211_p3), 32   ;;  %s1902_s28 = smov (!%p211_p3), 48  }
   0xa   : > { %s1903_s29 = smov (!%p211_p3), 56   ;;  %s1904_s30 = smov (!%p211_p3), 64  }
   0xc   : > { %vm286_vm0 = vcmask 60416   ;;  %vm288_vm1 = vcmask 59392   ;;  %v1896_v0 = vmov 0   ;;  %s2585_s15 = smov (!%p253_p4, %s1886_s15), 1  ;;  %vm650_vm2 = vcmask 1040384   ;;  %v1867_v1 = vld [vmem:[%s2563_s1] sm:$0xff]  }
   0xd   : > { %287 = vst.msk [vmem:[#allocation2] sm:$0xf] %vm286_vm0, %v1896_v0  ;;  %290 = vst.msk [vmem:[#allocation2 + $0x8] sm:$0xf] %vm286_vm0, %v1896_v0  ;;  %vm651_vm3 = vcmask 1044484   ;;  %s1778_s19 = sshll.u32 %s2585_s15, 5 }
   0xe   : > { %289 = vst.msk [vmem:[#allocation2 + $0x4] sm:$0x7] %vm288_vm1, %v1896_v0  ;;  %291 = vst.msk [vmem:[#allocation2 + $0xc] sm:$0x7] %vm288_vm1, %v1896_v0  ;;  %vm487_vm4 = vsmask.f32 2304  ;;  %s1992_s22 = scalar_lea.vmem %s2562_s0, %s1778_s19 }
   0xf   : > { %292 = vst.msk [vmem:[#allocation2 + $0x10] sm:$0xf] %vm286_vm0, %v1896_v0  ;;  %294 = vst.msk [vmem:[#allocation2 + $0x18] sm:$0xf] %vm286_vm0, %v1896_v0  ;;  %vm488_vm6 = vsmask.f32 6416 }
  0x10   : > { %293 = vst.msk [vmem:[#allocation2 + $0x14] sm:$0x7] %vm288_vm1, %v1896_v0  ;;  %295 = vst.msk [vmem:[#allocation2 + $0x1c] sm:$0x7] %vm288_vm1, %v1896_v0  ;;  %vm413_vm7 = vcmask 60417   ;;  %vm419_vm9 = vcmask 58368  }
  0x11   : > { %296 = vst.msk [vmem:[#allocation2 + $0x20] sm:$0xf] %vm286_vm0, %v1896_v0  ;;  %298 = vst.msk [vmem:[#allocation2 + $0x28] sm:$0xf] %vm286_vm0, %v1896_v0  ;;  %vm414_vm8 = vsmask.f32 7942 }
  0x12   : > { %297 = vst.msk [vmem:[#allocation2 + $0x24] sm:$0x7] %vm288_vm1, %v1896_v0  ;;  %299 = vst.msk [vmem:[#allocation2 + $0x2c] sm:$0x7] %vm288_vm1, %v1896_v0  ;;  %v320_v18 = vld [vmem:[%s1992_s22 + $0x10] sm:$0xf] }
  0x13   : > { %300 = vst.msk [vmem:[#allocation2 + $0x30] sm:$0xf] %vm286_vm0, %v1896_v0  ;;  %302 = vst.msk [vmem:[#allocation2 + $0x38] sm:$0xf] %vm286_vm0, %v1896_v0  ;;  %v321_v23 = vld [vmem:[%s1992_s22 + $0x14] sm:$0xf] }
  0x14   : > { %301 = vst.msk [vmem:[#allocation2 + $0x34] sm:$0x7] %vm288_vm1, %v1896_v0  ;;  %303 = vst.msk [vmem:[#allocation2 + $0x3c] sm:$0x7] %vm288_vm1, %v1896_v0  ;;  %v471_v2 = vld [vmem:[#allocation2] sm:$0xf] }
  0x15   : > { %304 = vst.msk [vmem:[#allocation2 + $0x40] sm:$0xf] %vm286_vm0, %v1896_v0  ;;  %306 = vst.msk [vmem:[#allocation2 + $0x48] sm:$0xf] %vm286_vm0, %v1896_v0  ;;  %v472_v3 = vld [vmem:[#allocation2 + $0x4] sm:$0x7] }
  0x16   : > { %305 = vst.msk [vmem:[#allocation2 + $0x44] sm:$0x7] %vm288_vm1, %v1896_v0  ;;  %307 = vst.msk [vmem:[#allocation2 + $0x4c] sm:$0x7] %vm288_vm1, %v1896_v0  ;;  %v473_v4 = vld [vmem:[#allocation2 + $0x8] sm:$0xf] }
  0x17   : > { %308 = vst.msk [vmem:[#allocation2 + $0x50] sm:$0xf] %vm286_vm0, %v1896_v0  ;;  %310 = vst.msk [vmem:[#allocation2 + $0x58] sm:$0xf] %vm286_vm0, %v1896_v0  ;;  %v474_v5 = vld [vmem:[#allocation2 + $0xc] sm:$0x7] }
  0x18   : > { %309 = vst.msk [vmem:[#allocation2 + $0x54] sm:$0x7] %vm288_vm1, %v1896_v0  ;;  %311 = vst.msk [vmem:[#allocation2 + $0x5c] sm:$0x7] %vm288_vm1, %v1896_v0  ;;  %v500_v6 = vshrl.u32 %v472_v3, 16  ;;  %v503_v7 = vshll.u32 %v472_v3, 16 }
  0x19   : > { %312 = vst.msk [vmem:[#allocation2 + $0x60] sm:$0xf] %vm286_vm0, %v1896_v0  ;;  %314 = vst.msk [vmem:[#allocation2 + $0x68] sm:$0xf] %vm286_vm0, %v1896_v0  ;;  %v1673_v8 = vrot.slane %v471_v2, 11  ;;  %v655_v9 = vrot.slane %v472_v3, 7 }
  0x1a   : > { %313 = vst.msk [vmem:[#allocation2 + $0x64] sm:$0x7] %vm288_vm1, %v1896_v0  ;;  %315 = vst.msk [vmem:[#allocation2 + $0x6c] sm:$0x7] %vm288_vm1, %v1896_v0  ;;  %v518_v10 = vshrl.u32 %v474_v5, 16  ;;  %v521_v11 = vshll.u32 %v474_v5, 16 }
  0x1b   : > { %vm1983_vm5 = vmor %vm650_vm2, %vm651_vm3  ;;  %v1674_v12 = vrot.slane %v473_v4, 11  ;;  %v659_v13 = vrot.slane %v474_v5, 7  ;;  %v491_v15 = vshrl.u32 %v471_v2, 16  ;;  %v494_v16 = vshll.u32 %v471_v2, 16  ;;  %v316_v28 = vld [vmem:[%s1992_s22] sm:$0xf] }
  0x1c   : > { %v656_v14 = vsel %vm1983_vm5, %v1673_v8, %v655_v9  ;;  %v502_v17 = vrot.slane %v500_v6, 5  ;;  %v505_v20 = vrot.slane %v503_v7, 6  ;;  %v509_v21 = vshrl.u32 %v473_v4, 16  ;;  %vm2004_vm11 = vmor %vm487_vm4, %vm488_vm6  ;;  %v317_v41 = vld [vmem:[%s1992_s22 + $0x4] sm:$0xf] }
  0x1d   : > { %v660_v19 = vsel %vm1983_vm5, %v1674_v12, %v659_v13  ;;  %v512_v22 = vshll.u32 %v473_v4, 16  ;;  %v493_v25 = vrot.slane %v491_v15, 5  ;;  %v496_v26 = vrot.slane %v494_v16, 6  ;;  %v322_v47 = vld [vmem:[%s1992_s22 + $0x18] sm:$0xf]  ;;  %vm2012_vm12 = vmand %vm413_vm7, %vm414_vm8 }
  0x1e   : > { %v1737_v24 = vcombine.low %v656_v14, %v660_v19  ;;  %v520_v27 = vrot.slane %v518_v10, 5  ;;  %v506_v29 = vor.u32 %v505_v20, %v502_v17  ;;  %v511_v30 = vrot.slane %v509_v21, 5  ;;  %v443_v51 = vld [vmem:[#allocation2 + $0x38] sm:$0xe]  ;;  %v449_v56 = vld [vmem:[#allocation2 + $0x40] sm:$0xe] }
  0x1f   : > { %v514_v31 = vrot.slane %v512_v22, 6  ;;  %v523_v32 = vrot.slane %v521_v11, 6  ;;  %vm420_vm10 = vsmask.f32 1280  ;;  %v497_v33 = vor.u32 %v496_v26, %v493_v25  ;;  %v323_v62 = vld [vmem:[%s1992_s22 + $0x1c] sm:$0xf] }
  0x20   : > { %1153 = vrot.lane.b32.xlu0 %v1737_v24, %s1897_s23  ;;  %v361_v34 = vshrl.u32 %v320_v18, 16  ;;  %v364_v35 = vshll.u32 %v320_v18, 16  ;;  %v370_v36 = vshrl.u32 %v321_v23, 16  ;;  %v373_v40 = vshll.u32 %v321_v23, 16  ;;  %v416_v5 = vld [vmem:[#allocation2 + $0x18] sm:$0xe]  ;;  %vm2040_vm13 = vmand %vm419_vm9, %vm420_vm10 }
  0x21   : > { %v515_v38 = vor.u32 %v514_v31, %v511_v30  ;;  %v524_v39 = vor.u32 %v523_v32, %v520_v27  ;;  %v325_v42 = vshrl.u32 %v316_v28, 16  ;;  %v498_v43 = vrot.slane %v497_v33, 4  ;;  %v318_v6 = vld [vmem:[%s1992_s22 + $0x8] sm:$0xf]  ;;  %v425_v11 = vld [vmem:[#allocation2 + $0x20] sm:$0xe] }
  0x22   : > { %v363_v44 = vrot.slane %v361_v34, 6  ;;  %v366_v45 = vrot.slane %v364_v35, 7  ;;  %v372_v46 = vrot.slane %v370_v36, 6  ;;  %v375_v49 = vrot.slane %v373_v40, 7  ;;  %v319_v16 = vld [vmem:[%s1992_s22 + $0xc] sm:$0xf] }
  0x23   : > { %v516_v48 = vrot.slane %v515_v38, 4  ;;  %v327_v52 = vrot.slane %v325_v42, 6  ;;  %v328_v53 = vshll.u32 %v316_v28, 16  ;;  %v507_v54 = vsel %vm2004_vm11, %v498_v43, %v506_v29  ;;  %v455_v20 = vld [vmem:[#allocation2 + $0x48] sm:$0xe] }
  0x24   : > { %v2018_v55 = vor.u32 %v366_v45, %v363_v44  ;;  %v334_v57 = vshrl.u32 %v317_v41, 16  ;;  %v337_v58 = vshll.u32 %v317_v41, 16  ;;  %v2022_v60 = vor.u32 %v375_v49, %v372_v46  ;;  %v428_v22 = vld [vmem:[#allocation2 + $0x24] sm:$0x3]  ;;  %v422_v23 = vld [vmem:[#allocation2 + $0x1c] sm:$0x3] }
  0x25   : > { %v525_v59 = vsel %vm2004_vm11, %v516_v48, %v524_v39  ;;  %v330_v61 = vrot.slane %v328_v53, 7  ;;  %v379_v63 = vshrl.u32 %v322_v47, 16  ;;  %v382_v13 = vshll.u32 %v322_v47, 16  ;;  %v2044_v29 = vld [vmem:[#allocation2 + $0x10] sm:$0xf] }
  0x26   : > { %v1733_v0 = vcombine.low %v507_v54, %v525_v59  ;;  %v444_v2 = vsel %vm2012_vm12, %v2018_v55, %v443_v51  ;;  %v368_v3 = vrot.slane %v2018_v55, 4  ;;  %v336_v4 = vrot.slane %v334_v57, 6  ;;  %v461_v32 = vld [vmem:[#allocation2 + $0x50] sm:$0xe]  ;;  %v2056_v43 = vld [vmem:[#allocation2 + $0x14] sm:$0x7] }
  0x27   : > { %v377_v7 = vrot.slane %v2022_v60, 4  ;;  %445 = vst [vmem:[#allocation2 + $0x38] sm:$0xe] %v444_v2  ;;  %v450_v8 = vsel %vm2012_vm12, %v2022_v60, %v449_v56  ;;  %v331_v9 = vor.u32 %v330_v61, %v327_v52  ;;  %v339_v10 = vrot.slane %v337_v58, 7  ;;  %v431_v51 = vld [vmem:[#allocation2 + $0x28] sm:$0xe] }
  0x28   : > { %1133 = vrot.lane.b32.xlu0 %v1733_v0, %s1898_s24  ;;  %451 = vst [vmem:[#allocation2 + $0x40] sm:$0xe] %v450_v8  ;;  %v381_v12 = vrot.slane %v379_v63, 6  ;;  %v388_v14 = vshrl.u32 %v323_v62, 16  ;;  %v391_v15 = vshll.u32 %v323_v62, 16  ;;  %v343_v21 = vshrl.u32 %v318_v6, 16 }
  0x29   : > { %v340_v17 = vor.u32 %v339_v10, %v336_v4  ;;  %v417_v18 = vsel %vm2012_vm12, %v331_v9, %v416_v5  ;;  %v332_v19 = vrot.slane %v331_v9, 4  ;;  %v384_v24 = vrot.slane %v382_v13, 7  ;;  %v437_v52 = vld [vmem:[#allocation2 + $0x30] sm:$0xe]  ;;  %v434_v53 = vld [vmem:[#allocation2 + $0x2c] sm:$0x3] }
  0x2a   : > { %418 = vst [vmem:[#allocation2 + $0x18] sm:$0xe] %v417_v18  ;;  %v390_v25 = vrot.slane %v388_v14, 6  ;;  %v393_v26 = vrot.slane %v391_v15, 7  ;;  %v346_v27 = vshll.u32 %v318_v6, 16  ;;  %v345_v33 = vrot.slane %v343_v21, 6 }
  0x2b   : > { %v341_v30 = vrot.slane %v340_v17, 4  ;;  %v426_v31 = vsel %vm2012_vm12, %v340_v17, %v425_v11  ;;  %v352_v34 = vshrl.u32 %v319_v16, 16  ;;  %v2048_v35 = vor.u32 %v384_v24, %v381_v12  ;;  %v440_v2 = vld [vmem:[#allocation2 + $0x34] sm:$0x3]  ;;  %v446_v4 = vld [vmem:[#allocation2 + $0x3c] sm:$0x3] }
  0x2c   : > { %427 = vst [vmem:[#allocation2 + $0x20] sm:$0xe] %v426_v31  ;;  %v2050_v36 = vor.u32 %v393_v26, %v390_v25  ;;  %v348_v38 = vrot.slane %v346_v27, 7  ;;  %v355_v39 = vshll.u32 %v319_v16, 16  ;;  %v423_v42 = vsel %vm2040_vm13, %v332_v19, %v422_v23  ;;  %v452_v11 = vld [vmem:[#allocation2 + $0x44] sm:$0x3] }
  0x2d   : > { %v354_v40 = vrot.slane %v352_v34, 6  ;;  %v429_v41 = vsel %vm2040_vm13, %v341_v30, %v428_v22  ;;  %v1675_v44 = vrot.slane %v2044_v29, 11  ;;  %v386_v46 = vrot.slane %v2048_v35, 4  ;;  %424 = vst [vmem:[#allocation2 + $0x1c] sm:$0x3] %v423_v42 }
  0x2e   : > { %v2059_v45 = vld [vmem:[#allocation2 + $0x38] sm:$0xf]  ;;  %v395_v47 = vrot.slane %v2050_v36, 4  ;;  %v456_v48 = vsel %vm2012_vm12, %v2048_v35, %v455_v20  ;;  %v462_v49 = vsel %vm2012_vm12, %v2050_v36, %v461_v32  ;;  %430 = vst [vmem:[#allocation2 + $0x24] sm:$0x3] %v429_v41  ;;  %v349_v58 = vor.u32 %v348_v38, %v345_v33 }
  0x2f   : > { %v2069_v54 = vld [vmem:[#allocation2 + $0x40] sm:$0xf]  ;;  %v778_v56 = vshrl.u32 %v2059_v45, 16  ;;  %v781_v57 = vshll.u32 %v2059_v45, 16  ;;  %457 = vst [vmem:[#allocation2 + $0x48] sm:$0xe] %v456_v48  ;;  %v447_v34 = vsel %vm2040_vm13, %v368_v3, %v446_v4  ;;  %v453_v55 = vsel %vm2040_vm13, %v377_v7, %v452_v11 }
  0x30   : > { %463 = vst [vmem:[#allocation2 + $0x50] sm:$0xe] %v462_v49  ;;  %v357_v59 = vrot.slane %v355_v39, 7  ;;  %v796_v61 = vshrl.u32 %v2069_v54, 16  ;;  %v799_v62 = vshll.u32 %v2069_v54, 16  ;;  %v1743_v63 = vcombine.low %v2059_v45, %v2069_v54 }
  0x31   : > { %v663_v0 = vrot.slane %v2056_v43, 7  ;;  %v2078_v5 = vrot.slane %v778_v56, 5  ;;  %v2080_v6 = vrot.slane %v781_v57, 6  ;;  %v2082_v8 = vld [vmem:[#allocation2 + $0x18] sm:$0xf]  ;;  %v350_v9 = vrot.slane %v349_v58, 4 }
  0x32   : > { %v358_v10 = vor.u32 %v357_v59, %v354_v40  ;;  %v2084_v12 = vrot.slane %v796_v61, 5  ;;  %v2086_v13 = vrot.slane %v799_v62, 6  ;;  %1177 = vrot.lane.b32.xlu1 %v1743_v63, %s1899_s25  ;;  %v706_v14 = vshrl.u32 %v2082_v8, 16  ;;  %v2091_v16 = vld [vmem:[#allocation2 + $0x18] sm:$0xf] }
  0x33   : > { %v709_v15 = vshll.u32 %v2082_v8, 16  ;;  %v2093_v17 = vld [vmem:[#allocation2 + $0x20] sm:$0xf]  ;;  %v432_v19 = vsel %vm2012_vm12, %v349_v58, %v431_v51  ;;  %v435_v21 = vsel %vm2040_vm13, %v350_v9, %v434_v53  ;;  %v2108_v27 = vld [vmem:[#allocation2 + $0x38] sm:$0xf]  ;;  %v2116_v31 = vsel %vm1983_vm5, %v1675_v44, %v663_v0 }
  0x34   : > { %v359_v18 = vrot.slane %v358_v10, 4  ;;  %v438_v20 = vsel %vm2012_vm12, %v358_v10, %v437_v52  ;;  %v2101_v22 = vld [vmem:[#allocation2 + $0x20] sm:$0xf]  ;;  %v724_v23 = vshrl.u32 %v2093_v17, 16  ;;  %v727_v24 = vshll.u32 %v2093_v17, 16 }
  0x35   : > { %v1741_v25 = vcombine.low %v2082_v8, %v2093_v17  ;;  %433 = vst [vmem:[#allocation2 + $0x28] sm:$0xe] %v432_v19  ;;  %439 = vst [vmem:[#allocation2 + $0x30] sm:$0xe] %v438_v20  ;;  %v1677_v26 = vrot.slane %v2101_v22, 11  ;;  %v1676_v32 = vrot.slane %v2091_v16, 11  ;;  %v784_v3 = vor.u32 %v2080_v6, %v2078_v5 }
  0x36   : > { %436 = vst [vmem:[#allocation2 + $0x2c] sm:$0x3] %v435_v21  ;;  %v2110_v50 = vld [vmem:[#allocation2 + $0x24] sm:$0x7]  ;;  %v2112_v30 = vld [vmem:[#allocation2 + $0x1c] sm:$0x7]  ;;  %v441_v33 = vsel %vm2040_vm13, %v359_v18, %v440_v2 }
  0x37   : > { %1173 = vrot.lane.b32.xlu0 %v1741_v25, %s1899_s25  ;;  %v2126_v38 = vld [vmem:[#allocation2 + $0x48] sm:$0xf]  ;;  %v2128_v39 = vld [vmem:[#allocation2 + $0x50] sm:$0xf]  ;;  %v671_v40 = vrot.slane %v2110_v50, 7  ;;  %v667_v41 = vrot.slane %v2112_v30, 7  ;;  %v802_v25 = vor.u32 %v2086_v13, %v2084_v12 }
  0x38   : > { %442 = vst [vmem:[#allocation2 + $0x34] sm:$0x3] %v441_v33  ;;  %448 = vst [vmem:[#allocation2 + $0x3c] sm:$0x3] %v447_v34  ;;  %v458_v42 = vld [vmem:[#allocation2 + $0x4c] sm:$0x3]  ;;  %v1744_v60 = vcombine.low %v2126_v38, %v2128_v39 }
  0x39   : > { %v2142_v52 = vld [vmem:[#allocation2 + $0x1c] sm:$0x7]  ;;  %454 = vst [vmem:[#allocation2 + $0x44] sm:$0x3] %v453_v55  ;;  %v672_v7 = vsel %vm1983_vm5, %v1677_v26, %v671_v40  ;;  %v668_v53 = vsel %vm1983_vm5, %v1676_v32, %v667_v41  ;;  %v1680_v56 = vrot.slane %v2108_v27, 11  ;;  %v1697_v61 = vrot.slane %v2082_v8, 11 }
  0x3a   : > { %v2151_v57 = vld [vmem:[#allocation2 + $0x24] sm:$0x7]  ;;  %v464_v58 = vld [vmem:[#allocation2 + $0x54] sm:$0x3]  ;;  %v1738_v59 = vcombine.low %v2116_v31, %v668_v53  ;;  %v867_v62 = vrot.slane %v2142_v52, 7  ;;  %v1698_v63 = vrot.slane %v2093_v17, 11  ;;  %1179 = vrot.lane.b32.xlu1 %v1744_v60, %s1899_s25 }
  0x3b   : > { %v2157_v0 = vld [vmem:[#allocation2 + $0x40] sm:$0xf]  ;;  %v871_v2 = vrot.slane %v2151_v57, 7  ;;  %v1701_v4 = vrot.slane %v2059_v45, 11  ;;  %v1702_v9 = vrot.slane %v2069_v54, 11  ;;  %v563_v10 = vshrl.u32 %v2101_v22, 16 }
  0x3c   : > { %v2164_v11 = vld [vmem:[#allocation2 + $0x48] sm:$0xf]  ;;  %v2168_v19 = vld [vmem:[#allocation2 + $0x30] sm:$0xf]  ;;  %v868_v21 = vsel %vm1983_vm5, %v1697_v61, %v867_v62  ;;  %v459_v45 = vsel %vm2040_vm13, %v386_v46, %v458_v42  ;;  %v465_v54 = vsel %vm2040_vm13, %v395_v47, %v464_v58  ;;  %v566_v58 = vshll.u32 %v2101_v22, 16 }
  0x3d   : > { %v2166_v18 = vld [vmem:[#allocation2 + $0x28] sm:$0xf]  ;;  %v760_v32 = vshrl.u32 %v2168_v19, 16  ;;  %v763_v33 = vshll.u32 %v2168_v19, 16  ;;  %v482_v34 = vld [vmem:[#allocation2 + $0x2c] sm:$0x7]  ;;  %v872_v47 = vsel %vm1983_vm5, %v1698_v63, %v871_v2 }
  0x3e   : > { %v2170_v20 = vld [vmem:[#allocation2 + $0x28] sm:$0xf]  ;;  %v742_v26 = vshrl.u32 %v2166_v18, 16  ;;  %v745_v31 = vshll.u32 %v2166_v18, 16  ;;  %460 = vst [vmem:[#allocation2 + $0x4c] sm:$0x3] %v459_v45  ;;  %v1742_v35 = vcombine.low %v2166_v18, %v2168_v19  ;;  %v1749_v60 = vcombine.low %v868_v21, %v872_v47 }
  0x3f   : > { %466 = vst [vmem:[#allocation2 + $0x54] sm:$0x3] %v465_v54  ;;  %v1678_v46 = vrot.slane %v2170_v20, 11  ;;  %v675_v36 = vrot.slane %v482_v34, 7  ;;  %v2191_v40 = vld [vmem:[#allocation2 + $0x30] sm:$0xf] }
  0x40   : > { %v2193_v28 = vld [vmem:[#allocation2 + $0x34] sm:$0x7]  ;;  %v2197_v41 = vld [vmem:[#allocation2 + $0x3c] sm:$0x7]  ;;  %v1679_v55 = vrot.slane %v2191_v40, 11  ;;  %1175 = vrot.lane.b32.xlu0 %v1742_v35, %s1899_s25  ;;  %v565_v45 = vrot.slane %v563_v10, 5 }
  0x41   : > { %v679_v42 = vrot.slane %v2193_v28, 7  ;;  %v2201_v53 = vld [vmem:[#allocation2 + $0x3c] sm:$0x7]  ;;  %v676_v61 = vsel %vm1983_vm5, %v1678_v46, %v675_v36  ;;  %v683_v62 = vrot.slane %v2197_v41, 7  ;;  %v2209_v63 = vld [vmem:[#allocation2 + $0x44] sm:$0x7] }
  0x42   : > { %v883_v2 = vrot.slane %v2201_v53, 7  ;;  %v1739_v54 = vcombine.low %v672_v7, %v676_v61  ;;  %v887_v47 = vrot.slane %v2209_v63, 7  ;;  %v572_v36 = vshrl.u32 %v2110_v50, 16 }
  0x43   : > { %v680_v21 = vsel %vm1983_vm5, %v1679_v55, %v679_v42  ;;  %v684_v35 = vsel %vm1983_vm5, %v1680_v56, %v683_v62  ;;  %v575_v51 = vshll.u32 %v2110_v50, 16  ;;  %v568_v55 = vrot.slane %v566_v58, 6 }
  0x44   : > { %v884_v46 = vsel %vm1983_vm5, %v1701_v4, %v883_v2  ;;  %1157 = vrot.lane.b32.xlu1 %v1739_v54, %s1897_s23  ;;  %v1740_v7 = vcombine.low %v680_v21, %v684_v35  ;;  %v888_v10 = vsel %vm1983_vm5, %v1702_v9, %v887_v47  ;;  %v581_v42 = vshrl.u32 %v2170_v20, 16  ;;  %1155 = vrot.lane.b32.xlu0 %v1738_v59, %s1897_s23 }
  0x45   : > { %v1751_v61 = vcombine.low %v884_v46, %v888_v10  ;;  %v574_v56 = vrot.slane %v572_v36, 5  ;;  %v577_v62 = vrot.slane %v575_v51, 6  ;;  %v584_v4 = vshll.u32 %v2170_v20, 16 }
  0x46   : > { %v569_v2 = vor.u32 %v568_v55, %v565_v45  ;;  %v583_v49 = vrot.slane %v581_v42, 5  ;;  %v590_v48 = vshrl.u32 %v482_v34, 16  ;;  %v593_v50 = vshll.u32 %v482_v34, 16 }
  0x47   : > { %v578_v44 = vor.u32 %v577_v62, %v574_v56  ;;  %v586_v54 = vrot.slane %v584_v4, 6  ;;  %v708_v21 = vrot.slane %v706_v14, 5  ;;  %v711_v9 = vrot.slane %v709_v15, 6 }
  0x48   : > { %1159 = vrot.lane.b32.xlu1 %v1740_v7, %s1897_s23  ;;  %v570_v59 = vrot.slane %v569_v2, 4  ;;  %v592_v58 = vrot.slane %v590_v48, 5  ;;  %v595_v47 = vrot.slane %v593_v50, 6  ;;  %v715_v51 = vshrl.u32 %v2142_v52, 16  ;;  %1213 = vrot.lane.b32.xlu0 %v1749_v60, %s1900_s26 }
  0x49   : > { %v587_v45 = vor.u32 %v586_v54, %v583_v49  ;;  %v712_v34 = vor.u32 %v711_v9, %v708_v21  ;;  %v718_v35 = vshll.u32 %v2142_v52, 16  ;;  %v726_v14 = vrot.slane %v724_v23, 5 }
  0x4a   : > { %v579_v8 = vsel %vm2004_vm11, %v570_v59, %v578_v44  ;;  %v596_v15 = vor.u32 %v595_v47, %v592_v58  ;;  %v717_v46 = vrot.slane %v715_v51, 5  ;;  %v729_v48 = vrot.slane %v727_v24, 6 }
  0x4b   : > { %v588_v36 = vrot.slane %v587_v45, 4  ;;  %v713_v7 = vrot.slane %v712_v34, 4  ;;  %v720_v10 = vrot.slane %v718_v35, 6  ;;  %v733_v60 = vshrl.u32 %v2151_v57, 16  ;;  %v2258_v45 = vld [vmem:[#allocation2 + $0x2c] sm:$0x7] }
  0x4c   : > { %1217 = vrot.lane.b32.xlu1 %v1751_v61, %s1900_s26  ;;  %v730_v49 = vor.u32 %v729_v48, %v726_v14  ;;  %v736_v52 = vshll.u32 %v2151_v57, 16  ;;  %v527_v23 = vshrl.u32 %v2044_v29, 16  ;;  %v530_v55 = vshll.u32 %v2044_v29, 16 }
  0x4d   : > { %v597_v44 = vsel %vm2004_vm11, %v588_v36, %v596_v15  ;;  %v721_v42 = vor.u32 %v720_v10, %v717_v46  ;;  %v735_v17 = vrot.slane %v733_v60, 5  ;;  %v536_v24 = vshrl.u32 %v2056_v43, 16  ;;  %v2264_v10 = vld [vmem:[#allocation2 + $0x34] sm:$0x7] }
  0x4e   : > { %v1735_v56 = vcombine.low %v579_v8, %v597_v44  ;;  %v731_v62 = vrot.slane %v730_v49, 4  ;;  %v738_v4 = vrot.slane %v736_v52, 6  ;;  %v529_v2 = vrot.slane %v527_v23, 5 }
  0x4f   : > { %v722_v61 = vsel %vm2004_vm11, %v713_v7, %v721_v42  ;;  %v532_v50 = vrot.slane %v530_v55, 6  ;;  %v538_v57 = vrot.slane %v536_v24, 5  ;;  %v539_v54 = vshll.u32 %v2056_v43, 16 }
  0x50   : > { %1137 = vrot.lane.b32.xlu0 %v1735_v56, %s1898_s24  ;;  %v739_v29 = vor.u32 %v738_v4, %v735_v17  ;;  %v545_v21 = vshrl.u32 %v2091_v16, 16  ;;  %v548_v9 = vshll.u32 %v2091_v16, 16  ;;  %v554_v59 = vshrl.u32 %v2112_v30, 16 }
  0x51   : > { %v533_v58 = vor.u32 %v532_v50, %v529_v2  ;;  %v541_v47 = vrot.slane %v539_v54, 6  ;;  %v557_v51 = vshll.u32 %v2112_v30, 16  ;;  %v744_v34 = vrot.slane %v742_v26, 5 }
  0x52   : > { %v740_v43 = vsel %vm2004_vm11, %v731_v62, %v739_v29  ;;  %v547_v35 = vrot.slane %v545_v21, 5  ;;  %v550_v14 = vrot.slane %v548_v9, 6  ;;  %v556_v8 = vrot.slane %v554_v59, 5 }
  0x53   : > { %v1745_v15 = vcombine.low %v722_v61, %v740_v43  ;;  %v534_v46 = vrot.slane %v533_v58, 4  ;;  %v542_v48 = vor.u32 %v541_v47, %v538_v57  ;;  %v559_v36 = vrot.slane %v557_v51, 6 }
  0x54   : > { %v551_v7 = vor.u32 %v550_v14, %v547_v35  ;;  %v747_v30 = vrot.slane %v745_v31, 6  ;;  %v751_v60 = vshrl.u32 %v2258_v45, 16  ;;  %v754_v26 = vshll.u32 %v2258_v45, 16 }
  0x55   : > { %1193 = vrot.lane.b32.xlu0 %v1745_v15, %s1901_s27  ;;  %v543_v49 = vsel %vm2004_vm11, %v534_v46, %v542_v48  ;;  %v560_v52 = vor.u32 %v559_v36, %v556_v8  ;;  %v762_v23 = vrot.slane %v760_v32, 5  ;;  %v765_v55 = vrot.slane %v763_v33, 6 }
  0x56   : > { %v552_v44 = vrot.slane %v551_v7, 4  ;;  %v748_v42 = vor.u32 %v747_v30, %v744_v34  ;;  %v753_v31 = vrot.slane %v751_v60, 5  ;;  %v756_v17 = vrot.slane %v754_v26, 6 }
  0x57   : > { %v766_v24 = vor.u32 %v765_v55, %v762_v23  ;;  %v769_v56 = vshrl.u32 %v2264_v10, 16  ;;  %v772_v62 = vshll.u32 %v2264_v10, 16  ;;  %v599_v4 = vshrl.u32 %v2191_v40, 16 }
  0x58   : > { %v561_v2 = vsel %vm2004_vm11, %v552_v44, %v560_v52  ;;  %v749_v61 = vrot.slane %v748_v42, 4  ;;  %v757_v50 = vor.u32 %v756_v17, %v753_v31  ;;  %v602_v32 = vshll.u32 %v2191_v40, 16 }
  0x59   : > { %v1734_v57 = vcombine.low %v543_v49, %v561_v2  ;;  %v767_v33 = vrot.slane %v766_v24, 4  ;;  %v771_v54 = vrot.slane %v769_v56, 5  ;;  %v774_v29 = vrot.slane %v772_v62, 6  ;;  %v2307_v24 = vld [vmem:[#allocation2 + $0x30] sm:$0xf] }
  0x5a   : > { %v758_v21 = vsel %vm2004_vm11, %v749_v61, %v757_v50  ;;  %v601_v9 = vrot.slane %v599_v4, 5  ;;  %v604_v59 = vrot.slane %v602_v32, 6  ;;  %v608_v58 = vshrl.u32 %v2193_v28, 16 }
  0x5b   : > { %1135 = vrot.lane.b32.xlu1 %v1734_v57, %s1898_s24  ;;  %v775_v47 = vor.u32 %v774_v29, %v771_v54  ;;  %v611_v51 = vshll.u32 %v2193_v28, 16  ;;  %v617_v34 = vshrl.u32 %v2108_v27, 16  ;;  %v620_v43 = vshll.u32 %v2108_v27, 16  ;;  %v1694_v57 = vld [vmem:[#allocation2 + $0x4c] sm:$0x7] }
  0x5c   : > { %v605_v35 = vor.u32 %v604_v59, %v601_v9  ;;  %v610_v14 = vrot.slane %v608_v58, 5  ;;  %v626_v8 = vshrl.u32 %v2197_v41, 16  ;;  %v629_v15 = vshll.u32 %v2197_v41, 16  ;;  %v1696_v54 = vld [vmem:[#allocation2 + $0x54] sm:$0x7] }
  0x5d   : > { %v776_v46 = vsel %vm2004_vm11, %v767_v33, %v775_v47  ;;  %v613_v48 = vrot.slane %v611_v51, 6  ;;  %v619_v36 = vrot.slane %v617_v34, 5  ;;  %v622_v7 = vrot.slane %v620_v43, 6 }
  0x5e   : > { %v1746_v30 = vcombine.low %v758_v21, %v776_v46  ;;  %v606_v60 = vrot.slane %v605_v35, 4  ;;  %v628_v26 = vrot.slane %v626_v8, 5  ;;  %v631_v28 = vrot.slane %v629_v15, 6 }
  0x5f   : > { %v614_v49 = vor.u32 %v613_v48, %v610_v14  ;;  %v623_v52 = vor.u32 %v622_v7, %v619_v36  ;;  %v1699_v27 = vrot.slane %v2166_v18, 11  ;;  %v875_v23 = vrot.slane %v2258_v45, 7 }
  0x60   : > { %1195 = vrot.lane.b32.xlu0 %v1746_v30, %s1901_s27  ;;  %v632_v55 = vor.u32 %v631_v28, %v628_v26  ;;  %v1700_v41 = vrot.slane %v2168_v19, 11  ;;  %v879_v44 = vrot.slane %v2264_v10, 7  ;;  %v785_v42 = vrot.slane %v784_v3, 4  ;;  %v2316_v3 = vld [vmem:[#allocation2 + $0x38] sm:$0xf] }
  0x61   : > { %v615_v31 = vsel %vm2004_vm11, %v606_v60, %v614_v49  ;;  %v624_v17 = vrot.slane %v623_v52, 4  ;;  %v876_v18 = vsel %vm1983_vm5, %v1699_v27, %v875_v23  ;;  %v787_v45 = vshrl.u32 %v2201_v53, 16 }
  0x62   : > { %v880_v19 = vsel %vm1983_vm5, %v1700_v41, %v879_v44  ;;  %v790_v10 = vshll.u32 %v2201_v53, 16  ;;  %v803_v5 = vrot.slane %v802_v25, 4  ;;  %v805_v6 = vshrl.u32 %v2209_v63, 16  ;;  %v2344_v44 = vld [vmem:[#allocation2 + $0x34] sm:$0x7] }
  0x63   : > { %v633_v56 = vsel %vm2004_vm11, %v624_v17, %v632_v55  ;;  %v1750_v62 = vcombine.low %v876_v18, %v880_v19  ;;  %v789_v4 = vrot.slane %v787_v45, 5  ;;  %v808_v2 = vshll.u32 %v2209_v63, 16 }
  0x64   : > { %v1736_v61 = vcombine.low %v615_v31, %v633_v56  ;;  %v792_v50 = vrot.slane %v790_v10, 6  ;;  %v807_v32 = vrot.slane %v805_v6, 5  ;;  %v918_v53 = vshrl.u32 %v2307_v24, 16 }
  0x65   : > { %1215 = vrot.lane.b32.xlu0 %v1750_v62, %s1900_s26  ;;  %v810_v12 = vrot.slane %v808_v2, 6  ;;  %v921_v13 = vshll.u32 %v2307_v24, 16  ;;  %v936_v25 = vshrl.u32 %v2316_v3, 16  ;;  %v939_v33 = vshll.u32 %v2316_v3, 16  ;;  %v2357_v62 = vld [vmem:[#allocation2 + $0x3c] sm:$0x7] }
  0x66   : > { %1139 = vrot.lane.b32.xlu1 %v1736_v61, %s1898_s24  ;;  %v793_v29 = vor.u32 %v792_v50, %v789_v4  ;;  %v1753_v63 = vcombine.low %v2307_v24, %v2316_v3  ;;  %v2575_v21 = vshrl.u32 %v2126_v38, 16  ;;  %v2576_v59 = vshll.u32 %v2126_v38, 16 }
  0x67   : > { %v811_v47 = vor.u32 %v810_v12, %v807_v32  ;;  %v823_v51 = vshrl.u32 %v1694_v57, 16  ;;  %v826_v34 = vshll.u32 %v1694_v57, 16  ;;  %v2577_v43 = vshrl.u32 %v2128_v39, 16 }
  0x68   : > { %v816_v9 = vrot.slane %v2575_v21, 5  ;;  %v819_v58 = vrot.slane %v2576_v59, 6  ;;  %v794_v14 = vsel %vm2004_vm11, %v785_v42, %v793_v29  ;;  %v2578_v15 = vshll.u32 %v2128_v39, 16  ;;  %v2365_v29 = vld [vmem:[#allocation2 + $0x50] sm:$0xf] }
  0x69   : > { %v834_v35 = vrot.slane %v2577_v43, 5  ;;  %v841_v48 = vshrl.u32 %v1696_v54, 16  ;;  %v812_v36 = vsel %vm2004_vm11, %v803_v5, %v811_v47  ;;  %1233 = vrot.lane.b32.xlu0 %v1753_v63, %s1902_s28  ;;  %v825_v7 = vrot.slane %v823_v51, 5 }
  0x6a   : > { %v820_v8 = vor.u32 %v819_v58, %v816_v9  ;;  %v837_v46 = vrot.slane %v2578_v15, 6  ;;  %v828_v30 = vrot.slane %v826_v34, 6  ;;  %v844_v60 = vshll.u32 %v1696_v54, 16  ;;  %v2376_v34 = vld [vmem:[#allocation2 + $0x44] sm:$0x7] }
  0x6b   : > { %v1747_v26 = vcombine.low %v794_v14, %v812_v36  ;;  %v843_v52 = vrot.slane %v841_v48, 5  ;;  %v954_v55 = vshrl.u32 %v2157_v0, 16  ;;  %v957_v41 = vshll.u32 %v2157_v0, 16  ;;  %v2382_v48 = vld [vmem:[#allocation2 + $0x4c] sm:$0x7] }
  0x6c   : > { %v821_v28 = vrot.slane %v820_v8, 4  ;;  %v838_v49 = vor.u32 %v837_v46, %v834_v35  ;;  %v829_v27 = vor.u32 %v828_v30, %v825_v7  ;;  %v846_v23 = vrot.slane %v844_v60, 6 }
  0x6d   : > { %1197 = vrot.lane.b32.xlu1 %v1747_v26, %s1901_s27  ;;  %v972_v31 = vshrl.u32 %v2164_v11, 16  ;;  %v975_v17 = vshll.u32 %v2164_v11, 16  ;;  %v1703_v18 = vrot.slane %v2126_v38, 11  ;;  %v2579_v10 = vcombine.low %v2157_v0, %v2164_v11 }
  0x6e   : > { %v839_v42 = vrot.slane %v838_v49, 4  ;;  %v830_v45 = vsel %vm2004_vm11, %v821_v28, %v829_v27  ;;  %v847_v19 = vor.u32 %v846_v23, %v843_v52  ;;  %v891_v5 = vrot.slane %v1694_v57, 7  ;;  %v2387_v28 = vld [vmem:[#allocation2 + $0x60] sm:$0xf] }
  0x6f   : > { %1235 = vrot.lane.b32.xlu0 %v2579_v10, %s1902_s28  ;;  %v1704_v6 = vrot.slane %v2128_v39, 11  ;;  %v895_v56 = vrot.slane %v1696_v54, 7  ;;  %v920_v4 = vrot.slane %v918_v53, 5  ;;  %v923_v2 = vrot.slane %v921_v13, 6  ;;  %v2369_v13 = vld [vmem:[#allocation2 + $0x58] sm:$0xf] }
  0x70   : > { %v927_v61 = vshrl.u32 %v2344_v44, 16  ;;  %v848_v38 = vsel %vm2004_vm11, %v839_v42, %v847_v19  ;;  %v892_v50 = vsel %vm1983_vm5, %v1703_v18, %v891_v5  ;;  %v930_v32 = vshll.u32 %v2344_v44, 16  ;;  %v2393_v19 = vld [vmem:[#allocation2 + $0x68] sm:$0xf] }
  0x71   : > { %v938_v12 = vrot.slane %v936_v25, 5  ;;  %v1748_v57 = vcombine.low %v830_v45, %v848_v38  ;;  %v896_v39 = vsel %vm1983_vm5, %v1704_v6, %v895_v56  ;;  %v924_v54 = vor.u32 %v923_v2, %v920_v4 }
  0x72   : > { %v929_v53 = vrot.slane %v927_v61, 5  ;;  %v1752_v63 = vcombine.low %v892_v50, %v896_v39  ;;  %v932_v21 = vrot.slane %v930_v32, 6  ;;  %v941_v9 = vrot.slane %v939_v33, 6  ;;  %v2401_v32 = vld [vmem:[#allocation2 + $0x54] sm:$0x7] }
  0x73   : > { %v945_v59 = vshrl.u32 %v2357_v62, 16  ;;  %1199 = vrot.lane.b32.xlu1 %v1748_v57, %s1901_s27  ;;  %v925_v58 = vrot.slane %v924_v54, 4  ;;  %v948_v25 = vshll.u32 %v2357_v62, 16  ;;  %v990_v47 = vshrl.u32 %v2365_v29, 16 }
  0x74   : > { %v993_v51 = vshll.u32 %v2365_v29, 16  ;;  %v933_v43 = vor.u32 %v932_v21, %v929_v53  ;;  %v942_v35 = vor.u32 %v941_v9, %v938_v12  ;;  %v1008_v8 = vshrl.u32 %v2369_v13, 16 }
  0x75   : > { %v947_v14 = vrot.slane %v945_v59, 5  ;;  %v950_v15 = vrot.slane %v948_v25, 6  ;;  %v1011_v33 = vshll.u32 %v2369_v13, 16  ;;  %v1755_v46 = vcombine.low %v2365_v29, %v2369_v13 }
  0x76   : > { %v956_v36 = vrot.slane %v954_v55, 5  ;;  %v934_v7 = vsel %vm2004_vm11, %v925_v58, %v933_v43  ;;  %v943_v30 = vrot.slane %v942_v35, 4  ;;  %v959_v60 = vrot.slane %v957_v41, 6  ;;  %v2415_v58 = vld [vmem:[#allocation2 + $0x5c] sm:$0x7] }
  0x77   : > { %v963_v26 = vshrl.u32 %v2376_v34, 16  ;;  %1219 = vrot.lane.b32.xlu1 %v1752_v63, %s1900_s26  ;;  %v951_v49 = vor.u32 %v950_v15, %v947_v14  ;;  %v966_v52 = vshll.u32 %v2376_v34, 16  ;;  %v974_v27 = vrot.slane %v972_v31, 5  ;;  %s2535_s26 = scalar_lea.vmem %s2566_s4, %s1778_s19 }
  0x78   : > { %v977_v23 = vrot.slane %v975_v17, 6  ;;  %v960_v42 = vor.u32 %v959_v60, %v956_v36  ;;  %v981_v55 = vshrl.u32 %v2382_v48, 16  ;;  %v984_v45 = vshll.u32 %v2382_v48, 16 }
  0x79   : > { %v965_v18 = vrot.slane %v963_v26, 5  ;;  %v952_v41 = vsel %vm2004_vm11, %v943_v30, %v951_v49  ;;  %v968_v10 = vrot.slane %v966_v52, 6  ;;  %v1026_v6 = vshrl.u32 %v2387_v28, 16 }
  0x7a   : > { %v978_v5 = vor.u32 %v977_v23, %v974_v27  ;;  %v1757_v56 = vcombine.low %v934_v7, %v952_v41  ;;  %v961_v4 = vrot.slane %v960_v42, 4  ;;  %v983_v2 = vrot.slane %v981_v55, 5  ;;  %v1718_v27 = vld [vmem:[#allocation2 + $0x64] sm:$0x7] }
  0x7b   : > { %v986_v31 = vrot.slane %v984_v45, 6  ;;  %1237 = vrot.lane.b32.xlu1 %v1755_v46, %s1902_s28  ;;  %v969_v17 = vor.u32 %v968_v10, %v965_v18  ;;  %v1029_v38 = vshll.u32 %v2387_v28, 16  ;;  %v1044_v50 = vshrl.u32 %v2393_v19, 16  ;;  %v1720_v10 = vld [vmem:[#allocation2 + $0x6c] sm:$0x7] }
  0x7c   : > { %v979_v61 = vrot.slane %v978_v5, 4  ;;  %1253 = vrot.lane.b32.xlu0 %v1757_v56, %s1903_s29  ;;  %v1047_v57 = vshll.u32 %v2393_v19, 16  ;;  %v1756_v39 = vcombine.low %v2387_v28, %v2393_v19  ;;  %v1721_v54 = vrot.slane %v2307_v24, 11 }
  0x7d   : > { %v987_v12 = vor.u32 %v986_v31, %v983_v2  ;;  %v970_v53 = vsel %vm2004_vm11, %v961_v4, %v969_v17  ;;  %v1079_v63 = vrot.slane %v2344_v44, 7  ;;  %v1722_v21 = vrot.slane %v2316_v3, 11 }
  0x7e   : > { %v1083_v9 = vrot.slane %v2357_v62, 7  ;;  %v992_v25 = vrot.slane %v990_v47, 5  ;;  %v995_v43 = vrot.slane %v993_v51, 6  ;;  %v999_v35 = vshrl.u32 %v2401_v32, 16 }
  0x7f   : > { %v988_v59 = vsel %vm2004_vm11, %v979_v61, %v987_v12  ;;  %1239 = vrot.lane.b32.xlu1 %v1756_v39, %s1902_s28  ;;  %v1080_v24 = vsel %vm1983_vm5, %v1721_v54, %v1079_v63  ;;  %v1002_v44 = vshll.u32 %v2401_v32, 16  ;;  %v1010_v36 = vrot.slane %v1008_v8, 5 }
  0x80   : > { %v1758_v14 = vcombine.low %v970_v53, %v988_v59  ;;  %v1084_v3 = vsel %vm1983_vm5, %v1722_v21, %v1083_v9  ;;  %v996_v15 = vor.u32 %v995_v43, %v992_v25  ;;  %v1001_v46 = vrot.slane %v999_v35, 5 }
  0x81   : > { %v1761_v62 = vcombine.low %v1080_v24, %v1084_v3  ;;  %v1004_v47 = vrot.slane %v1002_v44, 6  ;;  %v1013_v51 = vrot.slane %v1011_v33, 6  ;;  %v1017_v7 = vshrl.u32 %v2415_v58, 16 }
  0x82   : > { %1255 = vrot.lane.b32.xlu0 %v1758_v14, %s1903_s29  ;;  %v1020_v30 = vshll.u32 %v2415_v58, 16  ;;  %v997_v60 = vrot.slane %v996_v15, 4  ;;  %v1723_v26 = vrot.slane %v2157_v0, 11  ;;  %v1087_v49 = vrot.slane %v2376_v34, 7 }
  0x83   : > { %v1724_v52 = vrot.slane %v2164_v11, 11  ;;  %v1005_v23 = vor.u32 %v1004_v47, %v1001_v46  ;;  %v1014_v42 = vor.u32 %v1013_v51, %v1010_v36  ;;  %v1019_v18 = vrot.slane %v1017_v7, 5  ;;  %v1864_v36 = vld [vmem:[%s2563_s1 + $0x18] sm:$0xff]  }
  0x84   : > { %v1022_v8 = vrot.slane %v1020_v30, 6  ;;  %v1088_v55 = vsel %vm1983_vm5, %v1723_v26, %v1087_v49  ;;  %v1091_v33 = vrot.slane %v2382_v48, 7  ;;  %v1028_v45 = vrot.slane %v1026_v6, 5  ;;  %v1866_v30 = vld [vmem:[%s2563_s1 + $0x8] sm:$0xff]  }
  0x85   : > { %v1031_v41 = vrot.slane %v1029_v38, 6  ;;  %v1006_v0 = vsel %vm2004_vm11, %v997_v60, %v1005_v23  ;;  %v1015_v34 = vrot.slane %v1014_v42, 4  ;;  %v1035_v5 = vshrl.u32 %v1718_v27, 16 }
  0x86   : > { %1273 = vrot.lane.b32.xlu0 %v1761_v62, %s1904_s30  ;;  %v1023_v11 = vor.u32 %v1022_v8, %v1019_v18  ;;  %v1092_v56 = vsel %vm1983_vm5, %v1724_v52, %v1091_v33  ;;  %v1038_v2 = vshll.u32 %v1718_v27, 16  ;;  %v1046_v31 = vrot.slane %v1044_v50, 5 }
  0x87   : > { %v1032_v4 = vor.u32 %v1031_v41, %v1028_v45  ;;  %v1762_v6 = vcombine.low %v1088_v55, %v1092_v56  ;;  %v1037_v17 = vrot.slane %v1035_v5, 5  ;;  %v1049_v61 = vrot.slane %v1047_v57, 6 }
  0x88   : > { %v1024_v48 = vsel %vm2004_vm11, %v1015_v34, %v1023_v11  ;;  %v1040_v39 = vrot.slane %v1038_v2, 6  ;;  %v1053_v54 = vshrl.u32 %v1720_v10, 16  ;;  %v1056_v63 = vshll.u32 %v1720_v10, 16  ;;  %v1868_v2 = vld [vmem:[#allocation2] sm:$0xf] }
  0x89   : > { %v1759_v38 = vcombine.low %v1006_v0, %v1024_v48  ;;  %v1033_v12 = vrot.slane %v1032_v4, 4  ;;  %v1050_v53 = vor.u32 %v1049_v61, %v1046_v31  ;;  %v1725_v21 = vrot.slane %v2365_v29, 11  ;;  %v1869_v31 = vld [vmem:[#allocation2 + $0x8] sm:$0xf]  ;;  %v1870_v61 = vld [vmem:[#allocation2 + $0x10] sm:$0xf] }
  0x8a   : > { %1275 = vrot.lane.b32.xlu0 %v1762_v6, %s1904_s30  ;;  %v1095_v9 = vrot.slane %v2401_v32, 7  ;;  %v1041_v50 = vor.u32 %v1040_v39, %v1037_v17  ;;  %v1055_v59 = vrot.slane %v1053_v54, 5  ;;  %v1726_v25 = vrot.slane %v2369_v13, 11  ;;  %v1863_v13 = vld [vmem:[%s2563_s1 + $0x20] ss:$0 sps:$4 sm:$0xff]  }
  0x8b   : > { %1257 = vrot.lane.b32.xlu1 %v1759_v38, %s1903_s29  ;;  %v1099_v57 = vrot.slane %v2415_v58, 7  ;;  %v1051_v43 = vrot.slane %v1050_v53, 4  ;;  %v1058_v35 = vrot.slane %v1056_v63, 6  ;;  %v1727_v32 = vrot.slane %v2387_v28, 11 }
  0x8c   : > { %v1042_v14 = vsel %vm2004_vm11, %v1033_v12, %v1041_v50  ;;  %v1096_v3 = vsel %vm1983_vm5, %v1725_v21, %v1095_v9  ;;  %v1103_v44 = vrot.slane %v1718_v27, 7  ;;  %v1728_v62 = vrot.slane %v2393_v19, 11  ;;  %v1865_v19 = vld [vmem:[%s2563_s1 + $0x10] sm:$0xff]  }
  0x8d   : > { %v1059_v24 = vor.u32 %v1058_v35, %v1055_v59  ;;  %v1100_v29 = vsel %vm1983_vm5, %v1726_v25, %v1099_v57  ;;  %v1107_v15 = vrot.slane %v1720_v10, 7  ;;  %vm1402_vm14 = vcmask 1043456  }
  0x8e   : > { %v1763_v28 = vcombine.low %v1096_v3, %v1100_v29  ;;  %1817 = vmatprep.subr.msk.bf16.mxu0 %vm1402_vm14, %v1863_v13  ;;  %v1404_v47 = vsel %vm1402_vm14, %v1863_v13, 0  ;;  %v1104_v51 = vsel %vm1983_vm5, %v1727_v32, %v1103_v44  ;;  %1818 = vmatprep.subr.msk.bf16.mxu1 %vm1402_vm14, %v1863_v13  ;;  %v1729_v48 = vcombine.low %v1868_v2, %v1869_v31 }
  0x8f   : > { %v1060_v58 = vsel %vm2004_vm11, %v1051_v43, %v1059_v24  ;;  %v1108_v37 = vsel %vm1983_vm5, %v1728_v62, %v1107_v15  ;;  %1790 = vmatpush3.bf16.msra.mxu0 %v1404_v47  ;;  %1812 = vmatpush3.bf16.msra.mxu1 %v1404_v47  ;;  %vm1281_vm15 = vcmask 64512   ;;  %vm1294_vm1 = vcmask 130048  }
  0x90   : > { %v1760_v46 = vcombine.low %v1042_v14, %v1060_v58  ;;  %1791 = vmatprep.subr.bf16.mxu0 %v1864_v36  ;;  %1808 = vmatprep.subr.bf16.mxu1 %v1864_v36  ;;  %v1764_v7 = vcombine.low %v1104_v51, %v1108_v37  ;;  %v1730_v38 = vcombine.low %v1870_v61, %v2091_v16  ;;  %vm1303_vm2 = vcmask 195584  }
  0x91   : > { %vm1312_vm3 = vcmask 261120   ;;  %vm1321_vm4 = vcmask 326656   ;;  %vm1330_vm5 = vcmask 392192   ;;  %vm1339_vm6 = vcmask 457728  }
  0x92   : > { %1259 = vrot.lane.b32.xlu1 %v1760_v46, %s1903_s29  ;;  %v1154_v60 = vpop.permute.xlu0 %1153  ;;  %vm1348_vm7 = vcmask 523264   ;;  %vm1393_vm8 = vcmask 588800   ;;  %v1731_v14 = vcombine.low %v2101_v22, %v2170_v20  ;;  %v1871_v22 = vld [vmem:[#allocation2 + $0x38] sm:$0xf] }
  0x93   : > { %1792 = vmatpush3.bf16.msra.mxu0 %v1864_v36  ;;  %1813 = vmatpush3.bf16.msra.mxu1 %v1864_v36  ;;  %v1732_v20 = vcombine.low %v2191_v40, %v1871_v22 }
  0x94   : > { %1793 = vmatprep.subr.bf16.mxu0 %v1865_v19  ;;  %1809 = vmatprep.subr.bf16.mxu1 %v1865_v19 }
  0x96   : > { %1277 = vrot.lane.b32.xlu1 %v1763_v28, %s1904_s30 }
  0x97   : > { %1794 = vmatpush3.bf16.msra.mxu0 %v1865_v19  ;;  %1814 = vmatpush3.bf16.msra.mxu1 %v1865_v19 }
  0x98   : > { %1795 = vmatprep.subr.bf16.mxu0 %v1866_v30  ;;  %1810 = vmatprep.subr.bf16.mxu1 %v1866_v30 }
  0x9a   : > { %1279 = vrot.lane.b32.xlu1 %v1764_v7, %s1904_s30  ;;  %v1134_v26 = vpop.permute.xlu0 %1133 }
  0x9b   : > { %1796 = vmatpush3.bf16.msra.mxu0 %v1866_v30  ;;  %1815 = vmatpush3.bf16.msra.mxu1 %v1866_v30  ;;  %v1284_v17 = vsel %vm1281_vm15, %v1729_v48, %v1134_v26 }
  0x9c   : > { %1797 = vmatprep.subr.bf16.mxu0 %v1867_v1  ;;  %1811 = vmatprep.subr.bf16.mxu1 %v1867_v1  ;;  %v1296_v39 = vsel %vm1294_vm1, %v1284_v17, %v1154_v60 }
  0x9f   : > { %1798 = vmatpush3.bf16.msra.mxu0 %v1867_v1  ;;  %1816 = vmatpush3.bf16.msra.mxu1 %v1867_v1 }
  0xa4   : > { %v2478_v52 = vpop.permute.xlu1 %1177 }
  0xa9   : > { %v1174_v49 = vpop.permute.xlu0 %1173 }
  0xaa   : > { %v1305_v63 = vsel %vm1303_vm2, %v1296_v39, %v1174_v49 }
  0xac   : > { %v2480_v23 = vpop.permute.xlu1 %1179 }
  0xb2   : > { %v1176_v27 = vpop.permute.xlu0 %1175 }
  0xb6   : > { %v1156_v42 = vpop.permute.xlu0 %1155  ;;  %v1158_v18 = vpop.permute.xlu1 %1157 }
  0xba   : > { %v1214_v8 = vpop.permute.xlu0 %1213  ;;  %v1160_v55 = vpop.permute.xlu1 %1159 }
  0xbe   : > { %v1218_v45 = vpop.permute.xlu1 %1217 }
  0xc2   : > { %v1138_v33 = vpop.permute.xlu0 %1137 }
  0xc3   : > { %v1290_v62 = vsel %vm1281_vm15, %v1731_v14, %v1138_v33  ;;  %v1775_v33 = vld [vmem:[%s2565_s3] ss:$0 sm:$0xff] }
  0xc4   : > { %v1300_v36 = vsel %vm1294_vm1, %v1290_v62, %v1158_v18 }
  0xc5   : > { %v1309_v47 = vsel %vm1303_vm2, %v1300_v36, %v2478_v52 }
  0xc7   : > { %v1194_v41 = vpop.permute.xlu0 %1193 }
  0xc8   : > { %v1314_v21 = vsel %vm1312_vm3, %v1305_v63, %v1194_v41 }
  0xc9   : > { %v1323_v25 = vsel %vm1321_vm4, %v1314_v21, %v1214_v8 }
  0xcd   : > { %v1136_v0 = vpop.permute.xlu1 %1135 }
  0xce   : > { %v1287_v53 = vsel %vm1281_vm15, %v1730_v38, %v1136_v0 }
  0xcf   : > { %v1298_v9 = vsel %vm1294_vm1, %v1287_v53, %v1156_v42 }
  0xd0   : > { %v1307_v16 = vsel %vm1303_vm2, %v1298_v9, %v1176_v27 }
  0xd2   : > { %v1196_v34 = vpop.permute.xlu0 %1195 }
  0xd3   : > { %v1316_v24 = vsel %vm1312_vm3, %v1307_v16, %v1196_v34 }
  0xd7   : > { %v1216_v10 = vpop.permute.xlu0 %1215 }
  0xd8   : > { %v1140_v11 = vpop.permute.xlu1 %1139  ;;  %v1325_v32 = vsel %vm1321_vm4, %v1316_v24, %v1216_v10 }
  0xd9   : > { %v1293_v28 = vsel %vm1281_vm15, %v1732_v20, %v1140_v11 }
  0xda   : > { %v1302_v19 = vsel %vm1294_vm1, %v1293_v28, %v1160_v55 }
  0xdb   : > { %v1234_v56 = vpop.permute.xlu0 %1233  ;;  %v1311_v40 = vsel %vm1303_vm2, %v1302_v19, %v2480_v23  ;;  %v1774_v23 = vld [vmem:[%s2564_s2] ss:$0 sm:$0xff] }
  0xdc   : > { %v1332_v57 = vsel %vm1330_vm5, %v1323_v25, %v1234_v56 }
  0xdf   : > { %v1198_v5 = vpop.permute.xlu1 %1197 }
  0xe0   : > { %v1318_v51 = vsel %vm1312_vm3, %v1309_v47, %v1198_v5 }
  0xe1   : > { %v1236_v6 = vpop.permute.xlu0 %1235  ;;  %v1327_v7 = vsel %vm1321_vm4, %v1318_v51, %v1218_v45 }
  0xe2   : > { %v1334_v13 = vsel %vm1330_vm5, %v1325_v32, %v1236_v6 }
  0xe5   : > { %v1200_v4 = vpop.permute.xlu1 %1199 }
  0xe6   : > { %v1320_v26 = vsel %vm1312_vm3, %v1311_v40, %v1200_v4 }
  0xe9   : > { %v1220_v12 = vpop.permute.xlu1 %1219 }
  0xea   : > { %v1329_v52 = vsel %vm1321_vm4, %v1320_v26, %v1220_v12 }
  0xed   : > { %v1238_v50 = vpop.permute.xlu1 %1237 }
  0xee   : > { %v1254_v54 = vpop.permute.xlu0 %1253  ;;  %v1336_v30 = vsel %vm1330_vm5, %v1327_v7, %v1238_v50 }
  0xef   : > { %v1341_v43 = vsel %vm1339_vm6, %v1332_v57, %v1254_v54 }
  0xf1   : > { %v1240_v3 = vpop.permute.xlu1 %1239 }
  0xf2   : > { %v1338_v27 = vsel %vm1330_vm5, %v1329_v52, %v1240_v3 }
  0xf4   : > { %v1256_v59 = vpop.permute.xlu0 %1255 }
  0xf5   : > { %v1343_v58 = vsel %vm1339_vm6, %v1334_v13, %v1256_v59 }
  0xf8   : > { %v1274_v35 = vpop.permute.xlu0 %1273 }
  0xf9   : > { %v1350_v29 = vsel %vm1348_vm7, %v1341_v43, %v1274_v35 }
  0xfa   : > { %1799 = vmatprep.mubr.msk.bf16.mxu0 %vm1393_vm8, %v1350_v29 }
  0xfc   : > { %v1276_v44 = vpop.permute.xlu0 %1275 }
  0xfd   : > { %v1352_v15 = vsel %vm1348_vm7, %v1343_v58, %v1276_v44  ;;  %v1258_v46 = vpop.permute.xlu1 %1257 }
  0xfe   : > { %1800 = vmatmul.mubr.msk.bf16.vlgmr.msra.gmra.mxu0 %vm1393_vm8, %v1352_v15  ;;  %v1345_v1 = vsel %vm1339_vm6, %v1336_v30, %v1258_v46 }
 0x104   : > { %v1260_v37 = vpop.permute.xlu1 %1259 }
 0x105   : > { %v1347_v42 = vsel %vm1339_vm6, %v1338_v27, %v1260_v37 }
 0x108   : > { %v1278_v60 = vpop.permute.xlu1 %1277 }
 0x109   : > { %v1354_v49 = vsel %vm1348_vm7, %v1345_v1, %v1278_v60 }
 0x10a   : > { %1803 = vmatprep.mubr.msk.bf16.mxu1 %vm1393_vm8, %v1354_v49 }
 0x10c   : > { %v1280_v18 = vpop.permute.xlu1 %1279 }
 0x10d   : > { %v1356_v8 = vsel %vm1348_vm7, %v1347_v42, %v1280_v18 }
 0x10e   : > { %1804 = vmatmul.mubr.msk.bf16.vlgmr.msra.gmra.mxu1 %vm1393_vm8, %v1356_v8 }
 0x1be   : > { %v1801_v55 = vpop.f32.mrf.mxu0 }
 0x1bf   : > { %v1480_v45 = vmul.f32 %v1801_v55, %v1774_v23 }
 0x1c0   : > { %v1440_v41 = vpop.f32.mrf.mxu0 }
 0x1c1   : > { %v1495_v0 = vadd.f32 %v1775_v33, %v1480_v45  ;;  %v1478_v34 = vmul.f32 %v1774_v23, %v1440_v41 }
 0x1c2   : > { %v1802_v11 = vpop.f32.mrf.mxu0 }
 0x1c3   : > { %v1503_v10 = vpack.c.bf16 %v1495_v0, %v1495_v0  ;;  %v1493_v5 = vadd.f32 %v1775_v33, %v1478_v34  ;;  %v1481_v56 = vmul.f32 %v1802_v11, %v1774_v23 }
 0x1c4   : > { %v1443_v4 = vpop.f32.mrf.mxu0 }
 0x1c5   : > { %1512 = vst.msk [vmem:[%s2535_s26 + $0x8] sm:$0xf] %vm286_vm0, %v1503_v10  ;;  %v1501_v2 = vpack.c.bf16 %v1493_v5, %v1493_v5  ;;  %v1496_v31 = vadd.f32 %v1775_v33, %v1481_v56  ;;  %v1479_v48 = vmul.f32 %v1774_v23, %v1443_v4 }
 0x1c7   : > { %1510 = vst.msk [vmem:[%s2535_s26] sm:$0xf] %vm286_vm0, %v1501_v2  ;;  %v1504_v6 = vpack.c.bf16 %v1496_v31, %v1496_v31  ;;  %v1494_v17 = vadd.f32 %v1775_v33, %v1479_v48 }
 0x1c9   : > { %1513 = vst.msk [vmem:[%s2535_s26 + $0xc] sm:$0xf] %vm286_vm0, %v1504_v6  ;;  %v1502_v61 = vpack.c.bf16 %v1494_v17, %v1494_v17 }
 0x1cb   : > { %1511 = vst.msk [vmem:[%s2535_s26 + $0x4] sm:$0xf] %vm286_vm0, %v1502_v61 }
 0x1ce   : > { %v1805_v38 = vpop.f32.mrf.mxu1 }
 0x1cf   : > { %v1484_v12 = vmul.f32 %v1805_v38, %v1774_v23 }
 0x1d0   : > { %v1456_v39 = vpop.f32.mrf.mxu1 }
 0x1d1   : > { %v1499_v54 = vadd.f32 %v1775_v33, %v1484_v12  ;;  %v1482_v53 = vmul.f32 %v1774_v23, %v1456_v39 }
 0x1d2   : > { %v1806_v63 = vpop.f32.mrf.mxu1 }
 0x1d3   : > { %v1507_v21 = vpack.c.bf16 %v1499_v54, %v1499_v54  ;;  %v1497_v9 = vadd.f32 %v1775_v33, %v1482_v53  ;;  %v1485_v50 = vmul.f32 %v1806_v63, %v1774_v23 }
 0x1d4   : > { %v1459_v59 = vpop.f32.mrf.mxu1 }
 0x1d5   : > { %1516 = vst.msk [vmem:[%s2535_s26 + $0x18] sm:$0xf] %vm286_vm0, %v1507_v21  ;;  %v1505_v16 = vpack.c.bf16 %v1497_v9, %v1497_v9  ;;  %v1500_v25 = vadd.f32 %v1775_v33, %v1485_v50  ;;  %v1483_v57 = vmul.f32 %v1774_v23, %v1459_v59 }
 0x1d7   : > { %1514 = vst.msk [vmem:[%s2535_s26 + $0x10] sm:$0xf] %vm286_vm0, %v1505_v16  ;;  %v1508_v43 = vpack.c.bf16 %v1500_v25, %v1500_v25  ;;  %v1498_v35 = vadd.f32 %v1775_v33, %v1483_v57 }
 0x1d9   : > { %1517 = vst.msk [vmem:[%s2535_s26 + $0x1c] sm:$0xf] %vm286_vm0, %v1508_v43  ;;  %v1506_v14 = vpack.c.bf16 %v1498_v35, %v1498_v35 }
 0x1db   : > { %1515 = vst.msk [vmem:[%s2535_s26 + $0x14] sm:$0xf] %vm286_vm0, %v1506_v14 }
 0x1dc PF: > { %s14_s17 = sadd.s32 1, %s1894_s17   ;;  %s2580_s15 = smov %s1890_s16 }
 0x1dd   : > { %p11_p5 = scmp.ge.s32.totalorder %s14_s17, 4   ;;  %s2581_s16 = smov %s2583_s18 }
 0x1df   :  { %13 = sbr.rel (!%p11_p5) target bundleno = 2 (0x2), region = 83 }

// kernel: basic_rfb_apply.13
= control target key start
LH: loop header
LB: loop body
LE: loop exit
PB: predicated region body
PF: predicated region fallthrough
CT: control target
= control target key end

     0   :  { %s1792_s15 = smov 0   ;;  %s1794_s16 = smov 0   ;;  %s2394_s0 = inlined_call_operand.vmem [shape: bf16[2,8,8,4], index: 0, kind: input, shape index: {}]   ;;  %s2395_s1 = inlined_call_operand.vmem [shape: bf16[36,8], index: 1, kind: input, shape index: {}]   ;;  %s2396_s2 = inlined_call_operand.vmem [shape: f32[1,8], index: 2, kind: input, shape index: {}]   ;;  %s2397_s3 = inlined_call_operand.vmem [shape: f32[1,8], index: 3, kind: input, shape index: {}]   ;;  %s2398_s4 = inlined_call_operand.vmem [shape: bf16[2,8,8,8], index: 4, kind: output, shape index: {}]  }
   0x1   :  { %s1796_s17 = smov 0  }
   0x2 LB: > { %s29_s18 = sadd.s32 1, %s1752_s16  ;;  %p1548_p0 = scmp.ge.s32.totalorder %s1756_s17, 1  ;;  %s1756_s17 = sphi %s1796_s17, %s14_s17   ;;  %s1752_s16 = sphi %s1794_s16, %s2416_s16   ;;  %s1748_s15 = sphi %s1792_s15, %s2415_s15  }
   0x3   : > { %p31_p1 = scmp.ge.s32.totalorder %s29_s18, 2  ;;  %p210_p2 = scmp.lt.s32.totalorder %s1756_s17, 3 }
   0x5   : > { %s2418_s18 = smov (%p31_p1, %s29_s18), 0  ;;  %p211_p3 = pnand %p1548_p0, %p210_p2 }
   0x6   : > { %p253_p4 = scmp.lt.s32.totalorder (!%p211_p3), %s1748_s15, 1  ;;  %s1759_s23 = smov (!%p211_p3), 12  }
   0x7   : > { %214 = sbr.rel (%p211_p3) target bundleno = 452 (0x1c4), region = 36  ;;  %s1760_s24 = smov (!%p211_p3), 8  }
   0x8   : > { %s1761_s25 = smov (!%p211_p3), 20   ;;  %s1762_s26 = smov (!%p211_p3), 4  }
   0x9   : > { %s1763_s27 = smov (!%p211_p3), 16   ;;  %s1764_s28 = smov (!%p211_p3), 24  }
   0xa   : > { %s1765_s29 = smov (!%p211_p3), 28   ;;  %s1766_s6 = smov (!%p211_p3), 32  }
   0xc   : > { %vm286_vm0 = vcmask 27648   ;;  %v1758_v0 = vmov 0   ;;  %vm288_vm1 = vcmask 24576   ;;  %s2420_s15 = smov (!%p253_p4, %s1748_s15), 1  ;;  %vm398_vm2 = vsmask.f32 7938 }
   0xd   : > { %298 = vst.msk [vmem:[#allocation2 + $0x28] sm:$0xf] %vm286_vm0, %v1758_v0  ;;  %300 = vst.msk [vmem:[#allocation2 + $0x30] sm:$0xf] %vm286_vm0, %v1758_v0  ;;  %s1656_s19 = sshll.u32 %s2420_s15, 5  ;;  %vm602_vm4 = vcmask 1042432  }
   0xe   : > { %287 = vst.msk [vmem:[#allocation2] sm:$0xf] %vm286_vm0, %v1758_v0  ;;  %290 = vst.msk [vmem:[#allocation2 + $0x8] sm:$0xf] %vm286_vm0, %v1758_v0  ;;  %s1839_s22 = scalar_lea.vmem %s2394_s0, %s1656_s19  ;;  %vm404_vm3 = vsmask.f32 256 }
   0xf   : > { %292 = vst.msk [vmem:[#allocation2 + $0x10] sm:$0xf] %vm286_vm0, %v1758_v0  ;;  %294 = vst.msk [vmem:[#allocation2 + $0x18] sm:$0xf] %vm286_vm0, %v1758_v0  ;;  %v312_v1 = vld [vmem:[%s1839_s22 + $0x10] sm:$0xf] }
  0x10   : > { %296 = vst.msk [vmem:[#allocation2 + $0x20] sm:$0xf] %vm286_vm0, %v1758_v0  ;;  %302 = vst.msk [vmem:[#allocation2 + $0x38] sm:$0xf] %vm286_vm0, %v1758_v0  ;;  %v313_v2 = vld [vmem:[%s1839_s22 + $0x14] sm:$0xf] }
  0x11   : > { %304 = vst.msk [vmem:[#allocation2 + $0x40] sm:$0xf] %vm286_vm0, %v1758_v0  ;;  %306 = vst.msk [vmem:[#allocation2 + $0x48] sm:$0xf] %vm286_vm0, %v1758_v0  ;;  %v308_v3 = vld [vmem:[%s1839_s22] sm:$0xf] }
  0x12   : > { %297 = vst.msk [vmem:[#allocation2 + $0x24] sm:$0x1] %vm288_vm1, %v1758_v0  ;;  %299 = vst.msk [vmem:[#allocation2 + $0x2c] sm:$0x1] %vm288_vm1, %v1758_v0  ;;  %v349_v4 = vshrl.u32 %v312_v1, 16  ;;  %v352_v5 = vshll.u32 %v312_v1, 16 }
  0x13   : > { %289 = vst.msk [vmem:[#allocation2 + $0x4] sm:$0x1] %vm288_vm1, %v1758_v0  ;;  %291 = vst.msk [vmem:[#allocation2 + $0xc] sm:$0x1] %vm288_vm1, %v1758_v0  ;;  %v357_v6 = vshrl.u32 %v313_v2, 16  ;;  %v360_v7 = vshll.u32 %v313_v2, 16 }
  0x14   : > { %293 = vst.msk [vmem:[#allocation2 + $0x14] sm:$0x1] %vm288_vm1, %v1758_v0  ;;  %295 = vst.msk [vmem:[#allocation2 + $0x1c] sm:$0x1] %vm288_vm1, %v1758_v0  ;;  %v309_v8 = vld [vmem:[%s1839_s22 + $0x4] sm:$0xf] }
  0x15   : > { %301 = vst.msk [vmem:[#allocation2 + $0x34] sm:$0x1] %vm288_vm1, %v1758_v0  ;;  %303 = vst.msk [vmem:[#allocation2 + $0x3c] sm:$0x1] %vm288_vm1, %v1758_v0  ;;  %v317_v9 = vshrl.u32 %v308_v3, 16  ;;  %v320_v10 = vshll.u32 %v308_v3, 16 }
  0x16   : > { %305 = vst.msk [vmem:[#allocation2 + $0x44] sm:$0x1] %vm288_vm1, %v1758_v0  ;;  %307 = vst.msk [vmem:[#allocation2 + $0x4c] sm:$0x1] %vm288_vm1, %v1758_v0  ;;  %v351_v11 = vrot.slane %v349_v4, 7  ;;  %v1845_v12 = vrot.slane %v357_v6, 7 }
  0x17   : > { %v427_v13 = vld [vmem:[#allocation2 + $0x28] sm:$0xf]  ;;  %v325_v14 = vshrl.u32 %v309_v8, 16  ;;  %vm603_vm5 = vcmask 1046532   ;;  %vm1849_vm6 = vmand %vm286_vm0, %vm398_vm2  ;;  %v433_v16 = vld [vmem:[#allocation2 + $0x30] sm:$0xf] }
  0x18   : > { %v319_v17 = vrot.slane %v317_v9, 7  ;;  %v328_v18 = vshll.u32 %v309_v8, 16  ;;  %v314_v19 = vld [vmem:[%s1839_s22 + $0x18] sm:$0xf]  ;;  %v354_v20 = vor.u32 %v352_v5, %v351_v11  ;;  %v355_v21 = vrot.slane %v351_v11, 4  ;;  %vm1871_vm7 = vmand %vm288_vm1, %vm404_vm3 }
  0x19   : > { %v362_v22 = vor.u32 %v360_v7, %v1845_v12  ;;  %v363_v23 = vrot.slane %v1845_v12, 4  ;;  %v400_v24 = vld [vmem:[#allocation2 + $0x8] sm:$0xf]  ;;  %v315_v25 = vld [vmem:[%s1839_s22 + $0x1c] sm:$0xf]  ;;  %v1857_v28 = vrot.slane %v325_v14, 7  ;;  %vm1886_vm8 = vmor %vm602_vm4, %vm603_vm5 }
  0x1a   : > { %v322_v26 = vor.u32 %v320_v10, %v319_v17  ;;  %v323_v27 = vrot.slane %v319_v17, 4  ;;  %v409_v29 = vld [vmem:[#allocation2 + $0x10] sm:$0xf]  ;;  %v365_v30 = vshrl.u32 %v314_v19, 16  ;;  %v428_v31 = vsel %vm1849_vm6, %v354_v20, %v427_v13  ;;  %v310_v35 = vld [vmem:[%s1839_s22 + $0x8] sm:$0xf] }
  0x1b   : > { %v434_v32 = vsel %vm1849_vm6, %v362_v22, %v433_v16  ;;  %v368_v33 = vshll.u32 %v314_v19, 16  ;;  %v373_v34 = vshrl.u32 %v315_v25, 16  ;;  %v311_v36 = vld [vmem:[%s1839_s22 + $0xc] sm:$0xf]  ;;  %429 = vst [vmem:[#allocation2 + $0x28] sm:$0xf] %v428_v31  ;;  %v330_v37 = vor.u32 %v328_v18, %v1857_v28  ;;  %s2367_s22 = scalar_lea.vmem %s2398_s4, %s1656_s19 }
  0x1c   : > { %435 = vst [vmem:[#allocation2 + $0x30] sm:$0xf] %v434_v32  ;;  %v331_v38 = vrot.slane %v1857_v28, 4  ;;  %v401_v39 = vsel %vm1849_vm6, %v322_v26, %v400_v24  ;;  %v367_v40 = vrot.slane %v365_v30, 7  ;;  %v439_v41 = vld [vmem:[#allocation2 + $0x38] sm:$0xf] }
  0x1d   : > { %402 = vst [vmem:[#allocation2 + $0x8] sm:$0xf] %v401_v39  ;;  %v1875_v43 = vrot.slane %v373_v34, 7  ;;  %v376_v44 = vshll.u32 %v315_v25, 16  ;;  %v445_v45 = vld [vmem:[#allocation2 + $0x40] sm:$0xf]  ;;  %v410_v48 = vsel %vm1849_vm6, %v330_v37, %v409_v29 }
  0x1e   : > { %v333_v46 = vshrl.u32 %v310_v35, 16  ;;  %v336_v47 = vshll.u32 %v310_v35, 16  ;;  %v370_v49 = vor.u32 %v368_v33, %v367_v40  ;;  %v341_v50 = vshrl.u32 %v311_v36, 16  ;;  %v415_v52 = vld [vmem:[#allocation2 + $0x18] sm:$0xf] }
  0x1f   : > { %v344_v51 = vshll.u32 %v311_v36, 16  ;;  %v430_v53 = vld [vmem:[#allocation2 + $0x2c] sm:$0x1]  ;;  %411 = vst [vmem:[#allocation2 + $0x10] sm:$0xf] %v410_v48  ;;  %v378_v55 = vor.u32 %v376_v44, %v1875_v43  ;;  %v371_v5 = vrot.slane %v367_v40, 4 }
  0x20   : > { %v406_v54 = vld [vmem:[#allocation2 + $0xc] sm:$0x1]  ;;  %v1880_v56 = vrot.slane %v333_v46, 7  ;;  %v431_v57 = vsel %vm1871_vm7, %v355_v21, %v430_v53  ;;  %v1892_v60 = vld [vmem:[#allocation2] sm:$0xf]  ;;  %v440_v62 = vsel %vm1849_vm6, %v370_v49, %v439_v41  ;;  %v343_v63 = vrot.slane %v341_v50, 7 }
  0x21   : > { %v407_v59 = vsel %vm1871_vm7, %v323_v27, %v406_v54  ;;  %v1894_v61 = vld [vmem:[#allocation2 + $0x4] sm:$0x1]  ;;  %432 = vst [vmem:[#allocation2 + $0x2c] sm:$0x1] %v431_v57  ;;  %v1553_v0 = vrot.slane %v1892_v60, 9  ;;  %v446_v3 = vsel %vm1849_vm6, %v378_v55, %v445_v45  ;;  %vm1274_vm12 = vcmask 1041408  }
  0x22   : > { %408 = vst [vmem:[#allocation2 + $0xc] sm:$0x1] %v407_v59  ;;  %v607_v1 = vrot.slane %v1894_v61, 5  ;;  %v436_v2 = vld [vmem:[#allocation2 + $0x34] sm:$0x1]  ;;  %v338_v4 = vor.u32 %v336_v47, %v1880_v56  ;;  %v346_v9 = vor.u32 %v344_v51, %v343_v63  ;;  %v347_v11 = vrot.slane %v343_v63, 4 }
  0x23   : > { %441 = vst [vmem:[#allocation2 + $0x38] sm:$0xf] %v440_v62  ;;  %v437_v6 = vsel %vm1871_vm7, %v363_v23, %v436_v2  ;;  %v442_v7 = vld [vmem:[#allocation2 + $0x3c] sm:$0x1]  ;;  %v412_v8 = vld [vmem:[#allocation2 + $0x14] sm:$0x1] }
  0x24   : > { %447 = vst [vmem:[#allocation2 + $0x40] sm:$0xf] %v446_v3  ;;  %v421_v10 = vld [vmem:[#allocation2 + $0x20] sm:$0xf]  ;;  %v424_v12 = vld [vmem:[#allocation2 + $0x24] sm:$0x1]  ;;  %v1907_v13 = vsel %vm1886_vm8, %v1553_v0, %v607_v1  ;;  %v416_v17 = vsel %vm1849_vm6, %v338_v4, %v415_v52  ;;  %v443_v18 = vsel %vm1871_vm7, %v371_v5, %v442_v7  ;;  %v413_v20 = vsel %vm1871_vm7, %v331_v38, %v412_v8 }
  0x25   : > { %438 = vst [vmem:[#allocation2 + $0x34] sm:$0x1] %v437_v6  ;;  %v1909_v14 = vld [vmem:[#allocation2 + $0x28] sm:$0xf]  ;;  %v1911_v16 = vld [vmem:[#allocation2 + $0x30] sm:$0xf]  ;;  %v422_v29 = vsel %vm1849_vm6, %v346_v9, %v421_v10  ;;  %v425_v35 = vsel %vm1871_vm7, %v347_v11, %v424_v12 }
  0x26   : > { %v339_v19 = vrot.slane %v1880_v56, 4  ;;  %v728_v21 = vshrl.u32 %v1911_v16, 16  ;;  %v731_v22 = vshll.u32 %v1911_v16, 16  ;;  %v1623_v23 = vcombine.low %v1909_v14, %v1911_v16  ;;  %v1925_v25 = vld [vmem:[#allocation2 + $0x8] sm:$0xf] }
  0x27   : > { %v714_v24 = vshrl.u32 %v1909_v14, 16  ;;  %417 = vst [vmem:[#allocation2 + $0x18] sm:$0xf] %v416_v17  ;;  %444 = vst [vmem:[#allocation2 + $0x3c] sm:$0x1] %v443_v18  ;;  %v717_v26 = vshll.u32 %v1909_v14, 16 }
  0x28   : > { %414 = vst [vmem:[#allocation2 + $0x14] sm:$0x1] %v413_v20  ;;  %v658_v27 = vshrl.u32 %v1925_v25, 16  ;;  %v661_v28 = vshll.u32 %v1925_v25, 16  ;;  %v1932_v30 = vld [vmem:[#allocation2 + $0x28] sm:$0xf]  ;;  %1065 = vrot.lane.b32.xlu1 %v1623_v23, %s1759_s23 }
  0x29   : > { %v1934_v31 = vrot.slane %v728_v21, 4  ;;  %v1936_v32 = vrot.slane %v731_v22, 5  ;;  %v1939_v33 = vrot.slane %v714_v24, 4  ;;  %v1941_v34 = vld [vmem:[#allocation2 + $0x10] sm:$0xf]  ;;  %v1947_v37 = vrot.slane %v717_v26, 5 }
  0x2a   : > { %423 = vst [vmem:[#allocation2 + $0x20] sm:$0xf] %v422_v29  ;;  %v1945_v36 = vld [vmem:[#allocation2 + $0x8] sm:$0xf]  ;;  %v418_v15 = vld [vmem:[#allocation2 + $0x1c] sm:$0x1]  ;;  %v1621_v40 = vcombine.low %v1925_v25, %v1941_v34 }
  0x2b   : > { %v672_v38 = vshrl.u32 %v1941_v34, 16  ;;  %v675_v39 = vshll.u32 %v1941_v34, 16  ;;  %426 = vst [vmem:[#allocation2 + $0x24] sm:$0x1] %v425_v35  ;;  %v1953_v41 = vld [vmem:[#allocation2 + $0x2c] sm:$0x1]  ;;  %v419_v3 = vsel %vm1871_vm7, %v339_v19, %v418_v15  ;;  %v720_v4 = vor.u32 %v1947_v37, %v1939_v33 }
  0x2c   : > { %v1955_v44 = vrot.slane %v658_v27, 4  ;;  %v1957_v45 = vrot.slane %v661_v28, 5  ;;  %v1959_v46 = vld [vmem:[#allocation2 + $0x38] sm:$0xf]  ;;  %v1558_v47 = vrot.slane %v1932_v30, 9  ;;  %v627_v48 = vrot.slane %v1953_v41, 5  ;;  %1061 = vrot.lane.b32.xlu0 %v1621_v40, %s1759_s23 }
  0x2d   : > { %v1963_v49 = vrot.slane %v672_v38, 4  ;;  %v1965_v50 = vrot.slane %v675_v39, 5  ;;  %v1968_v51 = vld [vmem:[#allocation2 + $0x40] sm:$0xf]  ;;  %v742_v52 = vshrl.u32 %v1959_v46, 16  ;;  %v1554_v0 = vrot.slane %v1945_v36, 9 }
  0x2e   : > { %v1624_v56 = vcombine.low %v1959_v46, %v1968_v51  ;;  %v628_v57 = vsel %vm1886_vm8, %v1558_v47, %v627_v48  ;;  %v1978_v59 = vld [vmem:[#allocation2 + $0xc] sm:$0x1]  ;;  %v1980_v62 = vld [vmem:[#allocation2 + $0x30] sm:$0xf]  ;;  %v1982_v63 = vld [vmem:[#allocation2 + $0x18] sm:$0xf]  ;;  %v734_v9 = vor.u32 %v1936_v32, %v1934_v31  ;;  %v664_v10 = vor.u32 %v1957_v45, %v1955_v44 }
  0x2f   : > { %v611_v1 = vrot.slane %v1978_v59, 5  ;;  %v1986_v2 = vld [vmem:[#allocation2 + $0x34] sm:$0x1]  ;;  %v1995_v7 = vld [vmem:[#allocation2 + $0x38] sm:$0xf]  ;;  %v1559_v18 = vrot.slane %v1980_v62, 9  ;;  %v678_v20 = vor.u32 %v1965_v50, %v1963_v49 }
  0x30   : > { %1067 = vrot.lane.b32.xlu1 %v1624_v56, %s1759_s23  ;;  %v1997_v8 = vld [vmem:[#allocation2 + $0x3c] sm:$0x1]  ;;  %420 = vst [vmem:[#allocation2 + $0x1c] sm:$0x1] %v419_v3  ;;  %v631_v19 = vrot.slane %v1986_v2, 5  ;;  %v1560_v35 = vrot.slane %v1995_v7, 9 }
  0x31   : > { %v2003_v11 = vld [vmem:[#allocation2 + $0x20] sm:$0xf]  ;;  %v612_v17 = vsel %vm1886_vm8, %v1554_v0, %v611_v1  ;;  %v2025_v15 = vld [vmem:[#allocation2 + $0x10] sm:$0xf]  ;;  %v460_v38 = vld [vmem:[#allocation2 + $0x14] sm:$0x1] }
  0x32   : > { %v2005_v12 = vld [vmem:[#allocation2 + $0x20] sm:$0xf]  ;;  %v1622_v23 = vcombine.low %v1982_v63, %v2003_v11  ;;  %v2017_v24 = vld [vmem:[#allocation2 + $0x24] sm:$0x1]  ;;  %v1617_v28 = vcombine.low %v1907_v13, %v612_v17  ;;  %v632_v29 = vsel %vm1886_vm8, %v1559_v18, %v631_v19  ;;  %vm471_vm9 = vsmask.f32 3328 }
  0x33   : > { %v1557_v26 = vrot.slane %v2005_v12, 9  ;;  %v623_v27 = vrot.slane %v2017_v24, 5  ;;  %vm472_vm10 = vsmask.f32 7440  ;;  %v635_v39 = vrot.slane %v1997_v8, 5 }
  0x34   : > { %1063 = vrot.lane.b32.xlu0 %v1622_v23, %s1759_s23  ;;  %v2029_v40 = vld [vmem:[#allocation2 + $0x18] sm:$0xf]  ;;  %v1555_v47 = vrot.slane %v2025_v15, 9  ;;  %v615_v48 = vrot.slane %v460_v38, 5  ;;  %v1581_v13 = vrot.slane %v1909_v14, 9  ;;  %v1582_v17 = vrot.slane %v1911_v16, 9  ;;  %vm2076_vm11 = vmor %vm471_vm9, %vm472_vm10 }
  0x35   : > { %v624_v56 = vsel %vm1886_vm8, %v1557_v26, %v623_v27  ;;  %v1556_v0 = vrot.slane %v2029_v40, 9  ;;  %v2036_v1 = vld [vmem:[#allocation2 + $0x2c] sm:$0x1]  ;;  %v2038_v3 = vld [vmem:[#allocation2 + $0x34] sm:$0x1]  ;;  %v636_v23 = vsel %vm1886_vm8, %v1560_v35, %v635_v39  ;;  %v1577_v5 = vrot.slane %v1925_v25, 9 }
  0x36   : > { %v1619_v19 = vcombine.low %v624_v56, %v628_v57  ;;  %v616_v14 = vsel %vm1886_vm8, %v1555_v47, %v615_v48  ;;  %v803_v26 = vrot.slane %v2036_v1, 5  ;;  %v2048_v27 = vld [vmem:[#allocation2 + $0xc] sm:$0x1]  ;;  %v2050_v22 = vld [vmem:[#allocation2 + $0x14] sm:$0x1]  ;;  %v1620_v21 = vcombine.low %v632_v29, %v636_v23 }
  0x37   : > { %v462_v6 = vld [vmem:[#allocation2 + $0x1c] sm:$0x1]  ;;  %v807_v16 = vrot.slane %v2038_v3, 5  ;;  %v787_v57 = vrot.slane %v2048_v27, 5  ;;  %v1578_v47 = vrot.slane %v1941_v34, 9  ;;  %v791_v48 = vrot.slane %v2050_v22, 5 }
  0x38   : > { %1045 = vrot.lane.b32.xlu1 %v1619_v19, %s1760_s24  ;;  %1041 = vrot.lane.b32.xlu0 %v1617_v28, %s1760_s24  ;;  %v619_v35 = vrot.slane %v462_v6, 5  ;;  %v804_v39 = vsel %vm1886_vm8, %v1581_v13, %v803_v26  ;;  %v503_v25 = vshrl.u32 %v2025_v15, 16  ;;  %v506_v23 = vshll.u32 %v2025_v15, 16  ;;  %v448_v32 = vld [vmem:[#allocation2 + $0x44] sm:$0x1] }
  0x39   : > { %v808_v29 = vsel %vm1886_vm8, %v1582_v17, %v807_v16  ;;  %v788_v56 = vsel %vm1886_vm8, %v1577_v5, %v787_v57  ;;  %v792_v13 = vsel %vm1886_vm8, %v1578_v47, %v791_v48  ;;  %v512_v34 = vshll.u32 %v460_v38, 16 }
  0x3a   : > { %v620_v28 = vsel %vm1886_vm8, %v1556_v0, %v619_v35  ;;  %v1631_v19 = vcombine.low %v804_v39, %v808_v29  ;;  %v1629_v18 = vcombine.low %v788_v56, %v792_v13  ;;  %v505_v55 = vrot.slane %v503_v25, 4 }
  0x3b   : > { %v1618_v26 = vcombine.low %v616_v14, %v620_v28  ;;  %v508_v54 = vrot.slane %v506_v23, 5  ;;  %v514_v17 = vrot.slane %v512_v34, 5  ;;  %v517_v5 = vshrl.u32 %v2029_v40, 16 }
  0x3c   : > { %1047 = vrot.lane.b32.xlu1 %v1620_v21, %s1760_s24  ;;  %v520_v16 = vshll.u32 %v2029_v40, 16  ;;  %v526_v57 = vshll.u32 %v462_v6, 16  ;;  %v475_v0 = vshrl.u32 %v1892_v60, 16  ;;  %v478_v35 = vshll.u32 %v1892_v60, 16 }
  0x3d   : > { %1043 = vrot.lane.b32.xlu0 %v1618_v26, %s1760_s24  ;;  %v509_v53 = vor.u32 %v508_v54, %v505_v55  ;;  %v484_v39 = vshll.u32 %v1894_v61, 16  ;;  %v519_v21 = vrot.slane %v517_v5, 4  ;;  %v489_v48 = vshrl.u32 %v1945_v36, 16 }
  0x3e   : > { %v522_v14 = vrot.slane %v520_v16, 5  ;;  %v528_v47 = vrot.slane %v526_v57, 5  ;;  %v477_v29 = vrot.slane %v475_v0, 4  ;;  %v480_v54 = vrot.slane %v478_v35, 5 }
  0x3f   : > { %v510_v6 = vrot.slane %v509_v53, 4  ;;  %v486_v55 = vrot.slane %v484_v39, 5  ;;  %v491_v61 = vrot.slane %v489_v48, 4  ;;  %v492_v25 = vshll.u32 %v1945_v36, 16 }
  0x40   : > { %1105 = vrot.lane.b32.xlu1 %v1631_v19, %s1761_s25  ;;  %v523_v56 = vor.u32 %v522_v14, %v519_v21  ;;  %v498_v23 = vshll.u32 %v1978_v59, 16  ;;  %v481_v13 = vor.u32 %v480_v54, %v477_v29  ;;  %v559_v53 = vshrl.u32 %v1980_v62, 16 }
  0x41   : > { %1101 = vrot.lane.b32.xlu0 %v1629_v18, %s1761_s25  ;;  %v515_v28 = vsel %vm2076_vm11, %v510_v6, %v514_v17  ;;  %v562_v34 = vshll.u32 %v1980_v62, 16  ;;  %v494_v5 = vrot.slane %v492_v25, 5  ;;  %v568_v19 = vshll.u32 %v1986_v2, 16 }
  0x42   : > { %v524_v26 = vrot.slane %v523_v56, 4  ;;  %v500_v16 = vrot.slane %v498_v23, 5  ;;  %v482_v57 = vrot.slane %v481_v13, 4  ;;  %v561_v0 = vrot.slane %v559_v53, 4 }
  0x43   : > { %v564_v35 = vrot.slane %v562_v34, 5  ;;  %v573_v59 = vshrl.u32 %v1995_v7, 16  ;;  %v495_v39 = vor.u32 %v494_v5, %v491_v61  ;;  %v570_v17 = vrot.slane %v568_v19, 5 }
  0x44   : > { %v529_v18 = vsel %vm2076_vm11, %v524_v26, %v528_v47  ;;  %v576_v21 = vshll.u32 %v1995_v7, 16  ;;  %v487_v48 = vsel %vm2076_vm11, %v482_v57, %v486_v55  ;;  %v582_v56 = vshll.u32 %v1997_v8, 16 }
  0x45   : > { %v1614_v14 = vcombine.low %v515_v28, %v529_v18  ;;  %v565_v6 = vor.u32 %v564_v35, %v561_v0  ;;  %v575_v29 = vrot.slane %v573_v59, 4  ;;  %v496_v54 = vrot.slane %v495_v39, 4 }
  0x46   : > { %v578_v2 = vrot.slane %v576_v21, 5  ;;  %v531_v25 = vshrl.u32 %v2005_v12, 16  ;;  %v534_v61 = vshll.u32 %v2005_v12, 16  ;;  %v540_v23 = vshll.u32 %v2017_v24, 16 }
  0x47   : > { %1023 = vrot.lane.b32.xlu1 %v1614_v14, %s1762_s26  ;;  %v566_v47 = vrot.slane %v565_v6, 4  ;;  %v545_v28 = vshrl.u32 %v1932_v30, 16  ;;  %v501_v55 = vsel %vm2076_vm11, %v496_v54, %v500_v16  ;;  %v584_v53 = vrot.slane %v582_v56, 5 }
  0x48   : > { %v579_v13 = vor.u32 %v578_v2, %v575_v29  ;;  %v533_v34 = vrot.slane %v531_v25, 4  ;;  %v1613_v26 = vcombine.low %v487_v48, %v501_v55  ;;  %v536_v5 = vrot.slane %v534_v61, 5 }
  0x49   : > { %v571_v8 = vsel %vm2076_vm11, %v566_v47, %v570_v17  ;;  %v542_v19 = vrot.slane %v540_v23, 5  ;;  %v547_v0 = vrot.slane %v545_v28, 4  ;;  %v548_v35 = vshll.u32 %v1932_v30, 16 }
  0x4a   : > { %v580_v57 = vrot.slane %v579_v13, 4  ;;  %v554_v24 = vshll.u32 %v1953_v41, 16  ;;  %1021 = vrot.lane.b32.xlu0 %v1613_v26, %s1762_s26  ;;  %v537_v59 = vor.u32 %v536_v5, %v533_v34  ;;  %v721_v16 = vrot.slane %v720_v4, 4  ;;  %v1568_v26 = vld [vmem:[#allocation2 + $0x24] sm:$0x1] }
  0x4b   : > { %v723_v18 = vshll.u32 %v2036_v1, 16  ;;  %v735_v39 = vrot.slane %v734_v9, 4  ;;  %v550_v21 = vrot.slane %v548_v35, 5  ;;  %v737_v41 = vshll.u32 %v2038_v3, 16 }
  0x4c   : > { %v585_v17 = vsel %vm2076_vm11, %v580_v57, %v584_v53  ;;  %v556_v14 = vrot.slane %v554_v24, 5  ;;  %v538_v6 = vrot.slane %v537_v59, 4  ;;  %v665_v33 = vrot.slane %v664_v10, 4  ;;  %v1574_v10 = vld [vmem:[#allocation2 + $0x3c] sm:$0x1] }
  0x4d   : > { %v1616_v48 = vcombine.low %v571_v8, %v585_v17  ;;  %v725_v29 = vrot.slane %v723_v18, 5  ;;  %v551_v37 = vor.u32 %v550_v21, %v547_v0  ;;  %v739_v4 = vrot.slane %v737_v41, 5 }
  0x4e   : > { %v667_v1 = vshll.u32 %v2048_v27, 16  ;;  %v679_v31 = vrot.slane %v678_v20, 4  ;;  %v543_v9 = vsel %vm2076_vm11, %v538_v6, %v542_v19  ;;  %v681_v44 = vshll.u32 %v2050_v22, 16 }
  0x4f   : > { %1027 = vrot.lane.b32.xlu1 %v1616_v48, %s1762_s26  ;;  %v726_v3 = vsel %vm2076_vm11, %v721_v16, %v725_v29  ;;  %v379_v45 = vrot.slane %v1875_v43, 4  ;;  %v552_v54 = vrot.slane %v551_v37, 4  ;;  %v740_v27 = vsel %vm2076_vm11, %v735_v39, %v739_v4  ;;  %v2164_v4 = vld [vmem:[#allocation2 + $0x30] sm:$0xf] }
  0x50   : > { %v669_v49 = vrot.slane %v667_v1, 5  ;;  %v744_v50 = vrot.slane %v742_v52, 4  ;;  %v1627_v20 = vcombine.low %v726_v3, %v740_v27  ;;  %v683_v2 = vrot.slane %v681_v44, 5  ;;  %v1566_v52 = vld [vmem:[#allocation2 + $0x1c] sm:$0x1] }
  0x51   : > { %v449_v56 = vsel %vm1871_vm7, %v379_v45, %v448_v32  ;;  %v2407_v25 = vshll.u32 %v1959_v46, 16  ;;  %v557_v43 = vsel %vm2076_vm11, %v552_v54, %v556_v14  ;;  %v751_v61 = vshll.u32 %v1574_v10, 16  ;;  %v2167_v3 = vld [vmem:[#allocation2 + $0x38] sm:$0xf] }
  0x52   : > { %v670_v22 = vsel %vm2076_vm11, %v665_v33, %v669_v49  ;;  %450 = vst [vmem:[#allocation2 + $0x44] sm:$0x1] %v449_v56  ;;  %v2408_v23 = vshrl.u32 %v1968_v51, 16  ;;  %v1615_v55 = vcombine.low %v543_v9, %v557_v43  ;;  %v684_v42 = vsel %vm2076_vm11, %v679_v31, %v683_v2 }
  0x53   : > { %v747_v47 = vrot.slane %v2407_v25, 5  ;;  %1085 = vrot.lane.b32.xlu1 %v1627_v20, %s1763_s27  ;;  %v2409_v53 = vshll.u32 %v1968_v51, 16  ;;  %v1625_v8 = vcombine.low %v670_v22, %v684_v42  ;;  %v753_v5 = vrot.slane %v751_v61, 5  ;;  %v2187_v61 = vld [vmem:[#allocation2 + $0x18] sm:$0xf] }
  0x54   : > { %v758_v28 = vrot.slane %v2408_v23, 4  ;;  %v2410_v19 = vshrl.u32 %v1982_v63, 16  ;;  %v2411_v0 = vshll.u32 %v1982_v63, 16  ;;  %1025 = vrot.lane.b32.xlu0 %v1615_v55, %s1762_s26  ;;  %v695_v16 = vshll.u32 %v1566_v52, 16  ;;  %v2192_v42 = vld [vmem:[#allocation2 + $0x40] sm:$0xf] }
  0x55   : > { %v748_v13 = vor.u32 %v747_v47, %v744_v50  ;;  %v761_v34 = vrot.slane %v2409_v53, 5  ;;  %v2412_v18 = vshrl.u32 %v2003_v11, 16  ;;  %v2413_v21 = vshll.u32 %v2003_v11, 16  ;;  %v2180_v47 = vld [vmem:[#allocation2 + $0x10] sm:$0xf] }
  0x56   : > { %v688_v57 = vrot.slane %v2410_v19, 4  ;;  %v691_v35 = vrot.slane %v2411_v0, 5  ;;  %v709_v41 = vshll.u32 %v1568_v26, 16  ;;  %v1583_v48 = vrot.slane %v1959_v46, 9  ;;  %v2203_v19 = vld [vmem:[#allocation2 + $0x28] sm:$0xf] }
  0x57   : > { %v749_v24 = vrot.slane %v748_v13, 4  ;;  %v762_v59 = vor.u32 %v761_v34, %v758_v28  ;;  %v702_v39 = vrot.slane %v2412_v18, 4  ;;  %v705_v14 = vrot.slane %v2413_v21, 5  ;;  %v2194_v13 = vld [vmem:[#allocation2 + $0x48] sm:$0xf] }
  0x58   : > { %v692_v17 = vor.u32 %v691_v35, %v688_v57  ;;  %v697_v33 = vrot.slane %v695_v16, 5  ;;  %v811_v37 = vrot.slane %v1574_v10, 5  ;;  %v711_v32 = vrot.slane %v709_v41, 5  ;;  %1081 = vrot.lane.b32.xlu0 %v1625_v8, %s1763_s27  ;;  %v2216_v21 = vld [vmem:[#allocation2 + $0x3c] sm:$0x1] }
  0x59   : > { %v754_v6 = vsel %vm2076_vm11, %v749_v24, %v753_v5  ;;  %v763_v29 = vrot.slane %v762_v59, 4  ;;  %v706_v31 = vor.u32 %v705_v14, %v702_v39  ;;  %v1584_v9 = vrot.slane %v1968_v51, 9  ;;  %v1576_v44 = vld [vmem:[#allocation2 + $0x44] sm:$0x1]  ;;  %v2201_v5 = vld [vmem:[#allocation2 + $0x20] sm:$0xf] }
  0x5a   : > { %v693_v1 = vrot.slane %v692_v17, 4  ;;  %v812_v46 = vsel %vm1886_vm8, %v1583_v48, %v811_v37  ;;  %v1579_v45 = vrot.slane %v1982_v63, 9  ;;  %v795_v54 = vrot.slane %v1566_v52, 5  ;;  %v2209_v59 = vld [vmem:[#allocation2 + $0x34] sm:$0x1] }
  0x5b   : > { %v1580_v10 = vrot.slane %v2003_v11, 9  ;;  %v765_v27 = vshll.u32 %v1576_v44, 16  ;;  %v707_v50 = vrot.slane %v706_v31, 4  ;;  %v815_v20 = vrot.slane %v1576_v44, 5 }
  0x5c   : > { %v698_v49 = vsel %vm2076_vm11, %v693_v1, %v697_v33  ;;  %v796_v51 = vsel %vm1886_vm8, %v1579_v45, %v795_v54  ;;  %v799_v2 = vrot.slane %v1568_v26, 5  ;;  %v894_v56 = vshrl.u32 %v2164_v4, 16  ;;  %v2233_v54 = vld [vmem:[#allocation2 + $0x1c] sm:$0x1] }
  0x5d   : > { %v897_v25 = vshll.u32 %v2164_v4, 16  ;;  %v767_v63 = vrot.slane %v765_v27, 5  ;;  %v712_v11 = vsel %vm2076_vm11, %v707_v50, %v711_v32  ;;  %v816_v43 = vsel %vm1886_vm8, %v1584_v9, %v815_v20 }
  0x5e   : > { %v908_v22 = vshrl.u32 %v2167_v3, 16  ;;  %v1626_v23 = vcombine.low %v698_v49, %v712_v11  ;;  %v1632_v28 = vcombine.low %v812_v46, %v816_v43  ;;  %v800_v52 = vsel %vm1886_vm8, %v1580_v10, %v799_v2 }
  0x5f   : > { %v911_v55 = vshll.u32 %v2167_v3, 16  ;;  %v768_v53 = vsel %vm2076_vm11, %v763_v29, %v767_v63  ;;  %v1630_v34 = vcombine.low %v796_v51, %v800_v52  ;;  %v1635_v26 = vcombine.low %v2164_v4, %v2167_v3  ;;  %v2224_v29 = vld [vmem:[#allocation2 + $0x14] sm:$0x1] }
  0x60   : > { %v838_v8 = vshrl.u32 %v2180_v47, 16  ;;  %v1628_v57 = vcombine.low %v754_v6, %v768_v53  ;;  %1083 = vrot.lane.b32.xlu0 %v1626_v23, %s1763_s27  ;;  %v841_v0 = vshll.u32 %v2180_v47, 16  ;;  %v852_v35 = vshrl.u32 %v2187_v61, 16 }
  0x61   : > { %v855_v24 = vshll.u32 %v2187_v61, 16  ;;  %v1633_v16 = vcombine.low %v2180_v47, %v2187_v61  ;;  %v922_v18 = vshrl.u32 %v2192_v42, 16  ;;  %v925_v39 = vshll.u32 %v2192_v42, 16 }
  0x62   : > { %v936_v17 = vshrl.u32 %v2194_v13, 16  ;;  %1087 = vrot.lane.b32.xlu1 %v1628_v57, %s1763_s27  ;;  %v939_v14 = vshll.u32 %v2194_v13, 16  ;;  %v1636_v41 = vcombine.low %v2192_v42, %v2194_v13  ;;  %v866_v48 = vshrl.u32 %v2201_v5, 16 }
  0x63   : > { %v869_v6 = vshll.u32 %v2201_v5, 16  ;;  %v880_v33 = vshrl.u32 %v2203_v19, 16  ;;  %v883_v37 = vshll.u32 %v2203_v19, 16  ;;  %v1634_v1 = vcombine.low %v2201_v5, %v2203_v19 }
  0x64   : > { %v896_v31 = vrot.slane %v894_v56, 4  ;;  %1103 = vrot.lane.b32.xlu0 %v1630_v34, %s1761_s25  ;;  %v899_v32 = vrot.slane %v897_v25, 5  ;;  %v903_v9 = vshll.u32 %v2209_v59, 16  ;;  %v910_v44 = vrot.slane %v908_v22, 4  ;;  %v2237_v56 = vld [vmem:[#allocation2 + $0x44] sm:$0x1] }
  0x65   : > { %v913_v46 = vrot.slane %v911_v55, 5  ;;  %v917_v45 = vshll.u32 %v2216_v21, 16  ;;  %v840_v10 = vrot.slane %v838_v8, 4  ;;  %v843_v27 = vrot.slane %v841_v0, 5  ;;  %v2241_v34 = vld [vmem:[#allocation2 + $0x4c] sm:$0x1] }
  0x66   : > { %v847_v49 = vshll.u32 %v2224_v29, 16  ;;  %1107 = vrot.lane.b32.xlu1 %v1632_v28, %s1761_s25  ;;  %v900_v50 = vor.u32 %v899_v32, %v896_v31  ;;  %v905_v20 = vrot.slane %v903_v9, 5  ;;  %v854_v2 = vrot.slane %v852_v35, 4  ;;  %v2249_v31 = vld [vmem:[#allocation2 + $0x24] sm:$0x1] }
  0x67   : > { %v914_v51 = vor.u32 %v913_v46, %v910_v44  ;;  %v919_v25 = vrot.slane %v917_v45, 5  ;;  %v844_v63 = vor.u32 %v843_v27, %v840_v10  ;;  %v857_v43 = vrot.slane %v855_v24, 5 }
  0x68   : > { %v849_v11 = vrot.slane %v847_v49, 5  ;;  %1121 = vrot.lane.b32.xlu0 %v1633_v16, %s1764_s28  ;;  %v901_v22 = vrot.slane %v900_v50, 4  ;;  %v861_v52 = vshll.u32 %v2233_v54, 16  ;;  %v924_v55 = vrot.slane %v922_v18, 4 }
  0x69   : > { %v915_v23 = vrot.slane %v914_v51, 4  ;;  %v845_v53 = vrot.slane %v844_v63, 4  ;;  %v858_v28 = vor.u32 %v857_v43, %v854_v2  ;;  %v927_v8 = vrot.slane %v925_v39, 5 }
  0x6a   : > { %v931_v57 = vshll.u32 %v2237_v56, 16  ;;  %1125 = vrot.lane.b32.xlu1 %v1635_v26, %s1764_s28  ;;  %v906_v0 = vsel %vm2076_vm11, %v901_v22, %v905_v20  ;;  %v863_v24 = vrot.slane %v861_v52, 5  ;;  %v938_v16 = vrot.slane %v936_v17, 4  ;;  %v1592_v17 = vld [vmem:[#allocation2 + $0x2c] sm:$0x1] }
  0x6b   : > { %v920_v35 = vsel %vm2076_vm11, %v915_v23, %v919_v25  ;;  %v850_v32 = vsel %vm2076_vm11, %v845_v53, %v849_v11  ;;  %v859_v9 = vrot.slane %v858_v28, 4  ;;  %v928_v39 = vor.u32 %v927_v8, %v924_v55 }
  0x6c   : > { %v1639_v18 = vcombine.low %v906_v0, %v920_v35  ;;  %1123 = vrot.lane.b32.xlu0 %v1634_v1, %s1764_s28  ;;  %v933_v44 = vrot.slane %v931_v57, 5  ;;  %v941_v26 = vrot.slane %v939_v14, 5  ;;  %v945_v46 = vshll.u32 %v2241_v34, 16 }
  0x6d   : > { %v868_v45 = vrot.slane %v866_v48, 4  ;;  %v864_v10 = vsel %vm2076_vm11, %v859_v9, %v863_v24  ;;  %v929_v27 = vrot.slane %v928_v39, 4  ;;  %v871_v49 = vrot.slane %v869_v6, 5 }
  0x6e   : > { %v875_v50 = vshll.u32 %v2249_v31, 16  ;;  %1127 = vrot.lane.b32.xlu1 %v1636_v41, %s1764_s28  ;;  %v1637_v20 = vcombine.low %v850_v32, %v864_v10  ;;  %v942_v51 = vor.u32 %v941_v26, %v938_v16  ;;  %v947_v2 = vrot.slane %v945_v46, 5  ;;  %v1732_v46 = vld [vmem:[%s2395_s1 + $0x8] sm:$0xff]   ;;  %v1733_v10 = vld [vmem:[%s2395_s1] sm:$0xff]  }
  0x6f   : > { %v882_v25 = vrot.slane %v880_v33, 4  ;;  %v934_v14 = vsel %vm2076_vm11, %v929_v27, %v933_v44  ;;  %v872_v1 = vor.u32 %v871_v49, %v868_v45  ;;  %v885_v48 = vrot.slane %v883_v37, 5 }
  0x70   : > { %v877_v63 = vrot.slane %v875_v50, 5  ;;  %1141 = vrot.lane.b32.xlu0 %v1637_v20, %s1765_s29  ;;  %v943_v11 = vrot.slane %v942_v51, 4  ;;  %v889_v43 = vshll.u32 %v1592_v17, 16  ;;  %v1605_v6 = vrot.slane %v2164_v4, 9 }
  0x71   : > { %v983_v22 = vrot.slane %v2209_v59, 5  ;;  %v873_v41 = vrot.slane %v872_v1, 4  ;;  %v886_v23 = vor.u32 %v885_v48, %v882_v25  ;;  %v1606_v52 = vrot.slane %v2167_v3, 9 }
  0x72   : > { %v987_v33 = vrot.slane %v2216_v21, 5  ;;  %1145 = vrot.lane.b32.xlu1 %v1639_v18, %s1765_s29  ;;  %v948_v37 = vsel %vm2076_vm11, %v943_v11, %v947_v2  ;;  %v891_v55 = vrot.slane %v889_v43, 5  ;;  %v1601_v28 = vrot.slane %v2180_v47, 9 }
  0x73   : > { %v984_v53 = vsel %vm1886_vm8, %v1605_v6, %v983_v22  ;;  %v1640_v4 = vcombine.low %v934_v14, %v948_v37  ;;  %v878_v59 = vsel %vm2076_vm11, %v873_v41, %v877_v63  ;;  %v887_v8 = vrot.slane %v886_v23, 4 }
  0x74   : > { %v988_v3 = vsel %vm1886_vm8, %v1606_v52, %v987_v33  ;;  %v967_v57 = vrot.slane %v2224_v29, 5  ;;  %v1602_v0 = vrot.slane %v2187_v61, 9  ;;  %v971_v35 = vrot.slane %v2233_v54, 5 }
  0x75   : > { %v1643_v21 = vcombine.low %v984_v53, %v988_v3  ;;  %v892_v24 = vsel %vm2076_vm11, %v887_v8, %v891_v55  ;;  %v1607_v47 = vrot.slane %v2192_v42, 9  ;;  %v991_v16 = vrot.slane %v2237_v56, 5 }
  0x76   : > { %v1608_v18 = vrot.slane %v2194_v13, 9  ;;  %1147 = vrot.lane.b32.xlu1 %v1640_v4, %s1765_s29  ;;  %v1638_v32 = vcombine.low %v878_v59, %v892_v24  ;;  %v968_v9 = vsel %vm1886_vm8, %v1601_v28, %v967_v57  ;;  %v972_v61 = vsel %vm1886_vm8, %v1602_v0, %v971_v35 }
  0x77   : > { %v995_v29 = vrot.slane %v2241_v34, 5  ;;  %v992_v38 = vsel %vm1886_vm8, %v1607_v47, %v991_v16  ;;  %v1603_v42 = vrot.slane %v2201_v5, 9  ;;  %v975_v54 = vrot.slane %v2249_v31, 5  ;;  %v1731_v34 = vld [vmem:[%s2395_s1 + $0x10] ss:$0 sps:$4 sm:$0x33]  }
  0x78   : > { %1143 = vrot.lane.b32.xlu0 %v1638_v32, %s1765_s29  ;;  %v1641_v13 = vcombine.low %v968_v9, %v972_v61  ;;  %v1604_v39 = vrot.slane %v2203_v19, 9  ;;  %v979_v44 = vrot.slane %v1592_v17, 5  ;;  %1685 = vmatprep.subr.msk.bf16.mxu0 %vm1274_vm12, %v1731_v34  ;;  %v1276_v45 = vsel %vm1274_vm12, %v1731_v34, 0 }
  0x79   : > { %v996_v56 = vsel %vm1886_vm8, %v1608_v18, %v995_v29  ;;  %v976_v26 = vsel %vm1886_vm8, %v1603_v42, %v975_v54  ;;  %1686 = vmatprep.subr.msk.bf16.mxu1 %vm1274_vm12, %v1731_v34  ;;  %1666 = vmatpush3.bf16.msra.mxu0 %v1276_v45  ;;  %v1611_v33 = vcombine.low %v2005_v12, %v1932_v30  ;;  %vm1169_vm13 = vcmask 31744  }
  0x7a   : > { %1165 = vrot.lane.b32.xlu1 %v1643_v21, %s1766_s6  ;;  %v1644_v5 = vcombine.low %v992_v38, %v996_v56  ;;  %v980_v31 = vsel %vm1886_vm8, %v1604_v39, %v979_v44  ;;  %1682 = vmatpush3.bf16.msra.mxu1 %v1276_v45  ;;  %v1609_v53 = vcombine.low %v1892_v60, %v1945_v36  ;;  %vm1182_vm14 = vcmask 64512  }
  0x7b   : > { %v1642_v19 = vcombine.low %v976_v26, %v980_v31  ;;  %1667 = vmatprep.subr.bf16.mxu0 %v1732_v46  ;;  %1680 = vmatprep.subr.bf16.mxu1 %v1732_v46  ;;  %v1612_v21 = vcombine.low %v1980_v62, %v1995_v7  ;;  %vm1191_vm15 = vcmask 97280   ;;  %vm1200_vm0 = vcmask 130048  }
  0x7c   : > { %1161 = vrot.lane.b32.xlu0 %v1641_v13, %s1766_s6  ;;  %vm1209_vm1 = vcmask 162816   ;;  %v2414_v35 = vcombine.low %v2025_v15, %v2029_v40  ;;  %vm1218_vm2 = vcmask 195584   ;;  %vm1227_vm3 = vcmask 228352  }
  0x7d   : > { %1668 = vmatpush3.bf16.msra.mxu0 %v1732_v46  ;;  %vm1236_vm4 = vcmask 261120   ;;  %vm1265_vm5 = vcmask 293888   ;;  %vm1389_vm6 = vcmask 60416  }
  0x7e   : > { %1167 = vrot.lane.b32.xlu1 %v1644_v5, %s1766_s6  ;;  %1683 = vmatpush3.bf16.msra.mxu1 %v1732_v46 }
  0x7f   : > { %1669 = vmatprep.subr.bf16.mxu0 %v1733_v10  ;;  %1681 = vmatprep.subr.bf16.mxu1 %v1733_v10 }
  0x80   : > { %1163 = vrot.lane.b32.xlu0 %v1642_v19, %s1766_s6 }
  0x81   : > { %1670 = vmatpush3.bf16.msra.mxu0 %v1733_v10 }
  0x82   : > { %1684 = vmatpush3.bf16.msra.mxu1 %v1733_v10 }
  0x9a   : > { %v1066_v58 = vpop.permute.xlu1 %1065 }
  0x9e   : > { %v1062_v27 = vpop.permute.xlu0 %1061 }
  0xa2   : > { %v1068_v17 = vpop.permute.xlu1 %1067 }
  0xa6   : > { %v1064_v49 = vpop.permute.xlu0 %1063 }
  0xaa   : > { %v1046_v50 = vpop.permute.xlu1 %1045  ;;  %v1042_v20 = vpop.permute.xlu0 %1041 }
  0xae   : > { %v1048_v51 = vpop.permute.xlu1 %1047 }
  0xaf   : > { %v1044_v2 = vpop.permute.xlu0 %1043 }
  0xb2   : > { %v1106_v25 = vpop.permute.xlu1 %1105 }
  0xb3   : > { %v1102_v14 = vpop.permute.xlu0 %1101 }
  0xb9   : > { %v1024_v1 = vpop.permute.xlu1 %1023 }
  0xba   : > { %v1175_v24 = vsel %vm1169_vm13, %v2414_v35, %v1024_v1 }
  0xbb   : > { %v1186_v9 = vsel %vm1182_vm14, %v1175_v24, %v1044_v2 }
  0xbc   : > { %v1022_v63 = vpop.permute.xlu0 %1021  ;;  %v1195_v56 = vsel %vm1191_vm15, %v1186_v9, %v1064_v49 }
  0xbd   : > { %v1172_v3 = vsel %vm1169_vm13, %v1609_v53, %v1022_v63 }
  0xbe   : > { %v1184_v60 = vsel %vm1182_vm14, %v1172_v3, %v1042_v20  ;;  %v1653_v20 = vld [vmem:[%s2397_s3] ss:$0 sm:$0xff] }
  0xbf   : > { %v1193_v62 = vsel %vm1191_vm15, %v1184_v60, %v1062_v27 }
  0xc1   : > { %v1028_v48 = vpop.permute.xlu1 %1027 }
  0xc2   : > { %v1181_v36 = vsel %vm1169_vm13, %v1612_v21, %v1028_v48 }
  0xc3   : > { %v1190_v47 = vsel %vm1182_vm14, %v1181_v36, %v1048_v51 }
  0xc4   : > { %v1199_v15 = vsel %vm1191_vm15, %v1190_v47, %v1068_v17 }
  0xc5   : > { %v1086_v6 = vpop.permute.xlu1 %1085 }
  0xc6   : > { %v1026_v11 = vpop.permute.xlu0 %1025 }
  0xc7   : > { %v1178_v28 = vsel %vm1169_vm13, %v1611_v33, %v1026_v11 }
  0xc8   : > { %v1188_v8 = vsel %vm1182_vm14, %v1178_v28, %v1046_v50  ;;  %v1652_v50 = vld [vmem:[%s2396_s2] ss:$0 sm:$0xff] }
  0xc9   : > { %v1197_v30 = vsel %vm1191_vm15, %v1188_v8, %v1066_v58 }
  0xca   : > { %v1082_v43 = vpop.permute.xlu0 %1081  ;;  %v1206_v0 = vsel %vm1200_vm0, %v1197_v30, %v1086_v6 }
  0xcb   : > { %v1202_v16 = vsel %vm1200_vm0, %v1193_v62, %v1082_v43  ;;  %v1215_v18 = vsel %vm1209_vm1, %v1206_v0, %v1106_v25 }
  0xcc   : > { %v1211_v40 = vsel %vm1209_vm1, %v1202_v16, %v1102_v14 }
  0xd2   : > { %v1084_v22 = vpop.permute.xlu0 %1083 }
  0xd3   : > { %v1204_v34 = vsel %vm1200_vm0, %v1195_v56, %v1084_v22 }
  0xd4   : > { %v1088_v41 = vpop.permute.xlu1 %1087 }
  0xd5   : > { %v1208_v42 = vsel %vm1200_vm0, %v1199_v15, %v1088_v41 }
  0xd6   : > { %v1104_v23 = vpop.permute.xlu0 %1103 }
  0xd7   : > { %v1213_v46 = vsel %vm1209_vm1, %v1204_v34, %v1104_v23 }
  0xd8   : > { %v1108_v52 = vpop.permute.xlu1 %1107 }
  0xd9   : > { %v1217_v39 = vsel %vm1209_vm1, %v1208_v42, %v1108_v52 }
  0xda   : > { %v1122_v37 = vpop.permute.xlu0 %1121 }
  0xdb   : > { %v1220_v54 = vsel %vm1218_vm2, %v1211_v40, %v1122_v37 }
  0xdc   : > { %v1126_v55 = vpop.permute.xlu1 %1125 }
  0xdd   : > { %v1224_v61 = vsel %vm1218_vm2, %v1215_v18, %v1126_v55 }
  0xde   : > { %v1124_v4 = vpop.permute.xlu0 %1123 }
  0xdf   : > { %v1222_v10 = vsel %vm1218_vm2, %v1213_v46, %v1124_v4 }
  0xe0   : > { %v1128_v59 = vpop.permute.xlu1 %1127 }
  0xe1   : > { %v1226_v5 = vsel %vm1218_vm2, %v1217_v39, %v1128_v59 }
  0xe2   : > { %v1142_v57 = vpop.permute.xlu0 %1141 }
  0xe3   : > { %v1229_v44 = vsel %vm1227_vm3, %v1220_v54, %v1142_v57 }
  0xe4   : > { %v1146_v12 = vpop.permute.xlu1 %1145 }
  0xe5   : > { %v1233_v29 = vsel %vm1227_vm3, %v1224_v61, %v1146_v12 }
  0xe8   : > { %v1148_v7 = vpop.permute.xlu1 %1147 }
  0xe9   : > { %v1235_v19 = vsel %vm1227_vm3, %v1226_v5, %v1148_v7 }
  0xea   : > { %v1144_v32 = vpop.permute.xlu0 %1143 }
  0xeb   : > { %v1231_v27 = vsel %vm1227_vm3, %v1222_v10, %v1144_v32 }
  0xec   : > { %v1166_v38 = vpop.permute.xlu1 %1165 }
  0xed   : > { %v1242_v13 = vsel %vm1236_vm4, %v1233_v29, %v1166_v38 }
  0xee   : > { %v1162_v26 = vpop.permute.xlu0 %1161  ;;  %1675 = vmatprep.mubr.msk.bf16.mxu1 %vm1265_vm5, %v1242_v13 }
  0xef   : > { %v1238_v31 = vsel %vm1236_vm4, %v1229_v44, %v1162_v26 }
  0xf0   : > { %1671 = vmatprep.mubr.msk.bf16.mxu0 %vm1265_vm5, %v1238_v31  ;;  %v1168_v45 = vpop.permute.xlu1 %1167 }
  0xf1   : > { %v1244_v58 = vsel %vm1236_vm4, %v1235_v19, %v1168_v45 }
  0xf2   : > { %v1164_v17 = vpop.permute.xlu0 %1163  ;;  %1676 = vmatmul.mubr.msk.bf16.vlgmr.msra.gmra.mxu1 %vm1265_vm5, %v1244_v58 }
  0xf3   : > { %v1240_v49 = vsel %vm1236_vm4, %v1231_v27, %v1164_v17 }
  0xf4   : > { %1672 = vmatmul.mubr.msk.bf16.vlgmr.msra.gmra.mxu0 %vm1265_vm5, %v1240_v49 }
 0x1b2   : > { %v1677_v51 = vpop.f32.mrf.mxu1 }
 0x1b3   : > { %v1356_v2 = vmul.f32 %v1677_v51, %v1652_v50 }
 0x1b4   : > { %v1673_v25 = vpop.f32.mrf.mxu0  ;;  %v1328_v14 = vpop.f32.mrf.mxu1 }
 0x1b5   : > { %v1352_v1 = vmul.f32 %v1673_v25, %v1652_v50  ;;  %v1371_v63 = vadd.f32 %v1653_v20, %v1356_v2  ;;  %v1354_v48 = vmul.f32 %v1652_v50, %v1328_v14 }
 0x1b6   : > { %v1312_v11 = vpop.f32.mrf.mxu0  ;;  %v1678_v43 = vpop.f32.mrf.mxu1 }
 0x1b7   : > { %v1367_v6 = vadd.f32 %v1653_v20, %v1352_v1  ;;  %v1379_v22 = vmax.f32 %v1371_v63, 0.0  ;;  %v1350_v41 = vmul.f32 %v1652_v50, %v1312_v11  ;;  %v1369_v23 = vadd.f32 %v1653_v20, %v1354_v48 }
 0x1b8   : > { %v1674_v52 = vpop.f32.mrf.mxu0  ;;  %v1357_v33 = vmul.f32 %v1678_v43, %v1652_v50  ;;  %v1331_v37 = vpop.f32.mrf.mxu1 }
 0x1b9   : > { %v1375_v55 = vmax.f32 %v1367_v6, 0.0  ;;  %v1387_v53 = vpack.c.bf16 %v1379_v22, %v1379_v22  ;;  %v1365_v28 = vadd.f32 %v1653_v20, %v1350_v41  ;;  %v1377_v4 = vmax.f32 %v1369_v23, 0.0 }
 0x1ba   : > { %v1353_v59 = vmul.f32 %v1674_v52, %v1652_v50  ;;  %v1372_v8 = vadd.f32 %v1653_v20, %v1357_v33  ;;  %v1315_v3 = vpop.f32.mrf.mxu0  ;;  %v1355_v21 = vmul.f32 %v1652_v50, %v1331_v37 }
 0x1bb   : > { %v1383_v30 = vpack.c.bf16 %v1375_v55, %v1375_v55  ;;  %1396 = vst.msk [vmem:[%s2367_s22 + $0x18] sm:$0xf] %vm1389_vm6, %v1387_v53  ;;  %v1373_v12 = vmax.f32 %v1365_v28, 0.0  ;;  %v1385_v57 = vpack.c.bf16 %v1377_v4, %v1377_v4  ;;  %v1351_v60 = vmul.f32 %v1652_v50, %v1315_v3 }
 0x1bc   : > { %v1368_v36 = vadd.f32 %v1653_v20, %v1353_v59  ;;  %v1380_v0 = vmax.f32 %v1372_v8, 0.0  ;;  %v1370_v35 = vadd.f32 %v1653_v20, %v1355_v21 }
 0x1bd   : > { %1392 = vst.msk [vmem:[%s2367_s22 + $0x8] sm:$0xf] %vm1389_vm6, %v1383_v30  ;;  %v1381_v24 = vpack.c.bf16 %v1373_v12, %v1373_v12  ;;  %1394 = vst.msk [vmem:[%s2367_s22 + $0x10] sm:$0xf] %vm1389_vm6, %v1385_v57  ;;  %v1366_v62 = vadd.f32 %v1653_v20, %v1351_v60 }
 0x1be   : > { %v1376_v7 = vmax.f32 %v1368_v36, 0.0  ;;  %v1388_v47 = vpack.c.bf16 %v1380_v0, %v1380_v0  ;;  %v1378_v16 = vmax.f32 %v1370_v35, 0.0 }
 0x1bf   : > { %1390 = vst.msk [vmem:[%s2367_s22] sm:$0xf] %vm1389_vm6, %v1381_v24  ;;  %v1374_v18 = vmax.f32 %v1366_v62, 0.0 }
 0x1c0   : > { %v1384_v32 = vpack.c.bf16 %v1376_v7, %v1376_v7  ;;  %1397 = vst.msk [vmem:[%s2367_s22 + $0x1c] sm:$0xf] %vm1389_vm6, %v1388_v47  ;;  %v1386_v9 = vpack.c.bf16 %v1378_v16, %v1378_v16 }
 0x1c1   : > { %v1382_v61 = vpack.c.bf16 %v1374_v18, %v1374_v18 }
 0x1c2   : > { %1393 = vst.msk [vmem:[%s2367_s22 + $0xc] sm:$0xf] %vm1389_vm6, %v1384_v32  ;;  %1395 = vst.msk [vmem:[%s2367_s22 + $0x14] sm:$0xf] %vm1389_vm6, %v1386_v9 }
 0x1c3   : > { %1391 = vst.msk [vmem:[%s2367_s22 + $0x4] sm:$0xf] %vm1389_vm6, %v1382_v61 }
 0x1c4 PF: > { %s14_s17 = sadd.s32 1, %s1756_s17   ;;  %s2415_s15 = smov %s1752_s16 }
 0x1c5   : > { %p11_p5 = scmp.ge.s32.totalorder %s14_s17, 4   ;;  %s2416_s16 = smov %s2418_s18 }
 0x1c7   :  { %13 = sbr.rel (!%p11_p5) target bundleno = 2 (0x2), region = 83 }

// kernel: basic_rfb_apply.10
= control target key start
LH: loop header
LB: loop body
LE: loop exit
PB: predicated region body
PF: predicated region fallthrough
CT: control target
= control target key end

     0   :  { %s726_s15 = smov 0   ;;  %s728_s16 = smov 0   ;;  %s796_s0 = inlined_call_operand.vmem [shape: bf16[2,8,8,32], index: 0, kind: input, shape index: {}]   ;;  %s797_s1 = inlined_call_operand.vmem [shape: bf16[32,8], index: 1, kind: input, shape index: {}]   ;;  %s798_s2 = inlined_call_operand.vmem [shape: f32[1,8], index: 2, kind: input, shape index: {}]   ;;  %s799_s3 = inlined_call_operand.vmem [shape: f32[1,8], index: 3, kind: input, shape index: {}]   ;;  %s800_s4 = inlined_call_operand.vmem [shape: bf16[2,8,8,8], index: 4, kind: output, shape index: {}]  }
   0x1   :  { %s730_s17 = smov 0  }
   0x2 LB: > { %s29_s18 = sadd.s32 1, %s695_s16  ;;  %p604_p0 = scmp.ge.s32.totalorder %s699_s17, 1  ;;  %s699_s17 = sphi %s730_s17, %s14_s17   ;;  %s695_s16 = sphi %s728_s16, %s802_s16   ;;  %s691_s15 = sphi %s726_s15, %s801_s15  }
   0x3   : > { %p31_p1 = scmp.ge.s32.totalorder %s29_s18, 2  ;;  %p210_p2 = scmp.lt.s32.totalorder %s699_s17, 3 }
   0x5   : > { %s804_s18 = smov (%p31_p1, %s29_s18), 0  ;;  %p211_p3 = pnand %p604_p0, %p210_p2 }
   0x6   : > { %p253_p4 = scmp.lt.s32.totalorder (!%p211_p3), %s691_s15, 1 }
   0x7   : > { %214 = sbr.rel (%p211_p3) target bundleno = 230 (0xe6), region = 36 }
   0xc   : > { %v671_v0 = vld [vmem:[%s797_s1 + $0x8] sm:$0xff]   ;;  %v672_v1 = vld [vmem:[%s797_s1] sm:$0xff]   ;;  %s806_s15 = smov (!%p253_p4, %s691_s15), 1  ;;  %vm329_vm0 = vcmask 261120   ;;  %vm453_vm1 = vcmask 60416  }
   0xd   : > { %631 = vmatprep.subr.bf16.mxu0 %v671_v0  ;;  %643 = vmatprep.subr.bf16.mxu1 %v671_v0  ;;  %s623_s23 = sshll.u32 %s806_s15, 5  ;;  %v619_v6 = vld [vmem:[%s798_s2] ss:$0 sm:$0xff] }
   0xe   : > { %632 = vmatpush3.bf16.msra.mxu0 %v671_v0  ;;  %645 = vmatpush3.bf16.msra.mxu1 %v671_v0  ;;  %s257_s26 = scalar_lea.vmem %s796_s0, %s623_s23  ;;  %v620_v8 = vld [vmem:[%s799_s3] ss:$0 sm:$0xff]  ;;  %s769_s7 = scalar_lea.vmem %s800_s4, %s623_s23 }
   0xf   : > { %633 = vmatprep.subr.bf16.mxu0 %v672_v1  ;;  %644 = vmatprep.subr.bf16.mxu1 %v672_v1  ;;  %v673_v2 = vld [vmem:[%s257_s26] sm:$0xff]   ;;  %v674_v3 = vld [vmem:[%s257_s26 + $0x10] sm:$0xff]   ;;  %v675_v4 = vld [vmem:[%s257_s26 + $0x8] sm:$0xff]  }
  0x10   : > { %635 = vmatprep.mubr.msk.bf16.mxu0 %vm329_vm0, %v673_v2  ;;  %639 = vmatprep.mubr.msk.bf16.mxu1 %vm329_vm0, %v674_v3  ;;  %v676_v5 = vld [vmem:[%s257_s26 + $0x18] sm:$0xff]  }
  0x12   : > { %634 = vmatpush3.bf16.msra.mxu0 %v672_v1  ;;  %646 = vmatpush3.bf16.msra.mxu1 %v672_v1 }
  0x15   : > { %636 = vmatmul.mubr.msk.bf16.vlgmr.msra.gmra.mxu0 %vm329_vm0, %v675_v4  ;;  %640 = vmatmul.mubr.msk.bf16.vlgmr.msra.gmra.mxu1 %vm329_vm0, %v676_v5 }
  0xd5   : > { %v637_v7 = vpop.f32.mrf.mxu0  ;;  %v641_v10 = vpop.f32.mrf.mxu1 }
  0xd6   : > { %v416_v9 = vmul.f32 %v637_v7, %v619_v6  ;;  %v420_v11 = vmul.f32 %v641_v10, %v619_v6 }
  0xd7   : > { %v376_v12 = vpop.f32.mrf.mxu0  ;;  %v392_v15 = vpop.f32.mrf.mxu1 }
  0xd8   : > { %v431_v13 = vadd.f32 %v620_v8, %v416_v9  ;;  %v414_v14 = vmul.f32 %v619_v6, %v376_v12  ;;  %v435_v16 = vadd.f32 %v620_v8, %v420_v11  ;;  %v418_v17 = vmul.f32 %v619_v6, %v392_v15 }
  0xd9   : > { %v638_v18 = vpop.f32.mrf.mxu0  ;;  %v642_v22 = vpop.f32.mrf.mxu1 }
  0xda   : > { %v439_v19 = vmax.f32 %v431_v13, 0.0  ;;  %v429_v20 = vadd.f32 %v620_v8, %v414_v14  ;;  %v417_v21 = vmul.f32 %v638_v18, %v619_v6  ;;  %v443_v23 = vmax.f32 %v435_v16, 0.0 }
  0xdb   : > { %v433_v24 = vadd.f32 %v620_v8, %v418_v17  ;;  %v421_v25 = vmul.f32 %v642_v22, %v619_v6  ;;  %v379_v26 = vpop.f32.mrf.mxu0  ;;  %v395_v31 = vpop.f32.mrf.mxu1 }
  0xdc   : > { %v447_v27 = vpack.c.bf16 %v439_v19, %v439_v19  ;;  %v437_v28 = vmax.f32 %v429_v20, 0.0  ;;  %v432_v29 = vadd.f32 %v620_v8, %v417_v21  ;;  %v415_v30 = vmul.f32 %v619_v6, %v379_v26 }
  0xdd   : > { %v451_v32 = vpack.c.bf16 %v443_v23, %v443_v23  ;;  %v441_v33 = vmax.f32 %v433_v24, 0.0  ;;  %v436_v34 = vadd.f32 %v620_v8, %v421_v25  ;;  %v419_v35 = vmul.f32 %v619_v6, %v395_v31 }
  0xde   : > { %456 = vst.msk [vmem:[%s769_s7 + $0x8] sm:$0xf] %vm453_vm1, %v447_v27  ;;  %v445_v36 = vpack.c.bf16 %v437_v28, %v437_v28  ;;  %v440_v37 = vmax.f32 %v432_v29, 0.0  ;;  %v430_v38 = vadd.f32 %v620_v8, %v415_v30 }
  0xdf   : > { %460 = vst.msk [vmem:[%s769_s7 + $0x18] sm:$0xf] %vm453_vm1, %v451_v32  ;;  %v449_v39 = vpack.c.bf16 %v441_v33, %v441_v33  ;;  %v444_v40 = vmax.f32 %v436_v34, 0.0  ;;  %v434_v41 = vadd.f32 %v620_v8, %v419_v35 }
  0xe0   : > { %454 = vst.msk [vmem:[%s769_s7] sm:$0xf] %vm453_vm1, %v445_v36  ;;  %v448_v42 = vpack.c.bf16 %v440_v37, %v440_v37  ;;  %v438_v43 = vmax.f32 %v430_v38, 0.0 }
  0xe1   : > { %458 = vst.msk [vmem:[%s769_s7 + $0x10] sm:$0xf] %vm453_vm1, %v449_v39  ;;  %v452_v44 = vpack.c.bf16 %v444_v40, %v444_v40  ;;  %v442_v45 = vmax.f32 %v434_v41, 0.0 }
  0xe2   : > { %457 = vst.msk [vmem:[%s769_s7 + $0xc] sm:$0xf] %vm453_vm1, %v448_v42  ;;  %v446_v46 = vpack.c.bf16 %v438_v43, %v438_v43 }
  0xe3   : > { %461 = vst.msk [vmem:[%s769_s7 + $0x1c] sm:$0xf] %vm453_vm1, %v452_v44  ;;  %v450_v47 = vpack.c.bf16 %v442_v45, %v442_v45 }
  0xe4   : > { %455 = vst.msk [vmem:[%s769_s7 + $0x4] sm:$0xf] %vm453_vm1, %v446_v46 }
  0xe5   : > { %459 = vst.msk [vmem:[%s769_s7 + $0x14] sm:$0xf] %vm453_vm1, %v450_v47 }
  0xe6 PF: > { %s14_s17 = sadd.s32 1, %s699_s17   ;;  %s801_s15 = smov %s695_s16 }
  0xe7   : > { %p11_p5 = scmp.ge.s32.totalorder %s14_s17, 4   ;;  %s802_s16 = smov %s804_s18 }
  0xe9   :  { %13 = sbr.rel (!%p11_p5) target bundleno = 2 (0x2), region = 76 }

// kernel: basic_rfb_apply.14
= control target key start
LH: loop header
LB: loop body
LE: loop exit
PB: predicated region body
PF: predicated region fallthrough
CT: control target
= control target key end

     0   :  { %s1525_s15 = smov 0   ;;  %s1527_s16 = smov 0   ;;  %s2006_s0 = inlined_call_operand.vmem [shape: bf16[2,8,8,8], index: 0, kind: input, shape index: {}]   ;;  %s2007_s1 = inlined_call_operand.vmem [shape: bf16[72,8], index: 1, kind: input, shape index: {}]   ;;  %s2008_s2 = inlined_call_operand.vmem [shape: f32[1,8], index: 2, kind: input, shape index: {}]   ;;  %s2009_s3 = inlined_call_operand.vmem [shape: f32[1,8], index: 3, kind: input, shape index: {}]   ;;  %s2010_s4 = inlined_call_operand.vmem [shape: bf16[2,8,8,8], index: 4, kind: output, shape index: {}]  }
   0x1   :  { %s1529_s17 = smov 0  }
   0x2 LB: > { %s29_s18 = sadd.s32 1, %s1485_s16  ;;  %p1244_p0 = scmp.ge.s32.totalorder %s1489_s17, 1  ;;  %s1489_s17 = sphi %s1529_s17, %s14_s17   ;;  %s1485_s16 = sphi %s1527_s16, %s2016_s16   ;;  %s1481_s15 = sphi %s1525_s15, %s2015_s15  }
   0x3   : > { %p31_p1 = scmp.ge.s32.totalorder %s29_s18, 2  ;;  %p210_p2 = scmp.lt.s32.totalorder %s1489_s17, 3 }
   0x5   : > { %s2018_s18 = smov (%p31_p1, %s29_s18), 0  ;;  %p211_p3 = pnand %p1244_p0, %p210_p2 }
   0x6   : > { %p253_p4 = scmp.lt.s32.totalorder (!%p211_p3), %s1481_s15, 1  ;;  %s1492_s23 = smov (!%p211_p3), 8  }
   0x7   : > { %214 = sbr.rel (%p211_p3) target bundleno = 422 (0x1a6), region = 36  ;;  %s1493_s24 = smov (!%p211_p3), 16  }
   0x8   : > { %s1494_s25 = smov (!%p211_p3), 24   ;;  %s1495_s26 = smov (!%p211_p3), 32  }
   0x9   : > { %s1496_s27 = smov (!%p211_p3), 40   ;;  %s1497_s30 = smov (!%p211_p3), 48  }
   0xa   : > { %s1498_s9 = smov (!%p211_p3), 56   ;;  %s1499_s14 = smov (!%p211_p3), 64  }
   0xc   : > { %vm286_vm0 = vcmask 60416   ;;  %vm288_vm1 = vcmask 58368   ;;  %v1491_v0 = vmov 0   ;;  %vm415_vm2 = vcmask 1042432   ;;  %s2020_s15 = smov (!%p253_p4, %s1481_s15), 1 }
   0xd   : > { %287 = vst.msk [vmem:[#allocation2] sm:$0xf] %vm286_vm0, %v1491_v0  ;;  %290 = vst.msk [vmem:[#allocation2 + $0x8] sm:$0xf] %vm286_vm0, %v1491_v0  ;;  %vm416_vm3 = vcmask 1046532   ;;  %vm450_vm4 = vcmask 1041408  }
   0xe   : > { %289 = vst.msk [vmem:[#allocation2 + $0x4] sm:$0x3] %vm288_vm1, %v1491_v0  ;;  %291 = vst.msk [vmem:[#allocation2 + $0xc] sm:$0x3] %vm288_vm1, %v1491_v0  ;;  %vm451_vm5 = vcmask 1045508   ;;  %s1378_s19 = sshll.u32 %s2020_s15, 5 }
   0xf   : > { %292 = vst.msk [vmem:[#allocation2 + $0x10] sm:$0xf] %vm286_vm0, %v1491_v0  ;;  %294 = vst.msk [vmem:[#allocation2 + $0x18] sm:$0xf] %vm286_vm0, %v1491_v0  ;;  %vm361_vm7 = vcmask 60417   ;;  %s1583_s22 = scalar_lea.vmem %s2006_s0, %s1378_s19  ;;  %vm363_vm9 = vcmask 57344  }
  0x10   : > { %293 = vst.msk [vmem:[#allocation2 + $0x14] sm:$0x3] %vm288_vm1, %v1491_v0  ;;  %295 = vst.msk [vmem:[#allocation2 + $0x1c] sm:$0x3] %vm288_vm1, %v1491_v0  ;;  %v316_v2 = vld [vmem:[%s1583_s22 + $0x10] sm:$0xf] }
  0x11   : > { %296 = vst.msk [vmem:[#allocation2 + $0x20] sm:$0xf] %vm286_vm0, %v1491_v0  ;;  %298 = vst.msk [vmem:[#allocation2 + $0x28] sm:$0xf] %vm286_vm0, %v1491_v0  ;;  %v317_v3 = vld [vmem:[%s1583_s22 + $0x14] sm:$0xf] }
  0x12   : > { %297 = vst.msk [vmem:[#allocation2 + $0x24] sm:$0x3] %vm288_vm1, %v1491_v0  ;;  %299 = vst.msk [vmem:[#allocation2 + $0x2c] sm:$0x3] %vm288_vm1, %v1491_v0  ;;  %v312_v4 = vld [vmem:[%s1583_s22] sm:$0xf] }
  0x13   : > { %300 = vst.msk [vmem:[#allocation2 + $0x30] sm:$0xf] %vm286_vm0, %v1491_v0  ;;  %302 = vst.msk [vmem:[#allocation2 + $0x38] sm:$0xf] %vm286_vm0, %v1491_v0  ;;  %v313_v18 = vld [vmem:[%s1583_s22 + $0x4] sm:$0xf] }
  0x14   : > { %301 = vst.msk [vmem:[#allocation2 + $0x34] sm:$0x3] %vm288_vm1, %v1491_v0  ;;  %303 = vst.msk [vmem:[#allocation2 + $0x3c] sm:$0x3] %vm288_vm1, %v1491_v0  ;;  %v1588_v5 = vld [vmem:[#allocation2] sm:$0xf] }
  0x15   : > { %304 = vst.msk [vmem:[#allocation2 + $0x40] sm:$0xf] %vm286_vm0, %v1491_v0  ;;  %306 = vst.msk [vmem:[#allocation2 + $0x48] sm:$0xf] %vm286_vm0, %v1491_v0  ;;  %v384_v6 = vld [vmem:[#allocation2 + $0x4] sm:$0x3] }
  0x16   : > { %305 = vst.msk [vmem:[#allocation2 + $0x44] sm:$0x3] %vm288_vm1, %v1491_v0  ;;  %307 = vst.msk [vmem:[#allocation2 + $0x4c] sm:$0x3] %vm288_vm1, %v1491_v0  ;;  %v1590_v7 = vld [vmem:[#allocation2 + $0x8] sm:$0xf] }
  0x17   : > { %308 = vst.msk [vmem:[#allocation2 + $0x50] sm:$0xf] %vm286_vm0, %v1491_v0  ;;  %310 = vst.msk [vmem:[#allocation2 + $0x58] sm:$0xf] %vm286_vm0, %v1491_v0  ;;  %v386_v8 = vld [vmem:[#allocation2 + $0xc] sm:$0x3]  ;;  %v1329_v45 = vcombine.low %v1588_v5, %v1590_v7 }
  0x18   : > { %309 = vst.msk [vmem:[#allocation2 + $0x54] sm:$0x3] %vm288_vm1, %v1491_v0  ;;  %311 = vst.msk [vmem:[#allocation2 + $0x5c] sm:$0x3] %vm288_vm1, %v1491_v0  ;;  %v1249_v9 = vrot.slane %v1588_v5, 9  ;;  %v420_v10 = vrot.slane %v384_v6, 5 }
  0x19   : > { %vm1573_vm6 = vmor %vm415_vm2, %vm416_vm3  ;;  %v1250_v11 = vrot.slane %v1590_v7, 9  ;;  %v455_v12 = vrot.slane %v384_v6, 6  ;;  %v424_v14 = vrot.slane %v386_v8, 5  ;;  %v459_v15 = vrot.slane %v386_v8, 6  ;;  %v318_v23 = vld [vmem:[%s1583_s22 + $0x18] sm:$0xf] }
  0x1a   : > { %vm1596_vm8 = vmor %vm450_vm4, %vm451_vm5  ;;  %v1257_v16 = vrot.slane %v1588_v5, 10  ;;  %v1258_v17 = vrot.slane %v1590_v7, 10  ;;  %v421_v19 = vsel %vm1573_vm6, %v1249_v9, %v420_v10  ;;  %v336_v20 = vrot.slane %v316_v2, 7  ;;  %v319_v28 = vld [vmem:[%s1583_s22 + $0x1c] sm:$0xf] }
  0x1b   : > { %v338_v21 = vrot.slane %v317_v3, 7  ;;  %v328_v22 = vrot.slane %v312_v4, 7  ;;  %v425_v24 = vsel %vm1573_vm6, %v1250_v11, %v424_v14  ;;  %v330_v27 = vrot.slane %v313_v18, 7  ;;  %v314_v29 = vld [vmem:[%s1583_s22 + $0x8] sm:$0xf] }
  0x1c   : > { %v456_v25 = vsel %vm1596_vm8, %v1257_v16, %v455_v12  ;;  %v460_v26 = vsel %vm1596_vm8, %v1258_v17, %v459_v15  ;;  %v1333_v30 = vcombine.low %v421_v19, %v425_v24  ;;  %371 = vst.msk [vmem:[#allocation2 + $0x30] sm:$0xe] %vm361_vm7, %v336_v20  ;;  %v337_v32 = vrot.slane %v336_v20, 4  ;;  %v315_v33 = vld [vmem:[%s1583_s22 + $0xc] sm:$0xf] }
  0x1d   : > { %v339_v31 = vrot.slane %v338_v21, 4  ;;  %373 = vst.msk [vmem:[#allocation2 + $0x38] sm:$0xe] %vm361_vm7, %v338_v21  ;;  %362 = vst.msk [vmem:[#allocation2 + $0x10] sm:$0xe] %vm361_vm7, %v328_v22  ;;  %v331_v34 = vrot.slane %v330_v27, 4  ;;  %v1337_v38 = vcombine.low %v456_v25, %v460_v26 }
  0x1e   : > { %365 = vst.msk [vmem:[#allocation2 + $0x18] sm:$0xe] %vm361_vm7, %v330_v27  ;;  %v329_v35 = vrot.slane %v328_v22, 4  ;;  %v340_v36 = vrot.slane %v318_v23, 7  ;;  %v342_v37 = vrot.slane %v319_v28, 7  ;;  %709 = vrot.lane.b32.xlu0 %v1333_v30, %s1492_s23  ;;  %v332_v39 = vrot.slane %v314_v29, 7 }
  0x1f   : > { %v334_v40 = vrot.slane %v315_v33, 7  ;;  %372 = vst.msk [vmem:[#allocation2 + $0x34] sm:$0x1] %vm363_vm9, %v337_v32  ;;  %374 = vst.msk [vmem:[#allocation2 + $0x3c] sm:$0x1] %vm363_vm9, %v339_v31  ;;  %vm978_vm10 = vcmask 1043456  }
  0x20   : > { %v341_v41 = vrot.slane %v340_v36, 4  ;;  %v343_v42 = vrot.slane %v342_v37, 4  ;;  %375 = vst.msk [vmem:[#allocation2 + $0x40] sm:$0xe] %vm361_vm7, %v340_v36  ;;  %377 = vst.msk [vmem:[#allocation2 + $0x48] sm:$0xe] %vm361_vm7, %v342_v37 }
  0x21   : > { %364 = vst.msk [vmem:[#allocation2 + $0x14] sm:$0x1] %vm363_vm9, %v329_v35  ;;  %366 = vst.msk [vmem:[#allocation2 + $0x1c] sm:$0x1] %vm363_vm9, %v331_v34  ;;  %v333_v43 = vrot.slane %v332_v39, 4  ;;  %v335_v44 = vrot.slane %v334_v40, 4 }
  0x22   : > { %367 = vst.msk [vmem:[#allocation2 + $0x20] sm:$0xe] %vm361_vm7, %v332_v39  ;;  %369 = vst.msk [vmem:[#allocation2 + $0x28] sm:$0xe] %vm361_vm7, %v334_v40  ;;  %729 = vrot.lane.b32.xlu0 %v1337_v38, %s1493_s24  ;;  %vm857_vm11 = vcmask 64512   ;;  %vm870_vm12 = vcmask 130048  }
  0x23   : > { %376 = vst.msk [vmem:[#allocation2 + $0x44] sm:$0x1] %vm363_vm9, %v341_v41  ;;  %378 = vst.msk [vmem:[#allocation2 + $0x4c] sm:$0x1] %vm363_vm9, %v343_v42  ;;  %v1635_v46 = vld [vmem:[#allocation2 + $0x30] sm:$0xf] }
  0x24   : > { %368 = vst.msk [vmem:[#allocation2 + $0x24] sm:$0x1] %vm363_vm9, %v333_v43  ;;  %370 = vst.msk [vmem:[#allocation2 + $0x2c] sm:$0x1] %vm363_vm9, %v335_v44  ;;  %v1637_v47 = vld [vmem:[#allocation2 + $0x38] sm:$0xf] }
  0x25   : > { %v1639_v48 = vld [vmem:[#allocation2 + $0x10] sm:$0xf]  ;;  %v1343_v49 = vcombine.low %v1635_v46, %v1637_v47  ;;  %v1643_v50 = vld [vmem:[#allocation2 + $0x18] sm:$0xf]  ;;  %v1286_v51 = vrot.slane %v1637_v47, 9  ;;  %v1285_v53 = vrot.slane %v1635_v46, 9 }
  0x26   : > { %v1341_v52 = vcombine.low %v1639_v48, %v1643_v50  ;;  %v1282_v54 = vrot.slane %v1643_v50, 9  ;;  %v1290_v57 = vrot.slane %v1643_v50, 10  ;;  %v1281_v58 = vrot.slane %v1639_v48, 9  ;;  %v1658_v60 = vld [vmem:[#allocation2 + $0x10] sm:$0xf] }
  0x27   : > { %753 = vrot.lane.b32.xlu1 %v1343_v49, %s1494_s25  ;;  %v1650_v55 = vld [vmem:[#allocation2 + $0x40] sm:$0xf]  ;;  %v1652_v56 = vld [vmem:[#allocation2 + $0x48] sm:$0xf]  ;;  %v1289_v61 = vrot.slane %v1639_v48, 10  ;;  %v1251_v10 = vrot.slane %v1658_v60, 9 }
  0x28   : > { %749 = vrot.lane.b32.xlu0 %v1341_v52, %s1494_s25  ;;  %v1287_v62 = vrot.slane %v1650_v55, 9  ;;  %v1344_v63 = vcombine.low %v1650_v55, %v1652_v56  ;;  %v388_v2 = vld [vmem:[#allocation2 + $0x14] sm:$0x3]  ;;  %v1670_v8 = vld [vmem:[#allocation2 + $0x18] sm:$0xf]  ;;  %v1259_v38 = vrot.slane %v1658_v60, 10 }
  0x29   : > { %v1656_v59 = vld [vmem:[#allocation2 + $0x20] sm:$0xf]  ;;  %v1664_v0 = vld [vmem:[#allocation2 + $0x28] sm:$0xf]  ;;  %v390_v9 = vld [vmem:[#allocation2 + $0x1c] sm:$0x3]  ;;  %v1330_v19 = vcombine.low %v1658_v60, %v1670_v8 }
  0x2a   : > { %v1283_v3 = vrot.slane %v1656_v59, 9  ;;  %v1284_v4 = vrot.slane %v1664_v0, 9  ;;  %v1342_v6 = vcombine.low %v1656_v59, %v1664_v0  ;;  %v428_v11 = vrot.slane %v388_v2, 5  ;;  %v1674_v15 = vld [vmem:[#allocation2 + $0x20] sm:$0xf] }
  0x2b   : > { %755 = vrot.lane.b32.xlu1 %v1344_v63, %s1494_s25  ;;  %v1252_v12 = vrot.slane %v1670_v8, 9  ;;  %v432_v14 = vrot.slane %v390_v9, 5  ;;  %v392_v16 = vld [vmem:[#allocation2 + $0x24] sm:$0x3]  ;;  %v1676_v17 = vld [vmem:[#allocation2 + $0x28] sm:$0xf] }
  0x2c   : > { %751 = vrot.lane.b32.xlu0 %v1342_v6, %s1494_s25  ;;  %v394_v18 = vld [vmem:[#allocation2 + $0x2c] sm:$0x3]  ;;  %v429_v20 = vsel %vm1573_vm6, %v1251_v10, %v428_v11  ;;  %v1253_v22 = vrot.slane %v1674_v15, 9  ;;  %v436_v23 = vrot.slane %v392_v16, 5  ;;  %v1685_v24 = vld [vmem:[#allocation2 + $0x30] sm:$0xf]  ;;  %v1331_v31 = vcombine.low %v1674_v15, %v1676_v17 }
  0x2d   : > { %v433_v21 = vsel %vm1573_vm6, %v1252_v12, %v432_v14  ;;  %v396_v25 = vld [vmem:[#allocation2 + $0x34] sm:$0x3]  ;;  %v1254_v27 = vrot.slane %v1676_v17, 9  ;;  %v440_v28 = vrot.slane %v394_v18, 5  ;;  %v1688_v29 = vld [vmem:[#allocation2 + $0x38] sm:$0xf] }
  0x2e   : > { %v1334_v26 = vcombine.low %v429_v20, %v433_v21  ;;  %v398_v30 = vld [vmem:[#allocation2 + $0x3c] sm:$0x3]  ;;  %v437_v32 = vsel %vm1573_vm6, %v1253_v22, %v436_v23  ;;  %v1255_v33 = vrot.slane %v1685_v24, 9  ;;  %v444_v34 = vrot.slane %v396_v25, 5  ;;  %v1266_v44 = vld [vmem:[#allocation2 + $0x14] sm:$0x3] }
  0x2f   : > { %v1256_v35 = vrot.slane %v1688_v29, 9  ;;  %v441_v36 = vsel %vm1573_vm6, %v1254_v27, %v440_v28  ;;  %v448_v37 = vrot.slane %v398_v30, 5  ;;  %v463_v39 = vrot.slane %v388_v2, 6  ;;  %v1268_v49 = vld [vmem:[#allocation2 + $0x1c] sm:$0x3] }
  0x30   : > { %711 = vrot.lane.b32.xlu1 %v1334_v26, %s1492_s23  ;;  %v1335_v40 = vcombine.low %v437_v32, %v441_v36  ;;  %v445_v41 = vsel %vm1573_vm6, %v1255_v33, %v444_v34  ;;  %v1260_v42 = vrot.slane %v1670_v8, 10  ;;  %v467_v43 = vrot.slane %v390_v9, 6  ;;  %v1270_v14 = vld [vmem:[#allocation2 + $0x24] sm:$0x3]  ;;  %v1272_v26 = vld [vmem:[#allocation2 + $0x2c] sm:$0x3] }
  0x31   : > { %v449_v52 = vsel %vm1573_vm6, %v1256_v35, %v448_v37  ;;  %v464_v63 = vsel %vm1596_vm8, %v1259_v38, %v463_v39  ;;  %v1261_v6 = vrot.slane %v1674_v15, 10  ;;  %v471_v10 = vrot.slane %v392_v16, 6  ;;  %v1274_v27 = vld [vmem:[#allocation2 + $0x34] sm:$0x3] }
  0x32   : > { %713 = vrot.lane.b32.xlu0 %v1335_v40, %s1492_s23  ;;  %v1336_v2 = vcombine.low %v445_v41, %v449_v52  ;;  %v468_v11 = vsel %vm1596_vm8, %v1260_v42, %v467_v43  ;;  %v1262_v12 = vrot.slane %v1676_v17, 10  ;;  %v475_v9 = vrot.slane %v394_v18, 6  ;;  %v1276_v18 = vld [vmem:[#allocation2 + $0x3c] sm:$0x3]  ;;  %v1278_v41 = vld [vmem:[#allocation2 + $0x44] sm:$0x3] }
  0x33   : > { %v1338_v20 = vcombine.low %v464_v63, %v468_v11  ;;  %v472_v21 = vsel %vm1596_vm8, %v1261_v6, %v471_v10  ;;  %v523_v22 = vrot.slane %v1266_v44, 5  ;;  %v527_v23 = vrot.slane %v1268_v49, 5  ;;  %v1280_v63 = vld [vmem:[#allocation2 + $0x4c] sm:$0x3] }
  0x34   : > { %715 = vrot.lane.b32.xlu1 %v1336_v2, %s1492_s23  ;;  %v476_v16 = vsel %vm1596_vm8, %v1262_v12, %v475_v9  ;;  %v1263_v28 = vrot.slane %v1685_v24, 10  ;;  %v479_v32 = vrot.slane %v396_v25, 6  ;;  %v1264_v33 = vrot.slane %v1688_v29, 10 }
  0x35   : > { %v1339_v34 = vcombine.low %v472_v21, %v476_v16  ;;  %v524_v35 = vsel %vm1573_vm6, %v1281_v58, %v523_v22  ;;  %v528_v36 = vsel %vm1573_vm6, %v1282_v54, %v527_v23  ;;  %v483_v37 = vrot.slane %v398_v30, 6 }
  0x36   : > { %731 = vrot.lane.b32.xlu0 %v1338_v20, %s1493_s24  ;;  %v1345_v38 = vcombine.low %v524_v35, %v528_v36  ;;  %v480_v25 = vsel %vm1596_vm8, %v1263_v28, %v479_v32  ;;  %v531_v39 = vrot.slane %v1270_v14, 5  ;;  %v535_v40 = vrot.slane %v1272_v26, 5  ;;  %v1790_v35 = vld [vmem:[#allocation2 + $0x2c] sm:$0x3] }
  0x37   : > { %v484_v42 = vsel %vm1596_vm8, %v1264_v33, %v483_v37  ;;  %v539_v43 = vrot.slane %v1274_v27, 5  ;;  %v543_v58 = vrot.slane %v1276_v18, 5  ;;  %v555_v52 = vrot.slane %v1266_v44, 6 }
  0x38   : > { %733 = vrot.lane.b32.xlu1 %v1339_v34, %s1493_s24  ;;  %v1340_v54 = vcombine.low %v480_v25, %v484_v42  ;;  %v532_v30 = vsel %vm1573_vm6, %v1283_v3, %v531_v39  ;;  %v536_v6 = vsel %vm1573_vm6, %v1284_v4, %v535_v40  ;;  %v559_v10 = vrot.slane %v1268_v49, 6  ;;  %v1788_v34 = vld [vmem:[#allocation2 + $0x24] sm:$0x3]  ;;  %v1799_v25 = vld [vmem:[#allocation2 + $0x30] sm:$0xf] }
  0x39   : > { %v1288_v2 = vrot.slane %v1652_v56, 9  ;;  %v1291_v11 = vrot.slane %v1656_v59, 10  ;;  %v540_v44 = vsel %vm1573_vm6, %v1285_v53, %v539_v43  ;;  %v544_v3 = vsel %vm1573_vm6, %v1286_v51, %v543_v58  ;;  %v1801_v39 = vld [vmem:[#allocation2 + $0x38] sm:$0xf]  ;;  %v1807_v58 = vld [vmem:[#allocation2 + $0x34] sm:$0x3] }
  0x3a   : > { %v1292_v12 = vrot.slane %v1664_v0, 10  ;;  %769 = vrot.lane.b32.xlu0 %v1345_v38, %s1495_s26  ;;  %v1346_v4 = vcombine.low %v532_v30, %v536_v6  ;;  %v547_v49 = vrot.slane %v1278_v41, 5  ;;  %v551_v9 = vrot.slane %v1280_v63, 5  ;;  %v1815_v30 = vld [vmem:[#allocation2 + $0x40] sm:$0xf] }
  0x3b   : > { %v556_v59 = vsel %vm1596_vm8, %v1289_v61, %v555_v52  ;;  %v560_v53 = vsel %vm1596_vm8, %v1290_v57, %v559_v10  ;;  %v563_v20 = vrot.slane %v1270_v14, 6  ;;  %v567_v51 = vrot.slane %v1272_v26, 6  ;;  %v1817_v6 = vld [vmem:[#allocation2 + $0x48] sm:$0xf]  ;;  %v1819_v10 = vld [vmem:[#allocation2 + $0x44] sm:$0x3] }
  0x3c   : > { %v1294_v0 = vrot.slane %v1637_v47, 10  ;;  %v1293_v21 = vrot.slane %v1635_v46, 10  ;;  %735 = vrot.lane.b32.xlu1 %v1340_v54, %s1493_s24  ;;  %v1347_v22 = vcombine.low %v540_v44, %v544_v3  ;;  %v548_v48 = vsel %vm1573_vm6, %v1287_v62, %v547_v49  ;;  %v1462_v54 = vld [vmem:[%s2007_s1 + $0x20] ss:$0 sps:$4 sm:$0xff]   ;;  %v1463_v49 = vld [vmem:[%s2007_s1 + $0x18] sm:$0xff]  }
  0x3d   : > { %v552_v50 = vsel %vm1573_vm6, %v1288_v2, %v551_v9  ;;  %v571_v61 = vrot.slane %v1274_v27, 6  ;;  %v575_v23 = vrot.slane %v1276_v18, 6  ;;  %v1349_v57 = vcombine.low %v556_v59, %v560_v53  ;;  %v1783_v18 = vld [vmem:[#allocation2 + $0x20] sm:$0xf]  ;;  %v1838_v53 = vld [vmem:[#allocation2 + $0x50] sm:$0xf]  ;;  %1417 = vmatprep.subr.msk.bf16.mxu0 %vm978_vm10, %v1462_v54  ;;  %1418 = vmatprep.subr.msk.bf16.mxu1 %vm978_vm10, %v1462_v54 }
  0x3e   : > { %771 = vrot.lane.b32.xlu0 %v1346_v4, %s1495_s26  ;;  %v564_v47 = vsel %vm1596_vm8, %v1291_v11, %v563_v20  ;;  %v568_v46 = vsel %vm1596_vm8, %v1292_v12, %v567_v51  ;;  %v1295_v14 = vrot.slane %v1650_v55, 10  ;;  %v1296_v26 = vrot.slane %v1652_v56, 10  ;;  %v1785_v55 = vld [vmem:[#allocation2 + $0x28] sm:$0xf]  ;;  %v1829_v4 = vld [vmem:[#allocation2 + $0x4c] sm:$0x3] }
  0x3f   : > { %v1348_v62 = vcombine.low %v548_v48, %v552_v50  ;;  %v572_v27 = vsel %vm1596_vm8, %v1293_v21, %v571_v61  ;;  %v576_v16 = vsel %vm1596_vm8, %v1294_v0, %v575_v23  ;;  %v579_v28 = vrot.slane %v1278_v41, 6  ;;  %v1844_v0 = vld [vmem:[#allocation2 + $0x58] sm:$0xf]  ;;  %v1846_v21 = vld [vmem:[#allocation2 + $0x54] sm:$0x3] }
  0x40   : > { %773 = vrot.lane.b32.xlu1 %v1347_v22, %s1495_s26  ;;  %v583_v32 = vrot.slane %v1280_v63, 6  ;;  %v1350_v33 = vcombine.low %v564_v47, %v568_v46  ;;  %v1351_v56 = vcombine.low %v572_v27, %v576_v16  ;;  %v1353_v38 = vcombine.low %v1783_v18, %v1785_v55  ;;  %v1810_v63 = vld [vmem:[#allocation2 + $0x3c] sm:$0x3] }
  0x41   : > { %v580_v36 = vsel %vm1596_vm8, %v1295_v14, %v579_v28  ;;  %v1313_v40 = vrot.slane %v1783_v18, 9  ;;  %v1314_v41 = vrot.slane %v1785_v55, 9  ;;  %v623_v42 = vrot.slane %v1788_v34, 5 }
  0x42   : > { %789 = vrot.lane.b32.xlu0 %v1349_v57, %s1496_s27  ;;  %v584_v37 = vsel %vm1596_vm8, %v1296_v26, %v583_v32  ;;  %v627_v43 = vrot.slane %v1790_v35, 5  ;;  %v1332_v2 = vcombine.low %v1685_v24, %v1688_v29  ;;  %v1315_v11 = vrot.slane %v1799_v25, 9  ;;  %v1852_v57 = vld [vmem:[#allocation2 + $0x5c] sm:$0x3] }
  0x43   : > { %v1352_v52 = vcombine.low %v580_v36, %v584_v37  ;;  %v1316_v44 = vrot.slane %v1801_v39, 9  ;;  %v1354_v3 = vcombine.low %v1799_v25, %v1801_v39  ;;  %v631_v12 = vrot.slane %v1807_v58, 5 }
  0x44   : > { %775 = vrot.lane.b32.xlu1 %v1348_v62, %s1495_s26  ;;  %v624_v9 = vsel %vm1573_vm6, %v1313_v40, %v623_v42  ;;  %v628_v59 = vsel %vm1573_vm6, %v1314_v41, %v627_v43  ;;  %v635_v20 = vrot.slane %v1810_v63, 5  ;;  %v1355_v51 = vcombine.low %v1815_v30, %v1817_v6  ;;  %v1464_v62 = vld [vmem:[%s2007_s1 + $0x10] sm:$0xff]   ;;  %v1465_v40 = vld [vmem:[%s2007_s1 + $0x8] sm:$0xff]   ;;  %s1979_s26 = scalar_lea.vmem %s2010_s4, %s1378_s19 }
  0x45   : > { %v980_v22 = vsel %vm978_vm10, %v1462_v54, 0  ;;  %v1317_v48 = vrot.slane %v1815_v30, 9  ;;  %v1318_v50 = vrot.slane %v1817_v6, 9  ;;  %v639_v61 = vrot.slane %v1819_v10, 5 }
  0x46   : > { %791 = vrot.lane.b32.xlu0 %v1350_v33, %s1496_s27  ;;  %v643_v23 = vrot.slane %v1829_v4, 5  ;;  %1390 = vmatpush3.bf16.msra.mxu0 %v980_v22  ;;  %v1321_v47 = vrot.slane %v1783_v18, 10  ;;  %v1322_v46 = vrot.slane %v1785_v55, 10  ;;  %v1357_v14 = vcombine.low %v624_v9, %v628_v59 }
  0x47   : > { %v1319_v26 = vrot.slane %v1838_v53, 9  ;;  %1391 = vmatprep.subr.bf16.mxu0 %v1463_v49  ;;  %v632_v27 = vsel %vm1573_vm6, %v1315_v11, %v631_v12  ;;  %v636_v16 = vsel %vm1573_vm6, %v1316_v44, %v635_v20  ;;  %v655_v28 = vrot.slane %v1788_v34, 6  ;;  %1412 = vmatpush3.bf16.msra.mxu1 %v980_v22  ;;  %v1466_v12 = vld [vmem:[%s2007_s1] sm:$0xff]  }
  0x48   : > { %793 = vrot.lane.b32.xlu1 %v1351_v56, %s1496_s27  ;;  %v659_v32 = vrot.slane %v1790_v35, 6  ;;  %v1320_v33 = vrot.slane %v1844_v0, 9  ;;  %v1356_v18 = vcombine.low %v1838_v53, %v1844_v0  ;;  %v647_v55 = vrot.slane %v1846_v21, 5  ;;  %1408 = vmatprep.subr.bf16.mxu1 %v1463_v49 }
  0x49   : > { %v651_v56 = vrot.slane %v1852_v57, 5  ;;  %v640_v36 = vsel %vm1573_vm6, %v1317_v48, %v639_v61  ;;  %v644_v34 = vsel %vm1573_vm6, %v1318_v50, %v643_v23  ;;  %v1323_v35 = vrot.slane %v1799_v25, 10 }
  0x4a   : > { %809 = vrot.lane.b32.xlu0 %v1353_v38, %s1497_s30  ;;  %1392 = vmatpush3.bf16.msra.mxu0 %v1463_v49  ;;  %v1324_v37 = vrot.slane %v1801_v39, 10  ;;  %v1358_v38 = vcombine.low %v632_v27, %v636_v16  ;;  %v656_v41 = vsel %vm1596_vm8, %v1321_v47, %v655_v28  ;;  %v660_v42 = vsel %vm1596_vm8, %v1322_v46, %v659_v32 }
  0x4b   : > { %1393 = vmatprep.subr.bf16.mxu0 %v1464_v62  ;;  %v663_v43 = vrot.slane %v1807_v58, 6  ;;  %v667_v25 = vrot.slane %v1810_v63, 6  ;;  %1413 = vmatpush3.bf16.msra.mxu1 %v1463_v49  ;;  %v1359_v39 = vcombine.low %v640_v36, %v644_v34  ;;  %v652_v54 = vsel %vm1573_vm6, %v1320_v33, %v651_v56 }
  0x4c   : > { %795 = vrot.lane.b32.xlu1 %v1352_v52, %s1496_s27  ;;  %v648_v52 = vsel %vm1573_vm6, %v1319_v26, %v647_v55  ;;  %1409 = vmatprep.subr.bf16.mxu1 %v1464_v62  ;;  %v1325_v11 = vrot.slane %v1815_v30, 10  ;;  %v1326_v44 = vrot.slane %v1817_v6, 10  ;;  %v675_v58 = vrot.slane %v1829_v4, 6 }
  0x4d   : > { %v1361_v63 = vcombine.low %v656_v41, %v660_v42  ;;  %v664_v1 = vsel %vm1596_vm8, %v1323_v35, %v663_v43  ;;  %v668_v30 = vsel %vm1596_vm8, %v1324_v37, %v667_v25  ;;  %v1327_v6 = vrot.slane %v1838_v53, 10 }
  0x4e   : > { %811 = vrot.lane.b32.xlu0 %v1354_v3, %s1497_s30  ;;  %v671_v3 = vrot.slane %v1819_v10, 6  ;;  %1394 = vmatpush3.bf16.msra.mxu0 %v1464_v62  ;;  %v1328_v10 = vrot.slane %v1844_v0, 10  ;;  %v1360_v4 = vcombine.low %v648_v52, %v652_v54  ;;  %v676_v9 = vsel %vm1596_vm8, %v1326_v44, %v675_v58 }
  0x4f   : > { %1395 = vmatprep.subr.bf16.mxu0 %v1465_v40  ;;  %1414 = vmatpush3.bf16.msra.mxu1 %v1464_v62  ;;  %v679_v59 = vrot.slane %v1846_v21, 6  ;;  %v683_v20 = vrot.slane %v1852_v57, 6  ;;  %v1362_v53 = vcombine.low %v664_v1, %v668_v30  ;;  %vm879_vm13 = vcmask 195584  }
  0x50   : > { %813 = vrot.lane.b32.xlu1 %v1355_v51, %s1497_s30  ;;  %1410 = vmatprep.subr.bf16.mxu1 %v1465_v40  ;;  %v672_v49 = vsel %vm1596_vm8, %v1325_v11, %v671_v3  ;;  %vm888_vm14 = vcmask 261120   ;;  %vm897_vm15 = vcmask 326656   ;;  %vm906_vm1 = vcmask 392192  }
  0x51   : > { %v1363_v51 = vcombine.low %v672_v49, %v676_v9  ;;  %v680_v0 = vsel %vm1596_vm8, %v1327_v6, %v679_v59  ;;  %v684_v22 = vsel %vm1596_vm8, %v1328_v10, %v683_v20  ;;  %vm915_vm2 = vcmask 457728  }
  0x52   : > { %829 = vrot.lane.b32.xlu0 %v1357_v14, %s1498_s9  ;;  %1396 = vmatpush3.bf16.msra.mxu0 %v1465_v40  ;;  %v1364_v21 = vcombine.low %v680_v0, %v684_v22  ;;  %vm924_vm3 = vcmask 523264   ;;  %vm969_vm4 = vcmask 588800  }
  0x53   : > { %1397 = vmatprep.subr.bf16.mxu0 %v1466_v12  ;;  %1415 = vmatpush3.bf16.msra.mxu1 %v1465_v40 }
  0x54   : > { %815 = vrot.lane.b32.xlu1 %v1356_v18, %s1497_s30  ;;  %1411 = vmatprep.subr.bf16.mxu1 %v1466_v12 }
  0x56   : > { %831 = vrot.lane.b32.xlu0 %v1358_v38, %s1498_s9  ;;  %1398 = vmatpush3.bf16.msra.mxu0 %v1466_v12 }
  0x57   : > { %1416 = vmatpush3.bf16.msra.mxu1 %v1466_v12 }
  0x58   : > { %833 = vrot.lane.b32.xlu1 %v1359_v39, %s1498_s9 }
  0x5a   : > { %849 = vrot.lane.b32.xlu0 %v1361_v63, %s1499_s14 }
  0x5c   : > { %835 = vrot.lane.b32.xlu1 %v1360_v4, %s1498_s9 }
  0x5e   : > { %851 = vrot.lane.b32.xlu0 %v1362_v53, %s1499_s14 }
  0x60   : > { %853 = vrot.lane.b32.xlu1 %v1363_v51, %s1499_s14 }
  0x64   : > { %855 = vrot.lane.b32.xlu1 %v1364_v21, %s1499_s14 }
  0x90   : > { %v710_v48 = vpop.permute.xlu0 %709 }
  0x91   : > { %v860_v37 = vsel %vm857_vm11, %v1329_v45, %v710_v48  ;;  %v1374_v48 = vld [vmem:[%s2008_s2] ss:$0 sm:$0xff] }
  0x94   : > { %v730_v50 = vpop.permute.xlu0 %729 }
  0x95   : > { %v872_v41 = vsel %vm870_vm12, %v860_v37, %v730_v50 }
  0x99   : > { %v754_v61 = vpop.permute.xlu1 %753 }
  0x9a   : > { %v750_v23 = vpop.permute.xlu0 %749 }
  0x9b   : > { %v881_v43 = vsel %vm879_vm13, %v872_v41, %v750_v23 }
  0x9d   : > { %v756_v57 = vpop.permute.xlu1 %755 }
  0x9e   : > { %v752_v47 = vpop.permute.xlu0 %751 }
  0xa2   : > { %v712_v46 = vpop.permute.xlu1 %711 }
  0xa3   : > { %v863_v25 = vsel %vm857_vm11, %v1330_v19, %v712_v46 }
  0xa4   : > { %v714_v14 = vpop.permute.xlu0 %713 }
  0xa5   : > { %v866_v5 = vsel %vm857_vm11, %v1331_v31, %v714_v14 }
  0xa6   : > { %v716_v26 = vpop.permute.xlu1 %715 }
  0xa7   : > { %v869_v44 = vsel %vm857_vm11, %v1332_v2, %v716_v26 }
  0xa8   : > { %v732_v62 = vpop.permute.xlu0 %731 }
  0xa9   : > { %v874_v45 = vsel %vm870_vm12, %v863_v25, %v732_v62 }
  0xaa   : > { %v734_v27 = vpop.permute.xlu1 %733  ;;  %v883_v15 = vsel %vm879_vm13, %v874_v45, %v752_v47 }
  0xab   : > { %v876_v60 = vsel %vm870_vm12, %v866_v5, %v734_v27 }
  0xac   : > { %v770_v16 = vpop.permute.xlu0 %769  ;;  %v885_v3 = vsel %vm879_vm13, %v876_v60, %v754_v61  ;;  %v1375_v61 = vld [vmem:[%s2009_s3] ss:$0 sm:$0xff] }
  0xad   : > { %v890_v39 = vsel %vm888_vm14, %v881_v43, %v770_v16 }
  0xae   : > { %v736_v13 = vpop.permute.xlu1 %735 }
  0xaf   : > { %v878_v12 = vsel %vm870_vm12, %v869_v44, %v736_v13 }
  0xb0   : > { %v772_v28 = vpop.permute.xlu0 %771  ;;  %v887_v4 = vsel %vm879_vm13, %v878_v12, %v756_v57 }
  0xb1   : > { %v892_v31 = vsel %vm888_vm14, %v883_v15, %v772_v28 }
  0xb2   : > { %v774_v32 = vpop.permute.xlu1 %773 }
  0xb3   : > { %v894_v1 = vsel %vm888_vm14, %v885_v3, %v774_v32 }
  0xb4   : > { %v790_v33 = vpop.permute.xlu0 %789 }
  0xb5   : > { %v899_v52 = vsel %vm897_vm15, %v890_v39, %v790_v33 }
  0xb6   : > { %v776_v18 = vpop.permute.xlu1 %775 }
  0xb7   : > { %v896_v59 = vsel %vm888_vm14, %v887_v4, %v776_v18 }
  0xb8   : > { %v792_v55 = vpop.permute.xlu0 %791 }
  0xb9   : > { %v901_v58 = vsel %vm897_vm15, %v892_v31, %v792_v55 }
  0xba   : > { %v794_v56 = vpop.permute.xlu1 %793 }
  0xbb   : > { %v903_v6 = vsel %vm897_vm15, %v894_v1, %v794_v56 }
  0xbc   : > { %v810_v36 = vpop.permute.xlu0 %809 }
  0xbd   : > { %v908_v8 = vsel %vm906_vm1, %v899_v52, %v810_v36 }
  0xbe   : > { %v796_v34 = vpop.permute.xlu1 %795 }
  0xbf   : > { %v905_v53 = vsel %vm897_vm15, %v896_v59, %v796_v34 }
  0xc0   : > { %v812_v35 = vpop.permute.xlu0 %811 }
  0xc1   : > { %v910_v30 = vsel %vm906_vm1, %v901_v58, %v812_v35 }
  0xc2   : > { %v814_v38 = vpop.permute.xlu1 %813 }
  0xc3   : > { %v912_v29 = vsel %vm906_vm1, %v903_v6, %v814_v38 }
  0xc4   : > { %v830_v40 = vpop.permute.xlu0 %829 }
  0xc5   : > { %v917_v17 = vsel %vm915_vm2, %v908_v8, %v830_v40 }
  0xc6   : > { %v816_v42 = vpop.permute.xlu1 %815 }
  0xc7   : > { %v914_v51 = vsel %vm906_vm1, %v905_v53, %v816_v42 }
  0xc8   : > { %v832_v7 = vpop.permute.xlu0 %831 }
  0xc9   : > { %v919_v10 = vsel %vm915_vm2, %v910_v30, %v832_v7 }
  0xca   : > { %v834_v54 = vpop.permute.xlu1 %833 }
  0xcb   : > { %v921_v49 = vsel %vm915_vm2, %v912_v29, %v834_v54 }
  0xcc   : > { %v850_v19 = vpop.permute.xlu0 %849 }
  0xcd   : > { %v926_v11 = vsel %vm924_vm3, %v917_v17, %v850_v19 }
  0xce   : > { %v836_v63 = vpop.permute.xlu1 %835  ;;  %1399 = vmatprep.mubr.msk.bf16.mxu0 %vm969_vm4, %v926_v11 }
  0xcf   : > { %v923_v0 = vsel %vm915_vm2, %v914_v51, %v836_v63 }
  0xd0   : > { %v852_v24 = vpop.permute.xlu0 %851 }
  0xd1   : > { %v928_v2 = vsel %vm924_vm3, %v919_v10, %v852_v24 }
  0xd2   : > { %v854_v9 = vpop.permute.xlu1 %853  ;;  %1400 = vmatmul.mubr.msk.bf16.vlgmr.msra.gmra.mxu0 %vm969_vm4, %v928_v2 }
  0xd3   : > { %v930_v20 = vsel %vm924_vm3, %v921_v49, %v854_v9 }
  0xd4   : > { %1403 = vmatprep.mubr.msk.bf16.mxu1 %vm969_vm4, %v930_v20 }
  0xd6   : > { %v856_v22 = vpop.permute.xlu1 %855 }
  0xd7   : > { %v932_v21 = vsel %vm924_vm3, %v923_v0, %v856_v22 }
  0xd8   : > { %1404 = vmatmul.mubr.msk.bf16.vlgmr.msra.gmra.mxu1 %vm969_vm4, %v932_v21 }
 0x192   : > { %v1401_v50 = vpop.f32.mrf.mxu0 }
 0x193   : > { %v1056_v23 = vmul.f32 %v1401_v50, %v1374_v48 }
 0x194   : > { %v1016_v57 = vpop.f32.mrf.mxu0 }
 0x195   : > { %v1071_v47 = vadd.f32 %v1375_v61, %v1056_v23  ;;  %v1054_v46 = vmul.f32 %v1374_v48, %v1016_v57 }
 0x196   : > { %v1402_v14 = vpop.f32.mrf.mxu0 }
 0x197   : > { %v1079_v26 = vpack.c.bf16 %v1071_v47, %v1071_v47  ;;  %v1069_v62 = vadd.f32 %v1375_v61, %v1054_v46  ;;  %v1057_v27 = vmul.f32 %v1402_v14, %v1374_v48 }
 0x198   : > { %v1405_v16 = vpop.f32.mrf.mxu1  ;;  %v1019_v13 = vpop.f32.mrf.mxu0 }
 0x199   : > { %1088 = vst.msk [vmem:[%s1979_s26 + $0x8] sm:$0xf] %vm286_vm0, %v1079_v26  ;;  %v1077_v28 = vpack.c.bf16 %v1069_v62, %v1069_v62  ;;  %v1072_v32 = vadd.f32 %v1375_v61, %v1057_v27  ;;  %v1060_v33 = vmul.f32 %v1405_v16, %v1374_v48  ;;  %v1055_v18 = vmul.f32 %v1374_v48, %v1019_v13 }
 0x19a   : > { %v1032_v55 = vpop.f32.mrf.mxu1 }
 0x19b   : > { %1086 = vst.msk [vmem:[%s1979_s26] sm:$0xf] %vm286_vm0, %v1077_v28  ;;  %v1080_v56 = vpack.c.bf16 %v1072_v32, %v1072_v32  ;;  %v1075_v36 = vadd.f32 %v1375_v61, %v1060_v33  ;;  %v1070_v34 = vadd.f32 %v1375_v61, %v1055_v18  ;;  %v1058_v35 = vmul.f32 %v1374_v48, %v1032_v55 }
 0x19c   : > { %v1406_v37 = vpop.f32.mrf.mxu1 }
 0x19d   : > { %1089 = vst.msk [vmem:[%s1979_s26 + $0xc] sm:$0xf] %vm286_vm0, %v1080_v56  ;;  %v1083_v38 = vpack.c.bf16 %v1075_v36, %v1075_v36  ;;  %v1078_v40 = vpack.c.bf16 %v1070_v34, %v1070_v34  ;;  %v1073_v41 = vadd.f32 %v1375_v61, %v1058_v35  ;;  %v1061_v42 = vmul.f32 %v1406_v37, %v1374_v48 }
 0x19e   : > { %v1035_v43 = vpop.f32.mrf.mxu1 }
 0x19f   : > { %1092 = vst.msk [vmem:[%s1979_s26 + $0x18] sm:$0xf] %vm286_vm0, %v1083_v38  ;;  %1087 = vst.msk [vmem:[%s1979_s26 + $0x4] sm:$0xf] %vm286_vm0, %v1078_v40  ;;  %v1081_v25 = vpack.c.bf16 %v1073_v41, %v1073_v41  ;;  %v1076_v5 = vadd.f32 %v1375_v61, %v1061_v42  ;;  %v1059_v7 = vmul.f32 %v1374_v48, %v1035_v43 }
 0x1a1   : > { %1090 = vst.msk [vmem:[%s1979_s26 + $0x10] sm:$0xf] %vm286_vm0, %v1081_v25  ;;  %v1084_v45 = vpack.c.bf16 %v1076_v5, %v1076_v5  ;;  %v1074_v39 = vadd.f32 %v1375_v61, %v1059_v7 }
 0x1a3   : > { %1093 = vst.msk [vmem:[%s1979_s26 + $0x1c] sm:$0xf] %vm286_vm0, %v1084_v45  ;;  %v1082_v52 = vpack.c.bf16 %v1074_v39, %v1074_v39 }
 0x1a5   : > { %1091 = vst.msk [vmem:[%s1979_s26 + $0x14] sm:$0xf] %vm286_vm0, %v1082_v52 }
 0x1a6 PF: > { %s14_s17 = sadd.s32 1, %s1489_s17   ;;  %s2015_s15 = smov %s1485_s16 }
 0x1a7   : > { %p11_p5 = scmp.ge.s32.totalorder %s14_s17, 4   ;;  %s2016_s16 = smov %s2018_s18 }
 0x1a9   :  { %13 = sbr.rel (!%p11_p5) target bundleno = 2 (0x2), region = 83 }

// kernel: basic_rfb_apply.11
= control target key start
LH: loop header
LB: loop body
LE: loop exit
PB: predicated region body
PF: predicated region fallthrough
CT: control target
= control target key end

     0   :  { %s1814_s15 = smov 0   ;;  %s1816_s16 = smov 0   ;;  %s2422_s0 = inlined_call_operand.vmem [shape: bf16[2,8,8,8], index: 0, kind: input, shape index: {}]   ;;  %s2423_s1 = inlined_call_operand.vmem [shape: bf16[72,8], index: 1, kind: input, shape index: {}]   ;;  %s2424_s2 = inlined_call_operand.vmem [shape: f32[1,8], index: 2, kind: input, shape index: {}]   ;;  %s2425_s3 = inlined_call_operand.vmem [shape: f32[1,8], index: 3, kind: input, shape index: {}]   ;;  %s2426_s4 = inlined_call_operand.vmem [shape: bf16[2,8,8,8], index: 4, kind: output, shape index: {}]  }
   0x1   :  { %s1818_s17 = smov 0  }
   0x2 LB: > { %s29_s18 = sadd.s32 1, %s1774_s16  ;;  %p1556_p0 = scmp.ge.s32.totalorder %s1778_s17, 1  ;;  %s1778_s17 = sphi %s1818_s17, %s14_s17   ;;  %s1774_s16 = sphi %s1816_s16, %s2444_s16   ;;  %s1770_s15 = sphi %s1814_s15, %s2443_s15  }
   0x3   : > { %p31_p1 = scmp.ge.s32.totalorder %s29_s18, 2  ;;  %p210_p2 = scmp.lt.s32.totalorder %s1778_s17, 3 }
   0x5   : > { %s2446_s18 = smov (%p31_p1, %s29_s18), 0  ;;  %p211_p3 = pnand %p1556_p0, %p210_p2 }
   0x6   : > { %p253_p4 = scmp.lt.s32.totalorder (!%p211_p3), %s1770_s15, 1  ;;  %s1781_s23 = smov (!%p211_p3), 24  }
   0x7   : > { %214 = sbr.rel (%p211_p3) target bundleno = 450 (0x1c2), region = 36  ;;  %s1782_s24 = smov (!%p211_p3), 16  }
   0x8   : > { %s1783_s25 = smov (!%p211_p3), 40   ;;  %s1784_s26 = smov (!%p211_p3), 8  }
   0x9   : > { %s1785_s27 = smov (!%p211_p3), 32   ;;  %s1786_s28 = smov (!%p211_p3), 48  }
   0xa   : > { %s1787_s29 = smov (!%p211_p3), 56   ;;  %s1788_s6 = smov (!%p211_p3), 64  }
   0xc   : > { %vm286_vm0 = vcmask 60416   ;;  %v1780_v0 = vmov 0   ;;  %vm288_vm1 = vcmask 57344   ;;  %s2448_s15 = smov (!%p253_p4, %s1770_s15), 1  ;;  %vm398_vm2 = vsmask.f32 7938 }
   0xd   : > { %298 = vst.msk [vmem:[#allocation2 + $0x28] sm:$0xf] %vm286_vm0, %v1780_v0  ;;  %300 = vst.msk [vmem:[#allocation2 + $0x30] sm:$0xf] %vm286_vm0, %v1780_v0  ;;  %s1666_s19 = sshll.u32 %s2448_s15, 5  ;;  %vm602_vm4 = vcmask 1042432  }
   0xe   : > { %287 = vst.msk [vmem:[#allocation2] sm:$0xf] %vm286_vm0, %v1780_v0  ;;  %290 = vst.msk [vmem:[#allocation2 + $0x8] sm:$0xf] %vm286_vm0, %v1780_v0  ;;  %s1861_s22 = scalar_lea.vmem %s2422_s0, %s1666_s19  ;;  %vm404_vm3 = vsmask.f32 256 }
   0xf   : > { %292 = vst.msk [vmem:[#allocation2 + $0x10] sm:$0xf] %vm286_vm0, %v1780_v0  ;;  %294 = vst.msk [vmem:[#allocation2 + $0x18] sm:$0xf] %vm286_vm0, %v1780_v0  ;;  %v312_v1 = vld [vmem:[%s1861_s22 + $0x10] sm:$0xf] }
  0x10   : > { %296 = vst.msk [vmem:[#allocation2 + $0x20] sm:$0xf] %vm286_vm0, %v1780_v0  ;;  %302 = vst.msk [vmem:[#allocation2 + $0x38] sm:$0xf] %vm286_vm0, %v1780_v0  ;;  %v313_v2 = vld [vmem:[%s1861_s22 + $0x14] sm:$0xf] }
  0x11   : > { %304 = vst.msk [vmem:[#allocation2 + $0x40] sm:$0xf] %vm286_vm0, %v1780_v0  ;;  %306 = vst.msk [vmem:[#allocation2 + $0x48] sm:$0xf] %vm286_vm0, %v1780_v0  ;;  %v308_v3 = vld [vmem:[%s1861_s22] sm:$0xf] }
  0x12   : > { %297 = vst.msk [vmem:[#allocation2 + $0x24] sm:$0x1] %vm288_vm1, %v1780_v0  ;;  %299 = vst.msk [vmem:[#allocation2 + $0x2c] sm:$0x1] %vm288_vm1, %v1780_v0  ;;  %v349_v4 = vshrl.u32 %v312_v1, 16  ;;  %v352_v5 = vshll.u32 %v312_v1, 16 }
  0x13   : > { %289 = vst.msk [vmem:[#allocation2 + $0x4] sm:$0x1] %vm288_vm1, %v1780_v0  ;;  %291 = vst.msk [vmem:[#allocation2 + $0xc] sm:$0x1] %vm288_vm1, %v1780_v0  ;;  %v357_v6 = vshrl.u32 %v313_v2, 16  ;;  %v360_v7 = vshll.u32 %v313_v2, 16 }
  0x14   : > { %293 = vst.msk [vmem:[#allocation2 + $0x14] sm:$0x1] %vm288_vm1, %v1780_v0  ;;  %295 = vst.msk [vmem:[#allocation2 + $0x1c] sm:$0x1] %vm288_vm1, %v1780_v0  ;;  %v309_v8 = vld [vmem:[%s1861_s22 + $0x4] sm:$0xf] }
  0x15   : > { %301 = vst.msk [vmem:[#allocation2 + $0x34] sm:$0x1] %vm288_vm1, %v1780_v0  ;;  %303 = vst.msk [vmem:[#allocation2 + $0x3c] sm:$0x1] %vm288_vm1, %v1780_v0  ;;  %v317_v9 = vshrl.u32 %v308_v3, 16  ;;  %v320_v10 = vshll.u32 %v308_v3, 16 }
  0x16   : > { %305 = vst.msk [vmem:[#allocation2 + $0x44] sm:$0x1] %vm288_vm1, %v1780_v0  ;;  %307 = vst.msk [vmem:[#allocation2 + $0x4c] sm:$0x1] %vm288_vm1, %v1780_v0  ;;  %v351_v11 = vrot.slane %v349_v4, 7  ;;  %v1867_v12 = vrot.slane %v357_v6, 7 }
  0x17   : > { %v427_v13 = vld [vmem:[#allocation2 + $0x28] sm:$0xf]  ;;  %v325_v14 = vshrl.u32 %v309_v8, 16  ;;  %vm603_vm5 = vcmask 1046532   ;;  %vm1871_vm6 = vmand %vm286_vm0, %vm398_vm2  ;;  %v433_v16 = vld [vmem:[#allocation2 + $0x30] sm:$0xf] }
  0x18   : > { %v319_v17 = vrot.slane %v317_v9, 7  ;;  %v328_v18 = vshll.u32 %v309_v8, 16  ;;  %v314_v19 = vld [vmem:[%s1861_s22 + $0x18] sm:$0xf]  ;;  %v354_v20 = vor.u32 %v352_v5, %v351_v11  ;;  %v355_v21 = vrot.slane %v351_v11, 4  ;;  %vm1893_vm7 = vmand %vm288_vm1, %vm404_vm3  ;;  %v1754_v58 = vld [vmem:[%s2423_s1 + $0x8] sm:$0xff]  }
  0x19   : > { %v362_v22 = vor.u32 %v360_v7, %v1867_v12  ;;  %v363_v23 = vrot.slane %v1867_v12, 4  ;;  %v400_v24 = vld [vmem:[#allocation2 + $0x8] sm:$0xf]  ;;  %v315_v25 = vld [vmem:[%s1861_s22 + $0x1c] sm:$0xf]  ;;  %v1879_v28 = vrot.slane %v325_v14, 7  ;;  %vm1908_vm8 = vmor %vm602_vm4, %vm603_vm5 }
  0x1a   : > { %v322_v26 = vor.u32 %v320_v10, %v319_v17  ;;  %v323_v27 = vrot.slane %v319_v17, 4  ;;  %v409_v29 = vld [vmem:[#allocation2 + $0x10] sm:$0xf]  ;;  %v365_v30 = vshrl.u32 %v314_v19, 16  ;;  %v428_v31 = vsel %vm1871_vm6, %v354_v20, %v427_v13  ;;  %v310_v35 = vld [vmem:[%s1861_s22 + $0x8] sm:$0xf] }
  0x1b   : > { %v434_v32 = vsel %vm1871_vm6, %v362_v22, %v433_v16  ;;  %v368_v33 = vshll.u32 %v314_v19, 16  ;;  %v373_v34 = vshrl.u32 %v315_v25, 16  ;;  %v311_v36 = vld [vmem:[%s1861_s22 + $0xc] sm:$0xf]  ;;  %429 = vst [vmem:[#allocation2 + $0x28] sm:$0xf] %v428_v31  ;;  %v330_v37 = vor.u32 %v328_v18, %v1879_v28 }
  0x1c   : > { %435 = vst [vmem:[#allocation2 + $0x30] sm:$0xf] %v434_v32  ;;  %v331_v38 = vrot.slane %v1879_v28, 4  ;;  %v401_v39 = vsel %vm1871_vm6, %v322_v26, %v400_v24  ;;  %v367_v40 = vrot.slane %v365_v30, 7  ;;  %v439_v41 = vld [vmem:[#allocation2 + $0x38] sm:$0xf] }
  0x1d   : > { %402 = vst [vmem:[#allocation2 + $0x8] sm:$0xf] %v401_v39  ;;  %v1897_v43 = vrot.slane %v373_v34, 7  ;;  %v376_v44 = vshll.u32 %v315_v25, 16  ;;  %v445_v45 = vld [vmem:[#allocation2 + $0x40] sm:$0xf]  ;;  %v410_v48 = vsel %vm1871_vm6, %v330_v37, %v409_v29 }
  0x1e   : > { %v333_v46 = vshrl.u32 %v310_v35, 16  ;;  %v336_v47 = vshll.u32 %v310_v35, 16  ;;  %v370_v49 = vor.u32 %v368_v33, %v367_v40  ;;  %v341_v50 = vshrl.u32 %v311_v36, 16  ;;  %v415_v52 = vld [vmem:[#allocation2 + $0x18] sm:$0xf] }
  0x1f   : > { %v344_v51 = vshll.u32 %v311_v36, 16  ;;  %v430_v53 = vld [vmem:[#allocation2 + $0x2c] sm:$0x1]  ;;  %411 = vst [vmem:[#allocation2 + $0x10] sm:$0xf] %v410_v48  ;;  %v378_v55 = vor.u32 %v376_v44, %v1897_v43  ;;  %v371_v5 = vrot.slane %v367_v40, 4 }
  0x20   : > { %v406_v54 = vld [vmem:[#allocation2 + $0xc] sm:$0x1]  ;;  %v1902_v56 = vrot.slane %v333_v46, 7  ;;  %v431_v57 = vsel %vm1893_vm7, %v355_v21, %v430_v53  ;;  %v1914_v60 = vld [vmem:[#allocation2] sm:$0xf]  ;;  %v440_v62 = vsel %vm1871_vm6, %v370_v49, %v439_v41  ;;  %v343_v63 = vrot.slane %v341_v50, 7 }
  0x21   : > { %v407_v59 = vsel %vm1893_vm7, %v323_v27, %v406_v54  ;;  %v1916_v61 = vld [vmem:[#allocation2 + $0x4] sm:$0x1]  ;;  %432 = vst [vmem:[#allocation2 + $0x2c] sm:$0x1] %v431_v57  ;;  %v1561_v0 = vrot.slane %v1914_v60, 9  ;;  %v446_v3 = vsel %vm1871_vm6, %v378_v55, %v445_v45  ;;  %vm1290_vm12 = vcmask 1043456  }
  0x22   : > { %408 = vst [vmem:[#allocation2 + $0xc] sm:$0x1] %v407_v59  ;;  %v607_v1 = vrot.slane %v1916_v61, 5  ;;  %v436_v2 = vld [vmem:[#allocation2 + $0x34] sm:$0x1]  ;;  %v338_v4 = vor.u32 %v336_v47, %v1902_v56  ;;  %v346_v9 = vor.u32 %v344_v51, %v343_v63  ;;  %v347_v11 = vrot.slane %v343_v63, 4 }
  0x23   : > { %441 = vst [vmem:[#allocation2 + $0x38] sm:$0xf] %v440_v62  ;;  %v437_v6 = vsel %vm1893_vm7, %v363_v23, %v436_v2  ;;  %v442_v7 = vld [vmem:[#allocation2 + $0x3c] sm:$0x1]  ;;  %v412_v8 = vld [vmem:[#allocation2 + $0x14] sm:$0x1] }
  0x24   : > { %447 = vst [vmem:[#allocation2 + $0x40] sm:$0xf] %v446_v3  ;;  %v421_v10 = vld [vmem:[#allocation2 + $0x20] sm:$0xf]  ;;  %v424_v12 = vld [vmem:[#allocation2 + $0x24] sm:$0x1]  ;;  %v1929_v13 = vsel %vm1908_vm8, %v1561_v0, %v607_v1  ;;  %v416_v17 = vsel %vm1871_vm6, %v338_v4, %v415_v52  ;;  %v443_v18 = vsel %vm1893_vm7, %v371_v5, %v442_v7  ;;  %v413_v20 = vsel %vm1893_vm7, %v331_v38, %v412_v8 }
  0x25   : > { %438 = vst [vmem:[#allocation2 + $0x34] sm:$0x1] %v437_v6  ;;  %v1931_v14 = vld [vmem:[#allocation2 + $0x28] sm:$0xf]  ;;  %v1933_v16 = vld [vmem:[#allocation2 + $0x30] sm:$0xf]  ;;  %v422_v29 = vsel %vm1871_vm6, %v346_v9, %v421_v10  ;;  %v425_v35 = vsel %vm1893_vm7, %v347_v11, %v424_v12 }
  0x26   : > { %v339_v19 = vrot.slane %v1902_v56, 4  ;;  %v728_v21 = vshrl.u32 %v1933_v16, 16  ;;  %v731_v22 = vshll.u32 %v1933_v16, 16  ;;  %v1631_v23 = vcombine.low %v1931_v14, %v1933_v16  ;;  %v1947_v25 = vld [vmem:[#allocation2 + $0x8] sm:$0xf] }
  0x27   : > { %v714_v24 = vshrl.u32 %v1931_v14, 16  ;;  %417 = vst [vmem:[#allocation2 + $0x18] sm:$0xf] %v416_v17  ;;  %444 = vst [vmem:[#allocation2 + $0x3c] sm:$0x1] %v443_v18  ;;  %v717_v26 = vshll.u32 %v1931_v14, 16 }
  0x28   : > { %414 = vst [vmem:[#allocation2 + $0x14] sm:$0x1] %v413_v20  ;;  %v658_v27 = vshrl.u32 %v1947_v25, 16  ;;  %v661_v28 = vshll.u32 %v1947_v25, 16  ;;  %v1954_v30 = vld [vmem:[#allocation2 + $0x28] sm:$0xf]  ;;  %1065 = vrot.lane.b32.xlu1 %v1631_v23, %s1781_s23 }
  0x29   : > { %v1956_v31 = vrot.slane %v728_v21, 4  ;;  %v1958_v32 = vrot.slane %v731_v22, 5  ;;  %v1961_v33 = vrot.slane %v714_v24, 4  ;;  %v1963_v34 = vld [vmem:[#allocation2 + $0x10] sm:$0xf]  ;;  %v1969_v37 = vrot.slane %v717_v26, 5 }
  0x2a   : > { %423 = vst [vmem:[#allocation2 + $0x20] sm:$0xf] %v422_v29  ;;  %v1967_v36 = vld [vmem:[#allocation2 + $0x8] sm:$0xf]  ;;  %v418_v15 = vld [vmem:[#allocation2 + $0x1c] sm:$0x1]  ;;  %v1629_v40 = vcombine.low %v1947_v25, %v1963_v34 }
  0x2b   : > { %v672_v38 = vshrl.u32 %v1963_v34, 16  ;;  %v675_v39 = vshll.u32 %v1963_v34, 16  ;;  %426 = vst [vmem:[#allocation2 + $0x24] sm:$0x1] %v425_v35  ;;  %v1975_v41 = vld [vmem:[#allocation2 + $0x2c] sm:$0x1]  ;;  %v419_v3 = vsel %vm1893_vm7, %v339_v19, %v418_v15  ;;  %v720_v4 = vor.u32 %v1969_v37, %v1961_v33 }
  0x2c   : > { %v1977_v44 = vrot.slane %v658_v27, 4  ;;  %v1979_v45 = vrot.slane %v661_v28, 5  ;;  %v1981_v46 = vld [vmem:[#allocation2 + $0x38] sm:$0xf]  ;;  %v1566_v47 = vrot.slane %v1954_v30, 9  ;;  %v627_v48 = vrot.slane %v1975_v41, 5  ;;  %1061 = vrot.lane.b32.xlu0 %v1629_v40, %s1781_s23 }
  0x2d   : > { %v1985_v49 = vrot.slane %v672_v38, 4  ;;  %v1987_v50 = vrot.slane %v675_v39, 5  ;;  %v1990_v51 = vld [vmem:[#allocation2 + $0x40] sm:$0xf]  ;;  %v742_v52 = vshrl.u32 %v1981_v46, 16  ;;  %v1562_v0 = vrot.slane %v1967_v36, 9 }
  0x2e   : > { %v1632_v56 = vcombine.low %v1981_v46, %v1990_v51  ;;  %v628_v57 = vsel %vm1908_vm8, %v1566_v47, %v627_v48  ;;  %v2000_v59 = vld [vmem:[#allocation2 + $0xc] sm:$0x1]  ;;  %v2002_v62 = vld [vmem:[#allocation2 + $0x30] sm:$0xf]  ;;  %v2004_v63 = vld [vmem:[#allocation2 + $0x18] sm:$0xf]  ;;  %v734_v9 = vor.u32 %v1958_v32, %v1956_v31  ;;  %v664_v10 = vor.u32 %v1979_v45, %v1977_v44 }
  0x2f   : > { %v611_v1 = vrot.slane %v2000_v59, 5  ;;  %v2008_v2 = vld [vmem:[#allocation2 + $0x34] sm:$0x1]  ;;  %v2017_v7 = vld [vmem:[#allocation2 + $0x38] sm:$0xf]  ;;  %v1567_v18 = vrot.slane %v2002_v62, 9  ;;  %v678_v20 = vor.u32 %v1987_v50, %v1985_v49 }
  0x30   : > { %1067 = vrot.lane.b32.xlu1 %v1632_v56, %s1781_s23  ;;  %v2019_v8 = vld [vmem:[#allocation2 + $0x3c] sm:$0x1]  ;;  %420 = vst [vmem:[#allocation2 + $0x1c] sm:$0x1] %v419_v3  ;;  %v631_v19 = vrot.slane %v2008_v2, 5  ;;  %v1568_v35 = vrot.slane %v2017_v7, 9 }
  0x31   : > { %v2025_v11 = vld [vmem:[#allocation2 + $0x20] sm:$0xf]  ;;  %v612_v17 = vsel %vm1908_vm8, %v1562_v0, %v611_v1  ;;  %v2047_v15 = vld [vmem:[#allocation2 + $0x10] sm:$0xf]  ;;  %v460_v38 = vld [vmem:[#allocation2 + $0x14] sm:$0x1] }
  0x32   : > { %v2027_v12 = vld [vmem:[#allocation2 + $0x20] sm:$0xf]  ;;  %v1630_v23 = vcombine.low %v2004_v63, %v2025_v11  ;;  %v2039_v24 = vld [vmem:[#allocation2 + $0x24] sm:$0x1]  ;;  %v1625_v28 = vcombine.low %v1929_v13, %v612_v17  ;;  %v632_v29 = vsel %vm1908_vm8, %v1567_v18, %v631_v19  ;;  %vm471_vm9 = vsmask.f32 3328 }
  0x33   : > { %v1565_v26 = vrot.slane %v2027_v12, 9  ;;  %v623_v27 = vrot.slane %v2039_v24, 5  ;;  %vm472_vm10 = vsmask.f32 7440  ;;  %v635_v39 = vrot.slane %v2019_v8, 5 }
  0x34   : > { %1063 = vrot.lane.b32.xlu0 %v1630_v23, %s1781_s23  ;;  %v2051_v40 = vld [vmem:[#allocation2 + $0x18] sm:$0xf]  ;;  %v1563_v47 = vrot.slane %v2047_v15, 9  ;;  %v615_v48 = vrot.slane %v460_v38, 5  ;;  %v1589_v13 = vrot.slane %v1931_v14, 9  ;;  %v1590_v17 = vrot.slane %v1933_v16, 9  ;;  %vm2098_vm11 = vmor %vm471_vm9, %vm472_vm10 }
  0x35   : > { %v624_v56 = vsel %vm1908_vm8, %v1565_v26, %v623_v27  ;;  %v1564_v0 = vrot.slane %v2051_v40, 9  ;;  %v2058_v1 = vld [vmem:[#allocation2 + $0x2c] sm:$0x1]  ;;  %v2060_v3 = vld [vmem:[#allocation2 + $0x34] sm:$0x1]  ;;  %v636_v23 = vsel %vm1908_vm8, %v1568_v35, %v635_v39  ;;  %v1585_v5 = vrot.slane %v1947_v25, 9 }
  0x36   : > { %v1627_v19 = vcombine.low %v624_v56, %v628_v57  ;;  %v616_v14 = vsel %vm1908_vm8, %v1563_v47, %v615_v48  ;;  %v803_v26 = vrot.slane %v2058_v1, 5  ;;  %v2070_v27 = vld [vmem:[#allocation2 + $0xc] sm:$0x1]  ;;  %v2072_v22 = vld [vmem:[#allocation2 + $0x14] sm:$0x1]  ;;  %v1628_v21 = vcombine.low %v632_v29, %v636_v23 }
  0x37   : > { %v462_v6 = vld [vmem:[#allocation2 + $0x1c] sm:$0x1]  ;;  %v807_v16 = vrot.slane %v2060_v3, 5  ;;  %v787_v57 = vrot.slane %v2070_v27, 5  ;;  %v1586_v47 = vrot.slane %v1963_v34, 9  ;;  %v791_v48 = vrot.slane %v2072_v22, 5 }
  0x38   : > { %1045 = vrot.lane.b32.xlu1 %v1627_v19, %s1782_s24  ;;  %1041 = vrot.lane.b32.xlu0 %v1625_v28, %s1782_s24  ;;  %v619_v35 = vrot.slane %v462_v6, 5  ;;  %v804_v39 = vsel %vm1908_vm8, %v1589_v13, %v803_v26  ;;  %v503_v25 = vshrl.u32 %v2047_v15, 16  ;;  %v506_v23 = vshll.u32 %v2047_v15, 16  ;;  %v448_v32 = vld [vmem:[#allocation2 + $0x44] sm:$0x1] }
  0x39   : > { %v808_v29 = vsel %vm1908_vm8, %v1590_v17, %v807_v16  ;;  %v788_v56 = vsel %vm1908_vm8, %v1585_v5, %v787_v57  ;;  %v792_v13 = vsel %vm1908_vm8, %v1586_v47, %v791_v48  ;;  %v512_v34 = vshll.u32 %v460_v38, 16 }
  0x3a   : > { %v620_v28 = vsel %vm1908_vm8, %v1564_v0, %v619_v35  ;;  %v1639_v19 = vcombine.low %v804_v39, %v808_v29  ;;  %v1637_v18 = vcombine.low %v788_v56, %v792_v13  ;;  %v505_v55 = vrot.slane %v503_v25, 4 }
  0x3b   : > { %v1626_v26 = vcombine.low %v616_v14, %v620_v28  ;;  %v508_v54 = vrot.slane %v506_v23, 5  ;;  %v514_v17 = vrot.slane %v512_v34, 5  ;;  %v517_v5 = vshrl.u32 %v2051_v40, 16 }
  0x3c   : > { %1047 = vrot.lane.b32.xlu1 %v1628_v21, %s1782_s24  ;;  %v520_v16 = vshll.u32 %v2051_v40, 16  ;;  %v526_v57 = vshll.u32 %v462_v6, 16  ;;  %v475_v0 = vshrl.u32 %v1914_v60, 16  ;;  %v478_v35 = vshll.u32 %v1914_v60, 16 }
  0x3d   : > { %1043 = vrot.lane.b32.xlu0 %v1626_v26, %s1782_s24  ;;  %v509_v53 = vor.u32 %v508_v54, %v505_v55  ;;  %v484_v39 = vshll.u32 %v1916_v61, 16  ;;  %v519_v21 = vrot.slane %v517_v5, 4  ;;  %v489_v48 = vshrl.u32 %v1967_v36, 16 }
  0x3e   : > { %v522_v14 = vrot.slane %v520_v16, 5  ;;  %v528_v47 = vrot.slane %v526_v57, 5  ;;  %v477_v29 = vrot.slane %v475_v0, 4  ;;  %v480_v54 = vrot.slane %v478_v35, 5 }
  0x3f   : > { %v510_v6 = vrot.slane %v509_v53, 4  ;;  %v486_v55 = vrot.slane %v484_v39, 5  ;;  %v491_v61 = vrot.slane %v489_v48, 4  ;;  %v492_v25 = vshll.u32 %v1967_v36, 16 }
  0x40   : > { %1105 = vrot.lane.b32.xlu1 %v1639_v19, %s1783_s25  ;;  %v523_v56 = vor.u32 %v522_v14, %v519_v21  ;;  %v498_v23 = vshll.u32 %v2000_v59, 16  ;;  %v481_v13 = vor.u32 %v480_v54, %v477_v29  ;;  %v559_v53 = vshrl.u32 %v2002_v62, 16 }
  0x41   : > { %1101 = vrot.lane.b32.xlu0 %v1637_v18, %s1783_s25  ;;  %v515_v28 = vsel %vm2098_vm11, %v510_v6, %v514_v17  ;;  %v562_v34 = vshll.u32 %v2002_v62, 16  ;;  %v494_v5 = vrot.slane %v492_v25, 5  ;;  %v568_v19 = vshll.u32 %v2008_v2, 16 }
  0x42   : > { %v524_v26 = vrot.slane %v523_v56, 4  ;;  %v500_v16 = vrot.slane %v498_v23, 5  ;;  %v482_v57 = vrot.slane %v481_v13, 4  ;;  %v561_v0 = vrot.slane %v559_v53, 4 }
  0x43   : > { %v564_v35 = vrot.slane %v562_v34, 5  ;;  %v573_v59 = vshrl.u32 %v2017_v7, 16  ;;  %v495_v39 = vor.u32 %v494_v5, %v491_v61  ;;  %v570_v17 = vrot.slane %v568_v19, 5 }
  0x44   : > { %v529_v18 = vsel %vm2098_vm11, %v524_v26, %v528_v47  ;;  %v576_v21 = vshll.u32 %v2017_v7, 16  ;;  %v487_v48 = vsel %vm2098_vm11, %v482_v57, %v486_v55  ;;  %v582_v56 = vshll.u32 %v2019_v8, 16 }
  0x45   : > { %v1622_v14 = vcombine.low %v515_v28, %v529_v18  ;;  %v565_v6 = vor.u32 %v564_v35, %v561_v0  ;;  %v575_v29 = vrot.slane %v573_v59, 4  ;;  %v496_v54 = vrot.slane %v495_v39, 4 }
  0x46   : > { %v578_v2 = vrot.slane %v576_v21, 5  ;;  %v531_v25 = vshrl.u32 %v2027_v12, 16  ;;  %v534_v61 = vshll.u32 %v2027_v12, 16  ;;  %v540_v23 = vshll.u32 %v2039_v24, 16 }
  0x47   : > { %1023 = vrot.lane.b32.xlu1 %v1622_v14, %s1784_s26  ;;  %v566_v47 = vrot.slane %v565_v6, 4  ;;  %v545_v28 = vshrl.u32 %v1954_v30, 16  ;;  %v501_v55 = vsel %vm2098_vm11, %v496_v54, %v500_v16  ;;  %v584_v53 = vrot.slane %v582_v56, 5 }
  0x48   : > { %v579_v13 = vor.u32 %v578_v2, %v575_v29  ;;  %v533_v34 = vrot.slane %v531_v25, 4  ;;  %v1621_v26 = vcombine.low %v487_v48, %v501_v55  ;;  %v536_v5 = vrot.slane %v534_v61, 5 }
  0x49   : > { %v571_v8 = vsel %vm2098_vm11, %v566_v47, %v570_v17  ;;  %v542_v19 = vrot.slane %v540_v23, 5  ;;  %v547_v0 = vrot.slane %v545_v28, 4  ;;  %v548_v35 = vshll.u32 %v1954_v30, 16 }
  0x4a   : > { %v580_v57 = vrot.slane %v579_v13, 4  ;;  %v554_v24 = vshll.u32 %v1975_v41, 16  ;;  %1021 = vrot.lane.b32.xlu0 %v1621_v26, %s1784_s26  ;;  %v537_v59 = vor.u32 %v536_v5, %v533_v34  ;;  %v721_v16 = vrot.slane %v720_v4, 4  ;;  %v1576_v26 = vld [vmem:[#allocation2 + $0x24] sm:$0x1] }
  0x4b   : > { %v723_v18 = vshll.u32 %v2058_v1, 16  ;;  %v735_v39 = vrot.slane %v734_v9, 4  ;;  %v550_v21 = vrot.slane %v548_v35, 5  ;;  %v737_v41 = vshll.u32 %v2060_v3, 16 }
  0x4c   : > { %v585_v17 = vsel %vm2098_vm11, %v580_v57, %v584_v53  ;;  %v556_v14 = vrot.slane %v554_v24, 5  ;;  %v538_v6 = vrot.slane %v537_v59, 4  ;;  %v665_v33 = vrot.slane %v664_v10, 4  ;;  %v1582_v10 = vld [vmem:[#allocation2 + $0x3c] sm:$0x1] }
  0x4d   : > { %v1624_v48 = vcombine.low %v571_v8, %v585_v17  ;;  %v725_v29 = vrot.slane %v723_v18, 5  ;;  %v551_v37 = vor.u32 %v550_v21, %v547_v0  ;;  %v739_v4 = vrot.slane %v737_v41, 5 }
  0x4e   : > { %v667_v1 = vshll.u32 %v2070_v27, 16  ;;  %v679_v31 = vrot.slane %v678_v20, 4  ;;  %v543_v9 = vsel %vm2098_vm11, %v538_v6, %v542_v19  ;;  %v681_v44 = vshll.u32 %v2072_v22, 16 }
  0x4f   : > { %1027 = vrot.lane.b32.xlu1 %v1624_v48, %s1784_s26  ;;  %v726_v3 = vsel %vm2098_vm11, %v721_v16, %v725_v29  ;;  %v379_v45 = vrot.slane %v1897_v43, 4  ;;  %v552_v54 = vrot.slane %v551_v37, 4  ;;  %v740_v27 = vsel %vm2098_vm11, %v735_v39, %v739_v4  ;;  %v2186_v4 = vld [vmem:[#allocation2 + $0x30] sm:$0xf] }
  0x50   : > { %v669_v49 = vrot.slane %v667_v1, 5  ;;  %v744_v50 = vrot.slane %v742_v52, 4  ;;  %v1635_v20 = vcombine.low %v726_v3, %v740_v27  ;;  %v683_v2 = vrot.slane %v681_v44, 5  ;;  %v1574_v52 = vld [vmem:[#allocation2 + $0x1c] sm:$0x1] }
  0x51   : > { %v449_v56 = vsel %vm1893_vm7, %v379_v45, %v448_v32  ;;  %v2435_v25 = vshll.u32 %v1981_v46, 16  ;;  %v557_v43 = vsel %vm2098_vm11, %v552_v54, %v556_v14  ;;  %v751_v61 = vshll.u32 %v1582_v10, 16  ;;  %v2189_v3 = vld [vmem:[#allocation2 + $0x38] sm:$0xf] }
  0x52   : > { %v670_v22 = vsel %vm2098_vm11, %v665_v33, %v669_v49  ;;  %450 = vst [vmem:[#allocation2 + $0x44] sm:$0x1] %v449_v56  ;;  %v2436_v23 = vshrl.u32 %v1990_v51, 16  ;;  %v1623_v55 = vcombine.low %v543_v9, %v557_v43  ;;  %v684_v42 = vsel %vm2098_vm11, %v679_v31, %v683_v2 }
  0x53   : > { %v747_v47 = vrot.slane %v2435_v25, 5  ;;  %1085 = vrot.lane.b32.xlu1 %v1635_v20, %s1785_s27  ;;  %v2437_v53 = vshll.u32 %v1990_v51, 16  ;;  %v1633_v8 = vcombine.low %v670_v22, %v684_v42  ;;  %v753_v5 = vrot.slane %v751_v61, 5  ;;  %v2209_v61 = vld [vmem:[#allocation2 + $0x18] sm:$0xf] }
  0x54   : > { %v758_v28 = vrot.slane %v2436_v23, 4  ;;  %v2438_v19 = vshrl.u32 %v2004_v63, 16  ;;  %v2439_v0 = vshll.u32 %v2004_v63, 16  ;;  %1025 = vrot.lane.b32.xlu0 %v1623_v55, %s1784_s26  ;;  %v695_v16 = vshll.u32 %v1574_v52, 16  ;;  %v2214_v42 = vld [vmem:[#allocation2 + $0x40] sm:$0xf]  ;;  %s2395_s26 = scalar_lea.vmem %s2426_s4, %s1666_s19 }
  0x55   : > { %v748_v13 = vor.u32 %v747_v47, %v744_v50  ;;  %v761_v34 = vrot.slane %v2437_v53, 5  ;;  %v2440_v18 = vshrl.u32 %v2025_v11, 16  ;;  %v2441_v21 = vshll.u32 %v2025_v11, 16  ;;  %v2202_v47 = vld [vmem:[#allocation2 + $0x10] sm:$0xf] }
  0x56   : > { %v688_v57 = vrot.slane %v2438_v19, 4  ;;  %v691_v35 = vrot.slane %v2439_v0, 5  ;;  %v709_v41 = vshll.u32 %v1576_v26, 16  ;;  %v1591_v48 = vrot.slane %v1981_v46, 9  ;;  %v2225_v19 = vld [vmem:[#allocation2 + $0x28] sm:$0xf] }
  0x57   : > { %v749_v24 = vrot.slane %v748_v13, 4  ;;  %v762_v59 = vor.u32 %v761_v34, %v758_v28  ;;  %v702_v39 = vrot.slane %v2440_v18, 4  ;;  %v705_v14 = vrot.slane %v2441_v21, 5  ;;  %v2216_v13 = vld [vmem:[#allocation2 + $0x48] sm:$0xf] }
  0x58   : > { %v692_v17 = vor.u32 %v691_v35, %v688_v57  ;;  %v697_v33 = vrot.slane %v695_v16, 5  ;;  %v811_v37 = vrot.slane %v1582_v10, 5  ;;  %v711_v32 = vrot.slane %v709_v41, 5  ;;  %1081 = vrot.lane.b32.xlu0 %v1633_v8, %s1785_s27  ;;  %v2238_v21 = vld [vmem:[#allocation2 + $0x3c] sm:$0x1] }
  0x59   : > { %v754_v6 = vsel %vm2098_vm11, %v749_v24, %v753_v5  ;;  %v763_v29 = vrot.slane %v762_v59, 4  ;;  %v706_v31 = vor.u32 %v705_v14, %v702_v39  ;;  %v1592_v9 = vrot.slane %v1990_v51, 9  ;;  %v1584_v44 = vld [vmem:[#allocation2 + $0x44] sm:$0x1]  ;;  %v2223_v5 = vld [vmem:[#allocation2 + $0x20] sm:$0xf] }
  0x5a   : > { %v693_v1 = vrot.slane %v692_v17, 4  ;;  %v812_v46 = vsel %vm1908_vm8, %v1591_v48, %v811_v37  ;;  %v1587_v45 = vrot.slane %v2004_v63, 9  ;;  %v795_v54 = vrot.slane %v1574_v52, 5  ;;  %v2231_v59 = vld [vmem:[#allocation2 + $0x34] sm:$0x1] }
  0x5b   : > { %v1588_v10 = vrot.slane %v2025_v11, 9  ;;  %v765_v27 = vshll.u32 %v1584_v44, 16  ;;  %v707_v50 = vrot.slane %v706_v31, 4  ;;  %v815_v20 = vrot.slane %v1584_v44, 5 }
  0x5c   : > { %v698_v49 = vsel %vm2098_vm11, %v693_v1, %v697_v33  ;;  %v796_v51 = vsel %vm1908_vm8, %v1587_v45, %v795_v54  ;;  %v799_v2 = vrot.slane %v1576_v26, 5  ;;  %v894_v56 = vshrl.u32 %v2186_v4, 16  ;;  %v2255_v54 = vld [vmem:[#allocation2 + $0x1c] sm:$0x1] }
  0x5d   : > { %v897_v25 = vshll.u32 %v2186_v4, 16  ;;  %v767_v63 = vrot.slane %v765_v27, 5  ;;  %v712_v11 = vsel %vm2098_vm11, %v707_v50, %v711_v32  ;;  %v816_v43 = vsel %vm1908_vm8, %v1592_v9, %v815_v20 }
  0x5e   : > { %v908_v22 = vshrl.u32 %v2189_v3, 16  ;;  %v1634_v23 = vcombine.low %v698_v49, %v712_v11  ;;  %v1640_v28 = vcombine.low %v812_v46, %v816_v43  ;;  %v800_v52 = vsel %vm1908_vm8, %v1588_v10, %v799_v2 }
  0x5f   : > { %v911_v55 = vshll.u32 %v2189_v3, 16  ;;  %v768_v53 = vsel %vm2098_vm11, %v763_v29, %v767_v63  ;;  %v1638_v34 = vcombine.low %v796_v51, %v800_v52  ;;  %v1643_v26 = vcombine.low %v2186_v4, %v2189_v3  ;;  %v2246_v29 = vld [vmem:[#allocation2 + $0x14] sm:$0x1] }
  0x60   : > { %v838_v8 = vshrl.u32 %v2202_v47, 16  ;;  %v1636_v57 = vcombine.low %v754_v6, %v768_v53  ;;  %1083 = vrot.lane.b32.xlu0 %v1634_v23, %s1785_s27  ;;  %v841_v0 = vshll.u32 %v2202_v47, 16  ;;  %v852_v35 = vshrl.u32 %v2209_v61, 16 }
  0x61   : > { %v855_v24 = vshll.u32 %v2209_v61, 16  ;;  %v1641_v16 = vcombine.low %v2202_v47, %v2209_v61  ;;  %v922_v18 = vshrl.u32 %v2214_v42, 16  ;;  %v925_v39 = vshll.u32 %v2214_v42, 16 }
  0x62   : > { %v936_v17 = vshrl.u32 %v2216_v13, 16  ;;  %1087 = vrot.lane.b32.xlu1 %v1636_v57, %s1785_s27  ;;  %v939_v14 = vshll.u32 %v2216_v13, 16  ;;  %v1644_v41 = vcombine.low %v2214_v42, %v2216_v13  ;;  %v866_v48 = vshrl.u32 %v2223_v5, 16 }
  0x63   : > { %v869_v6 = vshll.u32 %v2223_v5, 16  ;;  %v880_v33 = vshrl.u32 %v2225_v19, 16  ;;  %v883_v37 = vshll.u32 %v2225_v19, 16  ;;  %v1642_v1 = vcombine.low %v2223_v5, %v2225_v19 }
  0x64   : > { %v896_v31 = vrot.slane %v894_v56, 4  ;;  %1103 = vrot.lane.b32.xlu0 %v1638_v34, %s1783_s25  ;;  %v899_v32 = vrot.slane %v897_v25, 5  ;;  %v903_v9 = vshll.u32 %v2231_v59, 16  ;;  %v910_v44 = vrot.slane %v908_v22, 4  ;;  %v2259_v56 = vld [vmem:[#allocation2 + $0x44] sm:$0x1] }
  0x65   : > { %v913_v46 = vrot.slane %v911_v55, 5  ;;  %v917_v45 = vshll.u32 %v2238_v21, 16  ;;  %v840_v10 = vrot.slane %v838_v8, 4  ;;  %v843_v27 = vrot.slane %v841_v0, 5  ;;  %v2263_v34 = vld [vmem:[#allocation2 + $0x4c] sm:$0x1] }
  0x66   : > { %v847_v49 = vshll.u32 %v2246_v29, 16  ;;  %1107 = vrot.lane.b32.xlu1 %v1640_v28, %s1783_s25  ;;  %v900_v50 = vor.u32 %v899_v32, %v896_v31  ;;  %v905_v20 = vrot.slane %v903_v9, 5  ;;  %v854_v2 = vrot.slane %v852_v35, 4  ;;  %v2271_v31 = vld [vmem:[#allocation2 + $0x24] sm:$0x1] }
  0x67   : > { %v914_v51 = vor.u32 %v913_v46, %v910_v44  ;;  %v919_v25 = vrot.slane %v917_v45, 5  ;;  %v844_v63 = vor.u32 %v843_v27, %v840_v10  ;;  %v857_v43 = vrot.slane %v855_v24, 5 }
  0x68   : > { %v849_v11 = vrot.slane %v847_v49, 5  ;;  %1121 = vrot.lane.b32.xlu0 %v1641_v16, %s1786_s28  ;;  %v901_v22 = vrot.slane %v900_v50, 4  ;;  %v861_v52 = vshll.u32 %v2255_v54, 16  ;;  %v924_v55 = vrot.slane %v922_v18, 4 }
  0x69   : > { %v915_v23 = vrot.slane %v914_v51, 4  ;;  %v845_v53 = vrot.slane %v844_v63, 4  ;;  %v858_v28 = vor.u32 %v857_v43, %v854_v2  ;;  %v927_v8 = vrot.slane %v925_v39, 5 }
  0x6a   : > { %v931_v57 = vshll.u32 %v2259_v56, 16  ;;  %1125 = vrot.lane.b32.xlu1 %v1643_v26, %s1786_s28  ;;  %v906_v0 = vsel %vm2098_vm11, %v901_v22, %v905_v20  ;;  %v863_v24 = vrot.slane %v861_v52, 5  ;;  %v938_v16 = vrot.slane %v936_v17, 4  ;;  %v1600_v17 = vld [vmem:[#allocation2 + $0x2c] sm:$0x1] }
  0x6b   : > { %v920_v35 = vsel %vm2098_vm11, %v915_v23, %v919_v25  ;;  %v850_v32 = vsel %vm2098_vm11, %v845_v53, %v849_v11  ;;  %v859_v9 = vrot.slane %v858_v28, 4  ;;  %v928_v39 = vor.u32 %v927_v8, %v924_v55 }
  0x6c   : > { %v1647_v18 = vcombine.low %v906_v0, %v920_v35  ;;  %1123 = vrot.lane.b32.xlu0 %v1642_v1, %s1786_s28  ;;  %v933_v44 = vrot.slane %v931_v57, 5  ;;  %v941_v26 = vrot.slane %v939_v14, 5  ;;  %v945_v46 = vshll.u32 %v2263_v34, 16 }
  0x6d   : > { %v868_v45 = vrot.slane %v866_v48, 4  ;;  %v864_v10 = vsel %vm2098_vm11, %v859_v9, %v863_v24  ;;  %v929_v27 = vrot.slane %v928_v39, 4  ;;  %v871_v49 = vrot.slane %v869_v6, 5 }
  0x6e   : > { %v875_v50 = vshll.u32 %v2271_v31, 16  ;;  %1127 = vrot.lane.b32.xlu1 %v1644_v41, %s1786_s28  ;;  %v1645_v20 = vcombine.low %v850_v32, %v864_v10  ;;  %v942_v51 = vor.u32 %v941_v26, %v938_v16  ;;  %v947_v2 = vrot.slane %v945_v46, 5  ;;  %v1752_v46 = vld [vmem:[%s2423_s1 + $0x18] sm:$0xff]   ;;  %v1753_v10 = vld [vmem:[%s2423_s1 + $0x10] sm:$0xff]  }
  0x6f   : > { %v882_v25 = vrot.slane %v880_v33, 4  ;;  %v934_v14 = vsel %vm2098_vm11, %v929_v27, %v933_v44  ;;  %v872_v1 = vor.u32 %v871_v49, %v868_v45  ;;  %v885_v48 = vrot.slane %v883_v37, 5  ;;  %v1755_v27 = vld [vmem:[%s2423_s1] sm:$0xff]  }
  0x70   : > { %v877_v63 = vrot.slane %v875_v50, 5  ;;  %1141 = vrot.lane.b32.xlu0 %v1645_v20, %s1787_s29  ;;  %v943_v11 = vrot.slane %v942_v51, 4  ;;  %v889_v43 = vshll.u32 %v1600_v17, 16  ;;  %v1613_v6 = vrot.slane %v2186_v4, 9 }
  0x71   : > { %v983_v22 = vrot.slane %v2231_v59, 5  ;;  %v873_v41 = vrot.slane %v872_v1, 4  ;;  %v886_v23 = vor.u32 %v885_v48, %v882_v25  ;;  %v1614_v52 = vrot.slane %v2189_v3, 9 }
  0x72   : > { %v987_v33 = vrot.slane %v2238_v21, 5  ;;  %1145 = vrot.lane.b32.xlu1 %v1647_v18, %s1787_s29  ;;  %v948_v37 = vsel %vm2098_vm11, %v943_v11, %v947_v2  ;;  %v891_v55 = vrot.slane %v889_v43, 5  ;;  %v1609_v28 = vrot.slane %v2202_v47, 9 }
  0x73   : > { %v984_v53 = vsel %vm1908_vm8, %v1613_v6, %v983_v22  ;;  %v1648_v4 = vcombine.low %v934_v14, %v948_v37  ;;  %v878_v59 = vsel %vm2098_vm11, %v873_v41, %v877_v63  ;;  %v887_v8 = vrot.slane %v886_v23, 4 }
  0x74   : > { %v988_v3 = vsel %vm1908_vm8, %v1614_v52, %v987_v33  ;;  %v967_v57 = vrot.slane %v2246_v29, 5  ;;  %v1610_v0 = vrot.slane %v2209_v61, 9  ;;  %v971_v35 = vrot.slane %v2255_v54, 5 }
  0x75   : > { %v1651_v21 = vcombine.low %v984_v53, %v988_v3  ;;  %v892_v24 = vsel %vm2098_vm11, %v887_v8, %v891_v55  ;;  %v1615_v47 = vrot.slane %v2214_v42, 9  ;;  %v991_v16 = vrot.slane %v2259_v56, 5 }
  0x76   : > { %v1616_v18 = vrot.slane %v2216_v13, 9  ;;  %1147 = vrot.lane.b32.xlu1 %v1648_v4, %s1787_s29  ;;  %v1646_v32 = vcombine.low %v878_v59, %v892_v24  ;;  %v968_v9 = vsel %vm1908_vm8, %v1609_v28, %v967_v57  ;;  %v972_v61 = vsel %vm1908_vm8, %v1610_v0, %v971_v35 }
  0x77   : > { %v995_v29 = vrot.slane %v2263_v34, 5  ;;  %v992_v38 = vsel %vm1908_vm8, %v1615_v47, %v991_v16  ;;  %v1611_v42 = vrot.slane %v2223_v5, 9  ;;  %v975_v54 = vrot.slane %v2271_v31, 5  ;;  %v1751_v34 = vld [vmem:[%s2423_s1 + $0x20] ss:$0 sps:$4 sm:$0xff]  }
  0x78   : > { %1143 = vrot.lane.b32.xlu0 %v1646_v32, %s1787_s29  ;;  %v1649_v13 = vcombine.low %v968_v9, %v972_v61  ;;  %v1612_v39 = vrot.slane %v2225_v19, 9  ;;  %v979_v44 = vrot.slane %v1600_v17, 5  ;;  %1705 = vmatprep.subr.msk.bf16.mxu0 %vm1290_vm12, %v1751_v34  ;;  %v1292_v45 = vsel %vm1290_vm12, %v1751_v34, 0 }
  0x79   : > { %v996_v56 = vsel %vm1908_vm8, %v1616_v18, %v995_v29  ;;  %v976_v26 = vsel %vm1908_vm8, %v1611_v42, %v975_v54  ;;  %1706 = vmatprep.subr.msk.bf16.mxu1 %vm1290_vm12, %v1751_v34  ;;  %1678 = vmatpush3.bf16.msra.mxu0 %v1292_v45  ;;  %v1619_v55 = vcombine.low %v2027_v12, %v1954_v30  ;;  %vm1169_vm13 = vcmask 64512  }
  0x7a   : > { %1165 = vrot.lane.b32.xlu1 %v1651_v21, %s1788_s6  ;;  %v1652_v5 = vcombine.low %v992_v38, %v996_v56  ;;  %v980_v31 = vsel %vm1908_vm8, %v1612_v39, %v979_v44  ;;  %1700 = vmatpush3.bf16.msra.mxu1 %v1292_v45  ;;  %v1617_v4 = vcombine.low %v1914_v60, %v1967_v36  ;;  %vm1182_vm14 = vcmask 130048  }
  0x7b   : > { %v1650_v19 = vcombine.low %v976_v26, %v980_v31  ;;  %1679 = vmatprep.subr.bf16.mxu0 %v1752_v46  ;;  %1696 = vmatprep.subr.bf16.mxu1 %v1752_v46  ;;  %v1620_v0 = vcombine.low %v2002_v62, %v2017_v7  ;;  %vm1191_vm15 = vcmask 195584   ;;  %vm1200_vm1 = vcmask 261120  }
  0x7c   : > { %1161 = vrot.lane.b32.xlu0 %v1649_v13, %s1788_s6  ;;  %vm1209_vm2 = vcmask 326656   ;;  %v2442_v47 = vcombine.low %v2047_v15, %v2051_v40  ;;  %vm1218_vm3 = vcmask 392192   ;;  %vm1227_vm4 = vcmask 457728  }
  0x7d   : > { %1680 = vmatpush3.bf16.msra.mxu0 %v1752_v46  ;;  %vm1236_vm5 = vcmask 523264   ;;  %vm1281_vm6 = vcmask 588800  }
  0x7e   : > { %1167 = vrot.lane.b32.xlu1 %v1652_v5, %s1788_s6  ;;  %1701 = vmatpush3.bf16.msra.mxu1 %v1752_v46 }
  0x7f   : > { %1681 = vmatprep.subr.bf16.mxu0 %v1753_v10  ;;  %1697 = vmatprep.subr.bf16.mxu1 %v1753_v10 }
  0x80   : > { %1163 = vrot.lane.b32.xlu0 %v1650_v19, %s1788_s6 }
  0x81   : > { %1682 = vmatpush3.bf16.msra.mxu0 %v1753_v10 }
  0x82   : > { %1702 = vmatpush3.bf16.msra.mxu1 %v1753_v10  ;;  %1683 = vmatprep.subr.bf16.mxu0 %v1754_v58 }
  0x83   : > { %1698 = vmatprep.subr.bf16.mxu1 %v1754_v58 }
  0x85   : > { %1684 = vmatpush3.bf16.msra.mxu0 %v1754_v58 }
  0x86   : > { %1703 = vmatpush3.bf16.msra.mxu1 %v1754_v58  ;;  %1685 = vmatprep.subr.bf16.mxu0 %v1755_v27 }
  0x87   : > { %1699 = vmatprep.subr.bf16.mxu1 %v1755_v27 }
  0x89   : > { %1686 = vmatpush3.bf16.msra.mxu0 %v1755_v27 }
  0x8a   : > { %1704 = vmatpush3.bf16.msra.mxu1 %v1755_v27 }
  0x9a   : > { %v1066_v17 = vpop.permute.xlu1 %1065 }
  0x9e   : > { %v1062_v49 = vpop.permute.xlu0 %1061 }
  0xa2   : > { %v1068_v50 = vpop.permute.xlu1 %1067 }
  0xa6   : > { %v1064_v20 = vpop.permute.xlu0 %1063 }
  0xaa   : > { %v1046_v51 = vpop.permute.xlu1 %1045  ;;  %v1042_v2 = vpop.permute.xlu0 %1041 }
  0xae   : > { %v1048_v25 = vpop.permute.xlu1 %1047 }
  0xaf   : > { %v1044_v14 = vpop.permute.xlu0 %1043 }
  0xb2   : > { %v1106_v1 = vpop.permute.xlu1 %1105 }
  0xb3   : > { %v1102_v63 = vpop.permute.xlu0 %1101 }
  0xb9   : > { %v1024_v48 = vpop.permute.xlu1 %1023 }
  0xba   : > { %v1175_v16 = vsel %vm1169_vm13, %v2442_v47, %v1024_v48 }
  0xbb   : > { %v1186_v29 = vsel %vm1182_vm14, %v1175_v16, %v1044_v14 }
  0xbc   : > { %v1022_v11 = vpop.permute.xlu0 %1021  ;;  %v1195_v44 = vsel %vm1191_vm15, %v1186_v29, %v1064_v20 }
  0xbd   : > { %v1172_v57 = vsel %vm1169_vm13, %v1617_v4, %v1022_v11 }
  0xbe   : > { %v1184_v60 = vsel %vm1182_vm14, %v1172_v57, %v1042_v2  ;;  %v1663_v2 = vld [vmem:[%s2425_s3] ss:$0 sm:$0xff] }
  0xbf   : > { %v1193_v62 = vsel %vm1191_vm15, %v1184_v60, %v1062_v49 }
  0xc1   : > { %v1028_v43 = vpop.permute.xlu1 %1027 }
  0xc2   : > { %v1181_v36 = vsel %vm1169_vm13, %v1620_v0, %v1028_v43 }
  0xc3   : > { %v1190_v18 = vsel %vm1182_vm14, %v1181_v36, %v1048_v25 }
  0xc4   : > { %v1199_v15 = vsel %vm1191_vm15, %v1190_v18, %v1068_v50 }
  0xc5   : > { %v1086_v41 = vpop.permute.xlu1 %1085 }
  0xc6   : > { %v1026_v6 = vpop.permute.xlu0 %1025 }
  0xc7   : > { %v1178_v59 = vsel %vm1169_vm13, %v1619_v55, %v1026_v6 }
  0xc8   : > { %v1188_v21 = vsel %vm1182_vm14, %v1178_v59, %v1046_v51  ;;  %v1662_v51 = vld [vmem:[%s2424_s2] ss:$0 sm:$0xff] }
  0xc9   : > { %v1197_v30 = vsel %vm1191_vm15, %v1188_v21, %v1066_v17 }
  0xca   : > { %v1082_v22 = vpop.permute.xlu0 %1081  ;;  %v1206_v24 = vsel %vm1200_vm1, %v1197_v30, %v1086_v41 }
  0xcb   : > { %v1202_v32 = vsel %vm1200_vm1, %v1193_v62, %v1082_v22  ;;  %v1215_v9 = vsel %vm1209_vm2, %v1206_v24, %v1106_v1 }
  0xcc   : > { %v1211_v40 = vsel %vm1209_vm2, %v1202_v32, %v1102_v63 }
  0xd2   : > { %v1084_v23 = vpop.permute.xlu0 %1083 }
  0xd3   : > { %v1204_v31 = vsel %vm1200_vm1, %v1195_v44, %v1084_v23 }
  0xd4   : > { %v1088_v52 = vpop.permute.xlu1 %1087 }
  0xd5   : > { %v1208_v13 = vsel %vm1200_vm1, %v1199_v15, %v1088_v52 }
  0xd6   : > { %v1104_v33 = vpop.permute.xlu0 %1103 }
  0xd7   : > { %v1213_v45 = vsel %vm1209_vm2, %v1204_v31, %v1104_v33 }
  0xd8   : > { %v1108_v37 = vpop.permute.xlu1 %1107 }
  0xd9   : > { %v1217_v26 = vsel %vm1209_vm2, %v1208_v13, %v1108_v37 }
  0xda   : > { %v1122_v53 = vpop.permute.xlu0 %1121 }
  0xdb   : > { %v1220_v56 = vsel %vm1218_vm3, %v1211_v40, %v1122_v53 }
  0xdc   : > { %v1126_v28 = vpop.permute.xlu1 %1125 }
  0xdd   : > { %v1224_v38 = vsel %vm1218_vm3, %v1215_v9, %v1126_v28 }
  0xde   : > { %v1124_v8 = vpop.permute.xlu0 %1123 }
  0xdf   : > { %v1222_v27 = vsel %vm1218_vm3, %v1213_v45, %v1124_v8 }
  0xe0   : > { %v1128_v3 = vpop.permute.xlu1 %1127 }
  0xe1   : > { %v1226_v46 = vsel %vm1218_vm3, %v1217_v26, %v1128_v3 }
  0xe2   : > { %v1142_v35 = vpop.permute.xlu0 %1141 }
  0xe3   : > { %v1229_v34 = vsel %vm1227_vm4, %v1220_v56, %v1142_v35 }
  0xe4   : > { %v1146_v12 = vpop.permute.xlu1 %1145 }
  0xe5   : > { %v1233_v42 = vsel %vm1227_vm4, %v1224_v38, %v1146_v12 }
  0xe8   : > { %v1148_v7 = vpop.permute.xlu1 %1147 }
  0xe9   : > { %v1235_v10 = vsel %vm1227_vm4, %v1226_v46, %v1148_v7 }
  0xea   : > { %v1144_v61 = vpop.permute.xlu0 %1143 }
  0xeb   : > { %v1231_v49 = vsel %vm1227_vm4, %v1222_v27, %v1144_v61 }
  0xec   : > { %v1166_v54 = vpop.permute.xlu1 %1165 }
  0xed   : > { %v1242_v39 = vsel %vm1236_vm5, %v1233_v42, %v1166_v54 }
  0xee   : > { %v1162_v5 = vpop.permute.xlu0 %1161  ;;  %1691 = vmatprep.mubr.msk.bf16.mxu1 %vm1281_vm6, %v1242_v39 }
  0xef   : > { %v1238_v19 = vsel %vm1236_vm5, %v1229_v34, %v1162_v5 }
  0xf0   : > { %1687 = vmatprep.mubr.msk.bf16.mxu0 %vm1281_vm6, %v1238_v19  ;;  %v1168_v58 = vpop.permute.xlu1 %1167 }
  0xf1   : > { %v1244_v17 = vsel %vm1236_vm5, %v1235_v10, %v1168_v58 }
  0xf2   : > { %v1164_v50 = vpop.permute.xlu0 %1163  ;;  %1692 = vmatmul.mubr.msk.bf16.vlgmr.msra.gmra.mxu1 %vm1281_vm6, %v1244_v17 }
  0xf3   : > { %v1240_v20 = vsel %vm1236_vm5, %v1231_v49, %v1164_v50 }
  0xf4   : > { %1688 = vmatmul.mubr.msk.bf16.vlgmr.msra.gmra.mxu0 %vm1281_vm6, %v1240_v20 }
 0x1b2   : > { %v1693_v25 = vpop.f32.mrf.mxu1 }
 0x1b3   : > { %v1372_v14 = vmul.f32 %v1693_v25, %v1662_v51 }
 0x1b4   : > { %v1689_v1 = vpop.f32.mrf.mxu0  ;;  %v1344_v63 = vpop.f32.mrf.mxu1 }
 0x1b5   : > { %v1368_v48 = vmul.f32 %v1689_v1, %v1662_v51  ;;  %v1387_v11 = vadd.f32 %v1663_v2, %v1372_v14  ;;  %v1370_v43 = vmul.f32 %v1662_v51, %v1344_v63 }
 0x1b6   : > { %v1328_v6 = vpop.f32.mrf.mxu0  ;;  %v1694_v22 = vpop.f32.mrf.mxu1 }
 0x1b7   : > { %v1383_v41 = vadd.f32 %v1663_v2, %v1368_v48  ;;  %v1395_v23 = vpack.c.bf16 %v1387_v11, %v1387_v11  ;;  %v1366_v52 = vmul.f32 %v1662_v51, %v1328_v6  ;;  %v1385_v33 = vadd.f32 %v1663_v2, %v1370_v43 }
 0x1b8   : > { %v1690_v37 = vpop.f32.mrf.mxu0  ;;  %v1373_v55 = vmul.f32 %v1694_v22, %v1662_v51  ;;  %v1347_v53 = vpop.f32.mrf.mxu1 }
 0x1b9   : > { %v1391_v28 = vpack.c.bf16 %v1383_v41, %v1383_v41  ;;  %1404 = vst.msk [vmem:[%s2395_s26 + $0x18] sm:$0xf] %vm286_vm0, %v1395_v23  ;;  %v1381_v4 = vadd.f32 %v1663_v2, %v1366_v52  ;;  %v1393_v59 = vpack.c.bf16 %v1385_v33, %v1385_v33  ;;  %v1369_v8 = vmul.f32 %v1690_v37, %v1662_v51 }
 0x1ba   : > { %v1388_v3 = vadd.f32 %v1663_v2, %v1373_v55  ;;  %v1331_v21 = vpop.f32.mrf.mxu0  ;;  %v1371_v57 = vmul.f32 %v1662_v51, %v1347_v53 }
 0x1bb   : > { %1400 = vst.msk [vmem:[%s2395_s26 + $0x8] sm:$0xf] %vm286_vm0, %v1391_v28  ;;  %v1389_v0 = vpack.c.bf16 %v1381_v4, %v1381_v4  ;;  %1402 = vst.msk [vmem:[%s2395_s26 + $0x10] sm:$0xf] %vm286_vm0, %v1393_v59  ;;  %v1384_v30 = vadd.f32 %v1663_v2, %v1369_v8  ;;  %v1367_v12 = vmul.f32 %v1662_v51, %v1331_v21 }
 0x1bc   : > { %v1396_v35 = vpack.c.bf16 %v1388_v3, %v1388_v3  ;;  %v1386_v60 = vadd.f32 %v1663_v2, %v1371_v57 }
 0x1bd   : > { %1398 = vst.msk [vmem:[%s2395_s26] sm:$0xf] %vm286_vm0, %v1389_v0  ;;  %v1392_v36 = vpack.c.bf16 %v1384_v30, %v1384_v30  ;;  %v1382_v24 = vadd.f32 %v1663_v2, %v1367_v12 }
 0x1be   : > { %1405 = vst.msk [vmem:[%s2395_s26 + $0x1c] sm:$0xf] %vm286_vm0, %v1396_v35  ;;  %v1394_v47 = vpack.c.bf16 %v1386_v60, %v1386_v60 }
 0x1bf   : > { %1401 = vst.msk [vmem:[%s2395_s26 + $0xc] sm:$0xf] %vm286_vm0, %v1392_v36  ;;  %v1390_v16 = vpack.c.bf16 %v1382_v24, %v1382_v24 }
 0x1c0   : > { %1403 = vst.msk [vmem:[%s2395_s26 + $0x14] sm:$0xf] %vm286_vm0, %v1394_v47 }
 0x1c1   : > { %1399 = vst.msk [vmem:[%s2395_s26 + $0x4] sm:$0xf] %vm286_vm0, %v1390_v16 }
 0x1c2 PF: > { %s14_s17 = sadd.s32 1, %s1778_s17   ;;  %s2443_s15 = smov %s1774_s16 }
 0x1c3   : > { %p11_p5 = scmp.ge.s32.totalorder %s14_s17, 4   ;;  %s2444_s16 = smov %s2446_s18 }
 0x1c5   :  { %13 = sbr.rel (!%p11_p5) target bundleno = 2 (0x2), region = 83 }

// kernel: basic_rfb_apply.19
= control target key start
LH: loop header
LB: loop body
LE: loop exit
PB: predicated region body
PF: predicated region fallthrough
CT: control target
= control target key end

     0   :  { %s2090_s0 = inlined_call_operand.vmem [shape: bf16[2,8,8,8], index: 0, kind: input, shape index: {}]   ;;  %s2091_s1 = inlined_call_operand.vmem [shape: bf16[2,8,8,8], index: 1, kind: input, shape index: {}]   ;;  %s2092_s2 = inlined_call_operand.vmem [shape: bf16[2,8,8,8], index: 2, kind: input, shape index: {}]   ;;  %s2093_s3 = inlined_call_operand.vmem [shape: bf16[2,8,8,32], index: 3, kind: input, shape index: {}]   ;;  %s2094_s4 = inlined_call_operand.vmem [shape: bf16[8,32], index: 4, kind: input, shape index: {}]   ;;  %s2095_s5 = inlined_call_operand.vmem [shape: bf16[8,32], index: 5, kind: input, shape index: {}]   ;;  %s2096_s6 = inlined_call_operand.vmem [shape: bf16[8,32], index: 6, kind: input, shape index: {}]   ;;  %s2097_s7 = inlined_call_operand.vmem [shape: bf16[32,32], index: 7, kind: input, shape index: {}]   ;;  %s2098_s8 = inlined_call_operand.vmem [shape: f32[1,32], index: 8, kind: input, shape index: {}]   ;;  %s2099_s9 = inlined_call_operand.vmem [shape: f32[1,32], index: 9, kind: input, shape index: {}]   ;;  %s2100_s10 = inlined_call_operand.vmem [shape: f32[1,32], index: 10, kind: input, shape index: {}]   ;;  %s2101_s11 = inlined_call_operand.vmem [shape: f32[1,32], index: 11, kind: input, shape index: {}]   ;;  %s2102_s12 = inlined_call_operand.hbm [shape: f32[2,8,8,32], index: 12, kind: output, shape index: {}]  }
   0x1   :  { %2104 = sst [smem:[#allocation6_spill]] %s2094_s4 }
   0x2   :  { %2105 = sst [smem:[#allocation7_spill]] %s2095_s5 }
   0x3   :  { %17 = vsyncpa [#allocation3], 0 }
   0x4   :  { %19 = vsyncpa [#allocation3 + $0x1], 0  ;;  %s1855_s21 = smov 0   ;;  %s1857_s22 = smov 0  }
   0x5   :  { %s1859_s23 = smov 0   ;;  %s1861_s24 = smov 0  }
   0x6   :  { %s1863_s25 = smov 0   ;;  %s1865_s26 = smov 0  }
   0x7 LB: > { %s1498_s27 = sadd.s32 4294967295, %s1785_s26   ;;  %s1499_s28 = sadd.s32 4294967294, %s1785_s26   ;;  %s1785_s26 = sphi %s1865_s26, %s25_s26   ;;  %s1781_s25 = sphi %s1863_s25, %s2116_s25   ;;  %s1777_s24 = sphi %s1861_s24, %s2115_s24   ;;  %s1773_s23 = sphi %s1859_s23, %s2114_s23   ;;  %s1769_s22 = sphi %s1857_s22, %s2113_s22   ;;  %s1765_s21 = sphi %s1855_s21, %s2112_s21  }
   0x8   : > { %s40_s29 = sadd.s32 1, %s1781_s25  ;;  %s375_s30 = sadd.s32 1, %s1773_s23 }
   0x9   : > { %p42_p0 = scmp.ge.s32.totalorder %s40_s29, 2  ;;  %p385_p1 = scmp.ne.s32.totalorder %s1773_s23, %s1769_s22 }
   0xa   : > { %p386_p2 = scmp.eq.s32.totalorder %s1498_s27, 1  ;;  %p391_p3 = scmp.ne.s32.totalorder %s1769_s22, %s1765_s21 }
   0xb   : > { %s2118_s29 = smov (%p42_p0, %s40_s29), 0  ;;  %p392_p5 = scmp.eq.s32.totalorder %s1499_s28, 1 }
   0xc   : > { %2106 = sst [smem:[#allocation5_spill]] %s2118_s29  ;;  %p1895_p4 = por %p386_p2, %p385_p1 }
   0xd   : > { %s368_s14 = ssub.s32 %s1781_s25, %s2118_s29  ;;  %p1510_p6 = scmp.ge.s32.totalorder %s1785_s26, 1 }
   0xe   : > { %p373_p7 = scmp.eq.s32.totalorder %s368_s14, 0  ;;  %p1902_p8 = por %p392_p5, %p391_p3 }
   0xf   : > { %p514_p9 = scmp.lt.s32.totalorder %s1785_s26, 3 }
  0x10   : > { %s1908_s16 = scalar_select %p373_p7, %s1773_s23, %s375_s30  }
  0x11   : > { %p515_p10 = pnand %p1510_p6, %p514_p9 }
  0x12   : > { %s2109_s5 = sld [smem:[#allocation7_spill]] (!%p515_p10)  ;;  %p616_p11 = scmp.lt.s32.totalorder (!%p515_p10), %s1777_s24, 1 }
  0x13   : > { %518 = sbr.rel (%p515_p10) target bundleno = 279 (0x117), region = 68  ;;  %s2110_s4 = sld [smem:[#allocation6_spill]] (!%p515_p10) }
  0x14   : > { %s1787_s29 = smov (!%p515_p10), [#allocation2]  }
  0x18   : > { %v702_v0 = vld [vmem:[%s2109_s5] sm:$0xf]  ;;  %vm736_vm0 = vcmask 1043456   ;;  %v1695_v5 = vld [vmem:[%s2097_s7 + $0x8] sm:$0xff]   ;;  %s617_s17 = scalar_select %p616_p11, %s1777_s24, 1  ;;  %vm723_vm1 = vcmask 64512  }
  0x19   : > { %v693_v1 = vld [vmem:[%s2110_s4] sm:$0xf]  ;;  %1631 = vmatprep.subr.msk.bf16.mxu0 %vm736_vm0, %v702_v0  ;;  %v738_v2 = vsel %vm736_vm0, %v702_v0, 0  ;;  %vm1096_vm2 = vcmask 261120  }
  0x1a   : > { %1632 = vmatprep.subr.msk.bf16.mxu1 %vm736_vm0, %v693_v1  ;;  %v838_v3 = vsel %vm736_vm0, %v693_v1, 0  ;;  %v913_v4 = vld [vmem:[%s2096_s6] sm:$0xf]  ;;  %1590 = vmatpush3.bf16.msra.mxu0 %v738_v2  ;;  %s1563_s18 = sshll.u32 %s617_s17, 5  ;;  %s612_s17 = sand.u32 1, %s1769_s22  }
  0x1b   : > { %1600 = vmatpush3.bf16.msra.mxu1 %v838_v3  ;;  %1633 = vmatprep.subr.msk.bf16.mxu0 %vm736_vm0, %v913_v4  ;;  %s633_s4 = scalar_lea.vmem %s2091_s1, %s1563_s18  ;;  %s623_s27 = scalar_lea.vmem %s2090_s0, %s1563_s18  ;;  %v1700_v8 = vld [vmem:[%s2097_s7] sm:$0xff]   ;;  %v947_v10 = vsel %vm736_vm0, %v913_v4, 0 }
  0x1c   : > { %1619 = vmatprep.subr.bf16.mxu1 %v1695_v5  ;;  %v1691_v6 = vld [vmem:[%s633_s4] sm:$0xff]   ;;  %v1693_v9 = vld [vmem:[%s633_s4 + $0x8] sm:$0xff]   ;;  %v1696_v12 = vld [vmem:[%s633_s4 + $0x10] sm:$0xff]   ;;  %s643_s14 = scalar_lea.vmem %s2092_s2, %s1563_s18  ;;  %s653_s20 = scalar_lea.vmem %s2093_s3, %s1563_s18 }
  0x1d   : > { %v1692_v7 = vld [vmem:[%s623_s27] sm:$0xff]   ;;  %1591 = vmatprep.mubr.msk.bf16.mxu0 %vm723_vm1, %v1691_v6  ;;  %v1694_v11 = vld [vmem:[%s623_s27 + $0x8] sm:$0xff]   ;;  %v1697_v13 = vld [vmem:[%s623_s27 + $0x10] sm:$0xff]   ;;  %s1511_s19 = sshll.u32 %s612_s17, 6 }
  0x1e   : > { %1601 = vmatprep.mubr.msk.bf16.mxu1 %vm723_vm1, %v1692_v7  ;;  %1592 = vmatmul.mubr.msk.bf16.vlgmr.msra.gmra.mxu0 %vm723_vm1, %v1693_v9  ;;  %v1698_v14 = vld [vmem:[%s633_s4 + $0x18] sm:$0xff]   ;;  %v1701_v16 = vld [vmem:[%s643_s14] sm:$0xff]   ;;  %v1703_v18 = vld [vmem:[%s643_s14 + $0x8] sm:$0xff]   ;;  %s1567_s4 = sshll.u32 %s1777_s24, 10  ;;  %s2045_s24 = scalar_lea.sflag [#allocation3], %s612_s17 }
  0x1f   : > { %1602 = vmatmul.mubr.msk.bf16.vlgmr.msra.gmra.mxu1 %vm723_vm1, %v1694_v11  ;;  %1610 = vmatpush3.bf16.msra.mxu0 %v947_v10  ;;  %v1699_v15 = vld [vmem:[%s623_s27 + $0x18] sm:$0xff]   ;;  %v1702_v17 = vld [vmem:[%s653_s20] sm:$0xff]   ;;  %v1704_v19 = vld [vmem:[%s653_s20 + $0x8] sm:$0xff]   ;;  %s2035_s30 = scalar_lea.hbm %s2102_s12, %s1567_s4 }
  0x20   : > { %1620 = vmatpush3.bf16.msra.mxu1 %v1695_v5  ;;  %1595 = vmatprep.mubr.msk.bf16.mxu0 %vm723_vm1, %v1696_v12  ;;  %v1705_v20 = vld [vmem:[%s643_s14 + $0x10] sm:$0xff]   ;;  %v1707_v22 = vld [vmem:[%s643_s14 + $0x18] sm:$0xff]   ;;  %v1964_v41 = vld [vmem:[%s2100_s10] ss:$0 sm:$0xff]  ;;  %s1713_s14 = sshll.u32 %s1787_s29, 4  ;;  %s1714_s14 = int_to_ptr.vmem [resolvable:$false] %s1713_s14 }
  0x21   : > { %1605 = vmatprep.mubr.msk.bf16.mxu1 %vm723_vm1, %v1697_v13  ;;  %1621 = vmatprep.subr.bf16.mxu1 %v1700_v8  ;;  %v1706_v21 = vld [vmem:[%s653_s20 + $0x10] sm:$0xff]   ;;  %v1708_v23 = vld [vmem:[%s653_s20 + $0x18] sm:$0xff]   ;;  %v1969_v43 = vld [vmem:[%s2098_s8] ss:$0 sm:$0xff]  ;;  %s2003_s20 = scalar_lea.vmem [#allocation2], %s1511_s19  ;;  %s1715_s19 = scalar_lea.vmem %s1714_s14, 2048 }
  0x22   : > { %v1974_v47 = vld [vmem:[%s2099_s9] ss:$0 sm:$0xff]  ;;  %s1253_s18 = sshll.u32 %s2003_s20, 4  ;;  %s2037_s18 = int_to_ptr.vmem [resolvable:$true] %s1253_s18 }
  0x23   : > { %v1980_v49 = vld [vmem:[%s2101_s11] ss:$0 sm:$0xff]  ;;  %s1709_s5 = scalar_lea.vmem %s2037_s18, 1024  ;;  %p1716_p1 = scmp.lt.s32.totalorder %s2037_s18, %s1714_s14 }
  0x24   : > { %1622 = vmatpush3.bf16.msra.mxu1 %v1700_v8  ;;  %p1710_p12 = scmp.ne.s32.totalorder %s2037_s18, %s1709_s5  ;;  %p1717_p2 = scmp.lt.s32.totalorder %s1715_s19, %s1709_s5 }
  0x26   : > { %1596 = vmatmul.mubr.msk.bf16.gmra.mxu0 %vm723_vm1, %v1698_v14  ;;  %p1711_p13 = pnand %p1710_p12, %p1895_p4  ;;  %p1718_p3 = por %p1717_p2, %p1716_p1 }
  0x27   : > { %1606 = vmatmul.mubr.msk.bf16.gmra.mxu1 %vm723_vm1, %v1699_v15  ;;  %1611 = vmatprep.mubr.msk.bf16.mxu0 %vm723_vm1, %v1701_v16 }
  0x28   : > { %1623 = vmatprep.mubr.msk.bf16.mxu1 %vm1096_vm2, %v1702_v17  ;;  %p1712_p0 = pneg %p1711_p13 }
  0x2a   : > { %p1719_p5 = pnand %p1718_p3, %p1712_p0 }
  0x2e   : > { %1612 = vmatmul.mubr.msk.bf16.vlgmr.msra.gmra.mxu0 %vm723_vm1, %v1703_v18 }
  0x2f   : > { %1624 = vmatmul.mubr.msk.bf16.vlgmr.msra.gmra.mxu1 %vm1096_vm2, %v1704_v19  ;;  %1615 = vmatprep.mubr.msk.bf16.mxu0 %vm723_vm1, %v1705_v20 }
  0x30   : > { %1627 = vmatprep.mubr.msk.bf16.mxu1 %vm1096_vm2, %v1706_v21 }
  0x36   : > { %1616 = vmatmul.mubr.msk.bf16.gmra.mxu0 %vm723_vm1, %v1707_v22 }
  0x37   : > { %1628 = vmatmul.mubr.msk.bf16.gmra.mxu1 %vm1096_vm2, %v1708_v23 }
  0xde   : > { %v1593_v24 = vpop.f32.mrf.mxu0 }
  0xdf   : > { %v1603_v25 = vpop.f32.mrf.mxu1 }
  0xe0   : > { %v774_v26 = vpop.f32.mrf.mxu0  ;;  %v883_v39 = vadd.f32 %v1603_v25, %v1593_v24 }
  0xe1   : > { %v874_v27 = vpop.f32.mrf.mxu1 }
  0xe2   : > { %v1594_v28 = vpop.f32.mrf.mxu0  ;;  %v875_v44 = vadd.f32 %v874_v27, %v774_v26 }
  0xe3   : > { %v1604_v29 = vpop.f32.mrf.mxu1 }
  0xe4   : > { %v777_v30 = vpop.f32.mrf.mxu0  ;;  %v886_v51 = vadd.f32 %v1604_v29, %v1594_v28 }
  0xe5   : > { %v877_v31 = vpop.f32.mrf.mxu1 }
  0xe6   : > { %v1597_v32 = vpop.f32.mrf.mxu0  ;;  %v878_v55 = vadd.f32 %v877_v31, %v777_v30 }
  0xe7   : > { %v1607_v33 = vpop.f32.mrf.mxu1 }
  0xe8   : > { %v790_v34 = vpop.f32.mrf.mxu0  ;;  %v899_v63 = vadd.f32 %v1607_v33, %v1597_v32 }
  0xe9   : > { %v890_v35 = vpop.f32.mrf.mxu1 }
  0xea   : > { %v1598_v36 = vpop.f32.mrf.mxu0  ;;  %v891_v7 = vadd.f32 %v890_v35, %v790_v34 }
  0xeb   : > { %v1608_v37 = vpop.f32.mrf.mxu1 }
  0xec   : > { %v793_v38 = vpop.f32.mrf.mxu0  ;;  %v902_v8 = vadd.f32 %v1608_v37, %v1598_v36 }
  0xed   : > { %v893_v40 = vpop.f32.mrf.mxu1 }
  0xee   : > { %v1613_v42 = vpop.f32.mrf.mxu0  ;;  %v894_v17 = vadd.f32 %v893_v40, %v793_v38 }
  0xef   : > { %v1016_v45 = vadd.f32 %v1613_v42, %v883_v39  ;;  %v1625_v46 = vpop.f32.mrf.mxu1 }
  0xf0   : > { %v1183_v48 = vmul.f32 %v1625_v46, %v1964_v41  ;;  %v983_v50 = vpop.f32.mrf.mxu0 }
  0xf1   : > { %v1031_v52 = vmul.f32 %v1969_v43, %v1016_v45  ;;  %v1014_v53 = vadd.f32 %v983_v50, %v875_v44  ;;  %v1143_v54 = vpop.f32.mrf.mxu1 }
  0xf2   : > { %v1181_v56 = vmul.f32 %v1964_v41, %v1143_v54  ;;  %v1614_v57 = vpop.f32.mrf.mxu0  ;;  %v1198_v59 = vadd.f32 %v1980_v49, %v1183_v48 }
  0xf3   : > { %v1046_v58 = vadd.f32 %v1974_v47, %v1031_v52  ;;  %v1029_v60 = vmul.f32 %v1969_v43, %v1014_v53  ;;  %v1017_v61 = vadd.f32 %v1614_v57, %v886_v51  ;;  %v1626_v62 = vpop.f32.mrf.mxu1 }
  0xf4   : > { %v1184_v0 = vmul.f32 %v1626_v62, %v1964_v41  ;;  %v986_v1 = vpop.f32.mrf.mxu0  ;;  %v1196_v9 = vadd.f32 %v1980_v49, %v1181_v56 }
  0xf5   : > { %v1206_v2 = vmul.f32 0.1, %v1046_v58  ;;  %v1044_v3 = vadd.f32 %v1974_v47, %v1029_v60  ;;  %v1032_v4 = vmul.f32 %v1969_v43, %v1017_v61  ;;  %v1015_v5 = vadd.f32 %v986_v1, %v878_v55  ;;  %v1146_v6 = vpop.f32.mrf.mxu1 }
  0xf6   : > { %v1182_v10 = vmul.f32 %v1964_v41, %v1146_v6  ;;  %v1617_v11 = vpop.f32.mrf.mxu0  ;;  %v1199_v18 = vadd.f32 %v1980_v49, %v1184_v0 }
  0xf7   : > { %v1214_v12 = vadd.f32 %v1206_v2, %v1198_v59  ;;  %v1204_v13 = vmul.f32 0.1, %v1044_v3  ;;  %v1047_v14 = vadd.f32 %v1974_v47, %v1032_v4  ;;  %v1030_v15 = vmul.f32 %v1969_v43, %v1015_v5  ;;  %v1629_v16 = vpop.f32.mrf.mxu1 }
  0xf8   : > { %v1020_v19 = vadd.f32 %v1617_v11, %v899_v63  ;;  %v1187_v20 = vmul.f32 %v1629_v16, %v1964_v41  ;;  %v999_v21 = vpop.f32.mrf.mxu0  ;;  %v1197_v27 = vadd.f32 %v1980_v49, %v1182_v10 }
  0xf9   : > { %v1222_v22 = vmax.f32 %v1214_v12, 0.0  ;;  %v1212_v23 = vadd.f32 %v1204_v13, %v1196_v9  ;;  %v1207_v24 = vmul.f32 0.1, %v1047_v14  ;;  %v1045_v25 = vadd.f32 %v1974_v47, %v1030_v15  ;;  %v1159_v26 = vpop.f32.mrf.mxu1 }
  0xfa   : > { %v1035_v28 = vmul.f32 %v1969_v43, %v1020_v19  ;;  %v1202_v29 = vadd.f32 %v1980_v49, %v1187_v20  ;;  %v1018_v30 = vadd.f32 %v999_v21, %v891_v7  ;;  %v1618_v31 = vpop.f32.mrf.mxu0  ;;  %v1185_v39 = vmul.f32 %v1964_v41, %v1159_v26 }
  0xfb   : > { %1230 = vst.msk [vmem:[%s2003_s20 + $0x10] sm:$0xff] %vm1096_vm2, %v1222_v22  ;;  %v1220_v32 = vmax.f32 %v1212_v23, 0.0  ;;  %v1215_v33 = vadd.f32 %v1207_v24, %v1199_v18  ;;  %v1205_v34 = vmul.f32 0.1, %v1045_v25  ;;  %v1021_v35 = vadd.f32 %v1618_v31, %v902_v8  ;;  %v1630_v36 = vpop.f32.mrf.mxu1 }
  0xfc   : > { %v1050_v37 = vadd.f32 %v1974_v47, %v1035_v28  ;;  %v1033_v38 = vmul.f32 %v1969_v43, %v1018_v30  ;;  %v1188_v40 = vmul.f32 %v1630_v36, %v1964_v41  ;;  %v1002_v42 = vpop.f32.mrf.mxu0  ;;  %v1200_v59 = vadd.f32 %v1980_v49, %v1185_v39 }
  0xfd   : > { %1228 = vst.msk [vmem:[%s2003_s20] sm:$0xff] %vm1096_vm2, %v1220_v32  ;;  %v1223_v44 = vmax.f32 %v1215_v33, 0.0  ;;  %v1213_v45 = vadd.f32 %v1205_v34, %v1197_v27  ;;  %v1036_v46 = vmul.f32 %v1969_v43, %v1021_v35  ;;  %v1019_v48 = vadd.f32 %v1002_v42, %v894_v17  ;;  %v1162_v50 = vpop.f32.mrf.mxu1 }
  0xfe   : > { %v1210_v51 = vmul.f32 0.1, %v1050_v37  ;;  %v1048_v52 = vadd.f32 %v1974_v47, %v1033_v38  ;;  %v1186_v56 = vmul.f32 %v1964_v41, %v1162_v50  ;;  %v1203_v61 = vadd.f32 %v1980_v49, %v1188_v40 }
  0xff   : > { %1231 = vst.msk [vmem:[%s2003_s20 + $0x18] sm:$0xff] %vm1096_vm2, %v1223_v44  ;;  %v1221_v53 = vmax.f32 %v1213_v45, 0.0  ;;  %v1051_v54 = vadd.f32 %v1974_v47, %v1036_v46  ;;  %v1034_v55 = vmul.f32 %v1969_v43, %v1019_v48 }
 0x100   : > { %v1218_v57 = vadd.f32 %v1210_v51, %v1202_v29  ;;  %v1208_v58 = vmul.f32 0.1, %v1048_v52  ;;  %v1201_v41 = vadd.f32 %v1980_v49, %v1186_v56 }
 0x101   : > { %1229 = vst.msk [vmem:[%s2003_s20 + $0x8] sm:$0xff] %vm1096_vm2, %v1221_v53  ;;  %v1211_v60 = vmul.f32 0.1, %v1051_v54  ;;  %v1049_v62 = vadd.f32 %v1974_v47, %v1034_v55 }
 0x102   : > { %v1226_v63 = vmax.f32 %v1218_v57, 0.0  ;;  %v1216_v0 = vadd.f32 %v1208_v58, %v1200_v59 }
 0x103   : > { %v1219_v43 = vadd.f32 %v1211_v60, %v1203_v61  ;;  %v1209_v1 = vmul.f32 0.1, %v1049_v62 }
 0x104   : > { %1234 = vst.msk [vmem:[%s2003_s20 + $0x30] sm:$0xff] %vm1096_vm2, %v1226_v63  ;;  %v1224_v2 = vmax.f32 %v1216_v0, 0.0 }
 0x105   : > { %v1227_v3 = vmax.f32 %v1219_v43, 0.0  ;;  %v1217_v4 = vadd.f32 %v1209_v1, %v1201_v41 }
 0x106   : > { %1232 = vst.msk [vmem:[%s2003_s20 + $0x20] sm:$0xff] %vm1096_vm2, %v1224_v2 }
 0x107   : > { %1235 = vst.msk [vmem:[%s2003_s20 + $0x38] sm:$0xff] %vm1096_vm2, %v1227_v3  ;;  %v1225_v47 = vmax.f32 %v1217_v4, 0.0 }
 0x109   : > { %1233 = vst.msk [vmem:[%s2003_s20 + $0x28] sm:$0xff] %vm1096_vm2, %v1225_v47 }
 0x10a   : > { %1722 = shalt.err (!%p1719_p5)
}
 0x10b   : > { %s1723_s17 = scalar_lea.hbm %s2035_s30, 1024  ;;  %s1727_s27 = scalar_lea.hbm %s2102_s12, 2048 }
 0x10c   : > { %p1724_p6 = scmp.ne.s32.totalorder %s2035_s30, %s1723_s17  ;;  %p1728_p10 = scmp.lt.s32.totalorder %s2035_s30, %s2102_s12 }
 0x10d   : > { %p1729_p11 = scmp.lt.s32.totalorder %s1727_s27, %s1723_s17 }
 0x10e   : > { %p1725_p7 = pnand %p1724_p6, %p1895_p4 }
 0x10f   : > { %p1730_p12 = por %p1729_p11, %p1728_p10 }
 0x110   : > { %p1726_p9 = pneg %p1725_p7 }
 0x112   : > { %p1731_p13 = pnand %p1730_p12, %p1726_p9 }
 0x114   : > { %1734 = shalt.err (!%p1731_p13)
}
 0x115   : > { %s1788_s5 = smov 128   ;;  %s1789_s14 = smov 8  }
 0x116   : > { %1634 = dma.vmem_to_hbm [thread:$0]  (%p1895_p4), %s2037_s18, 1024, %s2035_s30, %s2045_s24, %s1788_s5, %s1788_s5, %s1789_s14  }
 0x117 PF: > { %p1640_p0 = scmp.ge.s32.totalorder %s1785_s26, 2  ;;  %s1268_s19 = sand.u32 1, %s1765_s21  }
 0x118   : > { %s1269_s17 = scalar_lea.sflag [#allocation3], %s1268_s19 }
 0x119   : > { %p1637_p1 = pnand %p1640_p0, %p1902_p8 }
 0x11b   : > { %p1638_p2 = pneg %p1637_p1 }
 0x11d   : > { %1760 = dma.done.wait (%p1638_p2), %s1269_s17, 1024  }
 0x11e   : > { %1762 = vsyncadd (%p1638_p2), %s1269_s17, 4294966272  ;;  %s25_s26 = sadd.s32 1, %s1785_s26   ;;  %s2111_s13 = sld [smem:[#allocation5_spill]] }
 0x11f   : > { %p22_p3 = scmp.ge.s32.totalorder %s25_s26, 4   ;;  %s2112_s21 = smov %s1769_s22 }
 0x120   : > { %s2113_s22 = smov %s1773_s23  ;;  %s2114_s23 = smov %s1908_s16 }
 0x121   : > { %s2115_s24 = smov %s1781_s25  ;;  %24 = sbr.rel (!%p22_p3) target bundleno = 7 (0x7), region = 136 }
 0x124   : > { %s2116_s25 = smov %s2111_s13 }
 0x126   :  { %1274 = vsyncpa [#allocation3], 1 }
 0x127   :  { %1276 = vsyncpa [#allocation3 + $0x1], 1 }

</bundles_post_ra>
